<compile_context>
chip_gen: v5e
topology: v5e:2x2
jax: 0.10.0
libtpu: 0.0.40
codegen_flags: <defaults>
</compile_context>

<pallas_src>
import functools

import numpy as np
import jax
import jax.numpy as jnp
from jax import lax
from jax.experimental import pallas as pl
from jax.experimental.pallas import tpu as pltpu


# ----------------------------------------------------------------------------
# One-time host-side weight preprocessing (hoisted out of the forward path)
# ----------------------------------------------------------------------------
def _convT_as_matrix(w, H, W, stride, pad, out_pad):
    """Fold ConvTranspose2d(w) acting on a (Cin, H, W) input into a dense matrix.

    w: (Cin, Cout, k, k) numpy array (PyTorch ConvTranspose2d layout).
    Returns M with shape (Cin*H*W, Cout*Ho*Wo) such that
      flatten_CHW(out) = flatten_CHW(x) @ M     (bias excluded).
    """
    Cin, Cout, k, _ = w.shape
    Ho = (H - 1) * stride - 2 * pad + k + out_pad
    Wo = (W - 1) * stride - 2 * pad + k + out_pad
    M = np.zeros((Cin * H * W, Cout * Ho * Wo), np.float32)
    ci = np.arange(Cin)
    co = np.arange(Cout)
    for ii in range(H):
        for jj in range(W):
            for ki in range(k):
                for kj in range(k):
                    io = ii * stride - pad + ki
                    jo = jj * stride - pad + kj
                    if 0 <= io < Ho and 0 <= jo < Wo:
                        rows = ci * (H * W) + ii * W + jj
                        cols = co * (Ho * Wo) + io * Wo + jo
                        # each (row, col) pair is hit at most once
                        M[np.ix_(rows, cols)] = w[:, :, ki, kj]
    return M, Ho, Wo


def init_params(key, input_dim, encoded_dim):
    """Raw parameters in PyTorch layouts."""
    ks = jax.random.split(key, 8)
    return {
        "lin_w": jax.random.normal(ks[0], (encoded_dim, 3 * 3 * 32), jnp.float32) * 0.05,
        "lin_b": jax.random.normal(ks[1], (3 * 3 * 32,), jnp.float32) * 0.05,
        "w1": jax.random.normal(ks[2], (32, 16, 3, 3), jnp.float32) * 0.05,
        "b1": jax.random.normal(ks[3], (16,), jnp.float32) * 0.05,
        "w2": jax.random.normal(ks[4], (16, 8, 3, 3), jnp.float32) * 0.05,
        "b2": jax.random.normal(ks[5], (8,), jnp.float32) * 0.05,
        "w3": jax.random.normal(ks[6], (8, input_dim, 3, 3), jnp.float32) * 0.05,
        "b3": jax.random.normal(ks[7], (input_dim,), jnp.float32) * 0.05,
    }


def prepare_decoder(raw):
    """One-time prep: dense per-layer matrices, broadcast biases, bf16 cast."""
    m1, _, _ = _convT_as_matrix(np.asarray(raw["w1"]), 3, 3, 2, 0, 0)     # (288, 16*7*7)
    m2, _, _ = _convT_as_matrix(np.asarray(raw["w2"]), 7, 7, 2, 1, 1)     # (784, 8*14*14)
    m3, _, _ = _convT_as_matrix(np.asarray(raw["w3"]), 14, 14, 2, 1, 1)   # (1568, Cin*28*28)
    c1 = np.repeat(np.asarray(raw["b1"]), 7 * 7)[None, :]
    c2 = np.repeat(np.asarray(raw["b2"]), 14 * 14)[None, :]
    c3 = np.repeat(np.asarray(raw["b3"]), 28 * 28)[None, :]
    return {
        "wl": jnp.asarray(raw["lin_w"], jnp.bfloat16),
        "bl": jnp.asarray(np.asarray(raw["lin_b"])[None, :], jnp.float32),
        "m1": jnp.asarray(m1, jnp.bfloat16), "c1": jnp.asarray(c1, jnp.float32),
        "m2": jnp.asarray(m2, jnp.bfloat16), "c2": jnp.asarray(c2, jnp.float32),
        "m3": jnp.asarray(m3, jnp.bfloat16), "c3": jnp.asarray(c3, jnp.float32),
    }


# ----------------------------------------------------------------------------
# Fused Pallas kernel: the entire decoder forward on VMEM-resident data
# ----------------------------------------------------------------------------
def _decoder_kernel(x_ref, wl_ref, bl_ref, m1_ref, c1_ref, m2_ref, c2_ref,
                    m3_ref, c3_ref, o_ref):
    def layer(h, w_ref, b_ref):
        # bf16 x bf16 -> f32 accumulate on the MXU; bias + ReLU in f32.
        acc = jnp.dot(h.astype(jnp.bfloat16), w_ref[...],
                      preferred_element_type=jnp.float32)
        return jnp.maximum(acc + b_ref[...], 0.0)

    h = layer(x_ref[...], wl_ref, bl_ref)   # Linear + ReLU            (B, 288)
    h = layer(h, m1_ref, c1_ref)            # ConvT(32->16, 3x3->7x7)  (B, 784)
    h = layer(h, m2_ref, c2_ref)            # ConvT(16->8, 7x7->14x14) (B, 1568)
    h = layer(h, m3_ref, c3_ref)            # ConvT(8->Co, ->28x28)    (B, Co*784)
    o_ref[...] = h


def _full_spec(a):
    return pl.BlockSpec(a.shape, lambda i: (0, 0))


@functools.partial(jax.jit, static_argnames=("input_dim",))
def decoder_forward(x, fused, input_dim):
    B = x.shape[0]
    n_out = input_dim * 28 * 28
    operands = (x, fused["wl"], fused["bl"], fused["m1"], fused["c1"],
                fused["m2"], fused["c2"], fused["m3"], fused["c3"])
    out = pl.pallas_call(
        _decoder_kernel,
        out_shape=jax.ShapeDtypeStruct((B, n_out), jnp.float32),
        grid=(1,),
        in_specs=[_full_spec(a) for a in operands],
        out_specs=pl.BlockSpec((B, n_out), lambda i: (0, 0)),
        compiler_params=pltpu.CompilerParams(
            dimension_semantics=("arbitrary",),
            vmem_limit_bytes=32 * 1024 * 1024),
    )(*operands)
    # CHW column ordering of the last layer -> trivial row-major reshape.
    return out.reshape(B, input_dim, 28, 28)


# ----------------------------------------------------------------------------
# Pure-JAX reference (bf16-matched, validates the folded-matrix construction)
# ----------------------------------------------------------------------------
def _bf16(v):
    return v.astype(jnp.bfloat16).astype(jnp.float32)


def _ref_conv_transpose(x, w, b, stride, pad, out_pad):
    k = w.shape[2]
    rhs = jnp.transpose(w[:, :, ::-1, ::-1], (1, 0, 2, 3))   # (Cout, Cin, k, k)
    y = lax.conv_general_dilated(
        x, rhs, window_strides=(1, 1),
        padding=[(k - 1 - pad, k - 1 - pad + out_pad)] * 2,
        lhs_dilation=(stride, stride),
        dimension_numbers=("NCHW", "OIHW", "NCHW"),
        precision=lax.Precision.HIGHEST)
    return y + b[None, :, None, None]


def decoder_forward_ref(x, raw):
    h = jnp.maximum(jnp.dot(_bf16(x), _bf16(raw["lin_w"]),
                            precision=lax.Precision.HIGHEST) + raw["lin_b"], 0.0)
    h = h.reshape(x.shape[0], 32, 3, 3)
    h = jnp.maximum(_ref_conv_transpose(_bf16(h), _bf16(raw["w1"]), raw["b1"], 2, 0, 0), 0.0)
    h = jnp.maximum(_ref_conv_transpose(_bf16(h), _bf16(raw["w2"]), raw["b2"], 2, 1, 1), 0.0)
    h = jnp.maximum(_ref_conv_transpose(_bf16(h), _bf16(raw["w3"]), raw["b3"], 2, 1, 1), 0.0)
    return h


if __name__ == "__main__":
    batch, input_dim, encoded_dim = 2, 1, 128
    key = jax.random.PRNGKey(0)
    kx, kp = jax.random.split(key)
    x = jax.random.normal(kx, (batch, encoded_dim), jnp.float32)

    raw = init_params(kp, input_dim, encoded_dim)
    fused = prepare_decoder(raw)          # one-time, hoisted out of forward

    out = jax.block_until_ready(decoder_forward(x, fused, input_dim))
    assert out.shape == (batch, input_dim, 28, 28), out.shape

    ref = jax.block_until_ready(decoder_forward_ref(x, raw))
    np.testing.assert_allclose(np.asarray(out), np.asarray(ref),
                               rtol=1e-3, atol=1e-3)
    print("KERNEL_OK")
</pallas_src>

<mosaic_0001>
module attributes {stable_mosaic.version = 11 : i64} {
  func.func @_decoder_kernel(%arg0: i32, %arg1: memref<2x128xf32, #tpu.memory_space<vmem>>, %arg2: memref<128x288xbf16, #tpu.memory_space<vmem>>, %arg3: memref<1x288xf32, #tpu.memory_space<vmem>>, %arg4: memref<288x784xbf16, #tpu.memory_space<vmem>>, %arg5: memref<1x784xf32, #tpu.memory_space<vmem>>, %arg6: memref<784x1568xbf16, #tpu.memory_space<vmem>>, %arg7: memref<1x1568xf32, #tpu.memory_space<vmem>>, %arg8: memref<1568x784xbf16, #tpu.memory_space<vmem>>, %arg9: memref<1x784xf32, #tpu.memory_space<vmem>>, %arg10: memref<2x784xf32, #tpu.memory_space<vmem>>) attributes {dimension_semantics = [#tpu.dimension_semantics<arbitrary>], iteration_bounds = array<i64: 1>, scalar_prefetch = 0 : i64, scratch_operands = 0 : i64, tpu.core_type = #tpu.core_type<tc>, window_params = [{pipeline_mode = #tpu.pipeline_mode<synchronous>, transform_indices = @transform_0, window_bounds = array<i64: 2, 128>}, {pipeline_mode = #tpu.pipeline_mode<synchronous>, transform_indices = @transform_1, window_bounds = array<i64: 128, 288>}, {pipeline_mode = #tpu.pipeline_mode<synchronous>, transform_indices = @transform_2, window_bounds = array<i64: 1, 288>}, {pipeline_mode = #tpu.pipeline_mode<synchronous>, transform_indices = @transform_3, window_bounds = array<i64: 288, 784>}, {pipeline_mode = #tpu.pipeline_mode<synchronous>, transform_indices = @transform_4, window_bounds = array<i64: 1, 784>}, {pipeline_mode = #tpu.pipeline_mode<synchronous>, transform_indices = @transform_5, window_bounds = array<i64: 784, 1568>}, {pipeline_mode = #tpu.pipeline_mode<synchronous>, transform_indices = @transform_6, window_bounds = array<i64: 1, 1568>}, {pipeline_mode = #tpu.pipeline_mode<synchronous>, transform_indices = @transform_7, window_bounds = array<i64: 1568, 784>}, {pipeline_mode = #tpu.pipeline_mode<synchronous>, transform_indices = @transform_8, window_bounds = array<i64: 1, 784>}, {pipeline_mode = #tpu.pipeline_mode<synchronous>, transform_indices = @transform_9, window_bounds = array<i64: 2, 784>}]} {
    %c0 = arith.constant 0 : index
    %c0_0 = arith.constant 0 : index
    %0 = vector.load %arg1[%c0, %c0_0] : memref<2x128xf32, #tpu.memory_space<vmem>>, vector<2x128xf32>
    %1 = arith.truncf %0 : vector<2x128xf32> to vector<2x128xbf16>
    %c0_1 = arith.constant 0 : index
    %c0_2 = arith.constant 0 : index
    %2 = vector.load %arg2[%c0_1, %c0_2] : memref<128x288xbf16, #tpu.memory_space<vmem>>, vector<128x288xbf16>
    %cst = arith.constant dense<0.000000e+00> : vector<2x288xf32>
    %3 = tpu.matmul %1, %2, %cst {dimension_numbers = #tpu.dot_dimension_numbers<[1], [0], [0], [1], [0, 0, 1, 1], [], []>} : vector<2x128xbf16>, vector<128x288xbf16>, vector<2x288xf32> -> vector<2x288xf32>
    %c0_3 = arith.constant 0 : index
    %c0_4 = arith.constant 0 : index
    %4 = vector.load %arg3[%c0_3, %c0_4] : memref<1x288xf32, #tpu.memory_space<vmem>>, vector<1x288xf32>
    %5 = vector.broadcast %4 : vector<1x288xf32> to vector<2x288xf32>
    %6 = arith.addf %3, %5 : vector<2x288xf32>
    %cst_5 = arith.constant 0.000000e+00 : f32
    %7 = vector.broadcast %cst_5 : f32 to vector<2x288xf32>
    %8 = arith.maximumf %6, %7 : vector<2x288xf32>
    %9 = arith.truncf %8 : vector<2x288xf32> to vector<2x288xbf16>
    %c0_6 = arith.constant 0 : index
    %c0_7 = arith.constant 0 : index
    %10 = vector.load %arg4[%c0_6, %c0_7] : memref<288x784xbf16, #tpu.memory_space<vmem>>, vector<288x784xbf16>
    %cst_8 = arith.constant dense<0.000000e+00> : vector<2x784xf32>
    %11 = tpu.matmul %9, %10, %cst_8 {dimension_numbers = #tpu.dot_dimension_numbers<[1], [0], [0], [1], [0, 0, 1, 1], [], []>} : vector<2x288xbf16>, vector<288x784xbf16>, vector<2x784xf32> -> vector<2x784xf32>
    %c0_9 = arith.constant 0 : index
    %c0_10 = arith.constant 0 : index
    %12 = vector.load %arg5[%c0_9, %c0_10] : memref<1x784xf32, #tpu.memory_space<vmem>>, vector<1x784xf32>
    %13 = vector.broadcast %12 : vector<1x784xf32> to vector<2x784xf32>
    %14 = arith.addf %11, %13 : vector<2x784xf32>
    %cst_11 = arith.constant 0.000000e+00 : f32
    %15 = vector.broadcast %cst_11 : f32 to vector<2x784xf32>
    %16 = arith.maximumf %14, %15 : vector<2x784xf32>
    %17 = arith.truncf %16 : vector<2x784xf32> to vector<2x784xbf16>
    %c0_12 = arith.constant 0 : index
    %c0_13 = arith.constant 0 : index
    %18 = vector.load %arg6[%c0_12, %c0_13] : memref<784x1568xbf16, #tpu.memory_space<vmem>>, vector<784x1568xbf16>
    %cst_14 = arith.constant dense<0.000000e+00> : vector<2x1568xf32>
    %19 = tpu.matmul %17, %18, %cst_14 {dimension_numbers = #tpu.dot_dimension_numbers<[1], [0], [0], [1], [0, 0, 1, 1], [], []>} : vector<2x784xbf16>, vector<784x1568xbf16>, vector<2x1568xf32> -> vector<2x1568xf32>
    %c0_15 = arith.constant 0 : index
    %c0_16 = arith.constant 0 : index
    %20 = vector.load %arg7[%c0_15, %c0_16] : memref<1x1568xf32, #tpu.memory_space<vmem>>, vector<1x1568xf32>
    %21 = vector.broadcast %20 : vector<1x1568xf32> to vector<2x1568xf32>
    %22 = arith.addf %19, %21 : vector<2x1568xf32>
    %cst_17 = arith.constant 0.000000e+00 : f32
    %23 = vector.broadcast %cst_17 : f32 to vector<2x1568xf32>
    %24 = arith.maximumf %22, %23 : vector<2x1568xf32>
    %25 = arith.truncf %24 : vector<2x1568xf32> to vector<2x1568xbf16>
    %c0_18 = arith.constant 0 : index
    %c0_19 = arith.constant 0 : index
    %26 = vector.load %arg8[%c0_18, %c0_19] : memref<1568x784xbf16, #tpu.memory_space<vmem>>, vector<1568x784xbf16>
    %cst_20 = arith.constant dense<0.000000e+00> : vector<2x784xf32>
    %27 = tpu.matmul %25, %26, %cst_20 {dimension_numbers = #tpu.dot_dimension_numbers<[1], [0], [0], [1], [0, 0, 1, 1], [], []>} : vector<2x1568xbf16>, vector<1568x784xbf16>, vector<2x784xf32> -> vector<2x784xf32>
    %c0_21 = arith.constant 0 : index
    %c0_22 = arith.constant 0 : index
    %28 = vector.load %arg9[%c0_21, %c0_22] : memref<1x784xf32, #tpu.memory_space<vmem>>, vector<1x784xf32>
    %29 = vector.broadcast %28 : vector<1x784xf32> to vector<2x784xf32>
    %30 = arith.addf %27, %29 : vector<2x784xf32>
    %cst_23 = arith.constant 0.000000e+00 : f32
    %31 = vector.broadcast %cst_23 : f32 to vector<2x784xf32>
    %32 = arith.maximumf %30, %31 : vector<2x784xf32>
    %c0_24 = arith.constant 0 : index
    %c0_25 = arith.constant 0 : index
    %33 = vector.load %arg10[%c0_24, %c0_25] : memref<2x784xf32, #tpu.memory_space<vmem>>, vector<2x784xf32>
    tpu.vector_store %arg10[%c0_24, %c0_25], %32 {strides = array<i32>} : memref<2x784xf32, #tpu.memory_space<vmem>>, vector<2x784xf32>,
    return
  }
  func.func @transform_0(%arg0: i32) -> (i32, i32) {
    %c0_i32 = arith.constant 0 : i32
    %c0_i32_0 = arith.constant 0 : i32
    %c0_i32_1 = arith.constant 0 : i32
    return %c0_i32, %c0_i32_0 : i32, i32
  }
  func.func @transform_1(%arg0: i32) -> (i32, i32) {
    %c0_i32 = arith.constant 0 : i32
    %c0_i32_0 = arith.constant 0 : i32
    %c0_i32_1 = arith.constant 0 : i32
    return %c0_i32, %c0_i32_0 : i32, i32
  }
  func.func @transform_2(%arg0: i32) -> (i32, i32) {
    %c0_i32 = arith.constant 0 : i32
    %c0_i32_0 = arith.constant 0 : i32
    %c0_i32_1 = arith.constant 0 : i32
    return %c0_i32, %c0_i32_0 : i32, i32
  }
  func.func @transform_3(%arg0: i32) -> (i32, i32) {
    %c0_i32 = arith.constant 0 : i32
    %c0_i32_0 = arith.constant 0 : i32
    %c0_i32_1 = arith.constant 0 : i32
    return %c0_i32, %c0_i32_0 : i32, i32
  }
  func.func @transform_4(%arg0: i32) -> (i32, i32) {
    %c0_i32 = arith.constant 0 : i32
    %c0_i32_0 = arith.constant 0 : i32
    %c0_i32_1 = arith.constant 0 : i32
    return %c0_i32, %c0_i32_0 : i32, i32
  }
  func.func @transform_5(%arg0: i32) -> (i32, i32) {
    %c0_i32 = arith.constant 0 : i32
    %c0_i32_0 = arith.constant 0 : i32
    %c0_i32_1 = arith.constant 0 : i32
    return %c0_i32, %c0_i32_0 : i32, i32
  }
  func.func @transform_6(%arg0: i32) -> (i32, i32) {
    %c0_i32 = arith.constant 0 : i32
    %c0_i32_0 = arith.constant 0 : i32
    %c0_i32_1 = arith.constant 0 : i32
    return %c0_i32, %c0_i32_0 : i32, i32
  }
  func.func @transform_7(%arg0: i32) -> (i32, i32) {
    %c0_i32 = arith.constant 0 : i32
    %c0_i32_0 = arith.constant 0 : i32
    %c0_i32_1 = arith.constant 0 : i32
    return %c0_i32, %c0_i32_0 : i32, i32
  }
  func.func @transform_8(%arg0: i32) -> (i32, i32) {
    %c0_i32 = arith.constant 0 : i32
    %c0_i32_0 = arith.constant 0 : i32
    %c0_i32_1 = arith.constant 0 : i32
    return %c0_i32, %c0_i32_0 : i32, i32
  }
  func.func @transform_9(%arg0: i32) -> (i32, i32) {
    %c0_i32 = arith.constant 0 : i32
    %c0_i32_0 = arith.constant 0 : i32
    %c0_i32_1 = arith.constant 0 : i32
    return %c0_i32, %c0_i32_0 : i32, i32
  }
}

</mosaic_0001>

<bundles_post_ra>
// kernel: decoder_forward.1
= control target key start
LH: loop header
LB: loop body
LE: loop exit
PB: predicated region body
PF: predicated region fallthrough
CT: control target
= control target key end

     0   :  { %vm1056_vm0 = vcmask 261120   ;;  %vm5297_vm1 = vcmask 130048   ;;  %vm12043_vm2 = vcmask 1041408   ;;  %vm12045_vm3 = vcmask 1045508   ;;  %s29155_s1 = inlined_call_operand.vmem [shape: bf16[128,288], index: 1, kind: input, shape index: {}]   ;;  %s29156_s3 = inlined_call_operand.vmem [shape: bf16[288,784], index: 3, kind: input, shape index: {}]   ;;  %s29157_s0 = inlined_call_operand.vmem [shape: f32[2,128], index: 0, kind: input, shape index: {}]   ;;  %s29158_s2 = inlined_call_operand.vmem [shape: f32[1,288], index: 2, kind: input, shape index: {}]   ;;  %s29159_s5 = inlined_call_operand.vmem [shape: bf16[784,1568], index: 5, kind: input, shape index: {}]   ;;  %s29160_s4 = inlined_call_operand.vmem [shape: f32[1,784], index: 4, kind: input, shape index: {}]   ;;  %s29161_s6 = inlined_call_operand.vmem [shape: f32[1,1568], index: 6, kind: input, shape index: {}]   ;;  %s29162_s7 = inlined_call_operand.vmem [shape: bf16[1568,784], index: 7, kind: input, shape index: {}]   ;;  %s29163_s8 = inlined_call_operand.vmem [shape: f32[1,784], index: 8, kind: input, shape index: {}]   ;;  %s29164_s9 = inlined_call_operand.vmem [shape: f32[2,784], index: 9, kind: output, shape index: {}]  }
   0x1   :  { %v12149_v0 = vld [vmem:[%s29155_s1 + $0xa8] sm:$0xf]  ;;  %v18004_v1 = vld [vmem:[%s29155_s1 + $0xb0] sm:$0xf0]  ;;  %v18003_v2 = vld [vmem:[%s29155_s1 + $0xac] sm:$0xf] }
   0x2   :  { %v12150_v3 = vor.u32 %v18004_v1, %v12149_v0  ;;  %v12151_v4 = vld [vmem:[%s29155_s1 + $0xb4] sm:$0xf0]  ;;  %v12157_v5 = vld [vmem:[%s29155_s1 + $0xb0] sm:$0xf]  ;;  %v18005_v6 = vld [vmem:[%s29155_s1 + $0xb8] sm:$0xf0] }
   0x3   :  { %v12154_v7 = vor.u32 %v18003_v2, %v12151_v4  ;;  %v12158_v8 = vor.u32 %v18005_v6, %v12157_v5  ;;  %v12137_v9 = vld [vmem:[%s29155_s1 + $0x90] sm:$0xf]  ;;  %v18001_v10 = vld [vmem:[%s29155_s1 + $0x98] sm:$0xf0]  ;;  %v18000_v11 = vld [vmem:[%s29155_s1 + $0x94] sm:$0xf] }
   0x4   :  { %203 = vmatpush.bf16.msra.mxu0 %v12150_v3  ;;  %v12138_v12 = vor.u32 %v18001_v10, %v12137_v9  ;;  %v12139_v13 = vld [vmem:[%s29155_s1 + $0x9c] sm:$0xf0]  ;;  %v12145_v14 = vld [vmem:[%s29155_s1 + $0x98] sm:$0xf]  ;;  %v18002_v15 = vld [vmem:[%s29155_s1 + $0xa0] sm:$0xf0] }
   0x5   :  { %216 = vmatpush.bf16.msra.mxu1 %v12154_v7  ;;  %229 = vmatpush.bf16.msra.mxu2 %v12158_v8  ;;  %v12142_v16 = vor.u32 %v18000_v11, %v12139_v13  ;;  %v12146_v17 = vor.u32 %v18002_v15, %v12145_v14  ;;  %v12125_v18 = vld [vmem:[%s29155_s1 + $0x78] sm:$0xf]  ;;  %v17998_v19 = vld [vmem:[%s29155_s1 + $0x80] sm:$0xf0]  ;;  %v17997_v20 = vld [vmem:[%s29155_s1 + $0x7c] sm:$0xf] }
   0x6   :  { %v12127_v21 = vld [vmem:[%s29155_s1 + $0x84] sm:$0xf0]  ;;  %v12133_v22 = vld [vmem:[%s29155_s1 + $0x80] sm:$0xf]  ;;  %v17999_v23 = vld [vmem:[%s29155_s1 + $0x88] sm:$0xf0]  ;;  %v12126_v24 = vor.u32 %v17998_v19, %v12125_v18 }
   0x7   :  { %v12130_v25 = vor.u32 %v17997_v20, %v12127_v21  ;;  %v12134_v26 = vor.u32 %v17999_v23, %v12133_v22  ;;  %v12113_v27 = vld [vmem:[%s29155_s1 + $0x60] sm:$0xf]  ;;  %v17995_v28 = vld [vmem:[%s29155_s1 + $0x68] sm:$0xf0]  ;;  %v17994_v29 = vld [vmem:[%s29155_s1 + $0x64] sm:$0xf] }
   0x8   :  { %204 = vmatpush.bf16.msra.mxu0 %v12138_v12  ;;  %v12115_v30 = vld [vmem:[%s29155_s1 + $0x6c] sm:$0xf0]  ;;  %v12121_v31 = vld [vmem:[%s29155_s1 + $0x68] sm:$0xf]  ;;  %v17996_v32 = vld [vmem:[%s29155_s1 + $0x70] sm:$0xf0]  ;;  %v12114_v33 = vor.u32 %v17995_v28, %v12113_v27 }
   0x9   :  { %217 = vmatpush.bf16.msra.mxu1 %v12142_v16  ;;  %230 = vmatpush.bf16.msra.mxu2 %v12146_v17  ;;  %v12118_v34 = vor.u32 %v17994_v29, %v12115_v30  ;;  %v12122_v35 = vor.u32 %v17996_v32, %v12121_v31  ;;  %v12101_v36 = vld [vmem:[%s29155_s1 + $0x48] sm:$0xf]  ;;  %v17992_v37 = vld [vmem:[%s29155_s1 + $0x50] sm:$0xf0]  ;;  %v17991_v38 = vld [vmem:[%s29155_s1 + $0x4c] sm:$0xf] }
   0xa   :  { %v12103_v39 = vld [vmem:[%s29155_s1 + $0x54] sm:$0xf0]  ;;  %v12109_v40 = vld [vmem:[%s29155_s1 + $0x50] sm:$0xf]  ;;  %v17993_v41 = vld [vmem:[%s29155_s1 + $0x58] sm:$0xf0]  ;;  %v12102_v43 = vor.u32 %v17992_v37, %v12101_v36 }
   0xb   :  { %v12089_v42 = vld [vmem:[%s29155_s1 + $0x30] sm:$0xf]  ;;  %v17989_v44 = vld [vmem:[%s29155_s1 + $0x38] sm:$0xf0]  ;;  %v17988_v45 = vld [vmem:[%s29155_s1 + $0x34] sm:$0xf]  ;;  %v12106_v47 = vor.u32 %v17991_v38, %v12103_v39  ;;  %v12110_v48 = vor.u32 %v17993_v41, %v12109_v40 }
   0xc   :  { %205 = vmatpush.bf16.msra.mxu0 %v12126_v24  ;;  %v12091_v46 = vld [vmem:[%s29155_s1 + $0x3c] sm:$0xf0]  ;;  %v12097_v49 = vld [vmem:[%s29155_s1 + $0x38] sm:$0xf]  ;;  %v12357_v50 = vld [vmem:[%s29156_s3 + $0x188] sm:$0xf]  ;;  %v12090_v56 = vor.u32 %v17989_v44, %v12089_v42 }
   0xd   :  { %218 = vmatpush.bf16.msra.mxu1 %v12130_v25  ;;  %231 = vmatpush.bf16.msra.mxu2 %v12134_v26  ;;  %v18058_v51 = vld [vmem:[%s29156_s3 + $0x1a0] sm:$0xf0]  ;;  %v12329_v54 = vld [vmem:[%s29156_s3 + $0x150] sm:$0xf]  ;;  %v18051_v55 = vld [vmem:[%s29156_s3 + $0x168] sm:$0xf0]  ;;  %v12094_v60 = vor.u32 %v17988_v45, %v12091_v46 }
   0xe   :  { %v17990_v52 = vld [vmem:[%s29155_s1 + $0x40] sm:$0xf0]  ;;  %v12358_v53 = vor.u32 %v18058_v51, %v12357_v50  ;;  %v12077_v57 = vld [vmem:[%s29155_s1 + $0x18] sm:$0xf]  ;;  %v12330_v59 = vor.u32 %v18051_v55, %v12329_v54  ;;  %v17985_v62 = vld [vmem:[%s29155_s1 + $0x1c] sm:$0xf] }
   0xf   :  { %v17986_v58 = vld [vmem:[%s29155_s1 + $0x20] sm:$0xf0]  ;;  %v12098_v61 = vor.u32 %v17990_v52, %v12097_v49  ;;  %v12301_v63 = vld [vmem:[%s29156_s3 + $0x118] sm:$0xf]  ;;  %v18044_v0 = vld [vmem:[%s29156_s3 + $0x130] sm:$0xf0] }
  0x10   :  { %206 = vmatpush.bf16.msra.mxu0 %v12114_v33  ;;  %1060 = vmatpush.bf16.msra.mxu3 %v12358_v53  ;;  %v12079_v1 = vld [vmem:[%s29155_s1 + $0x24] sm:$0xf0]  ;;  %v12085_v2 = vld [vmem:[%s29155_s1 + $0x20] sm:$0xf]  ;;  %v17987_v3 = vld [vmem:[%s29155_s1 + $0x28] sm:$0xf0]  ;;  %v12078_v4 = vor.u32 %v17986_v58, %v12077_v57  ;;  %v12302_v8 = vor.u32 %v18044_v0, %v12301_v63 }
  0x11   :  { %219 = vmatpush.bf16.msra.mxu1 %v12118_v34  ;;  %232 = vmatpush.bf16.msra.mxu2 %v12122_v35  ;;  %v12065_v5 = vld [vmem:[%s29155_s1] sm:$0xf]  ;;  %v17983_v6 = vld [vmem:[%s29155_s1 + $0x8] sm:$0xf0]  ;;  %v17982_v7 = vld [vmem:[%s29155_s1 + $0x4] sm:$0xf]  ;;  %v12082_v9 = vor.u32 %v17985_v62, %v12079_v1  ;;  %v12086_v10 = vor.u32 %v17987_v3, %v12085_v2 }
  0x12   :  { %v12067_v11 = vld [vmem:[%s29155_s1 + $0xc] sm:$0xf0]  ;;  %v12273_v12 = vld [vmem:[%s29156_s3 + $0xe0] sm:$0xf]  ;;  %v18037_v13 = vld [vmem:[%s29156_s3 + $0xf8] sm:$0xf0]  ;;  %v12066_v20 = vor.u32 %v17983_v6, %v12065_v5 }
  0x13   :  { %v12073_v14 = vld [vmem:[%s29155_s1 + $0x8] sm:$0xf]  ;;  %v17984_v15 = vld [vmem:[%s29155_s1 + $0x10] sm:$0xf0]  ;;  %v18114_v17 = vld [vmem:[%s29156_s3 + $0x360] sm:$0xf0]  ;;  %v12274_v22 = vor.u32 %v18037_v13, %v12273_v12  ;;  %v12070_v23 = vor.u32 %v17982_v7, %v12067_v11 }
  0x14   :  { %207 = vmatpush.bf16.msra.mxu0 %v12102_v43  ;;  %1061 = vmatpush.bf16.msra.mxu3 %v12330_v59  ;;  %v12581_v16 = vld [vmem:[%s29156_s3 + $0x348] sm:$0xf]  ;;  %v18055_v18 = vld [vmem:[%s29156_s3 + $0x18c] sm:$0xf]  ;;  %v33_v21 = vld [vmem:[%s29157_s0] sm:$0x3]  ;;  %v12074_v24 = vor.u32 %v17984_v15, %v12073_v14 }
  0x15   :  { %220 = vmatpush.bf16.msra.mxu1 %v12106_v47  ;;  %233 = vmatpush.bf16.msra.mxu2 %v12110_v48  ;;  %v12359_v19 = vld [vmem:[%s29156_s3 + $0x1a4] sm:$0xf0]  ;;  %v12582_v25 = vor.u32 %v18114_v17, %v12581_v16  ;;  %v18030_v27 = vld [vmem:[%s29156_s3 + $0xc0] sm:$0xf0]  ;;  %v12553_v28 = vld [vmem:[%s29156_s3 + $0x310] sm:$0xf]  ;;  %v34_v30 = vpack.c.bf16 %v33_v21, %v33_v21 }
  0x16   :  { %v12245_v26 = vld [vmem:[%s29156_s3 + $0xa8] sm:$0xf]  ;;  %v12362_v29 = vor.u32 %v18055_v18, %v12359_v19  ;;  %v18107_v31 = vld [vmem:[%s29156_s3 + $0x328] sm:$0xf0]  ;;  %v18048_v32 = vld [vmem:[%s29156_s3 + $0x154] sm:$0xf] }
  0x17   :  { %v12331_v33 = vld [vmem:[%s29156_s3 + $0x16c] sm:$0xf0]  ;;  %v12246_v34 = vor.u32 %v18030_v27, %v12245_v26  ;;  %v12554_v35 = vor.u32 %v18107_v31, %v12553_v28  ;;  %v18023_v37 = vld [vmem:[%s29156_s3 + $0x88] sm:$0xf0]  ;;  %v12525_v38 = vld [vmem:[%s29156_s3 + $0x2d8] sm:$0xf] }
  0x18   :  { %208 = vmatpush.bf16.msra.mxu0 %v12090_v56  ;;  %1062 = vmatpush.bf16.msra.mxu3 %v12302_v8  ;;  %v12217_v36 = vld [vmem:[%s29156_s3 + $0x70] sm:$0xf]  ;;  %v12334_v39 = vor.u32 %v18048_v32, %v12331_v33  ;;  %v18100_v40 = vld [vmem:[%s29156_s3 + $0x2f0] sm:$0xf0]  ;;  %v18041_v41 = vld [vmem:[%s29156_s3 + $0x11c] sm:$0xf] }
  0x19   :  { %221 = vmatpush.bf16.msra.mxu1 %v12094_v60  ;;  %234 = vmatpush.bf16.msra.mxu2 %v12098_v61  ;;  %v12303_v42 = vld [vmem:[%s29156_s3 + $0x134] sm:$0xf0]  ;;  %v12218_v43 = vor.u32 %v18023_v37, %v12217_v36  ;;  %v12526_v44 = vor.u32 %v18100_v40, %v12525_v38  ;;  %v18016_v46 = vld [vmem:[%s29156_s3 + $0x50] sm:$0xf0]  ;;  %v12497_v47 = vld [vmem:[%s29156_s3 + $0x2a0] sm:$0xf] }
  0x1a   :  { %v12189_v45 = vld [vmem:[%s29156_s3 + $0x38] sm:$0xf]  ;;  %v12306_v48 = vor.u32 %v18041_v41, %v12303_v42  ;;  %v18093_v49 = vld [vmem:[%s29156_s3 + $0x2b8] sm:$0xf0]  ;;  %v18034_v50 = vld [vmem:[%s29156_s3 + $0xe4] sm:$0xf] }
  0x1b   :  { %v12275_v51 = vld [vmem:[%s29156_s3 + $0xfc] sm:$0xf0]  ;;  %v12190_v52 = vor.u32 %v18016_v46, %v12189_v45  ;;  %v12498_v53 = vor.u32 %v18093_v49, %v12497_v47  ;;  %v18009_v55 = vld [vmem:[%s29156_s3 + $0x18] sm:$0xf0]  ;;  %v18111_v56 = vld [vmem:[%s29156_s3 + $0x34c] sm:$0xf] }
  0x1c   :  { %209 = vmatpush.bf16.msra.mxu0 %v12078_v4  ;;  %1063 = vmatpush.bf16.msra.mxu3 %v12274_v22  ;;  %v12161_v54 = vld [vmem:[%s29156_s3] sm:$0xf]  ;;  %v12278_v57 = vor.u32 %v18034_v50, %v12275_v51  ;;  %v12583_v58 = vld [vmem:[%s29156_s3 + $0x364] sm:$0xf0]  ;;  %v18086_v60 = vld [vmem:[%s29156_s3 + $0x280] sm:$0xf0] }
  0x1d   :  { %222 = vmatpush.bf16.msra.mxu1 %v12082_v9  ;;  %235 = vmatpush.bf16.msra.mxu2 %v12086_v10  ;;  %v12469_v59 = vld [vmem:[%s29156_s3 + $0x268] sm:$0xf]  ;;  %v18027_v61 = vld [vmem:[%s29156_s3 + $0xac] sm:$0xf]  ;;  %v12162_v63 = vor.u32 %v18009_v55, %v12161_v54  ;;  %v12586_v0 = vor.u32 %v18111_v56, %v12583_v58  ;;  %v18104_v2 = vld [vmem:[%s29156_s3 + $0x314] sm:$0xf] }
  0x1e   :  { %v12247_v62 = vld [vmem:[%s29156_s3 + $0xc4] sm:$0xf0]  ;;  %v12470_v1 = vor.u32 %v18086_v60, %v12469_v59  ;;  %v12555_v3 = vld [vmem:[%s29156_s3 + $0x32c] sm:$0xf0]  ;;  %v18079_v5 = vld [vmem:[%s29156_s3 + $0x248] sm:$0xf0] }
  0x1f   :  { %v12441_v4 = vld [vmem:[%s29156_s3 + $0x230] sm:$0xf]  ;;  %v12250_v6 = vor.u32 %v18027_v61, %v12247_v62  ;;  %v18020_v7 = vld [vmem:[%s29156_s3 + $0x74] sm:$0xf]  ;;  %v12558_v9 = vor.u32 %v18104_v2, %v12555_v3  ;;  %v18097_v11 = vld [vmem:[%s29156_s3 + $0x2dc] sm:$0xf] }
  0x20   :  { %210 = vmatpush.bf16.msra.mxu0 %v12066_v20  ;;  %1064 = vmatpush.bf16.msra.mxu3 %v12246_v34  ;;  %v12219_v8 = vld [vmem:[%s29156_s3 + $0x8c] sm:$0xf0]  ;;  %v12442_v10 = vor.u32 %v18079_v5, %v12441_v4  ;;  %v12527_v12 = vld [vmem:[%s29156_s3 + $0x2f4] sm:$0xf0]  ;;  %v18072_v14 = vld [vmem:[%s29156_s3 + $0x210] sm:$0xf0] }
  0x21   :  { %223 = vmatpush.bf16.msra.mxu1 %v12070_v23  ;;  %236 = vmatpush.bf16.msra.mxu2 %v12074_v24  ;;  %v12413_v13 = vld [vmem:[%s29156_s3 + $0x1f8] sm:$0xf]  ;;  %v12222_v15 = vor.u32 %v18020_v7, %v12219_v8  ;;  %v18013_v16 = vld [vmem:[%s29156_s3 + $0x3c] sm:$0xf]  ;;  %v12530_v18 = vor.u32 %v18097_v11, %v12527_v12  ;;  %v18090_v20 = vld [vmem:[%s29156_s3 + $0x2a4] sm:$0xf] }
  0x22   :  { %v12191_v17 = vld [vmem:[%s29156_s3 + $0x54] sm:$0xf0]  ;;  %v12414_v19 = vor.u32 %v18072_v14, %v12413_v13  ;;  %v12499_v21 = vld [vmem:[%s29156_s3 + $0x2bc] sm:$0xf0]  ;;  %v18065_v23 = vld [vmem:[%s29156_s3 + $0x1d8] sm:$0xf0] }
  0x23   :  { %211 = vmatmul.bf16.vlgmr.msra.gmra.mxu0 %v34_v30  ;;  %v12385_v22 = vld [vmem:[%s29156_s3 + $0x1c0] sm:$0xf]  ;;  %v12194_v24 = vor.u32 %v18013_v16, %v12191_v17  ;;  %v18059_v26 = vld [vmem:[%s29156_s3 + $0x1a8] sm:$0xf0]  ;;  %v12502_v27 = vor.u32 %v18090_v20, %v12499_v21  ;;  %v12471_v31 = vld [vmem:[%s29156_s3 + $0x284] sm:$0xf0] }
  0x24   :  { %1073 = vmatpush.bf16.msrb.mxu0 %v12582_v25  ;;  %224 = vmatmul.bf16.vlgmr.msra.gmra.mxu1 %v34_v30  ;;  %v12365_v25 = vld [vmem:[%s29156_s3 + $0x190] sm:$0xf]  ;;  %v12386_v28 = vor.u32 %v18065_v23, %v12385_v22  ;;  %v12337_v32 = vld [vmem:[%s29156_s3 + $0x158] sm:$0xf]  ;;  %v18052_v33 = vld [vmem:[%s29156_s3 + $0x170] sm:$0xf0] }
  0x25   :  { %1099 = vmatpush.bf16.msrb.mxu2 %v12362_v29  ;;  %1065 = vmatpush.bf16.msra.mxu3 %v12218_v43  ;;  %v12366_v29 = vor.u32 %v18059_v26, %v12365_v25  ;;  %v18076_v36 = vld [vmem:[%s29156_s3 + $0x234] sm:$0xf]  ;;  %v12443_v37 = vld [vmem:[%s29156_s3 + $0x24c] sm:$0xf0]  ;;  %v18045_v40 = vld [vmem:[%s29156_s3 + $0x138] sm:$0xf0] }
  0x26   :  { %237 = vmatmul.bf16.vlgmr.msra.gmra.mxu2 %v34_v30  ;;  %v18083_v30 = vld [vmem:[%s29156_s3 + $0x26c] sm:$0xf]  ;;  %v12446_v38 = vor.u32 %v18076_v36, %v12443_v37  ;;  %v18006_v42 = vld [vmem:[%s29156_s3 + $0x4] sm:$0xf]  ;;  %v12163_v43 = vld [vmem:[%s29156_s3 + $0x1c] sm:$0xf0] }
  0x27   :  { %v12474_v34 = vor.u32 %v18083_v30, %v12471_v31  ;;  %v18069_v45 = vld [vmem:[%s29156_s3 + $0x1fc] sm:$0xf]  ;;  %v12415_v46 = vld [vmem:[%s29156_s3 + $0x214] sm:$0xf0]  ;;  %v18038_v54 = vld [vmem:[%s29156_s3 + $0x100] sm:$0xf0] }
  0x28   :  { %1074 = vmatpush.bf16.msrb.mxu0 %v12554_v35  ;;  %v12338_v35 = vor.u32 %v18052_v33, %v12337_v32  ;;  %v12418_v47 = vor.u32 %v18069_v45, %v12415_v46  ;;  %v18129_v49 = vld [vmem:[%s29156_s3 + $0x3d8] sm:$0xf0]  ;;  %v12637_v50 = vld [vmem:[%s29156_s3 + $0x3b8] sm:$0xf]  ;;  %v12387_v58 = vld [vmem:[%s29156_s3 + $0x1dc] sm:$0xf0] }
  0x29   :  { %1100 = vmatpush.bf16.msrb.mxu2 %v12334_v39  ;;  %1066 = vmatpush.bf16.msra.mxu3 %v12190_v52  ;;  %v12309_v39 = vld [vmem:[%s29156_s3 + $0x120] sm:$0xf]  ;;  %v18128_v52 = vld [vmem:[%s29156_s3 + $0x3d0] sm:$0xf0]  ;;  %v12617_v59 = vld [vmem:[%s29156_s3 + $0x388] sm:$0xf] }
  0x2a   :  { %v12310_v41 = vor.u32 %v18045_v40, %v12309_v39  ;;  %v12638_v55 = vor.u32 %v18128_v52, %v12637_v50  ;;  %v18122_v61 = vld [vmem:[%s29156_s3 + $0x3a0] sm:$0xf0]  ;;  %v12609_v62 = vld [vmem:[%s29156_s3 + $0x380] sm:$0xf]  ;;  %v18125_v2 = vld [vmem:[%s29156_s3 + $0x3bc] sm:$0xf] }
  0x2b   :  { %v12639_v3 = vld [vmem:[%s29156_s3 + $0x3d4] sm:$0xf0]  ;;  %v12253_v4 = vld [vmem:[%s29156_s3 + $0xb0] sm:$0xf]  ;;  %v18031_v5 = vld [vmem:[%s29156_s3 + $0xc8] sm:$0xf0] }
  0x2c   :  { %1075 = vmatpush.bf16.msrb.mxu0 %v12526_v44  ;;  %v12166_v44 = vor.u32 %v18006_v42, %v12163_v43  ;;  %1092 = vmatpush.bf16.msrb.mxu1 %v12638_v55  ;;  %v12254_v7 = vor.u32 %v18031_v5, %v12253_v4  ;;  %v18118_v8 = vld [vmem:[%s29156_s3 + $0x384] sm:$0xf]  ;;  %v12225_v11 = vld [vmem:[%s29156_s3 + $0x78] sm:$0xf]  ;;  %v18024_v12 = vld [vmem:[%s29156_s3 + $0x90] sm:$0xf0] }
  0x2d   :  { %1101 = vmatpush.bf16.msrb.mxu2 %v12306_v48  ;;  %1067 = vmatpush.bf16.msra.mxu3 %v12162_v63  ;;  %v12645_v48 = vld [vmem:[%s29156_s3 + $0x3c0] sm:$0xf]  ;;  %v18121_v63 = vld [vmem:[%s29156_s3 + $0x398] sm:$0xf0]  ;;  %v12226_v13 = vor.u32 %v18024_v12, %v12225_v11  ;;  %v12169_v17 = vld [vmem:[%s29156_s3 + $0x8] sm:$0xf] }
  0x2e   :  { %v12646_v51 = vor.u32 %v18129_v49, %v12645_v48  ;;  %v12197_v14 = vld [vmem:[%s29156_s3 + $0x40] sm:$0xf]  ;;  %v18056_v26 = vld [vmem:[%s29156_s3 + $0x194] sm:$0xf]  ;;  %v12591_v30 = vld [vmem:[%s29156_s3 + $0x36c] sm:$0xf0] }
  0x2f   :  { %v67_v20 = vld [vmem:[%s29158_s2] sm:$0x7]  ;;  %v18126_v31 = vld [vmem:[%s29156_s3 + $0x3c4] sm:$0xf]  ;;  %v18049_v39 = vld [vmem:[%s29156_s3 + $0x15c] sm:$0xf] }
  0x30   :  { %1076 = vmatpush.bf16.msrb.mxu0 %v12498_v53  ;;  %v12281_v53 = vld [vmem:[%s29156_s3 + $0xe8] sm:$0xf]  ;;  %v69_v21 = vperm.slane %v67_v20, 0  ;;  %v70_v22 = vperm.slane %v67_v20, 1  ;;  %v12647_v32 = vld [vmem:[%s29156_s3 + $0x3dc] sm:$0xf0] }
  0x31   :  { %1102 = vmatpush.bf16.msrb.mxu2 %v12278_v57  ;;  %1112 = vmatpush.bf16.msrb.mxu3 %v12586_v0  ;;  %v12282_v56 = vor.u32 %v18038_v54, %v12281_v53  ;;  %v18062_v57 = vld [vmem:[%s29156_s3 + $0x1c4] sm:$0xf]  ;;  %v12618_v0 = vor.u32 %v18122_v61, %v12617_v59  ;;  %v12339_v40 = vld [vmem:[%s29156_s3 + $0x174] sm:$0xf0]  ;;  %v12650_v42 = vor.u32 %v18126_v31, %v12647_v32  ;;  %v18119_v45 = vld [vmem:[%s29156_s3 + $0x38c] sm:$0xf] }
  0x32   :  { %v12390_v60 = vor.u32 %v18062_v57, %v12387_v58  ;;  %v12619_v46 = vld [vmem:[%s29156_s3 + $0x3a4] sm:$0xf0]  ;;  %v12342_v50 = vor.u32 %v18049_v39, %v12339_v40  ;;  %v18115_v52 = vld [vmem:[%s29156_s3 + $0x368] sm:$0xf0]  ;;  %v18042_v54 = vld [vmem:[%s29156_s3 + $0x124] sm:$0xf] }
  0x33   :  { %v12311_v55 = vld [vmem:[%s29156_s3 + $0x13c] sm:$0xf0]  ;;  %v12622_v57 = vor.u32 %v18119_v45, %v12619_v46  ;;  %v18098_v59 = vld [vmem:[%s29156_s3 + $0x2e4] sm:$0xf]  ;;  %v12283_v4 = vld [vmem:[%s29156_s3 + $0x104] sm:$0xf0] }
  0x34   :  { %1077 = vmatpush.bf16.msrb.mxu0 %v12470_v1  ;;  %v12610_v1 = vor.u32 %v18121_v63, %v12609_v62  ;;  %v12314_v63 = vor.u32 %v18042_v54, %v12311_v55  ;;  %v18091_v5 = vld [vmem:[%s29156_s3 + $0x2ac] sm:$0xf]  ;;  %v18101_v11 = vld [vmem:[%s29156_s3 + $0x2f8] sm:$0xf0]  ;;  %v12477_v32 = vld [vmem:[%s29156_s3 + $0x270] sm:$0xf] }
  0x35   :  { %1103 = vmatpush.bf16.msrb.mxu2 %v12250_v6  ;;  %1113 = vmatpush.bf16.msrb.mxu3 %v12558_v9  ;;  %v12642_v6 = vor.u32 %v18125_v2, %v12639_v3  ;;  %v12611_v9 = vld [vmem:[%s29156_s3 + $0x39c] sm:$0xf0]  ;;  %v18035_v3 = vld [vmem:[%s29156_s3 + $0xec] sm:$0xf]  ;;  %v18070_v39 = vld [vmem:[%s29156_s3 + $0x204] sm:$0xf] }
  0x36   :  { %1093 = vmatpush.bf16.msrb.mxu1 %v12610_v1  ;;  %v18108_v1 = vld [vmem:[%s29156_s3 + $0x330] sm:$0xf0]  ;;  %v18123_v31 = vld [vmem:[%s29156_s3 + $0x3a8] sm:$0xf0]  ;;  %v12423_v40 = vld [vmem:[%s29156_s3 + $0x21c] sm:$0xf0] }
  0x37   :  { %v18080_v45 = vld [vmem:[%s29156_s3 + $0x250] sm:$0xf0]  ;;  %v18057_v55 = vld [vmem:[%s29156_s3 + $0x19c] sm:$0xf]  ;;  %vm12047_vm4 = vcmask 1043456   ;;  %vm12054_vm5 = vcmask 1043458  }
  0x38   :  { %1078 = vmatpush.bf16.msrb.mxu0 %v12442_v10  ;;  %v12614_v10 = vor.u32 %v18118_v8, %v12611_v9  ;;  %v12286_v9 = vor.u32 %v18035_v3, %v12283_v4  ;;  %v18116_v54 = vld [vmem:[%s29156_s3 + $0x370] sm:$0xf0]  ;;  %v18050_v3 = vld [vmem:[%s29156_s3 + $0x164] sm:$0xf]  ;;  %v12347_v4 = vld [vmem:[%s29156_s3 + $0x17c] sm:$0xf0] }
  0x39   :  { %1104 = vmatpush.bf16.msrb.mxu2 %v12222_v15  ;;  %1114 = vmatpush.bf16.msrb.mxu3 %v12530_v18  ;;  %v18017_v15 = vld [vmem:[%s29156_s3 + $0x58] sm:$0xf0]  ;;  %v18010_v18 = vld [vmem:[%s29156_s3 + $0x20] sm:$0xf0]  ;;  %vm12055_vm6 = vmor %vm12054_vm5, %vm12043_vm2  ;;  %vm12056_vm7 = vcmask 128004  }
  0x3a   :  { %1131 = vmatpush.bf16.msra.mxu1 %v12642_v6  ;;  %v12198_v16 = vor.u32 %v18017_v15, %v12197_v14  ;;  %v12507_v6 = vld [vmem:[%s29156_s3 + $0x2c4] sm:$0xf0]  ;;  %v12255_v14 = vld [vmem:[%s29156_s3 + $0xcc] sm:$0xf0]  ;;  %v18084_v15 = vld [vmem:[%s29156_s3 + $0x274] sm:$0xf] }
  0x3b   :  { %v12510_v12 = vor.u32 %v18091_v5, %v12507_v6  ;;  %v18113_v5 = vld [vmem:[%s29156_s3 + $0x35c] sm:$0xf]  ;;  %v12599_v6 = vld [vmem:[%s29156_s3 + $0x374] sm:$0xf0]  ;;  %vm12057_vm8 = vmor %vm12056_vm7, %vm12055_vm6 }
  0x3c   :  { %1079 = vmatpush.bf16.msrb.mxu0 %v12414_v19  ;;  %v12170_v19 = vor.u32 %v18010_v18, %v12169_v17  ;;  %v12653_v18 = vld [vmem:[%s29156_s3 + $0x3c8] sm:$0xf] }
  0x3d   :  { %1105 = vmatpush.bf16.msrb.mxu2 %v12194_v24  ;;  %1115 = vmatpush.bf16.msrb.mxu3 %v12502_v27  ;;  %v12367_v27 = vld [vmem:[%s29156_s3 + $0x1ac] sm:$0xf0] }
  0x3e   :  { %1132 = vmatpush.bf16.msra.mxu1 %v12614_v10  ;;  %v12370_v36 = vor.u32 %v18056_v26, %v12367_v27  ;;  %v12533_v10 = vld [vmem:[%s29156_s3 + $0x2e0] sm:$0xf]  ;;  %v18077_v26 = vld [vmem:[%s29156_s3 + $0x23c] sm:$0xf]  ;;  %v12451_v27 = vld [vmem:[%s29156_s3 + $0x254] sm:$0xf0] }
  0x3f   :  { %v12534_v17 = vor.u32 %v18101_v11, %v12533_v10  ;;  %v18060_v10 = vld [vmem:[%s29156_s3 + $0x1b0] sm:$0xf0] }
  0x40   :  { %1080 = vmatpush.bf16.msrb.mxu0 %v12386_v28  ;;  %v18112_v28 = vld [vmem:[%s29156_s3 + $0x354] sm:$0xf] }
  0x41   :  { %1116 = vmatpush.bf16.msrb.mxu3 %v12474_v34  ;;  %1106 = vmatpush.bf16.msrb.mxu2 %v12166_v44  ;;  %v12563_v44 = vld [vmem:[%s29156_s3 + $0x334] sm:$0xf0] }
  0x44   :  { %1138 = vmatpush.bf16.msra.mxu0 %v12366_v29 }
  0x45   :  { %1117 = vmatpush.bf16.msrb.mxu3 %v12446_v38  ;;  %1170 = vmatpush.bf16.msra.mxu2 %v12646_v51  ;;  %v12594_v38 = vor.u32 %v18112_v28, %v12591_v30  ;;  %v12589_v51 = vld [vmem:[%s29156_s3 + $0x350] sm:$0xf] }
  0x46   :  { %v12590_v61 = vor.u32 %v18115_v52, %v12589_v51  ;;  %v12625_v30 = vld [vmem:[%s29156_s3 + $0x390] sm:$0xf]  ;;  %v12395_v51 = vld [vmem:[%s29156_s3 + $0x1e4] sm:$0xf0]  ;;  %v12597_v52 = vld [vmem:[%s29156_s3 + $0x358] sm:$0xf] }
  0x48   :  { %1139 = vmatpush.bf16.msra.mxu0 %v12338_v35  ;;  %v71_v35 = vperm.slane %v67_v20, 2  ;;  %v12505_v20 = vld [vmem:[%s29156_s3 + $0x2a8] sm:$0xf] }
  0x49   :  { %1118 = vmatpush.bf16.msrb.mxu3 %v12418_v47  ;;  %1171 = vmatpush.bf16.msra.mxu2 %v12618_v0  ;;  %v12561_v0 = vld [vmem:[%s29156_s3 + $0x318] sm:$0xf] }
  0x4a   :  { %v12562_v8 = vor.u32 %v18108_v1, %v12561_v0  ;;  %v12569_v0 = vld [vmem:[%s29156_s3 + $0x320] sm:$0xf]  ;;  %v18109_v1 = vld [vmem:[%s29156_s3 + $0x338] sm:$0xf0] }
  0x4b   :  { %v12570_v11 = vor.u32 %v18109_v1, %v12569_v0  ;;  %v12429_v1 = vld [vmem:[%s29156_s3 + $0x208] sm:$0xf] }
  0x4c   :  { %1140 = vmatpush.bf16.msra.mxu0 %v12310_v41  ;;  %v18105_v41 = vld [vmem:[%s29156_s3 + $0x31c] sm:$0xf] }
  0x4d   :  { %1119 = vmatpush.bf16.msrb.mxu3 %v12390_v60  ;;  %v12566_v53 = vor.u32 %v18105_v41, %v12563_v44  ;;  %v12535_v60 = vld [vmem:[%s29156_s3 + $0x2fc] sm:$0xf0]  ;;  %v12626_v41 = vor.u32 %v18123_v31, %v12625_v30  ;;  %v12449_v44 = vld [vmem:[%s29156_s3 + $0x238] sm:$0xf]  ;;  %v12291_v30 = vld [vmem:[%s29156_s3 + $0x10c] sm:$0xf0] }
  0x4e   :  { %v12538_v2 = vor.u32 %v18098_v59, %v12535_v60 }
  0x50   :  { %1141 = vmatpush.bf16.msra.mxu0 %v12282_v56 }
  0x54   :  { %1142 = vmatpush.bf16.msra.mxu0 %v12254_v7 }
  0x58   :  { %1143 = vmatpush.bf16.msra.mxu0 %v12226_v13  ;;  %v18028_v13 = vld [vmem:[%s29156_s3 + $0xb4] sm:$0xf] }
  0x5c   :  { %1144 = vmatpush.bf16.msra.mxu0 %v12198_v16  ;;  %v12479_v16 = vld [vmem:[%s29156_s3 + $0x28c] sm:$0xf0] }
  0x60   :  { %1145 = vmatpush.bf16.msra.mxu0 %v12170_v19  ;;  %v18130_v19 = vld [vmem:[%s29156_s3 + $0x3e0] sm:$0xf0] }
  0x61   :  { %v12654_v28 = vor.u32 %v18130_v19, %v12653_v18  ;;  %v12319_v18 = vld [vmem:[%s29156_s3 + $0x144] sm:$0xf0] }
  0xa0   :  { %v212_v23 = vpop.f32.mrf.mxu0 }
  0xa1   :  { %v213_v24 = vadd.f32 %v212_v23, %v69_v21  ;;  %v225_v25 = vpop.f32.mrf.mxu1  ;;  %v18094_v21 = vld [vmem:[%s29156_s3 + $0x2c0] sm:$0xf0]  ;;  %v12482_v23 = vor.u32 %v18084_v15, %v12479_v16 }
  0xa2   :  { %v226_v29 = vadd.f32 %v225_v25, %v70_v22  ;;  %v12258_v22 = vor.u32 %v18028_v13, %v12255_v14  ;;  %v12227_v25 = vld [vmem:[%s29156_s3 + $0x94] sm:$0xf0]  ;;  %v12541_v13 = vld [vmem:[%s29156_s3 + $0x2e8] sm:$0xf]  ;;  %v12602_v14 = vor.u32 %v18113_v5, %v12599_v6  ;;  %v18102_v16 = vld [vmem:[%s29156_s3 + $0x300] sm:$0xf0] }
  0xa3   :  { %v242_v33 = vmax.f32 %v213_v24, 0.0  ;;  %v18021_v24 = vld [vmem:[%s29156_s3 + $0x7c] sm:$0xf]  ;;  %v12207_v5 = vld [vmem:[%s29156_s3 + $0x64] sm:$0xf0] }
  0xa4   :  { %v243_v34 = vmax.f32 %v226_v29, 0.0  ;;  %v12506_v29 = vor.u32 %v18094_v21, %v12505_v20  ;;  %v18106_v20 = vld [vmem:[%s29156_s3 + $0x324] sm:$0xf]  ;;  %v12571_v21 = vld [vmem:[%s29156_s3 + $0x33c] sm:$0xf0] }
  0xa5   :  { %v19955_v37 = vpack.c.bf16 %v242_v33, %v242_v33  ;;  %v18087_v33 = vld [vmem:[%s29156_s3 + $0x288] sm:$0xf0] }
  0xa6   :  { %v19966_v43 = vpack.c.bf16 %v243_v34, %v243_v34  ;;  %v12230_v34 = vor.u32 %v18021_v24, %v12227_v25  ;;  %v12542_v24 = vor.u32 %v18102_v16, %v12541_v13  ;;  %v12401_v13 = vld [vmem:[%s29156_s3 + $0x1d0] sm:$0xf] }
  0xa7   :  { %1068 = vmatmul.bf16.vlgmr.msra.gmra.mxu3 %v19955_v37  ;;  %1107 = vmatmul.bf16.vlgmr.msrb.gmra.mxu2 %v19955_v37 }
  0xa8   :  { %1081 = vmatmul.bf16.vlgmr.msrb.gmra.mxu0 %v19966_v43  ;;  %1177 = vmatpush.bf16.msra.mxu3 %v12370_v36  ;;  %v214_v49 = vpop.f32.mrf.mxu0  ;;  %v18014_v36 = vld [vmem:[%s29156_s3 + $0x44] sm:$0xf] }
  0xa9   :  { %v238_v47 = vpop.f32.mrf.mxu2  ;;  %1190 = vmatpush.bf16.msrb.mxu2 %v12594_v38  ;;  %1209 = vmatpush.bf16.msrb.mxu0 %v12650_v42  ;;  %v227_v56 = vpop.f32.mrf.mxu1  ;;  %v12199_v38 = vld [vmem:[%s29156_s3 + $0x5c] sm:$0xf0]  ;;  %v12478_v42 = vor.u32 %v18087_v33, %v12477_v32  ;;  %v12171_v49 = vld [vmem:[%s29156_s3 + $0x24] sm:$0xf0]  ;;  %v18099_v32 = vld [vmem:[%s29156_s3 + $0x2ec] sm:$0xf] }
  0xaa   :  { %v239_v48 = vadd.f32 %v238_v47, %v71_v35  ;;  %v12454_v35 = vor.u32 %v18077_v26, %v12451_v27  ;;  %v12202_v46 = vor.u32 %v18014_v36, %v12199_v38  ;;  %v12426_v47 = vor.u32 %v18070_v39, %v12423_v40  ;;  %v12375_v56 = vld [vmem:[%s29156_s3 + $0x1b4] sm:$0xf0]  ;;  %v12513_v26 = vld [vmem:[%s29156_s3 + $0x2b0] sm:$0xf]  ;;  %v12543_v33 = vld [vmem:[%s29156_s3 + $0x304] sm:$0xf0] }
  0xab   :  { %v12574_v27 = vor.u32 %v18106_v20, %v12571_v21  ;;  %v12485_v39 = vld [vmem:[%s29156_s3 + $0x278] sm:$0xf]  ;;  %v12546_v40 = vor.u32 %v18099_v32, %v12543_v33  ;;  %v12381_v21 = vld [vmem:[%s29156_s3 + $0x1a0] sm:$0xf]  ;;  %v12403_v32 = vld [vmem:[%s29156_s3 + $0x1ec] sm:$0xf0] }
  0xac   :  { %v244_v58 = vmax.f32 %v239_v48, 0.0  ;;  %1178 = vmatpush.bf16.msra.mxu3 %v12342_v50  ;;  %v18007_v48 = vld [vmem:[%s29156_s3 + $0xc] sm:$0xf] }
  0xad   :  { %1191 = vmatpush.bf16.msrb.mxu2 %v12566_v53  ;;  %1210 = vmatpush.bf16.msrb.mxu0 %v12622_v57  ;;  %v18063_v50 = vld [vmem:[%s29156_s3 + $0x1cc] sm:$0xf]  ;;  %v12450_v53 = vor.u32 %v18080_v45, %v12449_v44  ;;  %v12421_v57 = vld [vmem:[%s29156_s3 + $0x200] sm:$0xf]  ;;  %v12174_v59 = vor.u32 %v18007_v48, %v12171_v49  ;;  %v12263_v44 = vld [vmem:[%s29156_s3 + $0xd4] sm:$0xf0] }
  0xae   :  { %v19998_v62 = vpack.c.bf16 %v244_v58, %v244_v58  ;;  %v18073_v58 = vld [vmem:[%s29156_s3 + $0x218] sm:$0xf0]  ;;  %v12398_v60 = vor.u32 %v18063_v50, %v12395_v51  ;;  %v12289_v48 = vld [vmem:[%s29156_s3 + $0xf0] sm:$0xf]  ;;  %v18039_v49 = vld [vmem:[%s29156_s3 + $0x108] sm:$0xf0] }
  0xb0   :  { %12663 = vmatmul.msk.bf16.vlgmr.msrb.gmra.mxu1 %vm1056_vm0, %v19998_v62  ;;  %1179 = vmatpush.bf16.msra.mxu3 %v12314_v63  ;;  %v12378_v63 = vor.u32 %v18057_v55, %v12375_v56  ;;  %v18022_v55 = vld [vmem:[%s29156_s3 + $0x84] sm:$0xf]  ;;  %v12235_v56 = vld [vmem:[%s29156_s3 + $0x9c] sm:$0xf0] }
  0xb1   :  { %1151 = vmatpush.bf16.msrb.mxu1 %v12590_v61  ;;  %v240_v7 = vpop.f32.mrf.mxu2  ;;  %1192 = vmatpush.bf16.msrb.mxu2 %v12538_v2  ;;  %v12598_v61 = vor.u32 %v18116_v54, %v12597_v52  ;;  %v12422_v2 = vor.u32 %v18073_v58, %v12421_v57  ;;  %v12457_v52 = vld [vmem:[%s29156_s3 + $0x240] sm:$0xf]  ;;  %v18081_v54 = vld [vmem:[%s29156_s3 + $0x258] sm:$0xf0]  ;;  %v12290_v57 = vor.u32 %v18039_v49, %v12289_v48  ;;  %v12325_v48 = vld [vmem:[%s29156_s3 + $0x130] sm:$0xf] }
  0xb2   :  { %v12393_v7 = vld [vmem:[%s29156_s3 + $0x1c8] sm:$0xf]  ;;  %v18085_v58 = vld [vmem:[%s29156_s3 + $0x27c] sm:$0xf]  ;;  %v12238_v0 = vor.u32 %v18022_v55, %v12235_v56  ;;  %v18047_v49 = vld [vmem:[%s29156_s3 + $0x148] sm:$0xf0] }
  0xb3   :  { %v12605_v55 = vld [vmem:[%s29156_s3 + $0x360] sm:$0xf]  ;;  %v18117_v56 = vld [vmem:[%s29156_s3 + $0x378] sm:$0xf0] }
  0xb4   :  { %1180 = vmatpush.bf16.msra.mxu3 %v12286_v9  ;;  %v12373_v9 = vld [vmem:[%s29156_s3 + $0x198] sm:$0xf] }
  0xb5   :  { %1152 = vmatpush.bf16.msrb.mxu1 %v12562_v8  ;;  %1193 = vmatpush.bf16.msrb.mxu2 %v12510_v12  ;;  %v18066_v8 = vld [vmem:[%s29156_s3 + $0x1e0] sm:$0xf0]  ;;  %v12350_v12 = vor.u32 %v18050_v3, %v12347_v4  ;;  %v12374_v19 = vor.u32 %v18060_v10, %v12373_v9  ;;  %v18015_v4 = vld [vmem:[%s29156_s3 + $0x4c] sm:$0xf]  ;;  %v12233_v9 = vld [vmem:[%s29156_s3 + $0x80] sm:$0xf] }
  0xb6   :  { %v12394_v15 = vor.u32 %v18066_v8, %v12393_v7  ;;  %v18074_v3 = vld [vmem:[%s29156_s3 + $0x220] sm:$0xf0]  ;;  %v12459_v8 = vld [vmem:[%s29156_s3 + $0x25c] sm:$0xf0]  ;;  %v18025_v10 = vld [vmem:[%s29156_s3 + $0x98] sm:$0xf0] }
  0xb7   :  { %1120 = vmatmul.bf16.vlgmr.msrb.gmra.mxu3 %v19966_v43  ;;  %12665 = vmatmul.msk.bf16.vlgmr.msra.gmra.mxu2 %vm1056_vm0, %v19998_v62  ;;  %v18078_v7 = vld [vmem:[%s29156_s3 + $0x244] sm:$0xf]  ;;  %v12234_v20 = vor.u32 %v18025_v10, %v12233_v9  ;;  %v12549_v10 = vld [vmem:[%s29156_s3 + $0x2f0] sm:$0xf] }
  0xb8   :  { %1146 = vmatmul.bf16.vlgmr.msra.gmra.mxu0 %v19955_v37  ;;  %1181 = vmatpush.bf16.msra.mxu3 %v12258_v22  ;;  %v12345_v22 = vld [vmem:[%s29156_s3 + $0x160] sm:$0xf]  ;;  %v12462_v16 = vor.u32 %v18078_v7, %v12459_v8  ;;  %v18216_v8 = vld [vmem:[%s29159_s5 + $0x2a0] sm:$0xf0] }
  0xb9   :  { %1153 = vmatpush.bf16.msrb.mxu1 %v12534_v17  ;;  %1194 = vmatpush.bf16.msrb.mxu2 %v12482_v23  ;;  %v18043_v17 = vld [vmem:[%s29156_s3 + $0x12c] sm:$0xf]  ;;  %v18053_v23 = vld [vmem:[%s29156_s3 + $0x178] sm:$0xf0] }
  0xba   :  { %1248 = vmatpush.bf16.msra.mxu0 %v12654_v28  ;;  %v12322_v25 = vor.u32 %v18043_v17, %v12319_v18  ;;  %v18095_v28 = vld [vmem:[%s29156_s3 + $0x2c8] sm:$0xf0]  ;;  %v12346_v31 = vor.u32 %v18053_v23, %v12345_v22  ;;  %v12179_v17 = vld [vmem:[%s29156_s3 + $0x2c] sm:$0xf0]  ;;  %v18061_v22 = vld [vmem:[%s29156_s3 + $0x1b8] sm:$0xf0] }
  0xbb   :  { %v12514_v36 = vor.u32 %v18095_v28, %v12513_v26  ;;  %v18071_v18 = vld [vmem:[%s29156_s3 + $0x20c] sm:$0xf]  ;;  %v12205_v23 = vld [vmem:[%s29156_s3 + $0x48] sm:$0xf] }
  0xbc   :  { %1182 = vmatpush.bf16.msra.mxu3 %v12230_v34  ;;  %v12317_v34 = vld [vmem:[%s29156_s3 + $0x128] sm:$0xf]  ;;  %v18131_v26 = vld [vmem:[%s29156_s3 + $0x3e8] sm:$0xf0] }
  0xbd   :  { %1154 = vmatpush.bf16.msrb.mxu1 %v12506_v29  ;;  %1195 = vmatpush.bf16.msrb.mxu2 %v12454_v35  ;;  %v18036_v29 = vld [vmem:[%s29156_s3 + $0xf4] sm:$0xf]  ;;  %v18046_v35 = vld [vmem:[%s29156_s3 + $0x140] sm:$0xf0] }
  0xbe   :  { %1249 = vmatpush.bf16.msra.mxu0 %v12626_v41  ;;  %v12294_v38 = vor.u32 %v18036_v29, %v12291_v30  ;;  %v18088_v41 = vld [vmem:[%s29156_s3 + $0x290] sm:$0xf0]  ;;  %v12318_v45 = vor.u32 %v18046_v35, %v12317_v34  ;;  %v12382_v30 = vor.u32 %v18061_v22, %v12381_v21  ;;  %v12353_v34 = vld [vmem:[%s29156_s3 + $0x168] sm:$0xf]  ;;  %v18054_v35 = vld [vmem:[%s29156_s3 + $0x180] sm:$0xf0] }
  0xbf   :  { %v12486_v50 = vor.u32 %v18088_v41, %v12485_v39  ;;  %v18011_v39 = vld [vmem:[%s29156_s3 + $0x28] sm:$0xf0]  ;;  %v18124_v41 = vld [vmem:[%s29156_s3 + $0x3b0] sm:$0xf0]  ;;  %v12213_v21 = vld [vmem:[%s29156_s3 + $0x50] sm:$0xf] }
  0xc0   :  { %12664 = vmatmul.msk.bf16.vlgmr.msra.gmra.mxu1 %vm1056_vm0, %v19998_v62  ;;  %1183 = vmatpush.bf16.msra.mxu3 %v12202_v46  ;;  %v18092_v46 = vld [vmem:[%s29156_s3 + $0x2b4] sm:$0xf]  ;;  %v18019_v22 = vld [vmem:[%s29156_s3 + $0x68] sm:$0xf0] }
  0xc1   :  { %1155 = vmatpush.bf16.msrb.mxu1 %v12478_v42  ;;  %1196 = vmatpush.bf16.msrb.mxu2 %v12426_v47  ;;  %v18029_v42 = vld [vmem:[%s29156_s3 + $0xbc] sm:$0xf]  ;;  %v12515_v47 = vld [vmem:[%s29156_s3 + $0x2cc] sm:$0xf0] }
  0xc2   :  { %v12266_v51 = vor.u32 %v18029_v42, %v12263_v44  ;;  %v18127_v42 = vld [vmem:[%s29156_s3 + $0x3cc] sm:$0xf]  ;;  %v12655_v44 = vld [vmem:[%s29156_s3 + $0x3e4] sm:$0xf0] }
  0xc4   :  { %1184 = vmatpush.bf16.msra.mxu3 %v12174_v59  ;;  %v12487_v59 = vld [vmem:[%s29156_s3 + $0x294] sm:$0xf0] }
  0xc5   :  { %1156 = vmatpush.bf16.msrb.mxu1 %v12450_v53  ;;  %1197 = vmatpush.bf16.msrb.mxu2 %v12398_v60  ;;  %v12518_v53 = vor.u32 %v18092_v46, %v12515_v47  ;;  %v12261_v60 = vld [vmem:[%s29156_s3 + $0xb8] sm:$0xf]  ;;  %v12354_v46 = vor.u32 %v18054_v35, %v12353_v34  ;;  %v12465_v35 = vld [vmem:[%s29156_s3 + $0x248] sm:$0xf] }
  0xc7   :  { %1185 = vmatmul.bf16.vlgmr.msra.gmra.mxu3 %v19955_v37 }
  0xc8   :  { %1229 = vmatpush.bf16.msrb.mxu3 %v12598_v61  ;;  %1198 = vmatmul.bf16.vlgmr.msrb.gmra.mxu2 %v19966_v43  ;;  %v18032_v61 = vld [vmem:[%s29156_s3 + $0xd0] sm:$0xf0] }
  0xc9   :  { %1255 = vmatpush.bf16.msra.mxu2 %v12378_v63  ;;  %1157 = vmatpush.bf16.msrb.mxu1 %v12422_v2  ;;  %v12458_v63 = vor.u32 %v18081_v54, %v12457_v52  ;;  %v12490_v2 = vor.u32 %v18085_v58, %v12487_v59  ;;  %v12262_v6 = vor.u32 %v18032_v61, %v12261_v60  ;;  %v18120_v52 = vld [vmem:[%s29156_s3 + $0x394] sm:$0xf] }
  0xca   :  { %12666 = vmatmul.msk.bf16.vlgmr.msrb.gmra.mxu0 %vm1056_vm0, %v19998_v62  ;;  %v12326_v54 = vor.u32 %v18047_v49, %v12325_v48  ;;  %v18040_v58 = vld [vmem:[%s29156_s3 + $0x110] sm:$0xf0]  ;;  %v12606_v60 = vor.u32 %v18117_v56, %v12605_v55  ;;  %v12828_v48 = vld [vmem:[%s29159_s5 + $0x138] sm:$0xf]  ;;  %v18177_v49 = vld [vmem:[%s29159_s5 + $0x168] sm:$0xf0] }
  0xcb   :  { %1268 = vmatpush.bf16.msrb.mxu0 %v12602_v14  ;;  %v18067_v14 = vld [vmem:[%s29156_s3 + $0x1e8] sm:$0xf0]  ;;  %v14232_v56 = vld [vmem:[%s29159_s5 + $0xc30] sm:$0xf] }
  0xcc   :  { %1230 = vmatpush.bf16.msrb.mxu3 %v12570_v11  ;;  %v12430_v11 = vor.u32 %v18074_v3, %v12429_v1  ;;  %v12269_v1 = vld [vmem:[%s29156_s3 + $0xc0] sm:$0xf]  ;;  %v13036_v3 = vld [vmem:[%s29159_s5 + $0x2d8] sm:$0xf] }
  0xcd   :  { %1256 = vmatpush.bf16.msra.mxu2 %v12350_v12  ;;  %1158 = vmatpush.bf16.msrb.mxu1 %v12394_v15  ;;  %v12210_v12 = vor.u32 %v18015_v4, %v12207_v5  ;;  %v18008_v15 = vld [vmem:[%s29156_s3 + $0x14] sm:$0xf]  ;;  %v18229_v4 = vld [vmem:[%s29159_s5 + $0x308] sm:$0xf0]  ;;  %v12984_v5 = vld [vmem:[%s29159_s5 + $0x270] sm:$0xf] }
  0xce   :  { %v12182_v28 = vor.u32 %v18008_v15, %v12179_v17  ;;  %v13037_v7 = vor.u32 %v18229_v4, %v13036_v3  ;;  %v12932_v15 = vld [vmem:[%s29159_s5 + $0x208] sm:$0xf] }
  0xcf   :  { %1269 = vmatpush.bf16.msrb.mxu0 %v12574_v27  ;;  %v12402_v27 = vor.u32 %v18067_v14, %v12401_v13  ;;  %v18026_v13 = vld [vmem:[%s29156_s3 + $0xa0] sm:$0xf0]  ;;  %v12985_v14 = vor.u32 %v18216_v8, %v12984_v5  ;;  %v12724_v4 = vld [vmem:[%s29159_s5 + $0x68] sm:$0xf]  ;;  %v18151_v5 = vld [vmem:[%s29159_s5 + $0x98] sm:$0xf0] }
  0xd0   :  { %1231 = vmatpush.bf16.msrb.mxu3 %v12542_v24  ;;  %1159 = vmatmul.bf16.vlgmr.msrb.gmra.mxu1 %v19966_v43  ;;  %v18018_v24 = vld [vmem:[%s29156_s3 + $0x60] sm:$0xf0]  ;;  %v12725_v8 = vor.u32 %v18151_v5, %v12724_v4  ;;  %v18645_v4 = vld [vmem:[%s29159_s5 + $0x1008] sm:$0xf0] }
  0xd1   :  { %1216 = vmatpush.bf16.msra.mxu1 %v12374_v19  ;;  %1257 = vmatpush.bf16.msra.mxu2 %v12322_v25  ;;  %v12431_v19 = vld [vmem:[%s29156_s3 + $0x224] sm:$0xf0]  ;;  %v12661_v25 = vld [vmem:[%s29156_s3 + $0x3d0] sm:$0xf]  ;;  %v12206_v33 = vor.u32 %v18018_v24, %v12205_v23  ;;  %v12880_v24 = vld [vmem:[%s29159_s5 + $0x1a0] sm:$0xf] }
  0xd2   :  { %v12434_v29 = vor.u32 %v18071_v18, %v12431_v19  ;;  %v12521_v19 = vld [vmem:[%s29156_s3 + $0x2b8] sm:$0xf] }
  0xd3   :  { %1270 = vmatpush.bf16.msrb.mxu0 %v12546_v40  ;;  %v12633_v40 = vld [vmem:[%s29156_s3 + $0x398] sm:$0xf] }
  0xd4   :  { %1232 = vmatpush.bf16.msrb.mxu3 %v12514_v36  ;;  %v12177_v36 = vld [vmem:[%s29156_s3 + $0x10] sm:$0xf] }
  0xd5   :  { %1217 = vmatpush.bf16.msra.mxu1 %v12346_v31  ;;  %1258 = vmatpush.bf16.msra.mxu2 %v12294_v38  ;;  %v18064_v31 = vld [vmem:[%s29156_s3 + $0x1d4] sm:$0xf]  ;;  %v12662_v38 = vor.u32 %v18131_v26, %v12661_v25  ;;  %v12178_v47 = vor.u32 %v18011_v39, %v12177_v36  ;;  %v18082_v36 = vld [vmem:[%s29156_s3 + $0x260] sm:$0xf0]  ;;  %v12437_v39 = vld [vmem:[%s29156_s3 + $0x210] sm:$0xf] }
  0xd6   :  { %v18190_v25 = vld [vmem:[%s29159_s5 + $0x1d0] sm:$0xf0] }
  0xd7   :  { %1271 = vmatpush.bf16.msrb.mxu0 %v12518_v53  ;;  %v12627_v53 = vld [vmem:[%s29156_s3 + $0x3ac] sm:$0xf0] }
  0xd8   :  { %1233 = vmatpush.bf16.msrb.mxu3 %v12486_v50  ;;  %v12634_v50 = vor.u32 %v18124_v41, %v12633_v40  ;;  %v12630_v59 = vor.u32 %v18120_v52, %v12627_v53  ;;  %v12409_v41 = vld [vmem:[%s29156_s3 + $0x1d8] sm:$0xf]  ;;  %v13400_v52 = vld [vmem:[%s29159_s5 + $0x5b0] sm:$0xf]  ;;  %v18320_v53 = vld [vmem:[%s29159_s5 + $0x5e0] sm:$0xf0] }
  0xd9   :  { %1218 = vmatpush.bf16.msra.mxu1 %v12318_v45  ;;  %1259 = vmatpush.bf16.msra.mxu2 %v12266_v51  ;;  %v12406_v45 = vor.u32 %v18064_v31, %v12403_v32  ;;  %v12658_v51 = vor.u32 %v18127_v42, %v12655_v44  ;;  %v18012_v31 = vld [vmem:[%s29156_s3 + $0x30] sm:$0xf0]  ;;  %v12881_v32 = vor.u32 %v18190_v25, %v12880_v24  ;;  %v14284_v44 = vld [vmem:[%s29159_s5 + $0xc98] sm:$0xf]  ;;  %v13192_v24 = vld [vmem:[%s29159_s5 + $0x410] sm:$0xf] }
  0xda   :  { %12667 = vmatmul.msk.bf16.vlgmr.msra.gmra.mxu0 %vm1056_vm0, %v19998_v62  ;;  %v18068_v42 = vld [vmem:[%s29156_s3 + $0x1f0] sm:$0xf0]  ;;  %v13401_v55 = vor.u32 %v18320_v53, %v13400_v52 }
  0xdb   :  { %1272 = vmatpush.bf16.msrb.mxu0 %v12490_v2  ;;  %v18033_v2 = vld [vmem:[%s29156_s3 + $0xd8] sm:$0xf0]  ;;  %v18398_v52 = vld [vmem:[%s29159_s5 + $0x850] sm:$0xf0] }
  0xdc   :  { %1234 = vmatpush.bf16.msrb.mxu3 %v12458_v63  ;;  %v12577_v63 = vld [vmem:[%s29156_s3 + $0x328] sm:$0xf]  ;;  %v12270_v9 = vor.u32 %v18033_v2, %v12269_v1  ;;  %v18307_v2 = vld [vmem:[%s29159_s5 + $0x578] sm:$0xf0] }
  0xdd   :  { %1219 = vmatpush.bf16.msra.mxu1 %v12290_v57  ;;  %1260 = vmatpush.bf16.msra.mxu2 %v12238_v0  ;;  %v12297_v57 = vld [vmem:[%s29156_s3 + $0xf8] sm:$0xf]  ;;  %v18110_v0 = vld [vmem:[%s29156_s3 + $0x340] sm:$0xf0]  ;;  %v13348_v1 = vld [vmem:[%s29159_s5 + $0x548] sm:$0xf] }
  0xde   :  { %v12298_v61 = vor.u32 %v18040_v58, %v12297_v57  ;;  %v18528_v57 = vld [vmem:[%s29159_s5 + $0xc60] sm:$0xf0]  ;;  %v12776_v58 = vld [vmem:[%s29159_s5 + $0xd0] sm:$0xf]  ;;  %v13349_v3 = vor.u32 %v18307_v2, %v13348_v1  ;;  %v18210_v1 = vld [vmem:[%s29159_s5 + $0x274] sm:$0xf] }
  0xdf   :  { %1273 = vmatpush.bf16.msrb.mxu0 %v12462_v16  ;;  %v18203_v16 = vld [vmem:[%s29159_s5 + $0x238] sm:$0xf0]  ;;  %v12986_v2 = vld [vmem:[%s29159_s5 + $0x2a4] sm:$0xf0] }
  0xe0   :  { %1235 = vmatpush.bf16.msrb.mxu3 %v12430_v11  ;;  %v18103_v11 = vld [vmem:[%s29156_s3 + $0x308] sm:$0xf0]  ;;  %v12933_v23 = vor.u32 %v18203_v16, %v12932_v15  ;;  %v14076_v15 = vld [vmem:[%s29159_s5 + $0xaf8] sm:$0xf] }
  0xe1   :  { %1220 = vmatpush.bf16.msra.mxu1 %v12262_v6  ;;  %1261 = vmatpush.bf16.msra.mxu2 %v12210_v12  ;;  %v12578_v6 = vor.u32 %v18110_v0, %v12577_v63  ;;  %v12241_v12 = vld [vmem:[%s29156_s3 + $0x88] sm:$0xf]  ;;  %v12550_v17 = vor.u32 %v18103_v11, %v12549_v10  ;;  %v18515_v0 = vld [vmem:[%s29159_s5 + $0xbf8] sm:$0xf0]  ;;  %v18294_v10 = vld [vmem:[%s29159_s5 + $0x510] sm:$0xf0] }
  0xe2   :  { %v12242_v18 = vor.u32 %v18026_v13, %v12241_v12  ;;  %v12672_v12 = vld [vmem:[%s29159_s5] sm:$0xf]  ;;  %v18138_v13 = vld [vmem:[%s29159_s5 + $0x30] sm:$0xf0]  ;;  %v18489_v16 = vld [vmem:[%s29159_s5 + $0xb28] sm:$0xf0] }
  0xe3   :  { %1274 = vmatpush.bf16.msrb.mxu0 %v12434_v29  ;;  %v18089_v29 = vld [vmem:[%s29156_s3 + $0x298] sm:$0xf0]  ;;  %v14077_v25 = vor.u32 %v18489_v16, %v14076_v15  ;;  %v12934_v15 = vld [vmem:[%s29159_s5 + $0x23c] sm:$0xf0] }
  0xe4   :  { %1236 = vmatpush.bf16.msrb.mxu3 %v12402_v27  ;;  %v12214_v27 = vor.u32 %v18019_v22, %v12213_v21  ;;  %v18437_v22 = vld [vmem:[%s29159_s5 + $0x988] sm:$0xf0] }
  0xe5   :  { %1221 = vmatpush.bf16.msra.mxu1 %v12234_v20  ;;  %1262 = vmatpush.bf16.msra.mxu2 %v12182_v28  ;;  %v18096_v20 = vld [vmem:[%s29156_s3 + $0x2d0] sm:$0xf0]  ;;  %v12493_v28 = vld [vmem:[%s29156_s3 + $0x280] sm:$0xf] }
  0xe6   :  { %v12522_v26 = vor.u32 %v18096_v20, %v12521_v19  ;;  %v18281_v19 = vld [vmem:[%s29159_s5 + $0x4a8] sm:$0xf0]  ;;  %v13868_v20 = vld [vmem:[%s29159_s5 + $0x958] sm:$0xf] }
  0xe7   :  { %1237 = vmatmul.bf16.vlgmr.msrb.gmra.mxu3 %v19966_v43  ;;  %1275 = vmatpush.bf16.msrb.mxu0 %v12406_v45  ;;  %v18541_v45 = vld [vmem:[%s29159_s5 + $0xcc8] sm:$0xf0] }
  0xe8   :  { %1294 = vmatpush.bf16.msra.mxu3 %v12382_v30  ;;  %1263 = vmatmul.bf16.vlgmr.msra.gmra.mxu2 %v19955_v37  ;;  %v12185_v30 = vld [vmem:[%s29156_s3 + $0x18] sm:$0xf] }
  0xe9   :  { %1222 = vmatpush.bf16.msra.mxu1 %v12206_v33  ;;  %1326 = vmatpush.bf16.msrb.mxu2 %v12662_v38  ;;  %v12494_v33 = vor.u32 %v18089_v29, %v12493_v28  ;;  %v12186_v34 = vor.u32 %v18012_v31, %v12185_v30  ;;  %v12466_v38 = vor.u32 %v18082_v36, %v12465_v35  ;;  %v18424_v28 = vld [vmem:[%s29159_s5 + $0x920] sm:$0xf0]  ;;  %v14024_v29 = vld [vmem:[%s29159_s5 + $0xa90] sm:$0xf]  ;;  %v18463_v35 = vld [vmem:[%s29159_s5 + $0xa58] sm:$0xf0] }
  0xea   :  { %1276 = vmatmul.bf16.vlgmr.msrb.gmra.mxu0 %v19966_v43  ;;  %v18476_v30 = vld [vmem:[%s29159_s5 + $0xac0] sm:$0xf0]  ;;  %v13140_v36 = vld [vmem:[%s29159_s5 + $0x3a8] sm:$0xf] }
  0xeb   :  { %5301 = vmatpush.bf16.msra.mxu0 %v13037_v7  ;;  %v14128_v7 = vld [vmem:[%s29159_s5 + $0xb60] sm:$0xf] }
  0xec   :  { %1295 = vmatpush.bf16.msra.mxu3 %v12354_v46  ;;  %v18333_v46 = vld [vmem:[%s29159_s5 + $0x648] sm:$0xf0] }
  0xed   :  { %1223 = vmatpush.bf16.msra.mxu1 %v12178_v47  ;;  %1327 = vmatpush.bf16.msrb.mxu2 %v12634_v50  ;;  %v12410_v50 = vor.u32 %v18068_v42, %v12409_v41  ;;  %v20604_v42 = vld [vmem:[%s29160_s4] sm:$0x7f] }
  0xef   :  { %5302 = vmatpush.bf16.msra.mxu0 %v12985_v14 }
  0xf0   :  { %1224 = vmatmul.bf16.vlgmr.msra.gmra.mxu1 %v19955_v37  ;;  %1296 = vmatpush.bf16.msra.mxu3 %v12326_v54  ;;  %v14285_v54 = vor.u32 %v18541_v45, %v14284_v44  ;;  %v13920_v45 = vld [vmem:[%s29159_s5 + $0x9c0] sm:$0xf] }
  0xf1   :  { %1287 = vmatpush.bf16.msrb.mxu1 %v12658_v51  ;;  %v12829_v51 = vor.u32 %v18177_v49, %v12828_v48  ;;  %v13712_v48 = vld [vmem:[%s29159_s5 + $0x820] sm:$0xf]  ;;  %v18223_v49 = vld [vmem:[%s29159_s5 + $0x2dc] sm:$0xf] }
  0xf2   :  { %v13713_v53 = vor.u32 %v18398_v52, %v13712_v48  ;;  %v18606_v48 = vld [vmem:[%s29159_s5 + $0xed0] sm:$0xf0] }
  0xf3   :  { %5303 = vmatpush.bf16.msra.mxu0 %v12933_v23  ;;  %v13869_v23 = vor.u32 %v18437_v22, %v13868_v20  ;;  %v18723_v22 = vld [vmem:[%s29159_s5 + $0x1278] sm:$0xf0] }
  0xf4   :  { %1297 = vmatpush.bf16.msra.mxu3 %v12298_v61  ;;  %v14180_v61 = vld [vmem:[%s29159_s5 + $0xbc8] sm:$0xf] }
  0xf5   :  { %1288 = vmatpush.bf16.msrb.mxu1 %v12630_v59  ;;  %v18164_v59 = vld [vmem:[%s29159_s5 + $0x100] sm:$0xf0] }
  0xf6   :  { %v12777_v63 = vor.u32 %v18164_v59, %v12776_v58 }
  0xf7   :  { %5304 = vmatpush.bf16.msra.mxu0 %v12881_v32 }
  0xf8   :  { %1298 = vmatpush.bf16.msra.mxu3 %v12270_v9  ;;  %12669 = vmatmul.msk.bf16.vlgmr.msrb.gmra.mxu2 %vm1056_vm0, %v19998_v62  ;;  %v13296_v9 = vld [vmem:[%s29159_s5 + $0x4e0] sm:$0xf] }
  0xf9   :  { %1307 = vmatpush.bf16.msra.mxu1 %v12606_v60  ;;  %v14233_v60 = vor.u32 %v18528_v57, %v14232_v56  ;;  %v13297_v11 = vor.u32 %v18294_v10, %v13296_v9  ;;  %v15116_v56 = vld [vmem:[%s29159_s5 + $0x1318] sm:$0xf]  ;;  %v18749_v57 = vld [vmem:[%s29159_s5 + $0x1348] sm:$0xf0]  ;;  %v18372_v9 = vld [vmem:[%s29159_s5 + $0x780] sm:$0xf0] }
  0xfa   :  { %v15117_v59 = vor.u32 %v18749_v57, %v15116_v56  ;;  %v14648_v10 = vld [vmem:[%s29159_s5 + $0xf70] sm:$0xf] }
  0xfb   :  { %5305 = vmatpush.bf16.msra.mxu0 %v12829_v51 }
  0xfc   :  { %1299 = vmatpush.bf16.msra.mxu3 %v12242_v18  ;;  %v13244_v18 = vld [vmem:[%s29159_s5 + $0x478] sm:$0xf] }
  0xfd   :  { %1308 = vmatpush.bf16.msra.mxu1 %v12578_v6  ;;  %v14181_v6 = vor.u32 %v18515_v0, %v14180_v61  ;;  %v13245_v21 = vor.u32 %v18281_v19, %v13244_v18  ;;  %v18385_v61 = vld [vmem:[%s29159_s5 + $0x7e8] sm:$0xf0] }
  0xff   :  { %5306 = vmatpush.bf16.msra.mxu0 %v12777_v63  ;;  %v14700_v63 = vld [vmem:[%s29159_s5 + $0xfd8] sm:$0xf] }
 0x100   :  { %12668 = vmatmul.msk.bf16.vlgmr.msrb.gmra.mxu1 %vm1056_vm0, %v19998_v62  ;;  %1300 = vmatpush.bf16.msra.mxu3 %v12214_v27  ;;  %v18075_v62 = vld [vmem:[%s29156_s3 + $0x228] sm:$0xf0]  ;;  %v13816_v27 = vld [vmem:[%s29159_s5 + $0x8f0] sm:$0xf]  ;;  %v14701_v5 = vor.u32 %v18645_v4, %v14700_v63  ;;  %v18158_v63 = vld [vmem:[%s29159_s5 + $0xd4] sm:$0xf] }
 0x101   :  { %1309 = vmatpush.bf16.msra.mxu1 %v12550_v17  ;;  %v12438_v40 = vor.u32 %v18075_v62, %v12437_v39  ;;  %v12673_v17 = vor.u32 %v18138_v13, %v12672_v12  ;;  %v13817_v32 = vor.u32 %v18424_v28, %v13816_v27  ;;  %v13764_v39 = vld [vmem:[%s29159_s5 + $0x888] sm:$0xf]  ;;  %v12989_v12 = vor.u32 %v18210_v1, %v12986_v2  ;;  %v18359_v27 = vld [vmem:[%s29159_s5 + $0x718] sm:$0xf0]  ;;  %v14856_v2 = vld [vmem:[%s29159_s5 + $0x1110] sm:$0xf] }
 0x102   :  { %v14440_v4 = vld [vmem:[%s29159_s5 + $0xdd0] sm:$0xf] }
 0x103   :  { %5307 = vmatpush.bf16.msra.mxu0 %v12725_v8  ;;  %v13608_v8 = vld [vmem:[%s29159_s5 + $0x750] sm:$0xf] }
 0x104   :  { %1301 = vmatpush.bf16.msra.mxu3 %v12186_v34  ;;  %v13972_v34 = vld [vmem:[%s29159_s5 + $0xa28] sm:$0xf]  ;;  %v13609_v13 = vor.u32 %v18372_v9, %v13608_v8  ;;  %v12726_v9 = vld [vmem:[%s29159_s5 + $0x9c] sm:$0xf0] }
 0x105   :  { %1310 = vmatpush.bf16.msra.mxu1 %v12522_v26  ;;  %v18268_v26 = vld [vmem:[%s29159_s5 + $0x440] sm:$0xf0]  ;;  %v13973_v44 = vor.u32 %v18463_v35, %v13972_v34 }
 0x106   :  { %v13193_v31 = vor.u32 %v18268_v26, %v13192_v24  ;;  %v18184_v24 = vld [vmem:[%s29159_s5 + $0x1a4] sm:$0xf]  ;;  %v13556_v26 = vld [vmem:[%s29159_s5 + $0x6e8] sm:$0xf] }
 0x107   :  { %1302 = vmatmul.bf16.vlgmr.msra.gmra.mxu3 %v19955_v37  ;;  %v13452_v37 = vld [vmem:[%s29159_s5 + $0x618] sm:$0xf]  ;;  %5308 = vmatpush.bf16.msra.mxu0 %v12673_v17 }
 0x108   :  { %v13453_v47 = vor.u32 %v18333_v46, %v13452_v37  ;;  %5327 = vmatpush.bf16.msrb.mxu3 %v13869_v23  ;;  %v18450_v37 = vld [vmem:[%s29159_s5 + $0x9f0] sm:$0xf0]  ;;  %v13088_v46 = vld [vmem:[%s29159_s5 + $0x340] sm:$0xf] }
 0x109   :  { %1311 = vmatpush.bf16.msra.mxu1 %v12494_v33  ;;  %v14025_v33 = vor.u32 %v18476_v30, %v14024_v29  ;;  %v12882_v30 = vld [vmem:[%s29159_s5 + $0x1d4] sm:$0xf0] }
 0x10a   :  { %5314 = vmatpush.bf16.msra.mxu2 %v13453_v47  ;;  %v18242_v47 = vld [vmem:[%s29159_s5 + $0x370] sm:$0xf0] }
 0x10b   :  { %v13089_v51 = vor.u32 %v18242_v47, %v13088_v46  ;;  %5353 = vmatpush.bf16.msrb.mxu0 %v14701_v5  ;;  %v12830_v46 = vld [vmem:[%s29159_s5 + $0x16c] sm:$0xf0] }
 0x10c   :  { %5328 = vmatpush.bf16.msrb.mxu3 %v13817_v32  ;;  %v14596_v32 = vld [vmem:[%s29159_s5 + $0xf08] sm:$0xf] }
 0x10d   :  { %1312 = vmatpush.bf16.msra.mxu1 %v12466_v38  ;;  %v18255_v38 = vld [vmem:[%s29159_s5 + $0x3d8] sm:$0xf0] }
 0x10e   :  { %5315 = vmatpush.bf16.msra.mxu2 %v13401_v55  ;;  %v13141_v62 = vor.u32 %v18255_v38, %v13140_v36  ;;  %v13921_v55 = vor.u32 %v18450_v37, %v13920_v45  ;;  %v18171_v36 = vld [vmem:[%s29159_s5 + $0x13c] sm:$0xf]  ;;  %v14960_v38 = vld [vmem:[%s29159_s5 + $0x11e0] sm:$0xf] }
 0x10f   :  { %v14544_v45 = vld [vmem:[%s29159_s5 + $0xea0] sm:$0xf]  ;;  %v12833_v56 = vor.u32 %v18171_v36, %v12830_v46  ;;  %v18431_v36 = vld [vmem:[%s29159_s5 + $0x95c] sm:$0xf]  ;;  %v14234_v46 = vld [vmem:[%s29159_s5 + $0xc64] sm:$0xf0] }
 0x111   :  { %1313 = vmatpush.bf16.msra.mxu1 %v12438_v40  ;;  %v18411_v40 = vld [vmem:[%s29159_s5 + $0x8b8] sm:$0xf0] }
 0x112   :  { %5316 = vmatpush.bf16.msra.mxu2 %v13349_v3  ;;  %v13765_v41 = vor.u32 %v18411_v40, %v13764_v39  ;;  %v18710_v39 = vld [vmem:[%s29159_s5 + $0x1210] sm:$0xf0] }
 0x113   :  { %v14961_v40 = vor.u32 %v18710_v39, %v14960_v38  ;;  %v13870_v38 = vld [vmem:[%s29159_s5 + $0x98c] sm:$0xf0] }
 0x114   :  { %5329 = vmatpush.bf16.msrb.mxu3 %v13765_v41  ;;  %v13504_v41 = vld [vmem:[%s29159_s5 + $0x680] sm:$0xf] }
 0x115   :  { %1314 = vmatpush.bf16.msra.mxu1 %v12410_v50  ;;  %v13038_v50 = vld [vmem:[%s29159_s5 + $0x30c] sm:$0xf0] }
 0x116   :  { %5317 = vmatpush.bf16.msra.mxu2 %v13297_v11  ;;  %v13041_v58 = vor.u32 %v18223_v49, %v13038_v50  ;;  %v18632_v11 = vld [vmem:[%s29159_s5 + $0xfa0] sm:$0xf0] }
 0x117   :  { %v14649_v16 = vor.u32 %v18632_v11, %v14648_v10 }
 0x118   :  { %1315 = vmatmul.bf16.vlgmr.msra.gmra.mxu1 %v19966_v43  ;;  %v18502_v43 = vld [vmem:[%s29159_s5 + $0xb90] sm:$0xf0]  ;;  %5330 = vmatpush.bf16.msrb.mxu3 %v13713_v53 }
 0x119   :  { %5340 = vmatpush.bf16.msrb.mxu1 %v14285_v54  ;;  %v14129_v14 = vor.u32 %v18502_v43, %v14128_v7  ;;  %v394_v54 = vperm.slane %v20604_v42, 0  ;;  %v18736_v7 = vld [vmem:[%s29159_s5 + $0x12e0] sm:$0xf0]  ;;  %5354 = vmatpush.bf16.msrb.mxu0 %v14649_v16  ;;  %v18671_v16 = vld [vmem:[%s29159_s5 + $0x10d8] sm:$0xf0] }
 0x11a   :  { %5318 = vmatpush.bf16.msra.mxu2 %v13245_v21  ;;  %v15012_v21 = vld [vmem:[%s29159_s5 + $0x1248] sm:$0xf] }
 0x11d   :  { %5341 = vmatpush.bf16.msrb.mxu1 %v14233_v60  ;;  %v13660_v60 = vld [vmem:[%s29159_s5 + $0x7b8] sm:$0xf] }
 0x11e   :  { %5319 = vmatpush.bf16.msra.mxu2 %v13193_v31  ;;  %v13661_v3 = vor.u32 %v18385_v61, %v13660_v60  ;;  %v13557_v31 = vor.u32 %v18359_v27, %v13556_v26  ;;  %v395_v60 = vperm.slane %v20604_v42, 1  ;;  %v14752_v27 = vld [vmem:[%s29159_s5 + $0x1040] sm:$0xf] }
 0x120   :  { %5331 = vmatpush.bf16.msrb.mxu3 %v13661_v3  ;;  %v18684_v3 = vld [vmem:[%s29159_s5 + $0x1140] sm:$0xf0] }
 0x121   :  { %5342 = vmatpush.bf16.msrb.mxu1 %v14181_v6  ;;  %v15064_v6 = vld [vmem:[%s29159_s5 + $0x12b0] sm:$0xf] }
 0x122   :  { %5320 = vmatpush.bf16.msra.mxu2 %v13141_v62  ;;  %v15065_v43 = vor.u32 %v18736_v7, %v15064_v6  ;;  %v12885_v62 = vor.u32 %v18184_v24, %v12882_v30  ;;  %v14857_v6 = vor.u32 %v18684_v3, %v14856_v2  ;;  %v18580_v7 = vld [vmem:[%s29159_s5 + $0xe00] sm:$0xf0]  ;;  %v12674_v24 = vld [vmem:[%s29159_s5 + $0x34] sm:$0xf0] }
 0x123   :  { %v14441_v11 = vor.u32 %v18580_v7, %v14440_v4  ;;  %v18496_v4 = vld [vmem:[%s29159_s5 + $0xb64] sm:$0xf] }
 0x124   :  { %5332 = vmatpush.bf16.msrb.mxu3 %v13609_v13 }
 0x125   :  { %5343 = vmatpush.bf16.msrb.mxu1 %v14129_v14  ;;  %v1082_v0 = vpop.f32.mrf.mxu0  ;;  %v18197_v14 = vld [vmem:[%s29159_s5 + $0x20c] sm:$0xf] }
 0x126   :  { %5321 = vmatpush.bf16.msra.mxu2 %v13089_v51  ;;  %v12937_v23 = vor.u32 %v18197_v14, %v12934_v15  ;;  %v14545_v51 = vor.u32 %v18606_v48, %v14544_v45  ;;  %v14804_v15 = vld [vmem:[%s29159_s5 + $0x10a8] sm:$0xf]  ;;  %v13873_v45 = vor.u32 %v18431_v36, %v13870_v38  ;;  %v18418_v48 = vld [vmem:[%s29159_s5 + $0x8f4] sm:$0xf] }
 0x128   :  { %5333 = vmatpush.bf16.msrb.mxu3 %v13557_v31  ;;  %v14336_v31 = vld [vmem:[%s29159_s5 + $0xd00] sm:$0xf] }
 0x129   :  { %5344 = vmatpush.bf16.msrb.mxu1 %v14077_v25  ;;  %v15013_v25 = vor.u32 %v18723_v22, %v15012_v21 }
 0x12a   :  { %5366 = vmatpush.bf16.msrb.mxu2 %v15117_v59  ;;  %v1069_v17 = vpop.f32.mrf.mxu3  ;;  %v20679_v18 = vpop.f32.mrf.mxu2  ;;  %v18593_v59 = vld [vmem:[%s29159_s5 + $0xe68] sm:$0xf0] }
 0x12b   :  { %v1070_v19 = vadd.f32 %v1069_v17, %v394_v54  ;;  %v14908_v54 = vld [vmem:[%s29159_s5 + $0x1178] sm:$0xf]  ;;  %v1109_v8 = vadd.f32 %v20679_v18, %v395_v60  ;;  %v14805_v18 = vor.u32 %v18671_v16, %v14804_v15  ;;  %v14702_v15 = vld [vmem:[%s29159_s5 + $0x100c] sm:$0xf0]  ;;  %v18483_v16 = vld [vmem:[%s29159_s5 + $0xafc] sm:$0xf] }
 0x12d   :  { %5345 = vmatpush.bf16.msrb.mxu1 %v14025_v33  ;;  %v1095_v20 = vpop.f32.mrf.mxu1  ;;  %v1083_v28 = vadd.f32 %v1082_v0, %v1070_v19  ;;  %v1084_v29 = vpop.f32.mrf.mxu0  ;;  %v18619_v33 = vld [vmem:[%s29159_s5 + $0xf38] sm:$0xf0]  ;;  %v12778_v0 = vld [vmem:[%s29159_s5 + $0x104] sm:$0xf0] }
 0x12e   :  { %5367 = vmatpush.bf16.msrb.mxu2 %v15065_v43  ;;  %v14597_v34 = vor.u32 %v18619_v33, %v14596_v32  ;;  %v12781_v5 = vor.u32 %v18158_v63, %v12778_v0  ;;  %v18145_v43 = vld [vmem:[%s29159_s5 + $0x6c] sm:$0xf]  ;;  %v14388_v19 = vld [vmem:[%s29159_s5 + $0xd68] sm:$0xf]  ;;  %v18554_v32 = vld [vmem:[%s29159_s5 + $0xd30] sm:$0xf0] }
 0x12f   :  { %v1096_v35 = vadd.f32 %v1095_v20, %v1083_v28  ;;  %v12729_v17 = vor.u32 %v18145_v43, %v12726_v9  ;;  %v18567_v20 = vld [vmem:[%s29159_s5 + $0xd98] sm:$0xf0]  ;;  %v18658_v28 = vld [vmem:[%s29159_s5 + $0x1070] sm:$0xf0] }
 0x130   :  { %5355 = vmatpush.bf16.msrb.mxu0 %v14597_v34  ;;  %v14753_v30 = vor.u32 %v18658_v28, %v14752_v27  ;;  %v18535_v33 = vld [vmem:[%s29159_s5 + $0xc9c] sm:$0xf]  ;;  %v14650_v27 = vld [vmem:[%s29159_s5 + $0xfa4] sm:$0xf0] }
 0x131   :  { %5346 = vmatpush.bf16.msrb.mxu1 %v13973_v44  ;;  %v18346_v44 = vld [vmem:[%s29159_s5 + $0x6b0] sm:$0xf0]  ;;  %v1333_v37 = vmax.f32 %v1096_v35, 0.0  ;;  %v14286_v35 = vld [vmem:[%s29159_s5 + $0xccc] sm:$0xf0] }
 0x132   :  { %5368 = vmatpush.bf16.msrb.mxu2 %v15013_v25  ;;  %v13505_v47 = vor.u32 %v18346_v44, %v13504_v41  ;;  %v1071_v49 = vpop.f32.mrf.mxu3  ;;  %v1110_v50 = vpop.f32.mrf.mxu2  ;;  %v14389_v25 = vor.u32 %v18567_v20, %v14388_v19  ;;  %v18379_v19 = vld [vmem:[%s29159_s5 + $0x7bc] sm:$0xf]  ;;  %v13662_v20 = vld [vmem:[%s29159_s5 + $0x7ec] sm:$0xf0] }
 0x133   :  { %v20729_v52 = vpack.c.bf16 %v1333_v37, %v1333_v37  ;;  %v18522_v37 = vld [vmem:[%s29159_s5 + $0xc34] sm:$0xf]  ;;  %v13818_v49 = vld [vmem:[%s29159_s5 + $0x924] sm:$0xf0]  ;;  %v13665_v28 = vor.u32 %v18379_v19, %v13662_v20  ;;  %v398_v19 = vperm.slane %v20604_v42, 4 }
 0x134   :  { %5334 = vmatpush.bf16.msrb.mxu3 %v13505_v47  ;;  %5356 = vmatpush.bf16.msrb.mxu0 %v14545_v51  ;;  %v14237_v47 = vor.u32 %v18522_v37, %v14234_v46  ;;  %v396_v51 = vperm.slane %v20604_v42, 2  ;;  %v18613_v46 = vld [vmem:[%s29159_s5 + $0xf0c] sm:$0xf] }
 0x135   :  { %5347 = vmatpush.bf16.msrb.mxu1 %v13921_v55  ;;  %v1097_v53 = vpop.f32.mrf.mxu1  ;;  %v18697_v55 = vld [vmem:[%s29159_s5 + $0x11a8] sm:$0xf0]  ;;  %v20744_v61 = vpop.f32.mrf.mxu0  ;;  %5309 = vmatmul.bf16.vlgmr.msra.gmra.mxu0 %v20729_v52 }
 0x136   :  { %5369 = vmatpush.bf16.msrb.mxu2 %v14961_v40  ;;  %v14909_v57 = vor.u32 %v18697_v55, %v14908_v54  ;;  %v14289_v40 = vor.u32 %v18535_v33, %v14286_v35  ;;  %v13821_v53 = vor.u32 %v18418_v48, %v13818_v49  ;;  %v397_v54 = vperm.slane %v20604_v42, 3  ;;  %v18509_v55 = vld [vmem:[%s29159_s5 + $0xbcc] sm:$0xf]  ;;  %v18327_v33 = vld [vmem:[%s29159_s5 + $0x61c] sm:$0xf] }
 0x137   :  { %v1148_v60 = vadd.f32 %v20744_v61, %v396_v51  ;;  %v18392_v61 = vld [vmem:[%s29159_s5 + $0x824] sm:$0xf]  ;;  %v13454_v35 = vld [vmem:[%s29159_s5 + $0x64c] sm:$0xf0]  ;;  %v18314_v49 = vld [vmem:[%s29159_s5 + $0x5b4] sm:$0xf] }
 0x138   :  { %v13457_v38 = vor.u32 %v18327_v33, %v13454_v35  ;;  %v18457_v51 = vld [vmem:[%s29159_s5 + $0xa2c] sm:$0xf] }
 0x139   :  { %5392 = vmatpush.bf16.msra.mxu1 %v13041_v58  ;;  %v14492_v58 = vld [vmem:[%s29159_s5 + $0xe38] sm:$0xf] }
 0x13a   :  { %5370 = vmatpush.bf16.msrb.mxu2 %v14909_v57  ;;  %v14493_v1 = vor.u32 %v18593_v59, %v14492_v58  ;;  %v1121_v10 = vpop.f32.mrf.mxu3  ;;  %v20772_v14 = vpop.f32.mrf.mxu2  ;;  %v18405_v58 = vld [vmem:[%s29159_s5 + $0x88c] sm:$0xf]  ;;  %v13766_v59 = vld [vmem:[%s29159_s5 + $0x8bc] sm:$0xf0] }
 0x13c   :  { %5357 = vmatpush.bf16.msrb.mxu0 %v14493_v1  ;;  %v13769_v1 = vor.u32 %v18405_v58, %v13766_v59  ;;  %v18600_v59 = vld [vmem:[%s29159_s5 + $0xea4] sm:$0xf] }
 0x13d   :  { %5393 = vmatpush.bf16.msra.mxu1 %v12989_v12  ;;  %v1122_v12 = vadd.f32 %v1121_v10, %v1109_v8  ;;  %v1134_v13 = vpop.f32.mrf.mxu1  ;;  %v1149_v22 = vpop.f32.mrf.mxu0  ;;  %v13714_v8 = vld [vmem:[%s29159_s5 + $0x854] sm:$0xf0] }
 0x13e   :  { %5371 = vmatpush.bf16.msrb.mxu2 %v14857_v6 }
 0x13f   :  { %v1135_v21 = vadd.f32 %v1134_v13, %v1122_v12  ;;  %v13717_v12 = vor.u32 %v18392_v61, %v13714_v8 }
 0x140   :  { %5358 = vmatpush.bf16.msrb.mxu0 %v14441_v11  ;;  %v18639_v11 = vld [vmem:[%s29159_s5 + $0xfdc] sm:$0xf] }
 0x141   :  { %5394 = vmatpush.bf16.msra.mxu1 %v12937_v23  ;;  %v18132_v23 = vld [vmem:[%s29159_s5 + $0x4] sm:$0xf]  ;;  %v1334_v26 = vmax.f32 %v1135_v21, 0.0 }
 0x142   :  { %5372 = vmatpush.bf16.msrb.mxu2 %v14805_v18  ;;  %v12677_v29 = vor.u32 %v18132_v23, %v12674_v24  ;;  %v1123_v39 = vpop.f32.mrf.mxu3  ;;  %v1175_v44 = vpop.f32.mrf.mxu2 }
 0x143   :  { %v20807_v34 = vpack.c.bf16 %v1334_v26, %v1334_v26  ;;  %v18626_v26 = vld [vmem:[%s29159_s5 + $0xf74] sm:$0xf] }
 0x144   :  { %5359 = vmatpush.bf16.msrb.mxu0 %v14389_v25  ;;  %v14705_v25 = vor.u32 %v18639_v11, %v14702_v15  ;;  %v18470_v39 = vld [vmem:[%s29159_s5 + $0xa94] sm:$0xf]  ;;  %v14653_v37 = vor.u32 %v18626_v26, %v14650_v27  ;;  %v18288_v11 = vld [vmem:[%s29159_s5 + $0x4e4] sm:$0xf]  ;;  %v14390_v27 = vld [vmem:[%s29159_s5 + $0xd9c] sm:$0xf0] }
 0x145   :  { %5395 = vmatpush.bf16.msra.mxu1 %v12885_v62  ;;  %v14337_v62 = vor.u32 %v18554_v32, %v14336_v31  ;;  %v1136_v41 = vpop.f32.mrf.mxu1  ;;  %5322 = vmatmul.bf16.vlgmr.msra.gmra.mxu2 %v20807_v34  ;;  %v18762_v32 = vld [vmem:[%s29159_s5 + $0x13b0] sm:$0xf0] }
 0x146   :  { %5373 = vmatpush.bf16.msrb.mxu2 %v14753_v30 }
 0x147   :  { %v1212_v50 = vpop.f32.mrf.mxu0 }
 0x148   :  { %5360 = vmatpush.bf16.msrb.mxu0 %v14337_v62  ;;  %v14026_v62 = vld [vmem:[%s29159_s5 + $0xac4] sm:$0xf0] }
 0x149   :  { %5396 = vmatpush.bf16.msra.mxu1 %v12833_v56  ;;  %v14182_v56 = vld [vmem:[%s29159_s5 + $0xbfc] sm:$0xf0]  ;;  %v14029_v44 = vor.u32 %v18470_v39, %v14026_v62  ;;  %v14338_v39 = vld [vmem:[%s29159_s5 + $0xd34] sm:$0xf0] }
 0x14a   :  { %5431 = vmatpush.bf16.msra.mxu2 %v14289_v40  ;;  %v14185_v57 = vor.u32 %v18509_v55, %v14182_v56  ;;  %v1186_v63 = vpop.f32.mrf.mxu3  ;;  %v18366_v40 = vld [vmem:[%s29159_s5 + $0x754] sm:$0xf]  ;;  %v18353_v55 = vld [vmem:[%s29159_s5 + $0x6ec] sm:$0xf]  ;;  %v13558_v56 = vld [vmem:[%s29159_s5 + $0x71c] sm:$0xf0] }
 0x14b   :  { %v1199_v0 = vpop.f32.mrf.mxu2  ;;  %v1187_v3 = vadd.f32 %v1186_v63, %v397_v54  ;;  %v13974_v54 = vld [vmem:[%s29159_s5 + $0xa5c] sm:$0xf0]  ;;  %v13561_v63 = vor.u32 %v18353_v55, %v13558_v56 }
 0x14c   :  { %5418 = vmatpush.bf16.msra.mxu0 %v13873_v45  ;;  %v13610_v45 = vld [vmem:[%s29159_s5 + $0x784] sm:$0xf0]  ;;  %v13876_v62 = vld [vmem:[%s29159_s5 + $0x960] sm:$0xf] }
 0x14d   :  { %5397 = vmatpush.bf16.msra.mxu1 %v12781_v5  ;;  %v1160_v2 = vpop.f32.mrf.mxu1  ;;  %v14130_v5 = vld [vmem:[%s29159_s5 + $0xb94] sm:$0xf0]  ;;  %v1200_v43 = vadd.f32 %v1199_v0, %v1187_v3  ;;  %v13613_v48 = vor.u32 %v18366_v40, %v13610_v45  ;;  %v18301_v0 = vld [vmem:[%s29159_s5 + $0x54c] sm:$0xf] }
 0x14e   :  { %5432 = vmatpush.bf16.msra.mxu2 %v14237_v47  ;;  %v1161_v6 = vadd.f32 %v1160_v2, %v1148_v60  ;;  %v14133_v7 = vor.u32 %v18496_v4, %v14130_v5  ;;  %v14598_v47 = vld [vmem:[%s29159_s5 + $0xf3c] sm:$0xf0]  ;;  %v14546_v60 = vld [vmem:[%s29159_s5 + $0xed4] sm:$0xf0]  ;;  %v18444_v2 = vld [vmem:[%s29159_s5 + $0x9c4] sm:$0xf] }
 0x14f   :  { %v1214_v9 = vpop.f32.mrf.mxu0  ;;  %v1213_v13 = vadd.f32 %v1212_v50, %v1200_v43  ;;  %v13402_v50 = vld [vmem:[%s29159_s5 + $0x5e4] sm:$0xf0]  ;;  %v14601_v58 = vor.u32 %v18613_v46, %v14598_v47  ;;  %v13922_v4 = vld [vmem:[%s29159_s5 + $0x9f4] sm:$0xf0]  ;;  %v18340_v5 = vld [vmem:[%s29159_s5 + $0x684] sm:$0xf]  ;;  %v14549_v8 = vor.u32 %v18600_v59, %v14546_v60 }
 0x150   :  { %5419 = vmatpush.bf16.msra.mxu0 %v13821_v53  ;;  %v1174_v10 = vadd.f32 %v20772_v14, %v1161_v6  ;;  %v14078_v14 = vld [vmem:[%s29159_s5 + $0xb2c] sm:$0xf0]  ;;  %v13405_v53 = vor.u32 %v18314_v49, %v13402_v50  ;;  %v13506_v6 = vld [vmem:[%s29159_s5 + $0x6b4] sm:$0xf0]  ;;  %v13925_v61 = vor.u32 %v18444_v2, %v13922_v4  ;;  %v18587_v43 = vld [vmem:[%s29159_s5 + $0xe3c] sm:$0xf] }
 0x151   :  { %5398 = vmatpush.bf16.msra.mxu1 %v12729_v17  ;;  %v14081_v18 = vor.u32 %v18483_v16, %v14078_v14  ;;  %v1336_v21 = vmax.f32 %v1213_v13, 0.0  ;;  %v13509_v9 = vor.u32 %v18340_v5, %v13506_v6  ;;  %v18574_v16 = vld [vmem:[%s29159_s5 + $0xdd4] sm:$0xf]  ;;  %v14442_v14 = vld [vmem:[%s29159_s5 + $0xe04] sm:$0xf0]  ;;  %v399_v50 = vperm.slane %v20604_v42, 5 }
 0x152   :  { %5433 = vmatpush.bf16.msra.mxu2 %v14185_v57  ;;  %v1335_v17 = vmax.f32 %v1174_v10, 0.0  ;;  %v1188_v23 = vpop.f32.mrf.mxu3  ;;  %v13977_v57 = vor.u32 %v18457_v51, %v13974_v54  ;;  %v14494_v10 = vld [vmem:[%s29159_s5 + $0xe6c] sm:$0xf0]  ;;  %v18249_v40 = vld [vmem:[%s29159_s5 + $0x3ac] sm:$0xf] }
 0x153   :  { %v1201_v24 = vpop.f32.mrf.mxu2  ;;  %v20888_v30 = vpack.c.bf16 %v1336_v21, %v1336_v21  ;;  %v14497_v15 = vor.u32 %v18587_v43, %v14494_v10  ;;  %v14445_v23 = vor.u32 %v18574_v16, %v14442_v14  ;;  %v18756_v46 = vld [vmem:[%s29159_s5 + $0x1384] sm:$0xf]  ;;  %v15170_v47 = vld [vmem:[%s29159_s5 + $0x13b4] sm:$0xf0]  ;;  %v13772_v4 = vld [vmem:[%s29159_s5 + $0x890] sm:$0xf] }
 0x154   :  { %5420 = vmatpush.bf16.msra.mxu0 %v13769_v1  ;;  %v20877_v22 = vpack.c.bf16 %v1335_v17, %v1335_v17  ;;  %v13350_v1 = vld [vmem:[%s29159_s5 + $0x57c] sm:$0xf0]  ;;  %v18275_v17 = vld [vmem:[%s29159_s5 + $0x47c] sm:$0xf]  ;;  %v18561_v24 = vld [vmem:[%s29159_s5 + $0xd6c] sm:$0xf]  ;;  %v15173_v56 = vor.u32 %v18756_v46, %v15170_v47 }
 0x155   :  { %5399 = vmatpush.bf16.msra.mxu1 %v12677_v29  ;;  %v15168_v29 = vld [vmem:[%s29159_s5 + $0x1380] sm:$0xf]  ;;  %v1162_v31 = vpop.f32.mrf.mxu1  ;;  %v13353_v3 = vor.u32 %v18301_v0, %v13350_v1  ;;  %v18425_v0 = vld [vmem:[%s29159_s5 + $0x928] sm:$0xf0]  ;;  %v18412_v5 = vld [vmem:[%s29159_s5 + $0x8c0] sm:$0xf0] }
 0x156   :  { %5434 = vmatpush.bf16.msra.mxu2 %v14133_v7  ;;  %5335 = vmatmul.bf16.vlgmr.msrb.gmra.mxu3 %v20877_v22  ;;  %v15169_v36 = vor.u32 %v18762_v32, %v15168_v29  ;;  %v13194_v29 = vld [vmem:[%s29159_s5 + $0x444] sm:$0xf0]  ;;  %v18230_v10 = vld [vmem:[%s29159_s5 + $0x310] sm:$0xf0]  ;;  %v12992_v14 = vld [vmem:[%s29159_s5 + $0x278] sm:$0xf] }
 0x157   :  { %v20909_v41 = vpop.f32.mrf.mxu0  ;;  %5348 = vmatmul.bf16.vlgmr.msrb.gmra.mxu1 %v20888_v30  ;;  %v13356_v46 = vld [vmem:[%s29159_s5 + $0x550] sm:$0xf] }
 0x158   :  { %5421 = vmatpush.bf16.msra.mxu0 %v13717_v12  ;;  %5386 = vmatpush.bf16.msra.mxu3 %v15169_v36  ;;  %v13298_v12 = vld [vmem:[%s29159_s5 + $0x514] sm:$0xf0]  ;;  %v14393_v36 = vor.u32 %v18561_v24, %v14390_v27  ;;  %v12940_v27 = vld [vmem:[%s29159_s5 + $0x210] sm:$0xf] }
 0x159   :  { %5444 = vmatpush.bf16.msrb.mxu1 %v14705_v25  ;;  %v13301_v13 = vor.u32 %v18288_v11, %v13298_v12  ;;  %v13720_v11 = vld [vmem:[%s29159_s5 + $0x828] sm:$0xf]  ;;  %v18399_v12 = vld [vmem:[%s29159_s5 + $0x858] sm:$0xf0]  ;;  %v13564_v47 = vld [vmem:[%s29159_s5 + $0x6f0] sm:$0xf] }
 0x15a   :  { %5435 = vmatpush.bf16.msra.mxu2 %v14081_v18  ;;  %v13246_v18 = vld [vmem:[%s29159_s5 + $0x4ac] sm:$0xf0]  ;;  %v13721_v16 = vor.u32 %v18399_v12, %v13720_v11 }
 0x15b   :  { %v13249_v20 = vor.u32 %v18275_v17, %v13246_v18  ;;  %v18217_v18 = vld [vmem:[%s29159_s5 + $0x2a8] sm:$0xf0] }
 0x15c   :  { %5422 = vmatpush.bf16.msra.mxu0 %v13665_v28  ;;  %5405 = vmatpush.bf16.msrb.mxu3 %v13457_v38  ;;  %v18262_v28 = vld [vmem:[%s29159_s5 + $0x414] sm:$0xf]  ;;  %v18548_v38 = vld [vmem:[%s29159_s5 + $0xd04] sm:$0xf] }
 0x15d   :  { %5445 = vmatpush.bf16.msrb.mxu1 %v14653_v37  ;;  %v13197_v33 = vor.u32 %v18262_v28, %v13194_v29  ;;  %v18438_v37 = vld [vmem:[%s29159_s5 + $0x990] sm:$0xf0] }
 0x15e   :  { %5436 = vmatpush.bf16.msra.mxu2 %v14029_v44  ;;  %v13142_v44 = vld [vmem:[%s29159_s5 + $0x3dc] sm:$0xf0]  ;;  %v13877_v55 = vor.u32 %v18438_v37, %v13876_v62  ;;  %v18191_v37 = vld [vmem:[%s29159_s5 + $0x1d8] sm:$0xf0] }
 0x15f   :  { %v1253_v7 = vpop.f32.mrf.mxu0 }
 0x160   :  { %5423 = vmatpush.bf16.msra.mxu0 %v13613_v48  ;;  %5406 = vmatpush.bf16.msrb.mxu3 %v13405_v53  ;;  %v13145_v48 = vor.u32 %v18249_v40, %v13142_v44  ;;  %v12888_v40 = vld [vmem:[%s29159_s5 + $0x1a8] sm:$0xf] }
 0x161   :  { %5446 = vmatpush.bf16.msrb.mxu1 %v14601_v58  ;;  %v13090_v58 = vld [vmem:[%s29159_s5 + $0x374] sm:$0xf0] }
 0x162   :  { %5437 = vmatpush.bf16.msra.mxu2 %v13977_v57  ;;  %v18236_v57 = vld [vmem:[%s29159_s5 + $0x344] sm:$0xf] }
 0x163   :  { %v13093_v1 = vor.u32 %v18236_v57, %v13090_v58  ;;  %v13512_v58 = vld [vmem:[%s29159_s5 + $0x688] sm:$0xf] }
 0x164   :  { %5424 = vmatpush.bf16.msra.mxu0 %v13561_v63  ;;  %5407 = vmatpush.bf16.msrb.mxu3 %v13353_v3  ;;  %v13824_v63 = vld [vmem:[%s29159_s5 + $0x8f8] sm:$0xf] }
 0x165   :  { %5447 = vmatpush.bf16.msrb.mxu1 %v14549_v8  ;;  %v13825_v3 = vor.u32 %v18425_v0, %v13824_v63  ;;  %v13044_v8 = vld [vmem:[%s29159_s5 + $0x2e0] sm:$0xf]  ;;  %v15176_v0 = vld [vmem:[%s29159_s5 + $0x1388] sm:$0xf] }
 0x166   :  { %5438 = vmatpush.bf16.msra.mxu2 %v13925_v61  ;;  %v13773_v61 = vor.u32 %v18412_v5, %v13772_v4  ;;  %v18743_v4 = vld [vmem:[%s29159_s5 + $0x131c] sm:$0xf] }
 0x167   :  { %5400 = vmatmul.bf16.vlgmr.msra.gmra.mxu1 %v20729_v52  ;;  %v1277_v21 = vpop.f32.mrf.mxu0 }
 0x168   :  { %5425 = vmatpush.bf16.msra.mxu0 %v13509_v9  ;;  %5408 = vmatpush.bf16.msrb.mxu3 %v13301_v13 }
 0x169   :  { %5448 = vmatpush.bf16.msrb.mxu1 %v14497_v15  ;;  %v13045_v15 = vor.u32 %v18230_v10, %v13044_v8  ;;  %v12784_v8 = vld [vmem:[%s29159_s5 + $0xd8] sm:$0xf]  ;;  %v13252_v10 = vld [vmem:[%s29159_s5 + $0x480] sm:$0xf] }
 0x16a   :  { %v1238_v26 = vpop.f32.mrf.mxu3 }
 0x16b   :  { %v1264_v32 = vpop.f32.mrf.mxu2 }
 0x16c   :  { %5409 = vmatpush.bf16.msrb.mxu3 %v13249_v20  ;;  %v1265_v2 = vadd.f32 %v1264_v32, %v399_v50  ;;  %v18334_v20 = vld [vmem:[%s29159_s5 + $0x650] sm:$0xf0]  ;;  %v13408_v32 = vld [vmem:[%s29159_s5 + $0x5b8] sm:$0xf] }
 0x16d   :  { %v1225_v25 = vpop.f32.mrf.mxu1  ;;  %5449 = vmatpush.bf16.msrb.mxu1 %v14445_v23  ;;  %v18386_v23 = vld [vmem:[%s29159_s5 + $0x7f0] sm:$0xf0] }
 0x16e   :  { %v1226_v31 = vadd.f32 %v1225_v25, %v398_v19  ;;  %v1278_v6 = vadd.f32 %v1277_v21, %v1265_v2  ;;  %v13460_v19 = vld [vmem:[%s29159_s5 + $0x620] sm:$0xf]  ;;  %v12993_v25 = vor.u32 %v18217_v18, %v12992_v14  ;;  %v18730_v18 = vld [vmem:[%s29159_s5 + $0x12b4] sm:$0xf] }
 0x16f   :  { %v1279_v51 = vpop.f32.mrf.mxu0  ;;  %v13668_v21 = vld [vmem:[%s29159_s5 + $0x7c0] sm:$0xf] }
 0x170   :  { %v1239_v35 = vadd.f32 %v1238_v26, %v1226_v31  ;;  %5410 = vmatpush.bf16.msrb.mxu3 %v13197_v33  ;;  %v13461_v26 = vor.u32 %v18334_v20, %v13460_v19  ;;  %v13669_v29 = vor.u32 %v18386_v23, %v13668_v21  ;;  %v18204_v31 = vld [vmem:[%s29159_s5 + $0x240] sm:$0xf0]  ;;  %v18321_v33 = vld [vmem:[%s29159_s5 + $0x5e8] sm:$0xf0]  ;;  %v12836_v51 = vld [vmem:[%s29159_s5 + $0x140] sm:$0xf] }
 0x171   :  { %5450 = vmatpush.bf16.msrb.mxu1 %v14393_v36  ;;  %v18373_v36 = vld [vmem:[%s29159_s5 + $0x788] sm:$0xf0]  ;;  %v13409_v62 = vor.u32 %v18321_v33, %v13408_v32  ;;  %v15066_v21 = vld [vmem:[%s29159_s5 + $0x12e4] sm:$0xf0]  ;;  %v12732_v23 = vld [vmem:[%s29159_s5 + $0x70] sm:$0xf] }
 0x172   :  { %v1252_v45 = vadd.f32 %v20909_v41, %v1239_v35  ;;  %v14341_v41 = vor.u32 %v18548_v38, %v14338_v39  ;;  %v1240_v54 = vpop.f32.mrf.mxu3  ;;  %v13616_v35 = vld [vmem:[%s29159_s5 + $0x758] sm:$0xf]  ;;  %v400_v38 = vperm.slane %v20604_v42, 6  ;;  %v12941_v39 = vor.u32 %v18204_v31, %v12940_v27  ;;  %v18308_v42 = vld [vmem:[%s29159_s5 + $0x580] sm:$0xf0] }
 0x173   :  { %v1266_v60 = vpop.f32.mrf.mxu2  ;;  %v13357_v50 = vor.u32 %v18308_v42, %v13356_v46  ;;  %v18178_v54 = vld [vmem:[%s29159_s5 + $0x170] sm:$0xf0]  ;;  %v13200_v27 = vld [vmem:[%s29159_s5 + $0x418] sm:$0xf]  ;;  %v13410_v31 = vld [vmem:[%s29159_s5 + $0x5ec] sm:$0xf0]  ;;  %v15069_v32 = vor.u32 %v18730_v18, %v15066_v21 }
 0x174   :  { %v1337_v49 = vmax.f32 %v1252_v45, 0.0  ;;  %5411 = vmatpush.bf16.msrb.mxu3 %v13145_v48  ;;  %v13617_v45 = vor.u32 %v18373_v36, %v13616_v35  ;;  %v18360_v48 = vld [vmem:[%s29159_s5 + $0x720] sm:$0xf0]  ;;  %v18347_v60 = vld [vmem:[%s29159_s5 + $0x6b8] sm:$0xf0]  ;;  %v12837_v2 = vor.u32 %v18178_v54, %v12836_v51 }
 0x175   :  { %v1227_v53 = vpop.f32.mrf.mxu1  ;;  %5451 = vmatpush.bf16.msrb.mxu1 %v14341_v41  ;;  %v18717_v35 = vld [vmem:[%s29159_s5 + $0x124c] sm:$0xf]  ;;  %v15014_v36 = vld [vmem:[%s29159_s5 + $0x127c] sm:$0xf0]  ;;  %v18646_v46 = vld [vmem:[%s29159_s5 + $0x1010] sm:$0xf0] }
 0x176   :  { %v21033_v59 = vpack.c.bf16 %v1337_v49, %v1337_v49  ;;  %v12889_v49 = vor.u32 %v18191_v37, %v12888_v40  ;;  %v13565_v53 = vor.u32 %v18360_v48, %v13564_v47  ;;  %v13148_v40 = vld [vmem:[%s29159_s5 + $0x3b0] sm:$0xf]  ;;  %v14708_v37 = vld [vmem:[%s29159_s5 + $0xfe0] sm:$0xf]  ;;  %v18302_v42 = vld [vmem:[%s29159_s5 + $0x554] sm:$0xf]  ;;  %v15017_v48 = vor.u32 %v18717_v35, %v15014_v36 }
 0x177   :  { %v13358_v47 = vld [vmem:[%s29159_s5 + $0x584] sm:$0xf0]  ;;  %v14500_v36 = vld [vmem:[%s29159_s5 + $0xe40] sm:$0xf] }
 0x178   :  { %5361 = vmatmul.bf16.vlgmr.msrb.gmra.mxu0 %v21033_v59  ;;  %5412 = vmatpush.bf16.msrb.mxu3 %v13093_v1  ;;  %v18763_v1 = vld [vmem:[%s29159_s5 + $0x13b8] sm:$0xf0]  ;;  %v13096_v54 = vld [vmem:[%s29159_s5 + $0x348] sm:$0xf] }
 0x179   :  { %5509 = vmatpush.bf16.msra.mxu1 %v13877_v55  ;;  %5477 = vmatpush.bf16.msrb.mxu0 %v15173_v56  ;;  %v13304_v55 = vld [vmem:[%s29159_s5 + $0x4e8] sm:$0xf]  ;;  %v18295_v56 = vld [vmem:[%s29159_s5 + $0x518] sm:$0xf0]  ;;  %v15177_v11 = vor.u32 %v18763_v1, %v15176_v0  ;;  %v18289_v0 = vld [vmem:[%s29159_s5 + $0x4ec] sm:$0xf] }
 0x17a   :  { %5452 = vmatmul.bf16.vlgmr.msrb.gmra.mxu1 %v21033_v59  ;;  %v13306_v1 = vld [vmem:[%s29159_s5 + $0x51c] sm:$0xf0]  ;;  %v14552_v21 = vld [vmem:[%s29159_s5 + $0xea8] sm:$0xf] }
 0x17b   :  { %v21052_v9 = vpop.f32.mrf.mxu2 }
 0x17d   :  { %v1290_v7 = vpop.f32.mrf.mxu1  ;;  %5510 = vmatpush.bf16.msra.mxu1 %v13825_v3  ;;  %v13305_v3 = vor.u32 %v18295_v56, %v13304_v55  ;;  %v18243_v55 = vld [vmem:[%s29159_s5 + $0x378] sm:$0xf0]  ;;  %v13361_v56 = vor.u32 %v18302_v42, %v13358_v47  ;;  %v14754_v42 = vld [vmem:[%s29159_s5 + $0x1074] sm:$0xf0]  ;;  %v14292_v47 = vld [vmem:[%s29159_s5 + $0xca0] sm:$0xf] }
 0x17e   :  { %v1291_v43 = vadd.f32 %v1290_v7, %v1278_v6  ;;  %v13513_v7 = vor.u32 %v18347_v60, %v13512_v58  ;;  %v18633_v58 = vld [vmem:[%s29159_s5 + $0xfa8] sm:$0xf0]  ;;  %v15124_v60 = vld [vmem:[%s29159_s5 + $0x1320] sm:$0xf] }
 0x180   :  { %v1338_v13 = vmax.f32 %v1291_v43, 0.0  ;;  %v18165_v43 = vld [vmem:[%s29159_s5 + $0x108] sm:$0xf0] }
 0x181   :  { %5511 = vmatpush.bf16.msra.mxu1 %v13773_v61  ;;  %v15118_v61 = vld [vmem:[%s29159_s5 + $0x134c] sm:$0xf0]  ;;  %v12785_v14 = vor.u32 %v18165_v43, %v12784_v8  ;;  %v18620_v43 = vld [vmem:[%s29159_s5 + $0xf40] sm:$0xf0] }
 0x182   :  { %v21066_v17 = vpack.c.bf16 %v1338_v13, %v1338_v13  ;;  %v18328_v13 = vld [vmem:[%s29159_s5 + $0x624] sm:$0xf]  ;;  %v14604_v8 = vld [vmem:[%s29159_s5 + $0xf10] sm:$0xf] }
 0x183   :  { %v1331_v28 = vpop.f32.mrf.mxu2 }
 0x184   :  { %5374 = vmatmul.bf16.vlgmr.msrb.gmra.mxu2 %v21066_v17  ;;  %v18269_v28 = vld [vmem:[%s29159_s5 + $0x448] sm:$0xf0] }
 0x185   :  { %5483 = vmatpush.bf16.msrb.mxu2 %v13045_v15  ;;  %v1292_v24 = vpop.f32.mrf.mxu1  ;;  %5512 = vmatpush.bf16.msra.mxu1 %v13721_v16  ;;  %v13462_v15 = vld [vmem:[%s29159_s5 + $0x654] sm:$0xf0]  ;;  %v15121_v16 = vor.u32 %v18743_v4, %v15118_v61  ;;  %v13309_v61 = vor.u32 %v18289_v0, %v13306_v1 }
 0x186   :  { %v18152_v24 = vld [vmem:[%s29159_s5 + $0xa0] sm:$0xf0] }
 0x187   :  { %v12733_v33 = vor.u32 %v18152_v24, %v12732_v23  ;;  %v18607_v23 = vld [vmem:[%s29159_s5 + $0xed8] sm:$0xf0]  ;;  %v15020_v24 = vld [vmem:[%s29159_s5 + $0x1250] sm:$0xf] }
 0x188   :  { %5426 = vmatmul.bf16.vlgmr.msra.gmra.mxu0 %v20877_v22 }
 0x189   :  { %5484 = vmatpush.bf16.msrb.mxu2 %v12993_v25  ;;  %5496 = vmatpush.bf16.msra.mxu0 %v13461_v26  ;;  %v13465_v26 = vor.u32 %v18328_v13, %v13462_v15  ;;  %v14605_v15 = vor.u32 %v18620_v43, %v14604_v8  ;;  %v18685_v8 = vld [vmem:[%s29159_s5 + $0x1148] sm:$0xf0]  ;;  %v18731_v43 = vld [vmem:[%s29159_s5 + $0x12bc] sm:$0xf] }
 0x18a   :  { %5513 = vmatpush.bf16.msra.mxu1 %v13669_v29  ;;  %v1303_v44 = vpop.f32.mrf.mxu3  ;;  %v18315_v29 = vld [vmem:[%s29159_s5 + $0x5bc] sm:$0xf] }
 0x18b   :  { %v1304_v41 = vadd.f32 %v1303_v44, %v400_v38  ;;  %v13201_v38 = vor.u32 %v18269_v28, %v13200_v27  ;;  %v13413_v44 = vor.u32 %v18315_v29, %v13410_v31  ;;  %v13202_v27 = vld [vmem:[%s29159_s5 + $0x44c] sm:$0xf0]  ;;  %v14553_v29 = vor.u32 %v18607_v23, %v14552_v21  ;;  %v18665_v31 = vld [vmem:[%s29159_s5 + $0x10ac] sm:$0xf]  ;;  %v18672_v23 = vld [vmem:[%s29159_s5 + $0x10e0] sm:$0xf0] }
 0x18c   :  { %v14812_v21 = vld [vmem:[%s29159_s5 + $0x10b0] sm:$0xf] }
 0x18d   :  { %5485 = vmatpush.bf16.msrb.mxu2 %v12941_v39  ;;  %5497 = vmatpush.bf16.msra.mxu0 %v13409_v62  ;;  %v12680_v39 = vld [vmem:[%s29159_s5 + $0x8] sm:$0xf]  ;;  %v18139_v62 = vld [vmem:[%s29159_s5 + $0x38] sm:$0xf0] }
 0x18e   :  { %5514 = vmatpush.bf16.msra.mxu1 %v13617_v45  ;;  %v18256_v45 = vld [vmem:[%s29159_s5 + $0x3e0] sm:$0xf0] }
 0x18f   :  { %v13149_v51 = vor.u32 %v18256_v45, %v13148_v40  ;;  %v18250_v40 = vld [vmem:[%s29159_s5 + $0x3b4] sm:$0xf] }
 0x191   :  { %5486 = vmatpush.bf16.msrb.mxu2 %v12889_v49  ;;  %5498 = vmatpush.bf16.msra.mxu0 %v13357_v50  ;;  %v12681_v49 = vor.u32 %v18139_v62, %v12680_v39  ;;  %v18704_v50 = vld [vmem:[%s29159_s5 + $0x11e4] sm:$0xf]  ;;  %v14968_v39 = vld [vmem:[%s29159_s5 + $0x11e8] sm:$0xf]  ;;  %v18711_v62 = vld [vmem:[%s29159_s5 + $0x1218] sm:$0xf0] }
 0x192   :  { %5515 = vmatpush.bf16.msra.mxu1 %v13565_v53  ;;  %v1305_v6 = vpop.f32.mrf.mxu3  ;;  %v14962_v53 = vld [vmem:[%s29159_s5 + $0x1214] sm:$0xf0] }
 0x193   :  { %v14910_v6 = vld [vmem:[%s29159_s5 + $0x11ac] sm:$0xf0] }
 0x194   :  { %5439 = vmatmul.bf16.vlgmr.msra.gmra.mxu2 %v20888_v30 }
 0x195   :  { %v1316_v57 = vpop.f32.mrf.mxu1  ;;  %5487 = vmatpush.bf16.msrb.mxu2 %v12837_v2  ;;  %5499 = vmatpush.bf16.msra.mxu0 %v13305_v3  ;;  %v14965_v2 = vor.u32 %v18704_v50, %v14962_v53  ;;  %v13097_v3 = vor.u32 %v18243_v55, %v13096_v54  ;;  %v14916_v53 = vld [vmem:[%s29159_s5 + $0x1180] sm:$0xf]  ;;  %v18698_v54 = vld [vmem:[%s29159_s5 + $0x11b0] sm:$0xf0]  ;;  %v18237_v55 = vld [vmem:[%s29159_s5 + $0x34c] sm:$0xf] }
 0x196   :  { %v1317_v63 = vadd.f32 %v1316_v57, %v1304_v41  ;;  %5516 = vmatpush.bf16.msra.mxu1 %v13513_v7  ;;  %v14709_v41 = vor.u32 %v18646_v46, %v14708_v37  ;;  %v14656_v57 = vld [vmem:[%s29159_s5 + $0xf78] sm:$0xf]  ;;  %v18652_v37 = vld [vmem:[%s29159_s5 + $0x1044] sm:$0xf]  ;;  %v14917_v1 = vor.u32 %v18698_v54, %v14916_v53  ;;  %v18406_v53 = vld [vmem:[%s29159_s5 + $0x894] sm:$0xf] }
 0x197   :  { %v14657_v4 = vor.u32 %v18633_v58, %v14656_v57  ;;  %v14757_v57 = vor.u32 %v18652_v37, %v14754_v42  ;;  %v18744_v58 = vld [vmem:[%s29159_s5 + $0x1324] sm:$0xf]  ;;  %v14970_v42 = vld [vmem:[%s29159_s5 + $0x121c] sm:$0xf0] }
 0x198   :  { %v1330_v5 = vadd.f32 %v21052_v9, %v1317_v63  ;;  %v18282_v9 = vld [vmem:[%s29159_s5 + $0x4b0] sm:$0xf0] }
 0x199   :  { %v13253_v20 = vor.u32 %v18282_v9, %v13252_v10  ;;  %5488 = vmatpush.bf16.msrb.mxu2 %v12785_v14  ;;  %5517 = vmatmul.bf16.vlgmr.msra.gmra.mxu1 %v20877_v22  ;;  %v18750_v63 = vld [vmem:[%s29159_s5 + $0x1350] sm:$0xf0]  ;;  %v15072_v10 = vld [vmem:[%s29159_s5 + $0x12b8] sm:$0xf]  ;;  %v18737_v9 = vld [vmem:[%s29159_s5 + $0x12e8] sm:$0xf0] }
 0x19a   :  { %v1339_v12 = vmax.f32 %v1330_v5, 0.0  ;;  %5568 = vmatpush.bf16.msrb.mxu1 %v15177_v11  ;;  %v18691_v5 = vld [vmem:[%s29159_s5 + $0x117c] sm:$0xf]  ;;  %v15125_v7 = vor.u32 %v18750_v63, %v15124_v60  ;;  %v18276_v11 = vld [vmem:[%s29159_s5 + $0x484] sm:$0xf]  ;;  %v15073_v18 = vor.u32 %v18737_v9, %v15072_v10 }
 0x19b   :  { %5500 = vmatpush.bf16.msra.mxu0 %v13253_v20  ;;  %v14913_v13 = vor.u32 %v18691_v5, %v14910_v6  ;;  %v14858_v14 = vld [vmem:[%s29159_s5 + $0x1144] sm:$0xf0]  ;;  %v15126_v60 = vld [vmem:[%s29159_s5 + $0x1354] sm:$0xf0]  ;;  %v14396_v5 = vld [vmem:[%s29159_s5 + $0xd70] sm:$0xf] }
 0x19c   :  { %v21175_v19 = vpack.c.bf16 %v1339_v12, %v1339_v12  ;;  %v13254_v12 = vld [vmem:[%s29159_s5 + $0x4b4] sm:$0xf0]  ;;  %v15129_v6 = vor.u32 %v18744_v58, %v15126_v60  ;;  %v15074_v10 = vld [vmem:[%s29159_s5 + $0x12ec] sm:$0xf0]  ;;  %v18692_v60 = vld [vmem:[%s29159_s5 + $0x1184] sm:$0xf] }
 0x19d   :  { %v1318_v25 = vpop.f32.mrf.mxu1  ;;  %5489 = vmatpush.bf16.msrb.mxu2 %v12733_v33  ;;  %v13257_v20 = vor.u32 %v18276_v11, %v13254_v12  ;;  %v14188_v11 = vld [vmem:[%s29159_s5 + $0xbd0] sm:$0xf] }
 0x19e   :  { %15218 = vmatmul.msk.bf16.vlgmr.msra.gmra.mxu3 %vm5297_vm1, %v21175_v19  ;;  %15219 = vmatmul.msk.bf16.vlgmr.msrb.gmra.mxu0 %vm5297_vm1, %v21175_v19  ;;  %v18724_v25 = vld [vmem:[%s29159_s5 + $0x1280] sm:$0xf0] }
 0x19f   :  { %5457 = vmatpush.bf16.msra.mxu3 %v15121_v16  ;;  %5587 = vmatpush.bf16.msra.mxu1 %v13465_v26  ;;  %v18678_v16 = vld [vmem:[%s29159_s5 + $0x1114] sm:$0xf]  ;;  %v18263_v26 = vld [vmem:[%s29159_s5 + $0x41c] sm:$0xf]  ;;  %v15021_v33 = vor.u32 %v18724_v25, %v15020_v24  ;;  %v18432_v24 = vld [vmem:[%s29159_s5 + $0x964] sm:$0xf] }
 0x1a0   :  { %5501 = vmatpush.bf16.msra.mxu0 %v13201_v38  ;;  %v14861_v28 = vor.u32 %v18678_v16, %v14858_v14  ;;  %v13205_v35 = vor.u32 %v18263_v26, %v13202_v27  ;;  %v18594_v38 = vld [vmem:[%s29159_s5 + $0xe70] sm:$0xf0]  ;;  %v18516_v16 = vld [vmem:[%s29159_s5 + $0xc00] sm:$0xf0]  ;;  %v14344_v14 = vld [vmem:[%s29159_s5 + $0xd08] sm:$0xf] }
 0x1a1   :  { %5490 = vmatpush.bf16.msrb.mxu2 %v12681_v49  ;;  %v14501_v46 = vor.u32 %v18594_v38, %v14500_v36  ;;  %v14969_v49 = vor.u32 %v18711_v62, %v14968_v39  ;;  %v13878_v25 = vld [vmem:[%s29159_s5 + $0x994] sm:$0xf0]  ;;  %v18718_v26 = vld [vmem:[%s29159_s5 + $0x1254] sm:$0xf]  ;;  %v15022_v27 = vld [vmem:[%s29159_s5 + $0x1284] sm:$0xf0] }
 0x1a2   :  { %v15025_v36 = vor.u32 %v18718_v26, %v15022_v27  ;;  %v14760_v38 = vld [vmem:[%s29159_s5 + $0x1048] sm:$0xf]  ;;  %v18659_v39 = vld [vmem:[%s29159_s5 + $0x1078] sm:$0xf0]  ;;  %v18666_v27 = vld [vmem:[%s29159_s5 + $0x10b4] sm:$0xf] }
 0x1a3   :  { %5458 = vmatpush.bf16.msra.mxu3 %v15069_v32  ;;  %5588 = vmatpush.bf16.msra.mxu1 %v13413_v44  ;;  %v14806_v32 = vld [vmem:[%s29159_s5 + $0x10dc] sm:$0xf0]  ;;  %v13150_v44 = vld [vmem:[%s29159_s5 + $0x3e4] sm:$0xf0]  ;;  %v18419_v62 = vld [vmem:[%s29159_s5 + $0x8fc] sm:$0xf] }
 0x1a4   :  { %5502 = vmatpush.bf16.msra.mxu0 %v13149_v51  ;;  %5491 = vmatmul.bf16.vlgmr.msrb.gmra.mxu2 %v20729_v52  ;;  %v14809_v45 = vor.u32 %v18665_v31, %v14806_v32  ;;  %v13153_v50 = vor.u32 %v18250_v40, %v13150_v44  ;;  %v14448_v51 = vld [vmem:[%s29159_s5 + $0xdd8] sm:$0xf]  ;;  %v14813_v31 = vor.u32 %v18672_v23, %v14812_v21  ;;  %v14136_v32 = vld [vmem:[%s29159_s5 + $0xb68] sm:$0xf]  ;;  %v13826_v40 = vld [vmem:[%s29159_s5 + $0x92c] sm:$0xf0] }
 0x1a5   :  { %5535 = vmatpush.bf16.msra.mxu2 %v14709_v41  ;;  %v18581_v41 = vld [vmem:[%s29159_s5 + $0xe08] sm:$0xf0]  ;;  %v18536_v44 = vld [vmem:[%s29159_s5 + $0xca4] sm:$0xf]  ;;  %v13670_v21 = vld [vmem:[%s29159_s5 + $0x7f4] sm:$0xf0] }
 0x1a6   :  { %v14449_v0 = vor.u32 %v18581_v41, %v14448_v51  ;;  %v13829_v51 = vor.u32 %v18419_v62, %v13826_v40  ;;  %v18497_v23 = vld [vmem:[%s29159_s5 + $0xb6c] sm:$0xf]  ;;  %v13618_v40 = vld [vmem:[%s29159_s5 + $0x78c] sm:$0xf0] }
 0x1a7   :  { %5459 = vmatpush.bf16.msra.mxu3 %v15017_v48  ;;  %5589 = vmatpush.bf16.msra.mxu1 %v13361_v56  ;;  %v18542_v48 = vld [vmem:[%s29159_s5 + $0xcd0] sm:$0xf0]  ;;  %v13098_v56 = vld [vmem:[%s29159_s5 + $0x37c] sm:$0xf0] }
 0x1a8   :  { %5503 = vmatpush.bf16.msra.mxu0 %v13097_v3  ;;  %v14293_v63 = vor.u32 %v18542_v48, %v14292_v47  ;;  %v14240_v3 = vld [vmem:[%s29159_s5 + $0xc38] sm:$0xf]  ;;  %v14761_v48 = vor.u32 %v18659_v39, %v14760_v38  ;;  %v18367_v39 = vld [vmem:[%s29159_s5 + $0x75c] sm:$0xf] }
 0x1a9   :  { %5536 = vmatpush.bf16.msra.mxu2 %v14657_v4  ;;  %15220 = vmatmul.msk.bf16.vlgmr.msrb.gmra.mxu1 %vm5297_vm1, %v21175_v19  ;;  %v18529_v4 = vld [vmem:[%s29159_s5 + $0xc68] sm:$0xf0]  ;;  %v13046_v38 = vld [vmem:[%s29159_s5 + $0x314] sm:$0xf0] }
 0x1aa   :  { %v14241_v9 = vor.u32 %v18529_v4, %v14240_v3 }
 0x1ab   :  { %5460 = vmatpush.bf16.msra.mxu3 %v14965_v2  ;;  %5590 = vmatpush.bf16.msra.mxu1 %v13309_v61  ;;  %v13101_v2 = vor.u32 %v18237_v55, %v13098_v56  ;;  %v14864_v61 = vld [vmem:[%s29159_s5 + $0x1118] sm:$0xf]  ;;  %v13774_v55 = vld [vmem:[%s29159_s5 + $0x8c4] sm:$0xf0]  ;;  %v18523_v56 = vld [vmem:[%s29159_s5 + $0xc3c] sm:$0xf] }
 0x1ac   :  { %5548 = vmatpush.bf16.msrb.mxu0 %v15125_v7  ;;  %v18568_v7 = vld [vmem:[%s29159_s5 + $0xda0] sm:$0xf0]  ;;  %v13777_v3 = vor.u32 %v18406_v53, %v13774_v55  ;;  %v12994_v53 = vld [vmem:[%s29159_s5 + $0x2ac] sm:$0xf0]  ;;  %v18354_v55 = vld [vmem:[%s29159_s5 + $0x6f4] sm:$0xf] }
 0x1ad   :  { %5537 = vmatpush.bf16.msra.mxu2 %v14605_v15  ;;  %v14865_v15 = vor.u32 %v18685_v8, %v14864_v61  ;;  %v18510_v61 = vld [vmem:[%s29159_s5 + $0xbd4] sm:$0xf]  ;;  %v14190_v8 = vld [vmem:[%s29159_s5 + $0xc04] sm:$0xf0] }
 0x1ae   :  { %5413 = vmatmul.bf16.vlgmr.msrb.gmra.mxu3 %v20807_v34  ;;  %5504 = vmatmul.bf16.vlgmr.msra.gmra.mxu0 %v20807_v34 }
 0x1af   :  { %5461 = vmatpush.bf16.msra.mxu3 %v14913_v13  ;;  %5591 = vmatpush.bf16.msra.mxu1 %v13257_v20  ;;  %v14397_v13 = vor.u32 %v18568_v7, %v14396_v5  ;;  %v15077_v20 = vor.u32 %v18731_v43, %v15074_v10  ;;  %v18393_v5 = vld [vmem:[%s29159_s5 + $0x82c] sm:$0xf]  ;;  %v13722_v7 = vld [vmem:[%s29159_s5 + $0x85c] sm:$0xf0] }
 0x1b0   :  { %5549 = vmatpush.bf16.msrb.mxu0 %v15073_v18  ;;  %v18555_v18 = vld [vmem:[%s29159_s5 + $0xd38] sm:$0xf0] }
 0x1b1   :  { %5538 = vmatpush.bf16.msra.mxu2 %v14553_v29  ;;  %v14345_v29 = vor.u32 %v18555_v18, %v14344_v14  ;;  %v14193_v14 = vor.u32 %v18510_v61, %v14190_v8  ;;  %v18380_v18 = vld [vmem:[%s29159_s5 + $0x7c4] sm:$0xf]  ;;  %v18341_v61 = vld [vmem:[%s29159_s5 + $0x68c] sm:$0xf]  ;;  %v13514_v8 = vld [vmem:[%s29159_s5 + $0x6bc] sm:$0xf0] }
 0x1b2   :  { %v21403_v12 = vpop.f32.mrf.mxu0 }
 0x1b3   :  { %5462 = vmatpush.bf16.msra.mxu3 %v14861_v28  ;;  %5592 = vmatpush.bf16.msra.mxu1 %v13205_v35  ;;  %v14189_v28 = vor.u32 %v18516_v16, %v14188_v11  ;;  %v13881_v35 = vor.u32 %v18432_v24, %v13878_v25  ;;  %v14866_v11 = vld [vmem:[%s29159_s5 + $0x114c] sm:$0xf0]  ;;  %v13725_v16 = vor.u32 %v18393_v5, %v13722_v7  ;;  %v14138_v24 = vld [vmem:[%s29159_s5 + $0xb9c] sm:$0xf0]  ;;  %v18198_v5 = vld [vmem:[%s29159_s5 + $0x214] sm:$0xf] }
 0x1b4   :  { %5550 = vmatpush.bf16.msrb.mxu0 %v15021_v33  ;;  %v18503_v33 = vld [vmem:[%s29159_s5 + $0xb98] sm:$0xf0] }
 0x1b5   :  { %5539 = vmatpush.bf16.msra.mxu2 %v14501_v46  ;;  %v14137_v37 = vor.u32 %v18503_v33, %v14136_v32  ;;  %v18705_v46 = vld [vmem:[%s29159_s5 + $0x11ec] sm:$0xf]  ;;  %v18451_v32 = vld [vmem:[%s29159_s5 + $0x9f8] sm:$0xf0]  ;;  %v13673_v33 = vor.u32 %v18380_v18, %v13670_v21 }
 0x1b6   :  { %v14973_v54 = vor.u32 %v18705_v46, %v14970_v42  ;;  %v18653_v46 = vld [vmem:[%s29159_s5 + $0x104c] sm:$0xf]  ;;  %v14762_v42 = vld [vmem:[%s29159_s5 + $0x107c] sm:$0xf0] }
 0x1b7   :  { %5463 = vmatpush.bf16.msra.mxu3 %v14809_v45  ;;  %5593 = vmatpush.bf16.msra.mxu1 %v13153_v50  ;;  %v14294_v45 = vld [vmem:[%s29159_s5 + $0xcd4] sm:$0xf0]  ;;  %v18490_v50 = vld [vmem:[%s29159_s5 + $0xb30] sm:$0xf0]  ;;  %v18185_v21 = vld [vmem:[%s29159_s5 + $0x1ac] sm:$0xf] }
 0x1b8   :  { %5551 = vmatpush.bf16.msrb.mxu0 %v14969_v49  ;;  %v14084_v49 = vld [vmem:[%s29159_s5 + $0xb00] sm:$0xf]  ;;  %v14297_v41 = vor.u32 %v18536_v44, %v14294_v45  ;;  %v18484_v44 = vld [vmem:[%s29159_s5 + $0xb04] sm:$0xf]  ;;  %v14086_v45 = vld [vmem:[%s29159_s5 + $0xb34] sm:$0xf0] }
 0x1b9   :  { %5540 = vmatpush.bf16.msra.mxu2 %v14449_v0  ;;  %v14085_v58 = vor.u32 %v18490_v50, %v14084_v49  ;;  %v21492_v0 = vld [vmem:[%s29161_s6] sm:$0xff]  ;;  %v18543_v49 = vld [vmem:[%s29159_s5 + $0xcd8] sm:$0xf0]  ;;  %v13621_v50 = vor.u32 %v18367_v39, %v13618_v40  ;;  %v12838_v40 = vld [vmem:[%s29159_s5 + $0x174] sm:$0xf0] }
 0x1ba   :  { %v5312_v47 = vpop.f32.mrf.mxu0  ;;  %v2037_v43 = vperm.slane %v21492_v0, 0 }
 0x1bb   :  { %5464 = vmatpush.bf16.msra.mxu3 %v14757_v57  ;;  %5594 = vmatpush.bf16.msra.mxu1 %v13101_v2  ;;  %v14242_v57 = vld [vmem:[%s29159_s5 + $0xc6c] sm:$0xf0]  ;;  %v18477_v2 = vld [vmem:[%s29159_s5 + $0xac8] sm:$0xf0] }
 0x1bc   :  { %5552 = vmatpush.bf16.msrb.mxu0 %v14917_v1  ;;  %v14032_v1 = vld [vmem:[%s29159_s5 + $0xa98] sm:$0xf]  ;;  %v14245_v4 = vor.u32 %v18523_v56, %v14242_v57  ;;  %v5311_v25 = vadd.f32 %v21403_v12, %v2037_v43  ;;  %v13566_v56 = vld [vmem:[%s29159_s5 + $0x724] sm:$0xf0]  ;;  %v18458_v43 = vld [vmem:[%s29159_s5 + $0xa34] sm:$0xf] }
 0x1bd   :  { %5541 = vmatpush.bf16.msra.mxu2 %v14397_v13  ;;  %v14033_v10 = vor.u32 %v18477_v2, %v14032_v1  ;;  %v13980_v13 = vld [vmem:[%s29159_s5 + $0xa30] sm:$0xf]  ;;  %v14248_v2 = vld [vmem:[%s29159_s5 + $0xc40] sm:$0xf] }
 0x1be   :  { %5465 = vmatmul.bf16.vlgmr.msra.gmra.mxu3 %v21066_v17  ;;  %5595 = vmatmul.bf16.vlgmr.msra.gmra.mxu1 %v20807_v34 }
 0x1bf   :  { %5522 = vmatpush.bf16.msrb.mxu3 %v14293_v63  ;;  %5639 = vmatpush.bf16.msrb.mxu1 %v15129_v6  ;;  %v14918_v63 = vld [vmem:[%s29159_s5 + $0x11b4] sm:$0xf0] }
 0x1c0   :  { %5553 = vmatpush.bf16.msrb.mxu0 %v14865_v15  ;;  %v14921_v6 = vor.u32 %v18692_v60, %v14918_v63  ;;  %v18464_v15 = vld [vmem:[%s29159_s5 + $0xa60] sm:$0xf0]  ;;  %v14034_v60 = vld [vmem:[%s29159_s5 + $0xacc] sm:$0xf0] }
 0x1c1   :  { %5542 = vmatpush.bf16.msra.mxu2 %v14345_v29  ;;  %v13981_v26 = vor.u32 %v18464_v15, %v13980_v13  ;;  %v15178_v13 = vld [vmem:[%s29159_s5 + $0x13bc] sm:$0xf0] }
 0x1c3   :  { %5523 = vmatpush.bf16.msrb.mxu3 %v14241_v9  ;;  %5640 = vmatpush.bf16.msrb.mxu1 %v15077_v20  ;;  %v18679_v9 = vld [vmem:[%s29159_s5 + $0x111c] sm:$0xf] }
 0x1c4   :  { %5554 = vmatpush.bf16.msrb.mxu0 %v14813_v31  ;;  %5543 = vmatmul.bf16.vlgmr.msra.gmra.mxu2 %v21033_v59  ;;  %v14869_v20 = vor.u32 %v18679_v9, %v14866_v11  ;;  %v13928_v31 = vld [vmem:[%s29159_s5 + $0x9c8] sm:$0xf]  ;;  %v18757_v11 = vld [vmem:[%s29159_s5 + $0x138c] sm:$0xf] }
 0x1c5   :  { %5600 = vmatpush.bf16.msrb.mxu2 %v13881_v35  ;;  %v14141_v35 = vor.u32 %v18497_v23, %v14138_v24  ;;  %v13982_v9 = vld [vmem:[%s29159_s5 + $0xa64] sm:$0xf0]  ;;  %v12890_v23 = vld [vmem:[%s29159_s5 + $0x1dc] sm:$0xf0] }
 0x1c6   :  { %v13985_v24 = vor.u32 %v18458_v43, %v13982_v9  ;;  %v18296_v9 = vld [vmem:[%s29159_s5 + $0x520] sm:$0xf0] }
 0x1c7   :  { %5524 = vmatpush.bf16.msrb.mxu3 %v14189_v28  ;;  %5641 = vmatpush.bf16.msrb.mxu1 %v15025_v36  ;;  %v14814_v28 = vld [vmem:[%s29159_s5 + $0x10e4] sm:$0xf0]  ;;  %v18224_v36 = vld [vmem:[%s29159_s5 + $0x2e4] sm:$0xf] }
 0x1c8   :  { %5555 = vmatpush.bf16.msrb.mxu0 %v14761_v48  ;;  %v5323_v29 = vpop.f32.mrf.mxu2  ;;  %v14817_v62 = vor.u32 %v18666_v27, %v14814_v28  ;;  %v13049_v47 = vor.u32 %v18224_v36, %v13046_v38  ;;  %v14300_v48 = vld [vmem:[%s29159_s5 + $0xca8] sm:$0xf]  ;;  %v18335_v27 = vld [vmem:[%s29159_s5 + $0x658] sm:$0xf0]  ;;  %v14144_v36 = vld [vmem:[%s29159_s5 + $0xb70] sm:$0xf] }
 0x1c9   :  { %5601 = vmatpush.bf16.msrb.mxu2 %v13829_v51  ;;  %v21551_v12 = vadd.f32 %v5323_v29, %v5311_v25  ;;  %v14089_v51 = vor.u32 %v18484_v44, %v14086_v45  ;;  %v14301_v57 = vor.u32 %v18543_v49, %v14300_v48  ;;  %v15181_v25 = vor.u32 %v18757_v11, %v15178_v13  ;;  %v18445_v29 = vld [vmem:[%s29159_s5 + $0x9cc] sm:$0xf]  ;;  %v18504_v38 = vld [vmem:[%s29159_s5 + $0xba0] sm:$0xf0]  ;;  %v13000_v49 = vld [vmem:[%s29159_s5 + $0x280] sm:$0xf] }
 0x1ca   :  { %v14145_v48 = vor.u32 %v18504_v38, %v14144_v36  ;;  %v18179_v36 = vld [vmem:[%s29159_s5 + $0x178] sm:$0xf0]  ;;  %v13936_v38 = vld [vmem:[%s29159_s5 + $0x9d0] sm:$0xf] }
 0x1cb   :  { %5525 = vmatpush.bf16.msrb.mxu3 %v14137_v37  ;;  %5642 = vmatpush.bf16.msrb.mxu1 %v14973_v54  ;;  %v13929_v37 = vor.u32 %v18451_v32, %v13928_v31  ;;  %v14765_v54 = vor.u32 %v18653_v46, %v14762_v42  ;;  %v13930_v31 = vld [vmem:[%s29159_s5 + $0x9fc] sm:$0xf0]  ;;  %v13052_v32 = vld [vmem:[%s29159_s5 + $0x2e8] sm:$0xf]  ;;  %v18322_v46 = vld [vmem:[%s29159_s5 + $0x5f0] sm:$0xf0] }
 0x1cc   :  { %5613 = vmatpush.bf16.msra.mxu0 %v14297_v41  ;;  %v18211_v41 = vld [vmem:[%s29159_s5 + $0x27c] sm:$0xf]  ;;  %v13933_v45 = vor.u32 %v18445_v29, %v13930_v31  ;;  %v14710_v29 = vld [vmem:[%s29159_s5 + $0x1014] sm:$0xf0] }
 0x1cd   :  { %5556 = vmatmul.bf16.vlgmr.msrb.gmra.mxu0 %v21066_v17  ;;  %5602 = vmatpush.bf16.msrb.mxu2 %v13777_v3  ;;  %v12997_v1 = vor.u32 %v18211_v41, %v12994_v53  ;;  %v18530_v3 = vld [vmem:[%s29159_s5 + $0xc70] sm:$0xf0]  ;;  %v14092_v41 = vld [vmem:[%s29159_s5 + $0xb08] sm:$0xf] }
 0x1cf   :  { %5526 = vmatpush.bf16.msrb.mxu3 %v14085_v58  ;;  %5643 = vmatpush.bf16.msrb.mxu1 %v14921_v6  ;;  %v18471_v58 = vld [vmem:[%s29159_s5 + $0xa9c] sm:$0xf]  ;;  %v12942_v6 = vld [vmem:[%s29159_s5 + $0x244] sm:$0xf0] }
 0x1d0   :  { %5614 = vmatpush.bf16.msra.mxu0 %v14245_v4  ;;  %v5325_v63 = vpop.f32.mrf.mxu2  ;;  %v13569_v4 = vor.u32 %v18354_v55, %v13566_v56  ;;  %v14037_v7 = vor.u32 %v18471_v58, %v14034_v60  ;;  %v12945_v15 = vor.u32 %v18198_v5, %v12942_v6  ;;  %v18159_v55 = vld [vmem:[%s29159_s5 + $0xdc] sm:$0xf]  ;;  %v12786_v56 = vld [vmem:[%s29159_s5 + $0x10c] sm:$0xf0]  ;;  %v13364_v58 = vld [vmem:[%s29159_s5 + $0x558] sm:$0xf] }
 0x1d1   :  { %5603 = vmatpush.bf16.msrb.mxu2 %v13725_v16  ;;  %v14196_v16 = vld [vmem:[%s29159_s5 + $0xbd8] sm:$0xf]  ;;  %v18309_v60 = vld [vmem:[%s29159_s5 + $0x588] sm:$0xf0]  ;;  %v14040_v5 = vld [vmem:[%s29159_s5 + $0xaa0] sm:$0xf] }
 0x1d2   :  { %v18478_v6 = vld [vmem:[%s29159_s5 + $0xad0] sm:$0xf0] }
 0x1d3   :  { %5527 = vmatpush.bf16.msrb.mxu3 %v14033_v10  ;;  %5644 = vmatpush.bf16.msrb.mxu1 %v14869_v20  ;;  %v14249_v10 = vor.u32 %v18530_v3, %v14248_v2  ;;  %v13517_v20 = vor.u32 %v18341_v61, %v13514_v8  ;;  %v12948_v2 = vld [vmem:[%s29159_s5 + $0x218] sm:$0xf]  ;;  %v12789_v3 = vor.u32 %v18159_v55, %v12786_v56  ;;  %v18146_v61 = vld [vmem:[%s29159_s5 + $0x74] sm:$0xf]  ;;  %v12734_v8 = vld [vmem:[%s29159_s5 + $0xa4] sm:$0xf0] }
 0x1d4   :  { %5615 = vmatpush.bf16.msra.mxu0 %v14193_v14  ;;  %v18517_v14 = vld [vmem:[%s29159_s5 + $0xc08] sm:$0xf0]  ;;  %v5349_v18 = vpop.f32.mrf.mxu1  ;;  %v14041_v13 = vor.u32 %v18478_v6, %v14040_v5  ;;  %v18212_v55 = vld [vmem:[%s29159_s5 + $0x284] sm:$0xf]  ;;  %v13002_v56 = vld [vmem:[%s29159_s5 + $0x2b4] sm:$0xf0] }
 0x1d5   :  { %5604 = vmatpush.bf16.msrb.mxu2 %v13673_v33  ;;  %v14197_v28 = vor.u32 %v18517_v14, %v14196_v16  ;;  %v12893_v33 = vor.u32 %v18185_v21, %v12890_v23  ;;  %v12737_v16 = vor.u32 %v18146_v61, %v12734_v8  ;;  %v18192_v14 = vld [vmem:[%s29159_s5 + $0x1e0] sm:$0xf0]  ;;  %v18153_v5 = vld [vmem:[%s29159_s5 + $0xa8] sm:$0xf0]  ;;  %v18199_v61 = vld [vmem:[%s29159_s5 + $0x21c] sm:$0xf] }
 0x1d6   :  { %v12950_v8 = vld [vmem:[%s29159_s5 + $0x24c] sm:$0xf0] }
 0x1d7   :  { %5528 = vmatpush.bf16.msrb.mxu3 %v13981_v26  ;;  %5645 = vmatpush.bf16.msrb.mxu1 %v14817_v62  ;;  %v13468_v26 = vld [vmem:[%s29159_s5 + $0x628] sm:$0xf]  ;;  %v18172_v62 = vld [vmem:[%s29159_s5 + $0x144] sm:$0xf] }
 0x1d8   :  { %5616 = vmatpush.bf16.msra.mxu0 %v14141_v35  ;;  %v18231_v35 = vld [vmem:[%s29159_s5 + $0x318] sm:$0xf0]  ;;  %v13469_v39 = vor.u32 %v18335_v27, %v13468_v26  ;;  %v13260_v26 = vld [vmem:[%s29159_s5 + $0x488] sm:$0xf] }
 0x1d9   :  { %5605 = vmatpush.bf16.msrb.mxu2 %v13621_v50  ;;  %v5336_v44 = vpop.f32.mrf.mxu3  ;;  %v12841_v50 = vor.u32 %v18172_v62, %v12838_v40  ;;  %v18283_v27 = vld [vmem:[%s29159_s5 + $0x4b8] sm:$0xf0] }
 0x1da   :  { %v5337_v42 = vadd.f32 %v5336_v44, %v21551_v12  ;;  %v18491_v12 = vld [vmem:[%s29159_s5 + $0xb38] sm:$0xf0]  ;;  %v13261_v62 = vor.u32 %v18283_v27, %v13260_v26  ;;  %v18225_v44 = vld [vmem:[%s29159_s5 + $0x2ec] sm:$0xf] }
 0x1db   :  { %5529 = vmatpush.bf16.msrb.mxu3 %v13929_v37  ;;  %5646 = vmatpush.bf16.msrb.mxu1 %v14765_v54  ;;  %v13416_v37 = vld [vmem:[%s29159_s5 + $0x5c0] sm:$0xf] }
 0x1dc   :  { %5617 = vmatpush.bf16.msra.mxu0 %v14089_v51  ;;  %v18218_v51 = vld [vmem:[%s29159_s5 + $0x2b0] sm:$0xf0]  ;;  %v5351_v53 = vpop.f32.mrf.mxu1  ;;  %v13417_v54 = vor.u32 %v18322_v46, %v13416_v37  ;;  %v13208_v37 = vld [vmem:[%s29159_s5 + $0x420] sm:$0xf] }
 0x1dd   :  { %5606 = vmatpush.bf16.msrb.mxu2 %v13569_v4  ;;  %v13001_v63 = vor.u32 %v18218_v51, %v13000_v49  ;;  %v18205_v4 = vld [vmem:[%s29159_s5 + $0x248] sm:$0xf0]  ;;  %v18270_v46 = vld [vmem:[%s29159_s5 + $0x450] sm:$0xf0]  ;;  %v12792_v51 = vld [vmem:[%s29159_s5 + $0xe0] sm:$0xf] }
 0x1de   :  { %5530 = vmatmul.bf16.vlgmr.msrb.gmra.mxu3 %v20888_v30  ;;  %5647 = vmatmul.bf16.vlgmr.msrb.gmra.mxu1 %v21066_v17  ;;  %v12949_v11 = vor.u32 %v18205_v4, %v12948_v2  ;;  %v13209_v53 = vor.u32 %v18270_v46, %v13208_v37  ;;  %v12740_v4 = vld [vmem:[%s29159_s5 + $0x78] sm:$0xf]  ;;  %v18634_v37 = vld [vmem:[%s29159_s5 + $0xfb0] sm:$0xf0]  ;;  %v18173_v46 = vld [vmem:[%s29159_s5 + $0x14c] sm:$0xf] }
 0x1df   :  { %5574 = vmatpush.bf16.msra.mxu3 %v13049_v47  ;;  %5704 = vmatpush.bf16.msra.mxu1 %v14301_v57  ;;  %v13053_v47 = vor.u32 %v18231_v35, %v13052_v32  ;;  %v21701_v57 = vadd.f32 %v5349_v18, %v5337_v42  ;;  %v13988_v18 = vld [vmem:[%s29159_s5 + $0xa38] sm:$0xf]  ;;  %v18627_v42 = vld [vmem:[%s29159_s5 + $0xf7c] sm:$0xf] }
 0x1e0   :  { %5618 = vmatpush.bf16.msra.mxu0 %v14037_v7  ;;  %v13365_v7 = vor.u32 %v18309_v60, %v13364_v58  ;;  %v13156_v58 = vld [vmem:[%s29159_s5 + $0x3b8] sm:$0xf]  ;;  %v18257_v60 = vld [vmem:[%s29159_s5 + $0x3e8] sm:$0xf0] }
 0x1e1   :  { %5607 = vmatpush.bf16.msrb.mxu2 %v13517_v20  ;;  %v5338_v43 = vpop.f32.mrf.mxu3  ;;  %v18465_v20 = vld [vmem:[%s29159_s5 + $0xa68] sm:$0xf0]  ;;  %v13157_v6 = vor.u32 %v18257_v60, %v13156_v58  ;;  %v18160_v60 = vld [vmem:[%s29159_s5 + $0xe4] sm:$0xf] }
 0x1e2   :  { %v13989_v32 = vor.u32 %v18465_v20, %v13988_v18  ;;  %v13104_v43 = vld [vmem:[%s29159_s5 + $0x350] sm:$0xf]  ;;  %v18751_v18 = vld [vmem:[%s29159_s5 + $0x1358] sm:$0xf0]  ;;  %v12953_v20 = vor.u32 %v18199_v61, %v12950_v8  ;;  %v18621_v58 = vld [vmem:[%s29159_s5 + $0xf48] sm:$0xf0] }
 0x1e3   :  { %5575 = vmatpush.bf16.msra.mxu3 %v12997_v1  ;;  %5705 = vmatpush.bf16.msra.mxu1 %v14249_v10  ;;  %v14093_v1 = vor.u32 %v18491_v12, %v14092_v41  ;;  %v13312_v10 = vld [vmem:[%s29159_s5 + $0x4f0] sm:$0xf]  ;;  %v18166_v41 = vld [vmem:[%s29159_s5 + $0x110] sm:$0xf0] }
 0x1e4   :  { %5619 = vmatpush.bf16.msra.mxu0 %v13985_v24  ;;  %5608 = vmatmul.bf16.vlgmr.msrb.gmra.mxu2 %v20877_v22  ;;  %v21746_v21 = vpop.f32.mrf.mxu1  ;;  %v13313_v23 = vor.u32 %v18296_v9, %v13312_v10  ;;  %v18133_v24 = vld [vmem:[%s29159_s5 + $0xc] sm:$0xf]  ;;  %v12793_v2 = vor.u32 %v18166_v41, %v12792_v51  ;;  %v18244_v9 = vld [vmem:[%s29159_s5 + $0x380] sm:$0xf0]  ;;  %v15028_v51 = vld [vmem:[%s29159_s5 + $0x1258] sm:$0xf] }
 0x1e5   :  { %5659 = vmatpush.bf16.msra.mxu2 %v15181_v25  ;;  %v12682_v25 = vld [vmem:[%s29159_s5 + $0x3c] sm:$0xf0]  ;;  %v13105_v26 = vor.u32 %v18244_v9, %v13104_v43  ;;  %v18725_v41 = vld [vmem:[%s29159_s5 + $0x1288] sm:$0xf0]  ;;  %v14560_v61 = vld [vmem:[%s29159_s5 + $0xeb0] sm:$0xf] }
 0x1e6   :  { %v12685_v35 = vor.u32 %v18133_v24, %v12682_v25  ;;  %v14716_v24 = vld [vmem:[%s29159_s5 + $0xfe8] sm:$0xf]  ;;  %v18608_v43 = vld [vmem:[%s29159_s5 + $0xee0] sm:$0xf0]  ;;  %v12742_v9 = vld [vmem:[%s29159_s5 + $0xac] sm:$0xf0] }
 0x1e7   :  { %5576 = vmatpush.bf16.msra.mxu3 %v12945_v15  ;;  %5706 = vmatpush.bf16.msra.mxu1 %v14197_v28  ;;  %v12896_v15 = vld [vmem:[%s29159_s5 + $0x1b0] sm:$0xf]  ;;  %v18640_v28 = vld [vmem:[%s29159_s5 + $0xfe4] sm:$0xf] }
 0x1e8   :  { %5620 = vmatpush.bf16.msra.mxu0 %v13933_v45  ;;  %v12897_v31 = vor.u32 %v18192_v14, %v12896_v15  ;;  %v14713_v40 = vor.u32 %v18640_v28, %v14710_v29  ;;  %v13054_v45 = vld [vmem:[%s29159_s5 + $0x31c] sm:$0xf0]  ;;  %v15132_v14 = vld [vmem:[%s29159_s5 + $0x1328] sm:$0xf]  ;;  %v18647_v28 = vld [vmem:[%s29159_s5 + $0x1018] sm:$0xf0] }
 0x1e9   :  { %5678 = vmatpush.bf16.msrb.mxu2 %v13469_v39  ;;  %v18452_v39 = vld [vmem:[%s29159_s5 + $0xa00] sm:$0xf0]  ;;  %v18186_v29 = vld [vmem:[%s29159_s5 + $0x1b4] sm:$0xf] }
 0x1ea   :  { %v13937_v49 = vor.u32 %v18452_v39, %v13936_v38  ;;  %v15080_v38 = vld [vmem:[%s29159_s5 + $0x12c0] sm:$0xf]  ;;  %v18738_v39 = vld [vmem:[%s29159_s5 + $0x12f0] sm:$0xf0] }
 0x1eb   :  { %5577 = vmatpush.bf16.msra.mxu3 %v12893_v33  ;;  %5707 = vmatpush.bf16.msra.mxu1 %v14145_v48  ;;  %v12844_v33 = vld [vmem:[%s29159_s5 + $0x148] sm:$0xf] }
 0x1ec   :  { %5665 = vmatpush.bf16.msrb.mxu0 %v13053_v47  ;;  %v14658_v47 = vld [vmem:[%s29159_s5 + $0xfac] sm:$0xf0]  ;;  %v12845_v48 = vor.u32 %v18179_v36, %v12844_v33  ;;  %v5403_v12 = vpop.f32.mrf.mxu1  ;;  %v18588_v33 = vld [vmem:[%s29159_s5 + $0xe44] sm:$0xf] }
 0x1ed   :  { %5621 = vmatmul.bf16.vlgmr.msra.gmra.mxu0 %v20888_v30  ;;  %5679 = vmatpush.bf16.msrb.mxu2 %v13417_v54  ;;  %v14661_v54 = vor.u32 %v18627_v42, %v14658_v47  ;;  %v12846_v42 = vld [vmem:[%s29159_s5 + $0x17c] sm:$0xf0] }
 0x1ef   :  { %5578 = vmatpush.bf16.msra.mxu3 %v12841_v50  ;;  %5708 = vmatpush.bf16.msra.mxu1 %v14093_v1  ;;  %v13057_v50 = vor.u32 %v18225_v44, %v13054_v45  ;;  %v14606_v1 = vld [vmem:[%s29159_s5 + $0xf44] sm:$0xf0]  ;;  %v14664_v44 = vld [vmem:[%s29159_s5 + $0xf80] sm:$0xf] }
 0x1f0   :  { %5666 = vmatpush.bf16.msrb.mxu0 %v13001_v63  ;;  %v18614_v63 = vld [vmem:[%s29159_s5 + $0xf14] sm:$0xf]  ;;  %v14665_v12 = vor.u32 %v18634_v37, %v14664_v44  ;;  %v13832_v44 = vld [vmem:[%s29159_s5 + $0x900] sm:$0xf] }
 0x1f1   :  { %5680 = vmatpush.bf16.msrb.mxu2 %v13365_v7  ;;  %v14609_v7 = vor.u32 %v18614_v63, %v14606_v1  ;;  %v12794_v63 = vld [vmem:[%s29159_s5 + $0x114] sm:$0xf0]  ;;  %v15029_v1 = vor.u32 %v18725_v41, %v15028_v51  ;;  %v18628_v41 = vld [vmem:[%s29159_s5 + $0xf84] sm:$0xf] }
 0x1f3   :  { %5579 = vmatpush.bf16.msra.mxu3 %v12789_v3  ;;  %5709 = vmatpush.bf16.msra.mxu1 %v14041_v13  ;;  %v13005_v3 = vor.u32 %v18212_v55, %v13002_v56  ;;  %v14554_v13 = vld [vmem:[%s29159_s5 + $0xedc] sm:$0xf0] }
 0x1f4   :  { %5667 = vmatpush.bf16.msrb.mxu0 %v12949_v11  ;;  %15221 = vmatmul.msk.bf16.vlgmr.msra.gmra.mxu2 %vm5297_vm1, %v21175_v19  ;;  %v18601_v11 = vld [vmem:[%s29159_s5 + $0xeac] sm:$0xf] }
 0x1f5   :  { %5681 = vmatpush.bf16.msrb.mxu2 %v13313_v23  ;;  %v5362_v10 = vpop.f32.mrf.mxu0  ;;  %v12688_v23 = vld [vmem:[%s29159_s5 + $0x10] sm:$0xf]  ;;  %v14557_v27 = vor.u32 %v18601_v11, %v14554_v13 }
 0x1f6   :  { %v21849_v15 = vadd.f32 %v5362_v10, %v21701_v57  ;;  %v18140_v57 = vld [vmem:[%s29159_s5 + $0x40] sm:$0xf0]  ;;  %v18147_v10 = vld [vmem:[%s29159_s5 + $0x7c] sm:$0xf] }
 0x1f7   :  { %5580 = vmatpush.bf16.msra.mxu3 %v12737_v16  ;;  %5710 = vmatpush.bf16.msra.mxu1 %v13989_v32  ;;  %v12741_v16 = vor.u32 %v18153_v5, %v12740_v4  ;;  %v21866_v25 = vpop.f32.mrf.mxu1  ;;  %v15133_v32 = vor.u32 %v18751_v18, %v15132_v14  ;;  %v12689_v36 = vor.u32 %v18140_v57, %v12688_v23  ;;  %v14976_v4 = vld [vmem:[%s29159_s5 + $0x11f0] sm:$0xf]  ;;  %v18712_v5 = vld [vmem:[%s29159_s5 + $0x1220] sm:$0xf0]  ;;  %v14346_v14 = vld [vmem:[%s29159_s5 + $0xd3c] sm:$0xf0] }
 0x1f8   :  { %5668 = vmatpush.bf16.msrb.mxu0 %v12897_v31  ;;  %v12898_v31 = vld [vmem:[%s29159_s5 + $0x1e4] sm:$0xf0]  ;;  %v14977_v13 = vor.u32 %v18712_v5, %v14976_v4  ;;  %v18439_v57 = vld [vmem:[%s29159_s5 + $0x998] sm:$0xf0] }
 0x1f9   :  { %5682 = vmatpush.bf16.msrb.mxu2 %v13261_v62  ;;  %v14717_v62 = vor.u32 %v18647_v28, %v14716_v24  ;;  %v14924_v18 = vld [vmem:[%s29159_s5 + $0x1188] sm:$0xf]  ;;  %v18615_v5 = vld [vmem:[%s29159_s5 + $0xf1c] sm:$0xf] }
 0x1fa   :  { %v13884_v23 = vld [vmem:[%s29159_s5 + $0x968] sm:$0xf] }
 0x1fb   :  { %5581 = vmatpush.bf16.msra.mxu3 %v12685_v35  ;;  %5711 = vmatpush.bf16.msra.mxu1 %v13937_v49  ;;  %v14502_v35 = vld [vmem:[%s29159_s5 + $0xe74] sm:$0xf0]  ;;  %v18575_v49 = vld [vmem:[%s29159_s5 + $0xddc] sm:$0xf]  ;;  %v14508_v28 = vld [vmem:[%s29159_s5 + $0xe48] sm:$0xf] }
 0x1fc   :  { %5669 = vmatpush.bf16.msrb.mxu0 %v12845_v48  ;;  %v14505_v45 = vor.u32 %v18588_v33, %v14502_v35  ;;  %v15081_v48 = vor.u32 %v18738_v39, %v15080_v38  ;;  %v18134_v33 = vld [vmem:[%s29159_s5 + $0x14] sm:$0xf]  ;;  %v12690_v35 = vld [vmem:[%s29159_s5 + $0x44] sm:$0xf0]  ;;  %v13885_v38 = vor.u32 %v18439_v57, %v13884_v23  ;;  %v14718_v39 = vld [vmem:[%s29159_s5 + $0x101c] sm:$0xf0] }
 0x1fd   :  { %5683 = vmatpush.bf16.msrb.mxu2 %v13209_v53  ;;  %v5364_v47 = vpop.f32.mrf.mxu0  ;;  %v12849_v53 = vor.u32 %v18173_v46, %v12846_v42  ;;  %v12693_v46 = vor.u32 %v18134_v33, %v12690_v35  ;;  %v18387_v33 = vld [vmem:[%s29159_s5 + $0x7f8] sm:$0xf0] }
 0x1fe   :  { %5582 = vmatmul.bf16.vlgmr.msra.gmra.mxu3 %v20729_v52  ;;  %5712 = vmatmul.bf16.vlgmr.msra.gmra.mxu1 %v20888_v30  ;;  %v14456_v47 = vld [vmem:[%s29159_s5 + $0xde0] sm:$0xf] }
 0x1ff   :  { %5626 = vmatpush.bf16.msrb.mxu3 %v14713_v40  ;;  %5756 = vmatpush.bf16.msrb.mxu1 %v13057_v50  ;;  %v12901_v40 = vor.u32 %v18186_v29, %v12898_v31  ;;  %v14450_v50 = vld [vmem:[%s29159_s5 + $0xe0c] sm:$0xf0]  ;;  %v5455_v55 = vpop.f32.mrf.mxu1 }
 0x200   :  { %5670 = vmatpush.bf16.msrb.mxu0 %v12793_v2  ;;  %v14453_v56 = vor.u32 %v18575_v49, %v14450_v50  ;;  %v18562_v2 = vld [vmem:[%s29159_s5 + $0xd74] sm:$0xf]  ;;  %v13780_v55 = vld [vmem:[%s29159_s5 + $0x898] sm:$0xf] }
 0x201   :  { %5684 = vmatpush.bf16.msrb.mxu2 %v13157_v6 }
 0x203   :  { %5627 = vmatpush.bf16.msrb.mxu3 %v14661_v54  ;;  %5757 = vmatpush.bf16.msrb.mxu1 %v13005_v3  ;;  %v14612_v54 = vld [vmem:[%s29159_s5 + $0xf18] sm:$0xf]  ;;  %v14398_v3 = vld [vmem:[%s29159_s5 + $0xda4] sm:$0xf0] }
 0x204   :  { %5671 = vmatpush.bf16.msrb.mxu0 %v12741_v16  ;;  %v14613_v6 = vor.u32 %v18621_v58, %v14612_v54  ;;  %v14401_v8 = vor.u32 %v18562_v2, %v14398_v3  ;;  %v18549_v16 = vld [vmem:[%s29159_s5 + $0xd0c] sm:$0xf] }
 0x205   :  { %5685 = vmatpush.bf16.msrb.mxu2 %v13105_v26  ;;  %v21951_v11 = vpop.f32.mrf.mxu0  ;;  %v14561_v26 = vor.u32 %v18608_v43, %v14560_v61  ;;  %v14349_v31 = vor.u32 %v18549_v16, %v14346_v14  ;;  %v18673_v54 = vld [vmem:[%s29159_s5 + $0x10e8] sm:$0xf0]  ;;  %v18660_v61 = vld [vmem:[%s29159_s5 + $0x1080] sm:$0xf0]  ;;  %v14352_v14 = vld [vmem:[%s29159_s5 + $0xd10] sm:$0xf] }
 0x206   :  { %v18569_v2 = vld [vmem:[%s29159_s5 + $0xda8] sm:$0xf0]  ;;  %v18400_v43 = vld [vmem:[%s29159_s5 + $0x860] sm:$0xf0] }
 0x207   :  { %5628 = vmatpush.bf16.msrb.mxu3 %v14609_v7  ;;  %5758 = vmatpush.bf16.msrb.mxu1 %v12953_v20  ;;  %v12797_v7 = vor.u32 %v18160_v60, %v12794_v63  ;;  %v18699_v20 = vld [vmem:[%s29159_s5 + $0x11b8] sm:$0xf0]  ;;  %v5375_v24 = vpop.f32.mrf.mxu2 }
 0x208   :  { %5672 = vmatpush.bf16.msrb.mxu0 %v12689_v36  ;;  %5686 = vmatmul.bf16.vlgmr.msrb.gmra.mxu2 %v20807_v34  ;;  %v21975_v29 = vadd.f32 %v5375_v24, %v21849_v15  ;;  %v14925_v36 = vor.u32 %v18699_v20, %v14924_v18  ;;  %v18641_v15 = vld [vmem:[%s29159_s5 + $0xfec] sm:$0xf]  ;;  %v18556_v18 = vld [vmem:[%s29159_s5 + $0xd40] sm:$0xf0] }
 0x209   :  { %5730 = vmatpush.bf16.msra.mxu2 %v15133_v32  ;;  %v18595_v32 = vld [vmem:[%s29159_s5 + $0xe78] sm:$0xf0]  ;;  %v14721_v42 = vor.u32 %v18641_v15, %v14718_v39  ;;  %v18433_v20 = vld [vmem:[%s29159_s5 + $0x96c] sm:$0xf]  ;;  %v18524_v15 = vld [vmem:[%s29159_s5 + $0xc44] sm:$0xf] }
 0x20a   :  { %v14509_v37 = vor.u32 %v18595_v32, %v14508_v28  ;;  %v14562_v28 = vld [vmem:[%s29159_s5 + $0xee4] sm:$0xf0]  ;;  %v14250_v39 = vld [vmem:[%s29159_s5 + $0xc74] sm:$0xf0] }
 0x20b   :  { %5629 = vmatpush.bf16.msrb.mxu3 %v14557_v27  ;;  %5759 = vmatpush.bf16.msrb.mxu1 %v12901_v40  ;;  %v12745_v27 = vor.u32 %v18147_v10, %v12742_v9  ;;  %v18686_v40 = vld [vmem:[%s29159_s5 + $0x1150] sm:$0xf0]  ;;  %v18537_v9 = vld [vmem:[%s29159_s5 + $0xcac] sm:$0xf]  ;;  %v13676_v32 = vld [vmem:[%s29159_s5 + $0x7c8] sm:$0xf] }
 0x20c   :  { %5717 = vmatpush.bf16.msra.mxu0 %v14717_v62  ;;  %v14872_v62 = vld [vmem:[%s29159_s5 + $0x1120] sm:$0xf] }
 0x20d   :  { %5673 = vmatmul.bf16.vlgmr.msrb.gmra.mxu0 %v20729_v52  ;;  %5731 = vmatpush.bf16.msra.mxu2 %v15081_v48  ;;  %v18582_v48 = vld [vmem:[%s29159_s5 + $0xe10] sm:$0xf0]  ;;  %v5429_v49 = vpop.f32.mrf.mxu0  ;;  %v14873_v50 = vor.u32 %v18686_v40, %v14872_v62 }
 0x20e   :  { %v14457_v60 = vor.u32 %v18582_v48, %v14456_v47  ;;  %v14253_v47 = vor.u32 %v18524_v15, %v14250_v39  ;;  %v13624_v48 = vld [vmem:[%s29159_s5 + $0x760] sm:$0xf]  ;;  %v18374_v49 = vld [vmem:[%s29159_s5 + $0x790] sm:$0xf0]  ;;  %v18381_v15 = vld [vmem:[%s29159_s5 + $0x7cc] sm:$0xf] }
 0x20f   :  { %5630 = vmatpush.bf16.msrb.mxu3 %v14505_v45  ;;  %5760 = vmatpush.bf16.msrb.mxu1 %v12849_v53  ;;  %v18426_v45 = vld [vmem:[%s29159_s5 + $0x930] sm:$0xf0]  ;;  %v14820_v53 = vld [vmem:[%s29159_s5 + $0x10b8] sm:$0xf]  ;;  %v5377_v58 = vpop.f32.mrf.mxu2 }
 0x210   :  { %5718 = vmatpush.bf16.msra.mxu0 %v14665_v12  ;;  %v13833_v51 = vor.u32 %v18426_v45, %v13832_v44  ;;  %v14666_v12 = vld [vmem:[%s29159_s5 + $0xfb4] sm:$0xf0]  ;;  %v14821_v3 = vor.u32 %v18673_v54, %v14820_v53  ;;  %v18420_v44 = vld [vmem:[%s29159_s5 + $0x904] sm:$0xf]  ;;  %v13677_v45 = vor.u32 %v18387_v33, %v13676_v32  ;;  %v13625_v58 = vor.u32 %v18374_v49, %v13624_v48 }
 0x211   :  { %5732 = vmatpush.bf16.msra.mxu2 %v15029_v1  ;;  %v14669_v63 = vor.u32 %v18628_v41, %v14666_v12  ;;  %v14404_v1 = vld [vmem:[%s29159_s5 + $0xd78] sm:$0xf]  ;;  %v14198_v41 = vld [vmem:[%s29159_s5 + $0xc0c] sm:$0xf0] }
 0x212   :  { %v14405_v10 = vor.u32 %v18569_v2, %v14404_v1  ;;  %v13572_v2 = vld [vmem:[%s29159_s5 + $0x6f8] sm:$0xf] }
 0x213   :  { %5631 = vmatpush.bf16.msrb.mxu3 %v14453_v56  ;;  %5761 = vmatpush.bf16.msrb.mxu1 %v12797_v7  ;;  %v18413_v56 = vld [vmem:[%s29159_s5 + $0x8c8] sm:$0xf0]  ;;  %v14768_v7 = vld [vmem:[%s29159_s5 + $0x1050] sm:$0xf] }
 0x214   :  { %5719 = vmatpush.bf16.msra.mxu0 %v14613_v6  ;;  %v13781_v4 = vor.u32 %v18413_v56, %v13780_v55  ;;  %v14614_v6 = vld [vmem:[%s29159_s5 + $0xf4c] sm:$0xf0]  ;;  %v14769_v57 = vor.u32 %v18660_v61, %v14768_v7  ;;  %v18407_v55 = vld [vmem:[%s29159_s5 + $0x89c] sm:$0xf]  ;;  %v14146_v7 = vld [vmem:[%s29159_s5 + $0xba4] sm:$0xf0] }
 0x215   :  { %5733 = vmatpush.bf16.msra.mxu2 %v14977_v13  ;;  %v14302_v13 = vld [vmem:[%s29159_s5 + $0xcdc] sm:$0xf0]  ;;  %v14617_v16 = vor.u32 %v18615_v5, %v14614_v6  ;;  %v18498_v6 = vld [vmem:[%s29159_s5 + $0xb74] sm:$0xf] }
 0x216   :  { %v22086_v35 = vpop.f32.mrf.mxu1 }
 0x217   :  { %5632 = vmatpush.bf16.msrb.mxu3 %v14401_v8  ;;  %5762 = vmatpush.bf16.msrb.mxu1 %v12745_v27  ;;  %v13728_v8 = vld [vmem:[%s29159_s5 + $0x830] sm:$0xf]  ;;  %v18602_v27 = vld [vmem:[%s29159_s5 + $0xeb4] sm:$0xf] }
 0x218   :  { %5720 = vmatpush.bf16.msra.mxu0 %v14561_v26  ;;  %v13729_v24 = vor.u32 %v18400_v43, %v13728_v8  ;;  %v13886_v26 = vld [vmem:[%s29159_s5 + $0x99c] sm:$0xf0]  ;;  %v14565_v40 = vor.u32 %v18602_v27, %v14562_v28  ;;  %v18394_v43 = vld [vmem:[%s29159_s5 + $0x834] sm:$0xf]  ;;  %v15184_v27 = vld [vmem:[%s29159_s5 + $0x1390] sm:$0xf] }
 0x219   :  { %5734 = vmatpush.bf16.msra.mxu2 %v14925_v36  ;;  %v22088_v36 = vpop.f32.mrf.mxu2  ;;  %v13889_v62 = vor.u32 %v18433_v20, %v13886_v26  ;;  %v18348_v20 = vld [vmem:[%s29159_s5 + $0x6c0] sm:$0xf0]  ;;  %v14094_v26 = vld [vmem:[%s29159_s5 + $0xb3c] sm:$0xf0] }
 0x21a   :  { %v18764_v28 = vld [vmem:[%s29159_s5 + $0x13c0] sm:$0xf0] }
 0x21b   :  { %5633 = vmatpush.bf16.msrb.mxu3 %v14349_v31  ;;  %5763 = vmatpush.bf16.msrb.mxu1 %v12693_v46  ;;  %v22069_v23 = vpop.f32.mrf.mxu0  ;;  %v14305_v31 = vor.u32 %v18537_v9, %v14302_v13  ;;  %v18589_v46 = vld [vmem:[%s29159_s5 + $0xe4c] sm:$0xf]  ;;  %v13730_v9 = vld [vmem:[%s29159_s5 + $0x864] sm:$0xf0]  ;;  %v18563_v13 = vld [vmem:[%s29159_s5 + $0xd7c] sm:$0xf] }
 0x21c   :  { %5721 = vmatpush.bf16.msra.mxu0 %v14509_v37  ;;  %v13834_v37 = vld [vmem:[%s29159_s5 + $0x934] sm:$0xf0]  ;;  %v13733_v32 = vor.u32 %v18394_v43, %v13730_v9 }
 0x21d   :  { %5735 = vmatpush.bf16.msra.mxu2 %v14873_v50  ;;  %v13837_v53 = vor.u32 %v18420_v44, %v13834_v37  ;;  %v14354_v44 = vld [vmem:[%s29159_s5 + $0xd44] sm:$0xf0]  ;;  %v13892_v37 = vld [vmem:[%s29159_s5 + $0x970] sm:$0xf] }
 0x21e   :  { %5634 = vmatmul.bf16.vlgmr.msrb.gmra.mxu3 %v21033_v59  ;;  %5764 = vmatmul.bf16.vlgmr.msrb.gmra.mxu1 %v20729_v52 }
 0x21f   :  { %5691 = vmatpush.bf16.msra.mxu3 %v13885_v38  ;;  %5808 = vmatpush.bf16.msra.mxu1 %v14721_v42  ;;  %v14353_v38 = vor.u32 %v18556_v18, %v14352_v14  ;;  %v14510_v42 = vld [vmem:[%s29159_s5 + $0xe7c] sm:$0xf0]  ;;  %v14149_v14 = vor.u32 %v18498_v6, %v14146_v7  ;;  %v13520_v18 = vld [vmem:[%s29159_s5 + $0x690] sm:$0xf]  ;;  %v13418_v6 = vld [vmem:[%s29159_s5 + $0x5f4] sm:$0xf0] }
 0x220   :  { %5722 = vmatpush.bf16.msra.mxu0 %v14457_v60  ;;  %v14513_v54 = vor.u32 %v18589_v46, %v14510_v42  ;;  %v13782_v60 = vld [vmem:[%s29159_s5 + $0x8cc] sm:$0xf0]  ;;  %v13521_v39 = vor.u32 %v18348_v20, %v13520_v18  ;;  %v18440_v46 = vld [vmem:[%s29159_s5 + $0x9a0] sm:$0xf0]  ;;  %v15185_v42 = vor.u32 %v18764_v28, %v15184_v27  ;;  %v18459_v7 = vld [vmem:[%s29159_s5 + $0xa3c] sm:$0xf] }
 0x221   :  { %5736 = vmatpush.bf16.msra.mxu2 %v14821_v3  ;;  %v5388_v50 = vpop.f32.mrf.mxu3  ;;  %v18361_v3 = vld [vmem:[%s29159_s5 + $0x728] sm:$0xf0]  ;;  %v5442_v5 = vpop.f32.mrf.mxu2  ;;  %v13785_v61 = vor.u32 %v18407_v55, %v13782_v60  ;;  %v18368_v60 = vld [vmem:[%s29159_s5 + $0x764] sm:$0xf]  ;;  %v13366_v28 = vld [vmem:[%s29159_s5 + $0x58c] sm:$0xf0] }
 0x222   :  { %v22121_v12 = vadd.f32 %v5388_v50, %v21975_v29  ;;  %v18576_v29 = vld [vmem:[%s29159_s5 + $0xde4] sm:$0xf]  ;;  %v13470_v50 = vld [vmem:[%s29159_s5 + $0x65c] sm:$0xf0] }
 0x223   :  { %5692 = vmatpush.bf16.msra.mxu3 %v13833_v51  ;;  %5809 = vmatpush.bf16.msra.mxu1 %v14669_v63  ;;  %v18511_v51 = vld [vmem:[%s29159_s5 + $0xbdc] sm:$0xf]  ;;  %v5481_v56 = vpop.f32.mrf.mxu0  ;;  %v14458_v63 = vld [vmem:[%s29159_s5 + $0xe14] sm:$0xf0] }
 0x224   :  { %5723 = vmatpush.bf16.msra.mxu0 %v14405_v10  ;;  %v14201_v1 = vor.u32 %v18511_v51, %v14198_v41  ;;  %v14461_v8 = vor.u32 %v18576_v29, %v14458_v63  ;;  %v13573_v10 = vor.u32 %v18361_v3, %v13572_v2  ;;  %v18472_v51 = vld [vmem:[%s29159_s5 + $0xaa4] sm:$0xf]  ;;  %v14042_v41 = vld [vmem:[%s29159_s5 + $0xad4] sm:$0xf0]  ;;  %v13840_v3 = vld [vmem:[%s29159_s5 + $0x908] sm:$0xf] }
 0x225   :  { %5737 = vmatpush.bf16.msra.mxu2 %v14769_v57  ;;  %v18485_v57 = vld [vmem:[%s29159_s5 + $0xb0c] sm:$0xf]  ;;  %v13626_v29 = vld [vmem:[%s29159_s5 + $0x794] sm:$0xf0]  ;;  %v14045_v2 = vor.u32 %v18472_v51, %v14042_v41  ;;  %v18758_v51 = vld [vmem:[%s29159_s5 + $0x1394] sm:$0xf] }
 0x226   :  { %v13629_v43 = vor.u32 %v18368_v60, %v13626_v29  ;;  %v15186_v41 = vld [vmem:[%s29159_s5 + $0x13c4] sm:$0xf0] }
 0x227   :  { %5693 = vmatpush.bf16.msra.mxu3 %v13781_v4  ;;  %5810 = vmatpush.bf16.msra.mxu1 %v14617_v16  ;;  %v5520_v4 = vpop.f32.mrf.mxu1  ;;  %v14406_v16 = vld [vmem:[%s29159_s5 + $0xdac] sm:$0xf0]  ;;  %v15189_v29 = vor.u32 %v18758_v51, %v15186_v41 }
 0x228   :  { %5724 = vmatpush.bf16.msra.mxu0 %v14353_v38  ;;  %5738 = vmatmul.bf16.vlgmr.msra.gmra.mxu2 %v21066_v17  ;;  %v14409_v33 = vor.u32 %v18563_v13, %v14406_v16  ;;  %v2039_v38 = vperm.slane %v21492_v0, 2  ;;  %v18316_v4 = vld [vmem:[%s29159_s5 + $0x5c4] sm:$0xf]  ;;  %v18355_v13 = vld [vmem:[%s29159_s5 + $0x6fc] sm:$0xf] }
 0x229   :  { %5795 = vmatpush.bf16.msrb.mxu2 %v14305_v31  ;;  %v2038_v31 = vperm.slane %v21492_v0, 1  ;;  %v5492_v49 = vpop.f32.mrf.mxu2  ;;  %v13574_v16 = vld [vmem:[%s29159_s5 + $0x72c] sm:$0xf0]  ;;  %v13421_v20 = vor.u32 %v18316_v4, %v13418_v6  ;;  %v13262_v4 = vld [vmem:[%s29159_s5 + $0x4bc] sm:$0xf0] }
 0x22a   :  { %v12956_v6 = vld [vmem:[%s29159_s5 + $0x220] sm:$0xf] }
 0x22b   :  { %5694 = vmatpush.bf16.msra.mxu3 %v13729_v24  ;;  %5811 = vmatpush.bf16.msra.mxu1 %v14565_v40  ;;  %v5390_v24 = vpop.f32.mrf.mxu3  ;;  %v18550_v40 = vld [vmem:[%s29159_s5 + $0xd14] sm:$0xf]  ;;  %v5505_v0 = vpop.f32.mrf.mxu0  ;;  %v5402_v56 = vadd.f32 %v21746_v21, %v2038_v31  ;;  %v18427_v21 = vld [vmem:[%s29159_s5 + $0x938] sm:$0xf0] }
 0x22c   :  { %5782 = vmatpush.bf16.msrb.mxu0 %v13889_v62  ;;  %v13678_v62 = vld [vmem:[%s29159_s5 + $0x7fc] sm:$0xf0]  ;;  %v14357_v55 = vor.u32 %v18550_v40, %v14354_v44  ;;  %v13841_v9 = vor.u32 %v18427_v21, %v13840_v3  ;;  %v18414_v24 = vld [vmem:[%s29159_s5 + $0x8d0] sm:$0xf0]  ;;  %v13522_v44 = vld [vmem:[%s29159_s5 + $0x6c4] sm:$0xf0] }
 0x22d   :  { %5725 = vmatmul.bf16.vlgmr.msra.gmra.mxu0 %v21033_v59  ;;  %5796 = vmatpush.bf16.msrb.mxu2 %v14253_v47  ;;  %v18329_v47 = vld [vmem:[%s29159_s5 + $0x62c] sm:$0xf]  ;;  %v18446_v31 = vld [vmem:[%s29159_s5 + $0x9d4] sm:$0xf] }
 0x22e   :  { %v18342_v40 = vld [vmem:[%s29159_s5 + $0x694] sm:$0xf]  ;;  %v18277_v21 = vld [vmem:[%s29159_s5 + $0x48c] sm:$0xf] }
 0x22f   :  { %5695 = vmatpush.bf16.msra.mxu3 %v13677_v45  ;;  %5812 = vmatpush.bf16.msra.mxu1 %v14513_v54  ;;  %v14097_v45 = vor.u32 %v18485_v57, %v14094_v26  ;;  %v22202_v48 = vpop.f32.mrf.mxu1  ;;  %v13681_v54 = vor.u32 %v18381_v15, %v13678_v62  ;;  %v13788_v57 = vld [vmem:[%s29159_s5 + $0x8a0] sm:$0xf]  ;;  %v18303_v26 = vld [vmem:[%s29159_s5 + $0x55c] sm:$0xf]  ;;  %v18232_v15 = vld [vmem:[%s29159_s5 + $0x320] sm:$0xf0] }
 0x230   :  { %5783 = vmatpush.bf16.msrb.mxu0 %v13837_v53  ;;  %v5493_v53 = vadd.f32 %v5492_v49, %v2039_v38  ;;  %v13060_v38 = vld [vmem:[%s29159_s5 + $0x2f0] sm:$0xf]  ;;  %v13789_v62 = vor.u32 %v18414_v24, %v13788_v57 }
 0x231   :  { %5797 = vmatpush.bf16.msrb.mxu2 %v14201_v1  ;;  %v13473_v1 = vor.u32 %v18329_v47, %v13470_v50  ;;  %v5494_v27 = vpop.f32.mrf.mxu2  ;;  %v13061_v49 = vor.u32 %v18232_v15, %v13060_v38  ;;  %v13314_v50 = vld [vmem:[%s29159_s5 + $0x524] sm:$0xf0]  ;;  %v13580_v38 = vld [vmem:[%s29159_s5 + $0x700] sm:$0xf]  ;;  %v18362_v15 = vld [vmem:[%s29159_s5 + $0x730] sm:$0xf0] }
 0x232   :  { %v5506_v63 = vadd.f32 %v5505_v0, %v5493_v53  ;;  %v13369_v0 = vor.u32 %v18303_v26, %v13366_v28  ;;  %v13525_v53 = vor.u32 %v18342_v40, %v13522_v44  ;;  %v12904_v26 = vld [vmem:[%s29159_s5 + $0x1b8] sm:$0xf]  ;;  %v13372_v28 = vld [vmem:[%s29159_s5 + $0x560] sm:$0xf]  ;;  %v18251_v40 = vld [vmem:[%s29159_s5 + $0x3bc] sm:$0xf] }
 0x233   :  { %5696 = vmatpush.bf16.msra.mxu3 %v13625_v58  ;;  %5813 = vmatpush.bf16.msra.mxu1 %v14461_v8  ;;  %v13893_v58 = vor.u32 %v18440_v46, %v13892_v37  ;;  %v5414_v5 = vpop.f32.mrf.mxu3  ;;  %v5507_v18 = vpop.f32.mrf.mxu0  ;;  %v13736_v37 = vld [vmem:[%s29159_s5 + $0x838] sm:$0xf]  ;;  %v18290_v46 = vld [vmem:[%s29159_s5 + $0x4f4] sm:$0xf] }
 0x234   :  { %5784 = vmatpush.bf16.msrb.mxu0 %v13785_v61  ;;  %v13990_v61 = vld [vmem:[%s29159_s5 + $0xa6c] sm:$0xf0]  ;;  %v5415_v8 = vadd.f32 %v5414_v5, %v5402_v56  ;;  %v13317_v60 = vor.u32 %v18290_v46, %v13314_v50  ;;  %v18297_v46 = vld [vmem:[%s29159_s5 + $0x528] sm:$0xf0]  ;;  %v18238_v50 = vld [vmem:[%s29159_s5 + $0x354] sm:$0xf] }
 0x235   :  { %5798 = vmatpush.bf16.msrb.mxu2 %v14149_v14  ;;  %v13476_v56 = vld [vmem:[%s29159_s5 + $0x630] sm:$0xf] }
 0x236   :  { %v5428_v14 = vadd.f32 %v21951_v11, %v5415_v8  ;;  %v13424_v8 = vld [vmem:[%s29159_s5 + $0x5c8] sm:$0xf] }
 0x237   :  { %5697 = vmatpush.bf16.msra.mxu3 %v13573_v10  ;;  %5814 = vmatpush.bf16.msra.mxu1 %v14409_v33  ;;  %v22239_v10 = vadd.f32 %v22086_v35, %v5506_v63  ;;  %v13993_v35 = vor.u32 %v18459_v7, %v13990_v61  ;;  %v5572_v11 = vpop.f32.mrf.mxu1  ;;  %v13577_v33 = vor.u32 %v18355_v13, %v13574_v16  ;;  %v13684_v63 = vld [vmem:[%s29159_s5 + $0x7d0] sm:$0xf]  ;;  %v18206_v7 = vld [vmem:[%s29159_s5 + $0x250] sm:$0xf0]  ;;  %v13632_v13 = vld [vmem:[%s29159_s5 + $0x768] sm:$0xf] }
 0x238   :  { %5785 = vmatpush.bf16.msrb.mxu0 %v13733_v32  ;;  %v13938_v32 = vld [vmem:[%s29159_s5 + $0xa04] sm:$0xf0]  ;;  %v18375_v16 = vld [vmem:[%s29159_s5 + $0x798] sm:$0xf0]  ;;  %v12957_v18 = vor.u32 %v18206_v7, %v12956_v6  ;;  %v18193_v11 = vld [vmem:[%s29159_s5 + $0x1e8] sm:$0xf0] }
 0x239   :  { %5799 = vmatpush.bf16.msrb.mxu2 %v14097_v45  ;;  %v13941_v45 = vor.u32 %v18446_v31, %v13938_v32  ;;  %v13633_v27 = vor.u32 %v18375_v16, %v13632_v13  ;;  %v18310_v31 = vld [vmem:[%s29159_s5 + $0x590] sm:$0xf0]  ;;  %v18732_v13 = vld [vmem:[%s29159_s5 + $0x12c4] sm:$0xf]  ;;  %v15082_v16 = vld [vmem:[%s29159_s5 + $0x12f4] sm:$0xf0] }
 0x23a   :  { %v13373_v44 = vor.u32 %v18310_v31, %v13372_v28 }
 0x23b   :  { %5698 = vmatpush.bf16.msra.mxu3 %v13521_v39  ;;  %5815 = vmatpush.bf16.msra.mxu1 %v14357_v55  ;;  %v5441_v39 = vadd.f32 %v22088_v36, %v5428_v14  ;;  %v18401_v36 = vld [vmem:[%s29159_s5 + $0x868] sm:$0xf0]  ;;  %v5416_v47 = vpop.f32.mrf.mxu3 }
 0x23c   :  { %5786 = vmatpush.bf16.msrb.mxu0 %v13681_v54  ;;  %v18219_v54 = vld [vmem:[%s29159_s5 + $0x2b8] sm:$0xf0]  ;;  %v13737_v55 = vor.u32 %v18401_v36, %v13736_v37  ;;  %v13581_v37 = vor.u32 %v18362_v15, %v13580_v38  ;;  %v13320_v36 = vld [vmem:[%s29159_s5 + $0x4f8] sm:$0xf]  ;;  %v15030_v38 = vld [vmem:[%s29159_s5 + $0x128c] sm:$0xf0] }
 0x23d   :  { %5800 = vmatpush.bf16.msrb.mxu2 %v14045_v2  ;;  %v13528_v47 = vld [vmem:[%s29159_s5 + $0x698] sm:$0xf] }
 0x23e   :  { %5699 = vmatmul.bf16.vlgmr.msra.gmra.mxu3 %v20877_v22  ;;  %5816 = vmatmul.bf16.vlgmr.msra.gmra.mxu1 %v21033_v59  ;;  %v12696_v15 = vld [vmem:[%s29159_s5 + $0x18] sm:$0xf] }
 0x23f   :  { %5750 = vmatpush.bf16.msrb.mxu3 %v15185_v42  ;;  %5873 = vmatpush.bf16.msrb.mxu1 %v13893_v58  ;;  %v5454_v42 = vadd.f32 %v21866_v25, %v5441_v39  ;;  %v13008_v25 = vld [vmem:[%s29159_s5 + $0x288] sm:$0xf]  ;;  %v18336_v58 = vld [vmem:[%s29159_s5 + $0x660] sm:$0xf0]  ;;  %v22318_v2 = vpop.f32.mrf.mxu1 }
 0x240   :  { %5787 = vmatpush.bf16.msrb.mxu0 %v13629_v43  ;;  %v13009_v3 = vor.u32 %v18219_v54, %v13008_v25  ;;  %v13477_v5 = vor.u32 %v18336_v58, %v13476_v56  ;;  %v18323_v43 = vld [vmem:[%s29159_s5 + $0x5f8] sm:$0xf0]  ;;  %v13106_v25 = vld [vmem:[%s29159_s5 + $0x384] sm:$0xf0]  ;;  %v15192_v54 = vld [vmem:[%s29159_s5 + $0x1398] sm:$0xf]  ;;  %v13321_v56 = vor.u32 %v18297_v46, %v13320_v36 }
 0x241   :  { %5801 = vmatpush.bf16.msrb.mxu2 %v13993_v35  ;;  %v13210_v35 = vld [vmem:[%s29159_s5 + $0x454] sm:$0xf0]  ;;  %v13425_v24 = vor.u32 %v18323_v43, %v13424_v8  ;;  %v18745_v58 = vld [vmem:[%s29159_s5 + $0x132c] sm:$0xf]  ;;  %v13478_v8 = vld [vmem:[%s29159_s5 + $0x664] sm:$0xf0] }
 0x242   :  { %v18304_v36 = vld [vmem:[%s29159_s5 + $0x564] sm:$0xf]  ;;  %v13374_v46 = vld [vmem:[%s29159_s5 + $0x594] sm:$0xf0] }
 0x243   :  { %5769 = vmatpush.bf16.msra.mxu3 %v13473_v1  ;;  %5874 = vmatpush.bf16.msrb.mxu1 %v13841_v9  ;;  %v18388_v1 = vld [vmem:[%s29159_s5 + $0x800] sm:$0xf0]  ;;  %v13265_v9 = vor.u32 %v18277_v21, %v13262_v4  ;;  %v5466_v14 = vpop.f32.mrf.mxu3  ;;  %v13268_v21 = vld [vmem:[%s29159_s5 + $0x490] sm:$0xf] }
 0x244   :  { %5788 = vmatpush.bf16.msrb.mxu0 %v13577_v33  ;;  %v13685_v61 = vor.u32 %v18388_v1, %v13684_v63  ;;  %v5467_v57 = vadd.f32 %v5466_v14, %v5454_v42  ;;  %v18284_v4 = vld [vmem:[%s29159_s5 + $0x4c0] sm:$0xf0]  ;;  %v12748_v14 = vld [vmem:[%s29159_s5 + $0x80] sm:$0xf] }
 0x245   :  { %5802 = vmatpush.bf16.msrb.mxu2 %v13941_v45  ;;  %v18180_v45 = vld [vmem:[%s29159_s5 + $0x180] sm:$0xf0] }
 0x246   :  { %v22367_v32 = vadd.f32 %v22069_v23, %v5467_v57  ;;  %v13158_v23 = vld [vmem:[%s29159_s5 + $0x3ec] sm:$0xf0] }
 0x247   :  { %5770 = vmatpush.bf16.msra.mxu3 %v13421_v20  ;;  %5875 = vmatpush.bf16.msrb.mxu1 %v13789_v62  ;;  %v18264_v20 = vld [vmem:[%s29159_s5 + $0x424] sm:$0xf]  ;;  %v5598_v39 = vpop.f32.mrf.mxu1  ;;  %v12905_v62 = vor.u32 %v18193_v11, %v12904_v26  ;;  %v13161_v42 = vor.u32 %v18251_v40, %v13158_v23  ;;  %v22422_v63 = vpop.f32.mrf.mxu2  ;;  %v15085_v26 = vor.u32 %v18732_v13, %v15082_v16  ;;  %v18317_v11 = vld [vmem:[%s29159_s5 + $0x5cc] sm:$0xf]  ;;  %v13164_v40 = vld [vmem:[%s29159_s5 + $0x3c0] sm:$0xf] }
 0x248   :  { %5789 = vmatpush.bf16.msrb.mxu0 %v13525_v53  ;;  %5803 = vmatmul.bf16.vlgmr.msrb.gmra.mxu2 %v20888_v30  ;;  %v13213_v33 = vor.u32 %v18264_v20, %v13210_v35  ;;  %v13216_v20 = vld [vmem:[%s29159_s5 + $0x428] sm:$0xf]  ;;  %v18271_v35 = vld [vmem:[%s29159_s5 + $0x458] sm:$0xf0]  ;;  %v18258_v23 = vld [vmem:[%s29159_s5 + $0x3f0] sm:$0xf0] }
 0x249   :  { %5847 = vmatpush.bf16.msra.mxu2 %v13061_v49  ;;  %v18349_v49 = vld [vmem:[%s29159_s5 + $0x6c8] sm:$0xf0]  ;;  %v13217_v31 = vor.u32 %v18271_v35, %v13216_v20  ;;  %v15088_v13 = vld [vmem:[%s29159_s5 + $0x12c8] sm:$0xf] }
 0x24a   :  { %v22402_v51 = vpop.f32.mrf.mxu0  ;;  %v13529_v1 = vor.u32 %v18349_v49, %v13528_v47  ;;  %v13165_v47 = vor.u32 %v18258_v23, %v13164_v40  ;;  %v18706_v49 = vld [vmem:[%s29159_s5 + $0x11f4] sm:$0xf]  ;;  %v13270_v20 = vld [vmem:[%s29159_s5 + $0x4c4] sm:$0xf0]  ;;  %v13218_v40 = vld [vmem:[%s29159_s5 + $0x45c] sm:$0xf0] }
 0x24b   :  { %5771 = vmatpush.bf16.msra.mxu3 %v13369_v0  ;;  %5876 = vmatpush.bf16.msrb.mxu1 %v13737_v55  ;;  %v12852_v0 = vld [vmem:[%s29159_s5 + $0x150] sm:$0xf]  ;;  %v5468_v41 = vpop.f32.mrf.mxu3  ;;  %v18765_v55 = vld [vmem:[%s29159_s5 + $0x13c8] sm:$0xf0] }
 0x24c   :  { %5841 = vmatpush.bf16.msra.mxu0 %v15189_v29  ;;  %v12853_v53 = vor.u32 %v18180_v45, %v12852_v0  ;;  %v12800_v29 = vld [vmem:[%s29159_s5 + $0xe8] sm:$0xf]  ;;  %v15193_v6 = vor.u32 %v18765_v55, %v15192_v54  ;;  %v14724_v0 = vld [vmem:[%s29159_s5 + $0xff0] sm:$0xf]  ;;  %v18648_v45 = vld [vmem:[%s29159_s5 + $0x1020] sm:$0xf0]  ;;  %v13377_v55 = vor.u32 %v18304_v36, %v13374_v46 }
 0x24d   :  { %5790 = vmatmul.bf16.vlgmr.msrb.gmra.mxu0 %v20877_v22  ;;  %5848 = vmatpush.bf16.msra.mxu2 %v13009_v3  ;;  %v18167_v3 = vld [vmem:[%s29159_s5 + $0x118] sm:$0xf0]  ;;  %v14725_v41 = vor.u32 %v18648_v45, %v14724_v0  ;;  %v14672_v54 = vld [vmem:[%s29159_s5 + $0xf88] sm:$0xf]  ;;  %v14822_v23 = vld [vmem:[%s29159_s5 + $0x10ec] sm:$0xf0] }
 0x24e   :  { %15222 = vmatmul.msk.bf16.vlgmr.msrb.gmra.mxu3 %vm5297_vm1, %v21175_v19  ;;  %v12801_v43 = vor.u32 %v18167_v3, %v12800_v29  ;;  %v13322_v3 = vld [vmem:[%s29159_s5 + $0x52c] sm:$0xf0] }
 0x24f   :  { %5772 = vmatpush.bf16.msra.mxu3 %v13317_v60  ;;  %5877 = vmatpush.bf16.msrb.mxu1 %v13685_v61  ;;  %v15134_v60 = vld [vmem:[%s29159_s5 + $0x135c] sm:$0xf0]  ;;  %v18330_v61 = vld [vmem:[%s29159_s5 + $0x634] sm:$0xf]  ;;  %v5546_v39 = vpop.f32.mrf.mxu2  ;;  %v14516_v46 = vld [vmem:[%s29159_s5 + $0xe50] sm:$0xf] }
 0x250   :  { %5860 = vmatpush.bf16.msrb.mxu0 %v13477_v5  ;;  %v13109_v5 = vor.u32 %v18238_v50, %v13106_v25  ;;  %v15137_v7 = vor.u32 %v18745_v58, %v15134_v60  ;;  %v13481_v57 = vor.u32 %v18330_v61, %v13478_v8  ;;  %v14978_v50 = vld [vmem:[%s29159_s5 + $0x1224] sm:$0xf0]  ;;  %v18245_v25 = vld [vmem:[%s29159_s5 + $0x388] sm:$0xf0]  ;;  %v15140_v58 = vld [vmem:[%s29159_s5 + $0x1330] sm:$0xf] }
 0x251   :  { %5849 = vmatpush.bf16.msra.mxu2 %v12957_v18  ;;  %v18154_v18 = vld [vmem:[%s29159_s5 + $0xb0] sm:$0xf0]  ;;  %v18752_v60 = vld [vmem:[%s29159_s5 + $0x1360] sm:$0xf0]  ;;  %v14981_v29 = vor.u32 %v18706_v49, %v14978_v50  ;;  %v18713_v50 = vld [vmem:[%s29159_s5 + $0x1228] sm:$0xf0] }
 0x252   :  { %v12749_v28 = vor.u32 %v18154_v18, %v12748_v14  ;;  %v15141_v61 = vor.u32 %v18752_v60, %v15140_v58  ;;  %v18739_v14 = vld [vmem:[%s29159_s5 + $0x12f8] sm:$0xf0]  ;;  %v18278_v18 = vld [vmem:[%s29159_s5 + $0x494] sm:$0xf]  ;;  %v14308_v58 = vld [vmem:[%s29159_s5 + $0xcb0] sm:$0xf] }
 0x253   :  { %5773 = vmatpush.bf16.msra.mxu3 %v13265_v9  ;;  %5878 = vmatpush.bf16.msrb.mxu1 %v13633_v27  ;;  %v13269_v9 = vor.u32 %v18284_v4, %v13268_v21  ;;  %v13426_v27 = vld [vmem:[%s29159_s5 + $0x5fc] sm:$0xf0]  ;;  %v18693_v4 = vld [vmem:[%s29159_s5 + $0x118c] sm:$0xf]  ;;  %v18726_v39 = vld [vmem:[%s29159_s5 + $0x1290] sm:$0xf0] }
 0x254   :  { %5861 = vmatpush.bf16.msrb.mxu0 %v13425_v24  ;;  %v5559_v24 = vpop.f32.mrf.mxu0  ;;  %v18544_v60 = vld [vmem:[%s29159_s5 + $0xce0] sm:$0xf0] }
 0x255   :  { %5850 = vmatpush.bf16.msra.mxu2 %v12905_v62  ;;  %v18141_v62 = vld [vmem:[%s29159_s5 + $0x48] sm:$0xf0]  ;;  %v14874_v24 = vld [vmem:[%s29159_s5 + $0x1154] sm:$0xf0] }
 0x257   :  { %5774 = vmatpush.bf16.msra.mxu3 %v13213_v33  ;;  %5879 = vmatpush.bf16.msrb.mxu1 %v13581_v37  ;;  %v18719_v33 = vld [vmem:[%s29159_s5 + $0x125c] sm:$0xf] }
 0x258   :  { %5862 = vmatpush.bf16.msrb.mxu0 %v13373_v44  ;;  %v13429_v44 = vor.u32 %v18317_v11, %v13426_v27  ;;  %v15033_v37 = vor.u32 %v18719_v33, %v15030_v38  ;;  %v15089_v27 = vor.u32 %v18739_v14, %v15088_v13  ;;  %v18609_v33 = vld [vmem:[%s29159_s5 + $0xee8] sm:$0xf0]  ;;  %v15036_v38 = vld [vmem:[%s29159_s5 + $0x1260] sm:$0xf]  ;;  %v18746_v13 = vld [vmem:[%s29159_s5 + $0x1334] sm:$0xf] }
 0x259   :  { %5851 = vmatpush.bf16.msra.mxu2 %v12853_v53  ;;  %v13112_v53 = vld [vmem:[%s29159_s5 + $0x358] sm:$0xf] }
 0x25a   :  { %v13113_v21 = vor.u32 %v18245_v25, %v13112_v53  ;;  %v13166_v53 = vld [vmem:[%s29159_s5 + $0x3f4] sm:$0xf0] }
 0x25b   :  { %5775 = vmatpush.bf16.msra.mxu3 %v13161_v42  ;;  %5880 = vmatpush.bf16.msrb.mxu1 %v13529_v1  ;;  %v12697_v42 = vor.u32 %v18141_v62, %v12696_v15  ;;  %v18291_v1 = vld [vmem:[%s29159_s5 + $0x4fc] sm:$0xf]  ;;  %v18265_v62 = vld [vmem:[%s29159_s5 + $0x42c] sm:$0xf] }
 0x25c   :  { %5863 = vmatpush.bf16.msrb.mxu0 %v13321_v56  ;;  %v18635_v56 = vld [vmem:[%s29159_s5 + $0xfb8] sm:$0xf0]  ;;  %v13325_v8 = vor.u32 %v18291_v1, %v13322_v3  ;;  %v13221_v36 = vor.u32 %v18265_v62, %v13218_v40  ;;  %v18518_v62 = vld [vmem:[%s29159_s5 + $0xc10] sm:$0xf0] }
 0x25d   :  { %15223 = vmatmul.msk.bf16.vlgmr.msra.gmra.mxu0 %vm5297_vm1, %v21175_v19  ;;  %5852 = vmatpush.bf16.msra.mxu2 %v12801_v43  ;;  %v14620_v43 = vld [vmem:[%s29159_s5 + $0xf20] sm:$0xf] }
 0x25e   :  { %5881 = vmatmul.bf16.vlgmr.msrb.gmra.mxu1 %v20877_v22 }
 0x25f   :  { %5776 = vmatpush.bf16.msra.mxu3 %v13109_v5  ;;  %5932 = vmatpush.bf16.msra.mxu1 %v15193_v6  ;;  %v14926_v5 = vld [vmem:[%s29159_s5 + $0x11bc] sm:$0xf0]  ;;  %v22533_v6 = vpop.f32.mrf.mxu1 }
 0x260   :  { %5864 = vmatpush.bf16.msrb.mxu0 %v13269_v9  ;;  %v18622_v9 = vld [vmem:[%s29159_s5 + $0xf50] sm:$0xf0]  ;;  %v14929_v16 = vor.u32 %v18693_v4, %v14926_v5  ;;  %v18583_v4 = vld [vmem:[%s29159_s5 + $0xe18] sm:$0xf0]  ;;  %v14932_v5 = vld [vmem:[%s29159_s5 + $0x1190] sm:$0xf] }
 0x261   :  { %5853 = vmatpush.bf16.msra.mxu2 %v12749_v28  ;;  %v5531_v35 = vpop.f32.mrf.mxu3  ;;  %v14621_v11 = vor.u32 %v18622_v9, %v14620_v43  ;;  %v13273_v28 = vor.u32 %v18278_v18, %v13270_v20  ;;  %v13114_v43 = vld [vmem:[%s29159_s5 + $0x38c] sm:$0xf0]  ;;  %v14309_v9 = vor.u32 %v18544_v60, %v14308_v58  ;;  %v14256_v18 = vld [vmem:[%s29159_s5 + $0xc48] sm:$0xf]  ;;  %v18531_v20 = vld [vmem:[%s29159_s5 + $0xc78] sm:$0xf0] }
 0x262   :  { %5777 = vmatmul.bf16.vlgmr.msra.gmra.mxu3 %v20807_v34  ;;  %v18421_v60 = vld [vmem:[%s29159_s5 + $0x90c] sm:$0xf] }
 0x263   :  { %5821 = vmatpush.bf16.msrb.mxu3 %v15137_v7  ;;  %5951 = vmatpush.bf16.msrb.mxu1 %v13481_v57  ;;  %v14673_v7 = vor.u32 %v18635_v56, %v14672_v54  ;;  %v18680_v57 = vld [vmem:[%s29159_s5 + $0x1124] sm:$0xf]  ;;  %v14770_v54 = vld [vmem:[%s29159_s5 + $0x1084] sm:$0xf0] }
 0x264   :  { %5865 = vmatpush.bf16.msrb.mxu0 %v13217_v31  ;;  %v14568_v31 = vld [vmem:[%s29159_s5 + $0xeb8] sm:$0xf] }
 0x265   :  { %5854 = vmatpush.bf16.msra.mxu2 %v12697_v42  ;;  %v14569_v45 = vor.u32 %v18609_v33, %v14568_v31  ;;  %v18596_v42 = vld [vmem:[%s29159_s5 + $0xe80] sm:$0xf0]  ;;  %v14257_v31 = vor.u32 %v18531_v20, %v14256_v18  ;;  %v18733_v33 = vld [vmem:[%s29159_s5 + $0x12cc] sm:$0xf] }
 0x266   :  { %v14517_v56 = vor.u32 %v18596_v42, %v14516_v46  ;;  %v13894_v46 = vld [vmem:[%s29159_s5 + $0x9a4] sm:$0xf0] }
 0x267   :  { %5822 = vmatpush.bf16.msrb.mxu3 %v15085_v26  ;;  %5952 = vmatpush.bf16.msrb.mxu1 %v13429_v44  ;;  %v5532_v26 = vadd.f32 %v5531_v35, %v22239_v10  ;;  %v14877_v10 = vor.u32 %v18680_v57, %v14874_v24  ;;  %v5650_v0 = vpop.f32.mrf.mxu1  ;;  %v14412_v24 = vld [vmem:[%s29159_s5 + $0xd80] sm:$0xf] }
 0x268   :  { %5866 = vmatpush.bf16.msrb.mxu0 %v13165_v47  ;;  %5855 = vmatmul.bf16.vlgmr.msra.gmra.mxu2 %v20729_v52  ;;  %v14828_v0 = vld [vmem:[%s29159_s5 + $0x10c0] sm:$0xf] }
 0x269   :  { %5899 = vmatpush.bf16.msrb.mxu2 %v14725_v41  ;;  %v5545_v15 = vadd.f32 %v22422_v63, %v5532_v26  ;;  %v18667_v63 = vld [vmem:[%s29159_s5 + $0x10bc] sm:$0xf]  ;;  %v18252_v41 = vld [vmem:[%s29159_s5 + $0x3c4] sm:$0xf]  ;;  %v5533_v25 = vpop.f32.mrf.mxu3  ;;  %v18570_v26 = vld [vmem:[%s29159_s5 + $0xdb0] sm:$0xf0] }
 0x26a   :  { %v14825_v49 = vor.u32 %v18667_v63, %v14822_v23  ;;  %v13169_v3 = vor.u32 %v18252_v41, %v13166_v53  ;;  %v14360_v23 = vld [vmem:[%s29159_s5 + $0xd18] sm:$0xf]  ;;  %v18505_v53 = vld [vmem:[%s29159_s5 + $0xba8] sm:$0xf0] }
 0x26b   :  { %5823 = vmatpush.bf16.msrb.mxu3 %v15033_v37  ;;  %5953 = vmatpush.bf16.msrb.mxu1 %v13377_v55  ;;  %v5558_v44 = vadd.f32 %v22402_v51, %v5545_v15  ;;  %v15037_v37 = vor.u32 %v18726_v39, %v15036_v38  ;;  %v14984_v51 = vld [vmem:[%s29159_s5 + $0x11f8] sm:$0xf]  ;;  %v22617_v55 = vpop.f32.mrf.mxu0  ;;  %v15090_v38 = vld [vmem:[%s29159_s5 + $0x12fc] sm:$0xf0] }
 0x26c   :  { %5867 = vmatpush.bf16.msrb.mxu0 %v13113_v21  ;;  %v14985_v1 = vor.u32 %v18713_v50, %v14984_v51  ;;  %v14464_v21 = vld [vmem:[%s29159_s5 + $0xde8] sm:$0xf]  ;;  %v14204_v39 = vld [vmem:[%s29159_s5 + $0xbe0] sm:$0xf]  ;;  %v18720_v51 = vld [vmem:[%s29159_s5 + $0x1264] sm:$0xf] }
 0x26d   :  { %5900 = vmatpush.bf16.msrb.mxu2 %v14673_v7  ;;  %v22600_v47 = vadd.f32 %v22202_v48, %v5558_v44  ;;  %v18654_v48 = vld [vmem:[%s29159_s5 + $0x1054] sm:$0xf]  ;;  %v14465_v14 = vor.u32 %v18583_v4, %v14464_v21  ;;  %v18557_v44 = vld [vmem:[%s29159_s5 + $0xd48] sm:$0xf0]  ;;  %v14205_v42 = vor.u32 %v18518_v62, %v14204_v39  ;;  %v14152_v41 = vld [vmem:[%s29159_s5 + $0xb78] sm:$0xf] }
 0x26e   :  { %15224 = vmatmul.msk.bf16.vlgmr.msra.gmra.mxu1 %vm5297_vm1, %v21175_v19  ;;  %v14773_v7 = vor.u32 %v18654_v48, %v14770_v54  ;;  %v14361_v50 = vor.u32 %v18557_v44, %v14360_v23  ;;  %v14776_v54 = vld [vmem:[%s29159_s5 + $0x1058] sm:$0xf]  ;;  %v14153_v21 = vor.u32 %v18505_v53, %v14152_v41  ;;  %v14310_v4 = vld [vmem:[%s29159_s5 + $0xce4] sm:$0xf0]  ;;  %v13738_v23 = vld [vmem:[%s29159_s5 + $0x86c] sm:$0xf0] }
 0x26f   :  { %5824 = vmatpush.bf16.msrb.mxu3 %v14981_v29  ;;  %5954 = vmatpush.bf16.msrb.mxu1 %v13325_v8  ;;  %v22625_v29 = vpop.f32.mrf.mxu2  ;;  %v18239_v8 = vld [vmem:[%s29159_s5 + $0x35c] sm:$0xf]  ;;  %v18512_v44 = vld [vmem:[%s29159_s5 + $0xbe4] sm:$0xf] }
 0x270   :  { %5912 = vmatpush.bf16.msra.mxu0 %v15141_v61  ;;  %v18700_v61 = vld [vmem:[%s29159_s5 + $0x11c0] sm:$0xf0]  ;;  %v13117_v57 = vor.u32 %v18239_v8, %v13114_v43 }
 0x271   :  { %5868 = vmatmul.bf16.vlgmr.msrb.gmra.mxu0 %v20807_v34  ;;  %5901 = vmatpush.bf16.msrb.mxu2 %v14621_v11  ;;  %v14933_v35 = vor.u32 %v18700_v61, %v14932_v5  ;;  %v18707_v5 = vld [vmem:[%s29159_s5 + $0x11fc] sm:$0xf]  ;;  %v14100_v61 = vld [vmem:[%s29159_s5 + $0xb10] sm:$0xf]  ;;  %v18492_v8 = vld [vmem:[%s29159_s5 + $0xb40] sm:$0xf0] }
 0x273   :  { %5825 = vmatpush.bf16.msrb.mxu3 %v14929_v16  ;;  %5955 = vmatpush.bf16.msrb.mxu1 %v13273_v28  ;;  %v15142_v16 = vld [vmem:[%s29159_s5 + $0x1364] sm:$0xf0]  ;;  %v18687_v28 = vld [vmem:[%s29159_s5 + $0x1158] sm:$0xf0]  ;;  %v5624_v15 = vpop.f32.mrf.mxu0 }
 0x274   :  { %5913 = vmatpush.bf16.msra.mxu0 %v15089_v27  ;;  %v15145_v11 = vor.u32 %v18746_v13, %v15142_v16  ;;  %v14880_v27 = vld [vmem:[%s29159_s5 + $0x1128] sm:$0xf] }
 0x275   :  { %5902 = vmatpush.bf16.msrb.mxu2 %v14569_v45  ;;  %v14881_v63 = vor.u32 %v18687_v28, %v14880_v27  ;;  %v15093_v45 = vor.u32 %v18733_v33, %v15090_v38  ;;  %v14258_v27 = vld [vmem:[%s29159_s5 + $0xc7c] sm:$0xf0]  ;;  %v18694_v28 = vld [vmem:[%s29159_s5 + $0x1194] sm:$0xf]  ;;  %v14048_v33 = vld [vmem:[%s29159_s5 + $0xaa8] sm:$0xf] }
 0x276   :  { %v18479_v38 = vld [vmem:[%s29159_s5 + $0xad8] sm:$0xf0] }
 0x277   :  { %5826 = vmatpush.bf16.msrb.mxu3 %v14877_v10  ;;  %5956 = vmatpush.bf16.msrb.mxu1 %v13221_v36  ;;  %v14413_v10 = vor.u32 %v18570_v26, %v14412_v24  ;;  %v5611_v40 = vpop.f32.mrf.mxu2  ;;  %v18434_v36 = vld [vmem:[%s29159_s5 + $0x974] sm:$0xf]  ;;  %v13790_v24 = vld [vmem:[%s29159_s5 + $0x8d4] sm:$0xf0]  ;;  %v18525_v26 = vld [vmem:[%s29159_s5 + $0xc4c] sm:$0xf] }
 0x278   :  { %5914 = vmatpush.bf16.msra.mxu0 %v15037_v37  ;;  %v18674_v37 = vld [vmem:[%s29159_s5 + $0x10f0] sm:$0xf0]  ;;  %v13897_v48 = vor.u32 %v18434_v36, %v13894_v46  ;;  %v14261_v62 = vor.u32 %v18525_v26, %v14258_v27  ;;  %v14882_v36 = vld [vmem:[%s29159_s5 + $0x115c] sm:$0xf0]  ;;  %v14102_v26 = vld [vmem:[%s29159_s5 + $0xb44] sm:$0xf0] }
 0x279   :  { %5903 = vmatpush.bf16.msrb.mxu2 %v14517_v56  ;;  %v14829_v25 = vor.u32 %v18674_v37, %v14828_v0  ;;  %v18661_v56 = vld [vmem:[%s29159_s5 + $0x1088] sm:$0xf0]  ;;  %v14049_v0 = vor.u32 %v18479_v38, %v14048_v33  ;;  %v14778_v27 = vld [vmem:[%s29159_s5 + $0x108c] sm:$0xf0] }
 0x27a   :  { %v14777_v13 = vor.u32 %v18661_v56, %v14776_v54  ;;  %v18681_v37 = vld [vmem:[%s29159_s5 + $0x112c] sm:$0xf]  ;;  %v18499_v54 = vld [vmem:[%s29159_s5 + $0xb7c] sm:$0xf] }
 0x27b   :  { %5827 = vmatpush.bf16.msrb.mxu3 %v14825_v49  ;;  %5957 = vmatpush.bf16.msrb.mxu1 %v13169_v3  ;;  %v15038_v49 = vld [vmem:[%s29159_s5 + $0x1294] sm:$0xf0]  ;;  %v18538_v3 = vld [vmem:[%s29159_s5 + $0xcb4] sm:$0xf]  ;;  %v22743_v43 = vpop.f32.mrf.mxu1  ;;  %v18545_v33 = vld [vmem:[%s29159_s5 + $0xce8] sm:$0xf0] }
 0x27c   :  { %5915 = vmatpush.bf16.msra.mxu0 %v14985_v1  ;;  %v15041_v58 = vor.u32 %v18720_v51, %v15038_v49  ;;  %v13842_v1 = vld [vmem:[%s29159_s5 + $0x93c] sm:$0xf0]  ;;  %v14313_v20 = vor.u32 %v18538_v3, %v14310_v4  ;;  %v18466_v51 = vld [vmem:[%s29159_s5 + $0xa70] sm:$0xf0]  ;;  %v14830_v3 = vld [vmem:[%s29159_s5 + $0x10f4] sm:$0xf0] }
 0x27d   :  { %5904 = vmatpush.bf16.msrb.mxu2 %v14465_v14  ;;  %v13845_v16 = vor.u32 %v18421_v60, %v13842_v1  ;;  %v22750_v14 = vld [vmem:[%s29161_s6] sm:$0xff]  ;;  %v14154_v60 = vld [vmem:[%s29159_s5 + $0xbac] sm:$0xf0] }
 0x27e   :  { %v2040_v18 = vperm.slane %v22750_v14, 3  ;;  %v18668_v1 = vld [vmem:[%s29159_s5 + $0x10c4] sm:$0xf] }
 0x27f   :  { %5828 = vmatpush.bf16.msrb.mxu3 %v14773_v7  ;;  %5958 = vmatpush.bf16.msrb.mxu1 %v13117_v57  ;;  %v14986_v7 = vld [vmem:[%s29159_s5 + $0x122c] sm:$0xf0]  ;;  %v18408_v57 = vld [vmem:[%s29159_s5 + $0x8a4] sm:$0xf] }
 0x280   :  { %5916 = vmatpush.bf16.msra.mxu0 %v14933_v35  ;;  %v14989_v35 = vor.u32 %v18707_v5, %v14986_v7  ;;  %v2041_v5 = vperm.slane %v22750_v14, 4 }
 0x281   :  { %5905 = vmatpush.bf16.msrb.mxu2 %v14413_v10  ;;  %v5583_v15 = vpop.f32.mrf.mxu3  ;;  %v13793_v10 = vor.u32 %v18408_v57, %v13790_v24  ;;  %v18486_v57 = vld [vmem:[%s29159_s5 + $0xb14] sm:$0xf] }
 0x282   :  { %5829 = vmatmul.bf16.vlgmr.msrb.gmra.mxu3 %v21066_v17  ;;  %5959 = vmatmul.bf16.vlgmr.msrb.gmra.mxu1 %v20807_v34  ;;  %v5584_v39 = vadd.f32 %v5583_v15, %v2040_v18  ;;  %v14157_v18 = vor.u32 %v18499_v54, %v14154_v60  ;;  %v18460_v54 = vld [vmem:[%s29159_s5 + $0xa44] sm:$0xf]  ;;  %v18759_v60 = vld [vmem:[%s29159_s5 + $0x139c] sm:$0xf] }
 0x283   :  { %5886 = vmatpush.bf16.msra.mxu3 %v14309_v9  ;;  %6003 = vmatpush.bf16.msra.mxu1 %v15145_v11  ;;  %v22745_v9 = vpop.f32.mrf.mxu2  ;;  %v14101_v11 = vor.u32 %v18492_v8, %v14100_v61  ;;  %v5715_v49 = vpop.f32.mrf.mxu1 }
 0x284   :  { %5917 = vmatpush.bf16.msra.mxu0 %v14881_v63  ;;  %v18395_v63 = vld [vmem:[%s29159_s5 + $0x83c] sm:$0xf]  ;;  %v5597_v46 = vadd.f32 %v22318_v2, %v5584_v39  ;;  %v18382_v2 = vld [vmem:[%s29159_s5 + $0x7d4] sm:$0xf]  ;;  %v13010_v39 = vld [vmem:[%s29159_s5 + $0x2bc] sm:$0xf0] }
 0x285   :  { %5906 = vmatpush.bf16.msrb.mxu2 %v14361_v50  ;;  %v13741_v41 = vor.u32 %v18395_v63, %v13738_v23  ;;  %v18356_v23 = vld [vmem:[%s29159_s5 + $0x704] sm:$0xf] }
 0x286   :  { %v5610_v56 = vadd.f32 %v22625_v29, %v5597_v46  ;;  %v18453_v29 = vld [vmem:[%s29159_s5 + $0xa08] sm:$0xf0] }
 0x287   :  { %5887 = vmatpush.bf16.msra.mxu3 %v14257_v31  ;;  %6004 = vmatpush.bf16.msra.mxu1 %v15093_v45  ;;  %v14934_v31 = vld [vmem:[%s29159_s5 + $0x11c4] sm:$0xf0]  ;;  %v14206_v45 = vld [vmem:[%s29159_s5 + $0xc14] sm:$0xf0] }
 0x288   :  { %5918 = vmatpush.bf16.msra.mxu0 %v14829_v25  ;;  %5907 = vmatmul.bf16.vlgmr.msrb.gmra.mxu2 %v21033_v59  ;;  %v14937_v40 = vor.u32 %v18694_v28, %v14934_v31  ;;  %v14209_v53 = vor.u32 %v18512_v44, %v14206_v45  ;;  %v14885_v25 = vor.u32 %v18681_v37, %v14882_v36  ;;  %v14316_v31 = vld [vmem:[%s29159_s5 + $0xcb8] sm:$0xf]  ;;  %v18473_v37 = vld [vmem:[%s29159_s5 + $0xaac] sm:$0xf]  ;;  %v14050_v36 = vld [vmem:[%s29159_s5 + $0xadc] sm:$0xf0] }
 0x289   :  { %5964 = vmatpush.bf16.msra.mxu2 %v13897_v48  ;;  %v13686_v48 = vld [vmem:[%s29159_s5 + $0x804] sm:$0xf0]  ;;  %v22830_v4 = vadd.f32 %v22617_v55, %v5610_v56  ;;  %v5585_v61 = vpop.f32.mrf.mxu3  ;;  %v18369_v55 = vld [vmem:[%s29159_s5 + $0x76c] sm:$0xf]  ;;  %v13582_v44 = vld [vmem:[%s29159_s5 + $0x734] sm:$0xf0]  ;;  %v14317_v45 = vor.u32 %v18545_v33, %v14316_v31 }
 0x28a   :  { %v5674_v7 = vpop.f32.mrf.mxu0  ;;  %v13689_v8 = vor.u32 %v18382_v2, %v13686_v48  ;;  %v18343_v2 = vld [vmem:[%s29159_s5 + $0x69c] sm:$0xf]  ;;  %v13530_v48 = vld [vmem:[%s29159_s5 + $0x6cc] sm:$0xf0]  ;;  %v18174_v33 = vld [vmem:[%s29159_s5 + $0x154] sm:$0xf] }
 0x28b   :  { %5888 = vmatpush.bf16.msra.mxu3 %v14205_v42  ;;  %6005 = vmatpush.bf16.msra.mxu1 %v15041_v58  ;;  %v13996_v42 = vld [vmem:[%s29159_s5 + $0xa40] sm:$0xf]  ;;  %v5663_v50 = vpop.f32.mrf.mxu2  ;;  %v5675_v38 = vadd.f32 %v5674_v7, %v2041_v5  ;;  %v13533_v5 = vor.u32 %v18343_v2, %v13530_v48  ;;  %v18187_v7 = vld [vmem:[%s29159_s5 + $0x1bc] sm:$0xf]  ;;  %v12906_v61 = vld [vmem:[%s29159_s5 + $0x1ec] sm:$0xf0] }
 0x28c   :  { %5919 = vmatpush.bf16.msra.mxu0 %v14777_v13  ;;  %v13997_v58 = vor.u32 %v18466_v51, %v13996_v42  ;;  %v18226_v13 = vld [vmem:[%s29159_s5 + $0x2f4] sm:$0xf]  ;;  %v14264_v42 = vld [vmem:[%s29159_s5 + $0xc50] sm:$0xf]  ;;  %v18532_v51 = vld [vmem:[%s29159_s5 + $0xc80] sm:$0xf0]  ;;  %v13585_v50 = vor.u32 %v18356_v23, %v13582_v44 }
 0x28d   :  { %5965 = vmatpush.bf16.msra.mxu2 %v13845_v16  ;;  %v13062_v16 = vld [vmem:[%s29159_s5 + $0x324] sm:$0xf0]  ;;  %v14265_v56 = vor.u32 %v18532_v51, %v14264_v42  ;;  %v13016_v23 = vld [vmem:[%s29159_s5 + $0x290] sm:$0xf]  ;;  %v18161_v42 = vld [vmem:[%s29159_s5 + $0xec] sm:$0xf] }
 0x28e   :  { %v13065_v28 = vor.u32 %v18226_v13, %v13062_v16  ;;  %v12802_v51 = vld [vmem:[%s29159_s5 + $0x11c] sm:$0xf0]  ;;  %v12964_v48 = vld [vmem:[%s29159_s5 + $0x228] sm:$0xf] }
 0x28f   :  { %5889 = vmatpush.bf16.msra.mxu3 %v14153_v21  ;;  %6006 = vmatpush.bf16.msra.mxu1 %v14989_v35  ;;  %v13944_v21 = vld [vmem:[%s29159_s5 + $0x9d8] sm:$0xf]  ;;  %v13634_v35 = vld [vmem:[%s29159_s5 + $0x79c] sm:$0xf0] }
 0x290   :  { %5977 = vmatpush.bf16.msrb.mxu0 %v14313_v20  ;;  %v14833_v20 = vor.u32 %v18668_v1, %v14830_v3  ;;  %v13945_v24 = vor.u32 %v18453_v29, %v13944_v21  ;;  %v13637_v15 = vor.u32 %v18369_v55, %v13634_v35  ;;  %v15194_v1 = vld [vmem:[%s29159_s5 + $0x13cc] sm:$0xf0]  ;;  %v14212_v21 = vld [vmem:[%s29159_s5 + $0xbe8] sm:$0xf]  ;;  %v18519_v29 = vld [vmem:[%s29159_s5 + $0xc18] sm:$0xf0] }
 0x291   :  { %5920 = vmatmul.bf16.vlgmr.msra.gmra.mxu0 %v21066_v17  ;;  %5966 = vmatpush.bf16.msra.mxu2 %v13793_v10  ;;  %v18213_v10 = vld [vmem:[%s29159_s5 + $0x28c] sm:$0xf]  ;;  %v15197_v16 = vor.u32 %v18759_v60, %v15194_v1  ;;  %v14213_v55 = vor.u32 %v18519_v29, %v14212_v21  ;;  %v18447_v35 = vld [vmem:[%s29159_s5 + $0x9dc] sm:$0xf]  ;;  %v12750_v21 = vld [vmem:[%s29159_s5 + $0xb4] sm:$0xf0] }
 0x292   :  { %v13013_v46 = vor.u32 %v18213_v10, %v13010_v39  ;;  %v5676_v49 = vpop.f32.mrf.mxu0  ;;  %v13432_v39 = vld [vmem:[%s29159_s5 + $0x5d0] sm:$0xf] }
 0x293   :  { %5890 = vmatpush.bf16.msra.mxu3 %v14101_v11  ;;  %6007 = vmatpush.bf16.msra.mxu1 %v14937_v40  ;;  %v18655_v11 = vld [vmem:[%s29159_s5 + $0x105c] sm:$0xf]  ;;  %v14105_v40 = vor.u32 %v18486_v57, %v14102_v26  ;;  %v13946_v57 = vld [vmem:[%s29159_s5 + $0xa0c] sm:$0xf0]  ;;  %v12909_v26 = vor.u32 %v18187_v7, %v12906_v61 }
 0x294   :  { %5978 = vmatpush.bf16.msrb.mxu0 %v14261_v62  ;;  %v5687_v62 = vpop.f32.mrf.mxu2  ;;  %v14781_v63 = vor.u32 %v18655_v11, %v14778_v27  ;;  %v18233_v11 = vld [vmem:[%s29159_s5 + $0x328] sm:$0xf0]  ;;  %v14160_v27 = vld [vmem:[%s29159_s5 + $0xb80] sm:$0xf]  ;;  %v13949_v10 = vor.u32 %v18447_v35, %v13946_v57  ;;  %v18135_v35 = vld [vmem:[%s29159_s5 + $0x1c] sm:$0xf] }
 0x295   :  { %5967 = vmatpush.bf16.msra.mxu2 %v13741_v41  ;;  %v18200_v41 = vld [vmem:[%s29159_s5 + $0x224] sm:$0xf]  ;;  %v12698_v57 = vld [vmem:[%s29159_s5 + $0x4c] sm:$0xf0] }
 0x297   :  { %5891 = vmatpush.bf16.msra.mxu3 %v14049_v0  ;;  %6008 = vmatpush.bf16.msra.mxu1 %v14885_v25  ;;  %v22875_v0 = vadd.f32 %v5687_v62, %v5675_v38  ;;  %v14053_v25 = vor.u32 %v18473_v37, %v14050_v36  ;;  %v12854_v38 = vld [vmem:[%s29159_s5 + $0x184] sm:$0xf0]  ;;  %v18324_v62 = vld [vmem:[%s29159_s5 + $0x600] sm:$0xf0]  ;;  %v14108_v37 = vld [vmem:[%s29159_s5 + $0xb18] sm:$0xf] }
 0x298   :  { %5979 = vmatpush.bf16.msrb.mxu0 %v14209_v53  ;;  %v12958_v53 = vld [vmem:[%s29159_s5 + $0x254] sm:$0xf0]  ;;  %v12857_v44 = vor.u32 %v18174_v33, %v12854_v38  ;;  %v18493_v36 = vld [vmem:[%s29159_s5 + $0xb48] sm:$0xf0] }
 0x299   :  { %5968 = vmatpush.bf16.msra.mxu2 %v13689_v8  ;;  %v12961_v3 = vor.u32 %v18200_v41, %v12958_v53  ;;  %v18311_v41 = vld [vmem:[%s29159_s5 + $0x598] sm:$0xf0]  ;;  %v14109_v2 = vor.u32 %v18493_v36, %v14108_v37  ;;  %v13070_v37 = vld [vmem:[%s29159_s5 + $0x32c] sm:$0xf0] }
 0x29a   :  { %v13224_v36 = vld [vmem:[%s29159_s5 + $0x430] sm:$0xf] }
 0x29b   :  { %5892 = vmatpush.bf16.msra.mxu3 %v13997_v58  ;;  %6009 = vmatpush.bf16.msra.mxu1 %v14833_v20  ;;  %v13998_v58 = vld [vmem:[%s29159_s5 + $0xa74] sm:$0xf0]  ;;  %v18337_v20 = vld [vmem:[%s29159_s5 + $0x668] sm:$0xf0] }
 0x29c   :  { %5980 = vmatpush.bf16.msrb.mxu0 %v14157_v18  ;;  %v5689_v8 = vpop.f32.mrf.mxu2  ;;  %v14001_v13 = vor.u32 %v18460_v54, %v13998_v58  ;;  %v13484_v18 = vld [vmem:[%s29159_s5 + $0x638] sm:$0xf]  ;;  %v12805_v54 = vor.u32 %v18161_v42, %v12802_v51  ;;  %v14056_v58 = vld [vmem:[%s29159_s5 + $0xab0] sm:$0xf]  ;;  %v18629_v42 = vld [vmem:[%s29159_s5 + $0xf8c] sm:$0xf] }
 0x29d   :  { %5969 = vmatpush.bf16.msra.mxu2 %v13637_v15  ;;  %v13485_v31 = vor.u32 %v18337_v20, %v13484_v18  ;;  %v22957_v15 = vpop.f32.mrf.mxu1  ;;  %v18194_v18 = vld [vmem:[%s29159_s5 + $0x1f0] sm:$0xf0]  ;;  %v14004_v20 = vld [vmem:[%s29159_s5 + $0xa48] sm:$0xf]  ;;  %v14674_v51 = vld [vmem:[%s29159_s5 + $0xfbc] sm:$0xf0] }
 0x29f   :  { %5893 = vmatpush.bf16.msra.mxu3 %v13945_v24  ;;  %6010 = vmatpush.bf16.msra.mxu1 %v14781_v63  ;;  %v13068_v24 = vld [vmem:[%s29159_s5 + $0x2f8] sm:$0xf] }
 0x2a0   :  { %5981 = vmatpush.bf16.msrb.mxu0 %v14105_v40  ;;  %v13069_v40 = vor.u32 %v18233_v11, %v13068_v24  ;;  %v13276_v24 = vld [vmem:[%s29159_s5 + $0x498] sm:$0xf] }
 0x2a1   :  { %5970 = vmatpush.bf16.msra.mxu2 %v13585_v50  ;;  %v5635_v49 = vpop.f32.mrf.mxu3  ;;  %v13380_v50 = vld [vmem:[%s29159_s5 + $0x568] sm:$0xf] }
 0x2a2   :  { %5894 = vmatmul.bf16.vlgmr.msra.gmra.mxu3 %v20888_v30  ;;  %6011 = vmatmul.bf16.vlgmr.msra.gmra.mxu1 %v21066_v17  ;;  %v5636_v53 = vadd.f32 %v5635_v49, %v22830_v4  ;;  %v18480_v4 = vld [vmem:[%s29159_s5 + $0xae0] sm:$0xf0]  ;;  %v13381_v1 = vor.u32 %v18311_v41, %v13380_v50 }
 0x2a3   :  { %5938 = vmatpush.bf16.msrb.mxu3 %v13065_v28  ;;  %6068 = vmatpush.bf16.msrb.mxu1 %v14317_v45  ;;  %v18506_v28 = vld [vmem:[%s29159_s5 + $0xbb0] sm:$0xf0]  ;;  %v18220_v45 = vld [vmem:[%s29159_s5 + $0x2c0] sm:$0xf0]  ;;  %v14057_v8 = vor.u32 %v18480_v4, %v14056_v58  ;;  %v13018_v58 = vld [vmem:[%s29159_s5 + $0x2c4] sm:$0xf0] }
 0x2a4   :  { %5982 = vmatpush.bf16.msrb.mxu0 %v14053_v25  ;;  %v14161_v63 = vor.u32 %v18506_v28, %v14160_v27  ;;  %v13017_v25 = vor.u32 %v18220_v45, %v13016_v23  ;;  %v5649_v60 = vadd.f32 %v22533_v6, %v5636_v53  ;;  %v18298_v6 = vld [vmem:[%s29159_s5 + $0x530] sm:$0xf0]  ;;  %v18285_v27 = vld [vmem:[%s29159_s5 + $0x4c8] sm:$0xf0]  ;;  %v18227_v45 = vld [vmem:[%s29159_s5 + $0x2fc] sm:$0xf] }
 0x2a5   :  { %5971 = vmatpush.bf16.msra.mxu2 %v13533_v5  ;;  %v5767_v29 = vpop.f32.mrf.mxu1  ;;  %v13328_v5 = vld [vmem:[%s29159_s5 + $0x500] sm:$0xf]  ;;  %v18642_v28 = vld [vmem:[%s29159_s5 + $0xff4] sm:$0xf]  ;;  %v13277_v23 = vor.u32 %v18285_v27, %v13276_v24  ;;  %v13073_v53 = vor.u32 %v18227_v45, %v13070_v37  ;;  %v13172_v4 = vld [vmem:[%s29159_s5 + $0x3c8] sm:$0xf] }
 0x2a6   :  { %v23018_v7 = vadd.f32 %v22745_v9, %v5649_v60  ;;  %v18467_v9 = vld [vmem:[%s29159_s5 + $0xa78] sm:$0xf0]  ;;  %v18753_v27 = vld [vmem:[%s29159_s5 + $0x1368] sm:$0xf0]  ;;  %v14518_v45 = vld [vmem:[%s29159_s5 + $0xe84] sm:$0xf0] }
 0x2a7   :  { %5939 = vmatpush.bf16.msrb.mxu3 %v13013_v46  ;;  %6069 = vmatpush.bf16.msrb.mxu1 %v14265_v56  ;;  %v13433_v46 = vor.u32 %v18324_v62, %v13432_v39  ;;  %v18207_v56 = vld [vmem:[%s29159_s5 + $0x258] sm:$0xf0]  ;;  %v14005_v38 = vor.u32 %v18467_v9, %v14004_v20  ;;  %v12701_v39 = vor.u32 %v18135_v35, %v12698_v57  ;;  %v18181_v62 = vld [vmem:[%s29159_s5 + $0x188] sm:$0xf0]  ;;  %v13120_v20 = vld [vmem:[%s29159_s5 + $0x360] sm:$0xf] }
 0x2a8   :  { %5983 = vmatpush.bf16.msrb.mxu0 %v14001_v13  ;;  %5972 = vmatmul.bf16.vlgmr.msra.gmra.mxu2 %v20877_v22  ;;  %v12965_v61 = vor.u32 %v18207_v56, %v12964_v48  ;;  %v12912_v13 = vld [vmem:[%s29159_s5 + $0x1c0] sm:$0xf]  ;;  %v18214_v56 = vld [vmem:[%s29159_s5 + $0x294] sm:$0xf]  ;;  %v14570_v35 = vld [vmem:[%s29159_s5 + $0xeec] sm:$0xf0] }
 0x2a9   :  { %6023 = vmatpush.bf16.msrb.mxu2 %v15197_v16  ;;  %v5637_v11 = vpop.f32.mrf.mxu3  ;;  %v12913_v33 = vor.u32 %v18194_v18, %v12912_v13  ;;  %v12966_v18 = vld [vmem:[%s29159_s5 + $0x25c] sm:$0xf0]  ;;  %v18246_v9 = vld [vmem:[%s29159_s5 + $0x390] sm:$0xf0] }
 0x2aa   :  { %v15148_v11 = vld [vmem:[%s29159_s5 + $0x1338] sm:$0xf] }
 0x2ab   :  { %5940 = vmatpush.bf16.msrb.mxu3 %v12961_v3  ;;  %6070 = vmatpush.bf16.msrb.mxu1 %v14213_v55  ;;  %v18148_v3 = vld [vmem:[%s29159_s5 + $0x84] sm:$0xf]  ;;  %v13329_v55 = vor.u32 %v18298_v6, %v13328_v5  ;;  %v23082_v49 = vpop.f32.mrf.mxu2  ;;  %v13021_v5 = vor.u32 %v18214_v56, %v13018_v58  ;;  %v12756_v6 = vld [vmem:[%s29159_s5 + $0x88] sm:$0xf]  ;;  %v18577_v56 = vld [vmem:[%s29159_s5 + $0xdec] sm:$0xf] }
 0x2ac   :  { %5984 = vmatpush.bf16.msrb.mxu0 %v13949_v10  ;;  %v12753_v16 = vor.u32 %v18148_v3, %v12750_v21  ;;  %v12860_v10 = vld [vmem:[%s29159_s5 + $0x158] sm:$0xf]  ;;  %v18616_v3 = vld [vmem:[%s29159_s5 + $0xf24] sm:$0xf]  ;;  %v14466_v58 = vld [vmem:[%s29159_s5 + $0xe1c] sm:$0xf0] }
 0x2ad   :  { %6042 = vmatpush.bf16.msra.mxu2 %v13485_v31  ;;  %v14726_v31 = vld [vmem:[%s29159_s5 + $0x1024] sm:$0xf0]  ;;  %v12861_v50 = vor.u32 %v18181_v62, %v12860_v10  ;;  %v14622_v21 = vld [vmem:[%s29159_s5 + $0xf54] sm:$0xf0]  ;;  %v13121_v10 = vor.u32 %v18246_v9, %v13120_v20  ;;  %v18649_v62 = vld [vmem:[%s29159_s5 + $0x1028] sm:$0xf0] }
 0x2ae   :  { %v14625_v13 = vor.u32 %v18616_v3, %v14622_v21  ;;  %v14414_v20 = vld [vmem:[%s29159_s5 + $0xdb4] sm:$0xf0] }
 0x2af   :  { %5941 = vmatpush.bf16.msrb.mxu3 %v12909_v26  ;;  %6071 = vmatpush.bf16.msrb.mxu1 %v14161_v63  ;;  %v23041_v26 = vpop.f32.mrf.mxu0  ;;  %v18454_v63 = vld [vmem:[%s29159_s5 + $0xa10] sm:$0xf0] }
 0x2b0   :  { %6029 = vmatpush.bf16.msra.mxu0 %v13069_v40  ;;  %v13952_v40 = vld [vmem:[%s29159_s5 + $0x9e0] sm:$0xf] }
 0x2b1   :  { %5985 = vmatmul.bf16.vlgmr.msrb.gmra.mxu0 %v20888_v30  ;;  %6043 = vmatpush.bf16.msra.mxu2 %v13433_v46  ;;  %v18272_v46 = vld [vmem:[%s29159_s5 + $0x460] sm:$0xf0]  ;;  %v13953_v41 = vor.u32 %v18454_v63, %v13952_v40  ;;  %v12914_v63 = vld [vmem:[%s29159_s5 + $0x1f4] sm:$0xf0] }
 0x2b2   :  { %v13225_v48 = vor.u32 %v18272_v46, %v13224_v36  ;;  %v18188_v40 = vld [vmem:[%s29159_s5 + $0x1c4] sm:$0xf]  ;;  %v15096_v46 = vld [vmem:[%s29159_s5 + $0x12d0] sm:$0xf] }
 0x2b3   :  { %5942 = vmatpush.bf16.msrb.mxu3 %v12857_v44  ;;  %6072 = vmatpush.bf16.msrb.mxu1 %v14109_v2  ;;  %v14729_v44 = vor.u32 %v18642_v28, %v14726_v31  ;;  %v18168_v2 = vld [vmem:[%s29159_s5 + $0x120] sm:$0xf0]  ;;  %v5741_v57 = vpop.f32.mrf.mxu2  ;;  %v12704_v31 = vld [vmem:[%s29159_s5 + $0x20] sm:$0xf] }
 0x2b4   :  { %6030 = vmatpush.bf16.msra.mxu0 %v13017_v25  ;;  %v12808_v25 = vld [vmem:[%s29159_s5 + $0xf0] sm:$0xf] }
 0x2b5   :  { %6044 = vmatpush.bf16.msra.mxu2 %v13381_v1  ;;  %v18259_v1 = vld [vmem:[%s29159_s5 + $0x3f8] sm:$0xf0]  ;;  %v12809_v29 = vor.u32 %v18168_v2, %v12808_v25  ;;  %v18636_v25 = vld [vmem:[%s29159_s5 + $0xfc0] sm:$0xf0] }
 0x2b6   :  { %v18175_v2 = vld [vmem:[%s29159_s5 + $0x15c] sm:$0xf] }
 0x2b7   :  { %5943 = vmatpush.bf16.msrb.mxu3 %v12805_v54  ;;  %6073 = vmatpush.bf16.msrb.mxu1 %v14057_v8  ;;  %v14677_v54 = vor.u32 %v18629_v42, %v14674_v51  ;;  %v5728_v60 = vpop.f32.mrf.mxu0  ;;  %v13173_v8 = vor.u32 %v18259_v1, %v13172_v4  ;;  %v18740_v42 = vld [vmem:[%s29159_s5 + $0x1300] sm:$0xf0]  ;;  %v18727_v1 = vld [vmem:[%s29159_s5 + $0x1298] sm:$0xf0] }
 0x2b8   :  { %6031 = vmatpush.bf16.msra.mxu0 %v12965_v61  ;;  %15225 = vmatmul.msk.bf16.vlgmr.msrb.gmra.mxu2 %vm5297_vm1, %v21175_v19  ;;  %v18155_v61 = vld [vmem:[%s29159_s5 + $0xb8] sm:$0xf0]  ;;  %v15044_v60 = vld [vmem:[%s29159_s5 + $0x1268] sm:$0xf] }
 0x2b9   :  { %6045 = vmatpush.bf16.msra.mxu2 %v13329_v55  ;;  %v18603_v55 = vld [vmem:[%s29159_s5 + $0xebc] sm:$0xf]  ;;  %v12757_v24 = vor.u32 %v18155_v61, %v12756_v6  ;;  %v14469_v6 = vor.u32 %v18577_v56, %v14466_v58  ;;  %v18688_v58 = vld [vmem:[%s29159_s5 + $0x1160] sm:$0xf0] }
 0x2ba   :  { %v18623_v61 = vld [vmem:[%s29159_s5 + $0xf58] sm:$0xf0] }
 0x2bb   :  { %5944 = vmatpush.bf16.msrb.mxu3 %v12753_v16  ;;  %6074 = vmatpush.bf16.msrb.mxu1 %v14005_v38  ;;  %v18201_v16 = vld [vmem:[%s29159_s5 + $0x22c] sm:$0xf]  ;;  %v14732_v38 = vld [vmem:[%s29159_s5 + $0xff8] sm:$0xf]  ;;  %v23166_v37 = vpop.f32.mrf.mxu1 }
 0x2bc   :  { %6032 = vmatpush.bf16.msra.mxu0 %v12913_v33  ;;  %v12969_v28 = vor.u32 %v18201_v16, %v12966_v18  ;;  %v18142_v33 = vld [vmem:[%s29159_s5 + $0x50] sm:$0xf0]  ;;  %v14733_v51 = vor.u32 %v18649_v62, %v14732_v38  ;;  %v15045_v16 = vor.u32 %v18727_v1, %v15044_v60  ;;  %v18564_v18 = vld [vmem:[%s29159_s5 + $0xd84] sm:$0xf] }
 0x2bd   :  { %6046 = vmatpush.bf16.msra.mxu2 %v13277_v23  ;;  %v15149_v23 = vor.u32 %v18753_v27, %v15148_v11  ;;  %v12705_v36 = vor.u32 %v18142_v33, %v12704_v31  ;;  %v14417_v27 = vor.u32 %v18564_v18, %v14414_v20  ;;  %v18149_v31 = vld [vmem:[%s29159_s5 + $0x8c] sm:$0xf]  ;;  %v12758_v33 = vld [vmem:[%s29159_s5 + $0xbc] sm:$0xf0]  ;;  %v18428_v60 = vld [vmem:[%s29159_s5 + $0x940] sm:$0xf0] }
 0x2be   :  { %v18675_v20 = vld [vmem:[%s29159_s5 + $0x10f8] sm:$0xf0] }
 0x2bf   :  { %5945 = vmatpush.bf16.msrb.mxu3 %v12701_v39  ;;  %6075 = vmatpush.bf16.msrb.mxu1 %v13953_v41  ;;  %v14573_v39 = vor.u32 %v18603_v55, %v14570_v35  ;;  %v14680_v41 = vld [vmem:[%s29159_s5 + $0xf90] sm:$0xf]  ;;  %v14992_v55 = vld [vmem:[%s29159_s5 + $0x1200] sm:$0xf] }
 0x2c0   :  { %6033 = vmatpush.bf16.msra.mxu0 %v12861_v50  ;;  %v12917_v50 = vor.u32 %v18188_v40, %v12914_v63  ;;  %v14681_v21 = vor.u32 %v18636_v25, %v14680_v41  ;;  %v12706_v41 = vld [vmem:[%s29159_s5 + $0x54] sm:$0xf0] }
 0x2c1   :  { %6047 = vmatpush.bf16.msra.mxu2 %v13225_v48  ;;  %v12862_v48 = vld [vmem:[%s29159_s5 + $0x18c] sm:$0xf0]  ;;  %v5700_v4 = vpop.f32.mrf.mxu3 }
 0x2c2   :  { %5946 = vmatmul.bf16.vlgmr.msrb.gmra.mxu3 %v20729_v52  ;;  %6076 = vmatmul.bf16.vlgmr.msrb.gmra.mxu1 %v20888_v30  ;;  %v5701_v3 = vadd.f32 %v5700_v4, %v22875_v0  ;;  %v12810_v0 = vld [vmem:[%s29159_s5 + $0x124] sm:$0xf0]  ;;  %v13848_v4 = vld [vmem:[%s29159_s5 + $0x910] sm:$0xf] }
 0x2c3   :  { %5990 = vmatpush.bf16.msra.mxu3 %v14729_v44  ;;  %6120 = vmatpush.bf16.msra.mxu1 %v13073_v53  ;;  %v18590_v44 = vld [vmem:[%s29159_s5 + $0xe54] sm:$0xf]  ;;  %v5819_v9 = vpop.f32.mrf.mxu1 }
 0x2c4   :  { %6034 = vmatpush.bf16.msra.mxu0 %v12809_v29  ;;  %v14521_v53 = vor.u32 %v18590_v44, %v14518_v45  ;;  %v12865_v29 = vor.u32 %v18175_v2, %v12862_v48  ;;  %v13900_v44 = vld [vmem:[%s29159_s5 + $0x978] sm:$0xf]  ;;  %v18441_v45 = vld [vmem:[%s29159_s5 + $0x9a8] sm:$0xf0]  ;;  %v18643_v2 = vld [vmem:[%s29159_s5 + $0xffc] sm:$0xf] }
 0x2c5   :  { %6048 = vmatpush.bf16.msra.mxu2 %v13173_v8  ;;  %v18162_v8 = vld [vmem:[%s29159_s5 + $0xf4] sm:$0xf]  ;;  %v13901_v25 = vor.u32 %v18441_v45, %v13900_v44  ;;  %v14734_v48 = vld [vmem:[%s29159_s5 + $0x102c] sm:$0xf0]  ;;  %v13796_v9 = vld [vmem:[%s29159_s5 + $0x8a8] sm:$0xf] }
 0x2c6   :  { %v12813_v57 = vor.u32 %v18162_v8, %v12810_v0  ;;  %v18630_v8 = vld [vmem:[%s29159_s5 + $0xf94] sm:$0xf]  ;;  %v14682_v0 = vld [vmem:[%s29159_s5 + $0xfc4] sm:$0xf0]  ;;  %v14318_v44 = vld [vmem:[%s29159_s5 + $0xcec] sm:$0xf0] }
 0x2c7   :  { %5991 = vmatpush.bf16.msra.mxu3 %v14677_v54  ;;  %6121 = vmatpush.bf16.msra.mxu1 %v13021_v5  ;;  %v15097_v54 = vor.u32 %v18740_v42, %v15096_v46  ;;  %v14628_v5 = vld [vmem:[%s29159_s5 + $0xf28] sm:$0xf]  ;;  %v12761_v46 = vor.u32 %v18149_v31, %v12758_v33  ;;  %v18617_v31 = vld [vmem:[%s29159_s5 + $0xf2c] sm:$0xf]  ;;  %v14630_v33 = vld [vmem:[%s29159_s5 + $0xf5c] sm:$0xf0] }
 0x2c8   :  { %6035 = vmatpush.bf16.msra.mxu0 %v12757_v24  ;;  %v14629_v35 = vor.u32 %v18623_v61, %v14628_v5  ;;  %v14576_v24 = vld [vmem:[%s29159_s5 + $0xec0] sm:$0xf]  ;;  %v18584_v5 = vld [vmem:[%s29159_s5 + $0xe20] sm:$0xf0]  ;;  %v13849_v61 = vor.u32 %v18428_v60, %v13848_v4  ;;  %v14633_v45 = vor.u32 %v18617_v31, %v14630_v33  ;;  %v18526_v60 = vld [vmem:[%s29159_s5 + $0xc54] sm:$0xf] }
 0x2c9   :  { %6049 = vmatpush.bf16.msra.mxu2 %v13121_v10  ;;  %v14362_v10 = vld [vmem:[%s29159_s5 + $0xd4c] sm:$0xf0]  ;;  %v5702_v63 = vpop.f32.mrf.mxu3  ;;  %v18578_v31 = vld [vmem:[%s29159_s5 + $0xdf4] sm:$0xf]  ;;  %v14474_v33 = vld [vmem:[%s29159_s5 + $0xe24] sm:$0xf0] }
 0x2ca   :  { %v23249_v40 = vpop.f32.mrf.mxu0 }
 0x2cb   :  { %5992 = vmatpush.bf16.msra.mxu3 %v14625_v13  ;;  %6122 = vmatpush.bf16.msra.mxu1 %v12969_v28  ;;  %v5714_v13 = vadd.f32 %v22743_v43, %v5701_v3  ;;  %v18714_v43 = vld [vmem:[%s29159_s5 + $0x1230] sm:$0xf0]  ;;  %v23281_v56 = vpop.f32.mrf.mxu2 }
 0x2cc   :  { %6036 = vmatpush.bf16.msra.mxu0 %v12705_v36  ;;  %6050 = vmatmul.bf16.vlgmr.msra.gmra.mxu2 %v20807_v34  ;;  %v18610_v28 = vld [vmem:[%s29159_s5 + $0xef0] sm:$0xf0]  ;;  %v14993_v38 = vor.u32 %v18714_v43, %v14992_v55  ;;  %v18415_v55 = vld [vmem:[%s29159_s5 + $0x8d8] sm:$0xf0] }
 0x2cd   :  { %6094 = vmatpush.bf16.msrb.mxu2 %v15149_v23  ;;  %v5727_v11 = vadd.f32 %v23041_v26, %v5714_v13  ;;  %v18551_v26 = vld [vmem:[%s29159_s5 + $0xd1c] sm:$0xf]  ;;  %v18701_v23 = vld [vmem:[%s29159_s5 + $0x11c8] sm:$0xf0]  ;;  %v14577_v36 = vor.u32 %v18610_v28, %v14576_v24  ;;  %v14836_v13 = vld [vmem:[%s29159_s5 + $0x10c8] sm:$0xf]  ;;  %v13797_v28 = vor.u32 %v18415_v55, %v13796_v9 }
 0x2ce   :  { %v14365_v42 = vor.u32 %v18551_v26, %v14362_v10  ;;  %v14420_v24 = vld [vmem:[%s29159_s5 + $0xd88] sm:$0xf]  ;;  %v18662_v10 = vld [vmem:[%s29159_s5 + $0x1090] sm:$0xf0]  ;;  %v18513_v9 = vld [vmem:[%s29159_s5 + $0xbec] sm:$0xf] }
 0x2cf   :  { %5993 = vmatpush.bf16.msra.mxu3 %v14573_v39  ;;  %6123 = vmatpush.bf16.msra.mxu1 %v12917_v50  ;;  %v14940_v39 = vld [vmem:[%s29159_s5 + $0x1198] sm:$0xf]  ;;  %v5740_v62 = vadd.f32 %v23082_v49, %v5727_v11  ;;  %v18136_v50 = vld [vmem:[%s29159_s5 + $0x24] sm:$0xf]  ;;  %v18571_v11 = vld [vmem:[%s29159_s5 + $0xdb8] sm:$0xf0] }
 0x2d0   :  { %6081 = vmatpush.bf16.msrb.mxu0 %v14733_v51  ;;  %v14524_v49 = vld [vmem:[%s29159_s5 + $0xe58] sm:$0xf]  ;;  %v18597_v51 = vld [vmem:[%s29159_s5 + $0xe88] sm:$0xf0]  ;;  %v12709_v3 = vor.u32 %v18136_v50, %v12706_v41  ;;  %v14421_v63 = vor.u32 %v18571_v11, %v14420_v24  ;;  %v13902_v50 = vld [vmem:[%s29159_s5 + $0x9ac] sm:$0xf0] }
 0x2d1   :  { %6037 = vmatmul.bf16.vlgmr.msra.gmra.mxu0 %v20729_v52  ;;  %6095 = vmatpush.bf16.msrb.mxu2 %v15097_v54  ;;  %v14888_v54 = vld [vmem:[%s29159_s5 + $0x1130] sm:$0xf]  ;;  %v14525_v1 = vor.u32 %v18597_v51, %v14524_v49  ;;  %v5752_v18 = vpop.f32.mrf.mxu3  ;;  %v18435_v49 = vld [vmem:[%s29159_s5 + $0x97c] sm:$0xf]  ;;  %v18604_v41 = vld [vmem:[%s29159_s5 + $0xec4] sm:$0xf] }
 0x2d2   :  { %v23316_v43 = vadd.f32 %v5752_v18, %v5740_v62  ;;  %v18402_v62 = vld [vmem:[%s29159_s5 + $0x870] sm:$0xf0]  ;;  %v13640_v18 = vld [vmem:[%s29159_s5 + $0x770] sm:$0xf]  ;;  %v14214_v55 = vld [vmem:[%s29159_s5 + $0xc1c] sm:$0xf0] }
 0x2d3   :  { %5994 = vmatpush.bf16.msra.mxu3 %v14521_v53  ;;  %6124 = vmatpush.bf16.msra.mxu1 %v12865_v29  ;;  %v14941_v53 = vor.u32 %v18701_v23, %v14940_v39  ;;  %v14472_v29 = vld [vmem:[%s29159_s5 + $0xdf0] sm:$0xf]  ;;  %v5806_v26 = vpop.f32.mrf.mxu2  ;;  %v13744_v39 = vld [vmem:[%s29159_s5 + $0x840] sm:$0xf]  ;;  %v18539_v23 = vld [vmem:[%s29159_s5 + $0xcbc] sm:$0xf] }
 0x2d4   :  { %6082 = vmatpush.bf16.msrb.mxu0 %v14681_v21  ;;  %v14737_v21 = vor.u32 %v18643_v2, %v14734_v48  ;;  %v13745_v51 = vor.u32 %v18402_v62, %v13744_v39  ;;  %v14321_v48 = vor.u32 %v18539_v23, %v14318_v44  ;;  %v18409_v24 = vld [vmem:[%s29159_s5 + $0x8ac] sm:$0xf]  ;;  %v14217_v26 = vor.u32 %v18513_v9, %v14214_v55  ;;  %v18363_v39 = vld [vmem:[%s29159_s5 + $0x738] sm:$0xf0]  ;;  %v14162_v23 = vld [vmem:[%s29159_s5 + $0xbb4] sm:$0xf0] }
 0x2d5   :  { %6096 = vmatpush.bf16.msrb.mxu2 %v15045_v16  ;;  %v5793_v16 = vpop.f32.mrf.mxu0  ;;  %v18331_v55 = vld [vmem:[%s29159_s5 + $0x63c] sm:$0xf] }
 0x2d7   :  { %5995 = vmatpush.bf16.msra.mxu3 %v14469_v6  ;;  %6125 = vmatpush.bf16.msra.mxu1 %v12813_v57  ;;  %v14889_v6 = vor.u32 %v18688_v58, %v14888_v54  ;;  %v14685_v57 = vor.u32 %v18630_v8, %v14682_v0  ;;  %v13692_v54 = vld [vmem:[%s29159_s5 + $0x7d8] sm:$0xf]  ;;  %v18389_v58 = vld [vmem:[%s29159_s5 + $0x808] sm:$0xf0]  ;;  %v13850_v8 = vld [vmem:[%s29159_s5 + $0x944] sm:$0xf0] }
 0x2d8   :  { %6083 = vmatpush.bf16.msrb.mxu0 %v14629_v35  ;;  %v14473_v35 = vor.u32 %v18584_v5, %v14472_v29  ;;  %v13905_v29 = vor.u32 %v18435_v49, %v13902_v50  ;;  %v18591_v0 = vld [vmem:[%s29159_s5 + $0xe5c] sm:$0xf]  ;;  %v18565_v50 = vld [vmem:[%s29159_s5 + $0xd8c] sm:$0xf] }
 0x2d9   :  { %6097 = vmatpush.bf16.msrb.mxu2 %v14993_v38  ;;  %v14784_v38 = vld [vmem:[%s29159_s5 + $0x1060] sm:$0xf]  ;;  %v5754_v2 = vpop.f32.mrf.mxu3 }
 0x2da   :  { %v18350_v2 = vld [vmem:[%s29159_s5 + $0x6d0] sm:$0xf0] }
 0x2db   :  { %5996 = vmatpush.bf16.msra.mxu3 %v14417_v27  ;;  %6126 = vmatpush.bf16.msra.mxu1 %v12761_v46  ;;  %v14837_v27 = vor.u32 %v18675_v20, %v14836_v13  ;;  %v18558_v46 = vld [vmem:[%s29159_s5 + $0xd50] sm:$0xf0]  ;;  %v14526_v13 = vld [vmem:[%s29159_s5 + $0xe8c] sm:$0xf0]  ;;  %v18376_v20 = vld [vmem:[%s29159_s5 + $0x7a0] sm:$0xf0] }
 0x2dc   :  { %6084 = vmatpush.bf16.msrb.mxu0 %v14577_v36  ;;  %v14368_v36 = vld [vmem:[%s29159_s5 + $0xd20] sm:$0xf] }
 0x2dd   :  { %6098 = vmatpush.bf16.msrb.mxu2 %v14941_v53  ;;  %v14578_v53 = vld [vmem:[%s29159_s5 + $0xef4] sm:$0xf0]  ;;  %v14369_v4 = vor.u32 %v18558_v46, %v14368_v36  ;;  %v14477_v36 = vor.u32 %v18578_v31, %v14474_v33  ;;  %v18396_v46 = vld [vmem:[%s29159_s5 + $0x844] sm:$0xf] }
 0x2de   :  { %v14581_v5 = vor.u32 %v18604_v41, %v14578_v53  ;;  %v14422_v41 = vld [vmem:[%s29159_s5 + $0xdbc] sm:$0xf0] }
 0x2df   :  { %5997 = vmatpush.bf16.msra.mxu3 %v14365_v42  ;;  %6127 = vmatpush.bf16.msra.mxu1 %v12709_v3  ;;  %v14785_v42 = vor.u32 %v18662_v10, %v14784_v38  ;;  %v2042_v3 = vperm.slane %v22750_v14, 5  ;;  %v13588_v10 = vld [vmem:[%s29159_s5 + $0x708] sm:$0xf] }
 0x2e0   :  { %6085 = vmatpush.bf16.msrb.mxu0 %v14525_v1  ;;  %v14266_v1 = vld [vmem:[%s29159_s5 + $0xc84] sm:$0xf0] }
 0x2e1   :  { %6099 = vmatpush.bf16.msrb.mxu2 %v14889_v6  ;;  %v18422_v6 = vld [vmem:[%s29159_s5 + $0x914] sm:$0xf]  ;;  %v14269_v16 = vor.u32 %v18526_v60, %v14266_v1  ;;  %v5766_v11 = vadd.f32 %v22957_v15, %v2042_v3  ;;  %v14425_v3 = vor.u32 %v18565_v50, %v14422_v41 }
 0x2e2   :  { %5998 = vmatmul.bf16.vlgmr.msra.gmra.mxu3 %v21033_v59  ;;  %6128 = vmatmul.bf16.vlgmr.msra.gmra.mxu1 %v20729_v52 }
 0x2e3   :  { %6055 = vmatpush.bf16.msrb.mxu3 %v13901_v25  ;;  %6172 = vmatpush.bf16.msrb.mxu1 %v14737_v21  ;;  %v23368_v25 = vpop.f32.mrf.mxu0  ;;  %v23383_v21 = vpop.f32.mrf.mxu1 }
 0x2e4   :  { %6086 = vmatpush.bf16.msrb.mxu0 %v14473_v35  ;;  %v13853_v35 = vor.u32 %v18422_v6, %v13850_v8  ;;  %v14370_v8 = vld [vmem:[%s29159_s5 + $0xd54] sm:$0xf0] }
 0x2e5   :  { %6100 = vmatpush.bf16.msrb.mxu2 %v14837_v27  ;;  %v13641_v27 = vor.u32 %v18376_v20, %v13640_v18  ;;  %v5778_v15 = vpop.f32.mrf.mxu3  ;;  %v13908_v18 = vld [vmem:[%s29159_s5 + $0x980] sm:$0xf]  ;;  %v18442_v20 = vld [vmem:[%s29159_s5 + $0x9b0] sm:$0xf0] }
 0x2e6   :  { %v5779_v62 = vadd.f32 %v5778_v15, %v5766_v11  ;;  %v13909_v33 = vor.u32 %v18442_v20, %v13908_v18  ;;  %v13642_v15 = vld [vmem:[%s29159_s5 + $0x7a4] sm:$0xf0]  ;;  %v18292_v18 = vld [vmem:[%s29159_s5 + $0x504] sm:$0xf] }
 0x2e7   :  { %6056 = vmatpush.bf16.msrb.mxu3 %v13849_v61  ;;  %6173 = vmatpush.bf16.msrb.mxu1 %v14685_v57  ;;  %v13693_v61 = vor.u32 %v18389_v58, %v13692_v54  ;;  %v14529_v57 = vor.u32 %v18591_v0, %v14526_v13  ;;  %v14110_v54 = vld [vmem:[%s29159_s5 + $0xb4c] sm:$0xf0]  ;;  %v15200_v58 = vld [vmem:[%s29159_s5 + $0x13a0] sm:$0xf] }
 0x2e8   :  { %6087 = vmatpush.bf16.msrb.mxu0 %v14421_v63  ;;  %v18500_v63 = vld [vmem:[%s29159_s5 + $0xb84] sm:$0xf]  ;;  %v5792_v49 = vadd.f32 %v23249_v40, %v5779_v62  ;;  %v13536_v40 = vld [vmem:[%s29159_s5 + $0x6a0] sm:$0xf]  ;;  %v18429_v62 = vld [vmem:[%s29159_s5 + $0x948] sm:$0xf0] }
 0x2e9   :  { %6101 = vmatpush.bf16.msrb.mxu2 %v14785_v42  ;;  %v13589_v42 = vor.u32 %v18363_v39, %v13588_v10  ;;  %v14165_v53 = vor.u32 %v18500_v63, %v14162_v23  ;;  %v13537_v6 = vor.u32 %v18350_v2, %v13536_v40  ;;  %v13856_v39 = vld [vmem:[%s29159_s5 + $0x918] sm:$0xf]  ;;  %v18318_v63 = vld [vmem:[%s29159_s5 + $0x5d4] sm:$0xf]  ;;  %v13804_v2 = vld [vmem:[%s29159_s5 + $0x8b0] sm:$0xf] }
 0x2ea   :  { %v5805_v60 = vadd.f32 %v23281_v56, %v5792_v49  ;;  %v18552_v56 = vld [vmem:[%s29159_s5 + $0xd24] sm:$0xf]  ;;  %v13857_v49 = vor.u32 %v18429_v62, %v13856_v39  ;;  %v18279_v39 = vld [vmem:[%s29159_s5 + $0x49c] sm:$0xf]  ;;  %v13278_v62 = vld [vmem:[%s29159_s5 + $0x4cc] sm:$0xf0] }
 0x2eb   :  { %6057 = vmatpush.bf16.msrb.mxu3 %v13797_v28  ;;  %6174 = vmatpush.bf16.msrb.mxu1 %v14633_v45  ;;  %v13798_v28 = vld [vmem:[%s29159_s5 + $0x8dc] sm:$0xf0]  ;;  %v5845_v38 = vpop.f32.mrf.mxu0  ;;  %v5884_v44 = vpop.f32.mrf.mxu1 }
 0x2ec   :  { %6088 = vmatpush.bf16.msrb.mxu0 %v14369_v4  ;;  %6102 = vmatmul.bf16.vlgmr.msrb.gmra.mxu2 %v21066_v17  ;;  %v13801_v45 = vor.u32 %v18409_v24, %v13798_v28  ;;  %v18766_v4 = vld [vmem:[%s29159_s5 + $0x13d0] sm:$0xf0]  ;;  %v5856_v11 = vpop.f32.mrf.mxu2  ;;  %v14373_v28 = vor.u32 %v18552_v56, %v14370_v8  ;;  %v13434_v44 = vld [vmem:[%s29159_s5 + $0x604] sm:$0xf0]  ;;  %v13538_v56 = vld [vmem:[%s29159_s5 + $0x6d4] sm:$0xf0] }
 0x2ed   :  { %6159 = vmatpush.bf16.msra.mxu2 %v14321_v48  ;;  %v18487_v48 = vld [vmem:[%s29159_s5 + $0xb1c] sm:$0xf]  ;;  %v5780_v13 = vpop.f32.mrf.mxu3  ;;  %v15201_v9 = vor.u32 %v18766_v4, %v15200_v58  ;;  %v18370_v38 = vld [vmem:[%s29159_s5 + $0x774] sm:$0xf]  ;;  %v18448_v58 = vld [vmem:[%s29159_s5 + $0x9e4] sm:$0xf] }
 0x2ee   :  { %v13954_v4 = vld [vmem:[%s29159_s5 + $0xa14] sm:$0xf0]  ;;  %v13752_v13 = vld [vmem:[%s29159_s5 + $0x848] sm:$0xf] }
 0x2ef   :  { %6058 = vmatpush.bf16.msrb.mxu3 %v13745_v51  ;;  %6175 = vmatpush.bf16.msrb.mxu1 %v14581_v5  ;;  %v13746_v51 = vld [vmem:[%s29159_s5 + $0x874] sm:$0xf0]  ;;  %v18383_v5 = vld [vmem:[%s29159_s5 + $0x7dc] sm:$0xf] }
 0x2f0   :  { %6146 = vmatpush.bf16.msra.mxu0 %v13905_v29  ;;  %v13749_v1 = vor.u32 %v18396_v46, %v13746_v51  ;;  %v2043_v29 = vperm.slane %v22750_v14, 6  ;;  %v23482_v14 = vadd.f32 %v23166_v37, %v5805_v60  ;;  %v13486_v37 = vld [vmem:[%s29159_s5 + $0x66c] sm:$0xf0]  ;;  %v13645_v46 = vor.u32 %v18370_v38, %v13642_v15  ;;  %v13590_v51 = vld [vmem:[%s29159_s5 + $0x73c] sm:$0xf0] }
 0x2f1   :  { %6089 = vmatmul.bf16.vlgmr.msrb.gmra.mxu0 %v21033_v59  ;;  %6160 = vmatpush.bf16.msra.mxu2 %v14269_v16  ;;  %v14113_v16 = vor.u32 %v18487_v48, %v14110_v54  ;;  %v18416_v48 = vld [vmem:[%s29159_s5 + $0x8e0] sm:$0xf0]  ;;  %v18305_v54 = vld [vmem:[%s29159_s5 + $0x56c] sm:$0xf]  ;;  %v13700_v15 = vld [vmem:[%s29159_s5 + $0x7e0] sm:$0xf] }
 0x2f2   :  { %v5857_v31 = vadd.f32 %v5856_v11, %v2043_v29  ;;  %v13076_v29 = vld [vmem:[%s29159_s5 + $0x300] sm:$0xf]  ;;  %v18221_v11 = vld [vmem:[%s29159_s5 + $0x2c8] sm:$0xf0] }
 0x2f3   :  { %6059 = vmatpush.bf16.msrb.mxu3 %v13693_v61  ;;  %6176 = vmatpush.bf16.msrb.mxu1 %v14529_v57  ;;  %v13694_v61 = vld [vmem:[%s29159_s5 + $0x80c] sm:$0xf0]  ;;  %v5869_v0 = vpop.f32.mrf.mxu0  ;;  %v14058_v57 = vld [vmem:[%s29159_s5 + $0xae4] sm:$0xf0]  ;;  %v23502_v24 = vpop.f32.mrf.mxu1 }
 0x2f4   :  { %6147 = vmatpush.bf16.msra.mxu0 %v13853_v35  ;;  %v18474_v35 = vld [vmem:[%s29159_s5 + $0xab4] sm:$0xf]  ;;  %v5870_v23 = vadd.f32 %v5869_v0, %v5857_v31  ;;  %v13957_v0 = vor.u32 %v18448_v58, %v13954_v4  ;;  %v18195_v58 = vld [vmem:[%s29159_s5 + $0x1f8] sm:$0xf0] }
 0x2f5   :  { %6161 = vmatpush.bf16.msra.mxu2 %v14217_v26  ;;  %v13489_v26 = vor.u32 %v18331_v55, %v13486_v37  ;;  %v14061_v10 = vor.u32 %v18474_v35, %v14058_v57  ;;  %v18760_v55 = vld [vmem:[%s29159_s5 + $0x13a4] sm:$0xf]  ;;  %v15202_v37 = vld [vmem:[%s29159_s5 + $0x13d4] sm:$0xf0]  ;;  %v18338_v31 = vld [vmem:[%s29159_s5 + $0x670] sm:$0xf0] }
 0x2f6   :  { %v23536_v50 = vadd.f32 %v23383_v21, %v5870_v23  ;;  %v13382_v21 = vld [vmem:[%s29159_s5 + $0x59c] sm:$0xf0]  ;;  %v13024_v57 = vld [vmem:[%s29159_s5 + $0x298] sm:$0xf]  ;;  %v15205_v38 = vor.u32 %v18760_v55, %v15202_v37  ;;  %v13544_v37 = vld [vmem:[%s29159_s5 + $0x6a8] sm:$0xf] }
 0x2f7   :  { %6060 = vmatpush.bf16.msrb.mxu3 %v13641_v27  ;;  %6177 = vmatpush.bf16.msrb.mxu1 %v14477_v36  ;;  %v13697_v27 = vor.u32 %v18383_v5, %v13694_v61  ;;  %v14006_v36 = vld [vmem:[%s29159_s5 + $0xa7c] sm:$0xf0]  ;;  %v18234_v5 = vld [vmem:[%s29159_s5 + $0x330] sm:$0xf0]  ;;  %v18344_v61 = vld [vmem:[%s29159_s5 + $0x6a4] sm:$0xf]  ;;  %v13385_v8 = vor.u32 %v18305_v54, %v13382_v21 }
 0x2f8   :  { %6148 = vmatpush.bf16.msra.mxu0 %v13801_v45  ;;  %v18461_v45 = vld [vmem:[%s29159_s5 + $0xa4c] sm:$0xf]  ;;  %v13077_v20 = vor.u32 %v18234_v5, %v13076_v29  ;;  %v13541_v35 = vor.u32 %v18344_v61, %v13538_v56  ;;  %v12920_v21 = vld [vmem:[%s29159_s5 + $0x1c8] sm:$0xf]  ;;  %v13596_v5 = vld [vmem:[%s29159_s5 + $0x710] sm:$0xf] }
 0x2f9   :  { %6162 = vmatpush.bf16.msra.mxu2 %v14165_v53  ;;  %v13437_v53 = vor.u32 %v18318_v63, %v13434_v44  ;;  %v14009_v40 = vor.u32 %v18461_v45, %v14006_v36  ;;  %v12972_v44 = vld [vmem:[%s29159_s5 + $0x230] sm:$0xf]  ;;  %v18208_v45 = vld [vmem:[%s29159_s5 + $0x260] sm:$0xf0]  ;;  %v12921_v61 = vor.u32 %v18195_v58, %v12920_v21  ;;  %v18253_v56 = vld [vmem:[%s29159_s5 + $0x3cc] sm:$0xf] }
 0x2fa   :  { %v18156_v21 = vld [vmem:[%s29159_s5 + $0xc0] sm:$0xf0]  ;;  %v13232_v58 = vld [vmem:[%s29159_s5 + $0x438] sm:$0xf] }
 0x2fb   :  { %6061 = vmatpush.bf16.msrb.mxu3 %v13589_v42  ;;  %6178 = vmatpush.bf16.msrb.mxu1 %v14425_v3  ;;  %v18357_v42 = vld [vmem:[%s29159_s5 + $0x70c] sm:$0xf]  ;;  %v5871_v41 = vpop.f32.mrf.mxu0  ;;  %v5936_v60 = vpop.f32.mrf.mxu1 }
 0x2fc   :  { %6149 = vmatpush.bf16.msra.mxu0 %v13749_v1  ;;  %v5858_v1 = vpop.f32.mrf.mxu2  ;;  %v13593_v3 = vor.u32 %v18357_v42, %v13590_v51  ;;  %v13281_v42 = vor.u32 %v18279_v39, %v13278_v62  ;;  %v13648_v51 = vld [vmem:[%s29159_s5 + $0x778] sm:$0xf]  ;;  %v18377_v41 = vld [vmem:[%s29159_s5 + $0x7a8] sm:$0xf0] }
 0x2fd   :  { %6163 = vmatpush.bf16.msra.mxu2 %v14113_v16  ;;  %v18403_v16 = vld [vmem:[%s29159_s5 + $0x878] sm:$0xf0]  ;;  %v13649_v60 = vor.u32 %v18377_v41, %v13648_v51  ;;  %v13388_v1 = vld [vmem:[%s29159_s5 + $0x570] sm:$0xf]  ;;  %v12816_v39 = vld [vmem:[%s29159_s5 + $0xf8] sm:$0xf] }
 0x2fe   :  { %v18332_v51 = vld [vmem:[%s29159_s5 + $0x644] sm:$0xf]  ;;  %v13494_v41 = vld [vmem:[%s29159_s5 + $0x674] sm:$0xf0] }
 0x2ff   :  { %6062 = vmatpush.bf16.msrb.mxu3 %v13537_v6  ;;  %6179 = vmatpush.bf16.msrb.mxu1 %v14373_v28  ;;  %v13805_v6 = vor.u32 %v18416_v48, %v13804_v2  ;;  %v13492_v28 = vld [vmem:[%s29159_s5 + $0x640] sm:$0xf]  ;;  %v13226_v2 = vld [vmem:[%s29159_s5 + $0x464] sm:$0xf0] }
 0x300   :  { %6150 = vmatpush.bf16.msra.mxu0 %v13697_v27  ;;  %v13753_v27 = vor.u32 %v18403_v16, %v13752_v13  ;;  %v13493_v23 = vor.u32 %v18338_v31, %v13492_v28  ;;  %v12868_v16 = vld [vmem:[%s29159_s5 + $0x160] sm:$0xf]  ;;  %v15208_v28 = vld [vmem:[%s29159_s5 + $0x13a8] sm:$0xf]  ;;  %v18767_v31 = vld [vmem:[%s29159_s5 + $0x13d8] sm:$0xf0] }
 0x301   :  { %6164 = vmatpush.bf16.msra.mxu2 %v14061_v10  ;;  %v13025_v10 = vor.u32 %v18221_v11, %v13024_v57  ;;  %v18240_v57 = vld [vmem:[%s29159_s5 + $0x364] sm:$0xf] }
 0x302   :  { %6063 = vmatmul.bf16.vlgmr.msrb.gmra.mxu3 %v20877_v22  ;;  %6180 = vmatmul.bf16.vlgmr.msrb.gmra.mxu1 %v21033_v59 }
 0x303   :  { %6114 = vmatpush.bf16.msra.mxu3 %v15201_v9  ;;  %6237 = vmatpush.bf16.msra.mxu1 %v13909_v33  ;;  %v13330_v9 = vld [vmem:[%s29159_s5 + $0x534] sm:$0xf0]  ;;  %v23611_v63 = vpop.f32.mrf.mxu1 }
 0x304   :  { %6151 = vmatpush.bf16.msra.mxu0 %v13645_v46  ;;  %v13333_v33 = vor.u32 %v18292_v18, %v13330_v9  ;;  %v13440_v46 = vld [vmem:[%s29159_s5 + $0x5d8] sm:$0xf]  ;;  %v18299_v9 = vld [vmem:[%s29159_s5 + $0x538] sm:$0xf0] }
 0x305   :  { %6165 = vmatpush.bf16.msra.mxu2 %v14009_v40  ;;  %v18266_v40 = vld [vmem:[%s29159_s5 + $0x434] sm:$0xf]  ;;  %v5830_v48 = vpop.f32.mrf.mxu3 }
 0x306   :  { %v5831_v4 = vadd.f32 %v5830_v48, %v23482_v14  ;;  %v13229_v29 = vor.u32 %v18266_v40, %v13226_v2  ;;  %v18364_v14 = vld [vmem:[%s29159_s5 + $0x740] sm:$0xf0]  ;;  %v18734_v2 = vld [vmem:[%s29159_s5 + $0x12d4] sm:$0xf]  ;;  %v15098_v48 = vld [vmem:[%s29159_s5 + $0x1304] sm:$0xf0] }
 0x307   :  { %6133 = vmatpush.bf16.msrb.mxu3 %v13489_v26  ;;  %6238 = vmatpush.bf16.msra.mxu1 %v13857_v49  ;;  %v18390_v26 = vld [vmem:[%s29159_s5 + $0x810] sm:$0xf0]  ;;  %v18325_v49 = vld [vmem:[%s29159_s5 + $0x608] sm:$0xf0]  ;;  %v13597_v18 = vor.u32 %v18364_v14, %v13596_v5 }
 0x308   :  { %6152 = vmatpush.bf16.msra.mxu0 %v13593_v3  ;;  %v13701_v36 = vor.u32 %v18390_v26, %v13700_v15  ;;  %v13441_v54 = vor.u32 %v18325_v49, %v13440_v46  ;;  %v18312_v3 = vld [vmem:[%s29159_s5 + $0x5a0] sm:$0xf0]  ;;  %v18747_v26 = vld [vmem:[%s29159_s5 + $0x133c] sm:$0xf]  ;;  %v15209_v49 = vor.u32 %v18767_v31, %v15208_v28  ;;  %v14994_v31 = vld [vmem:[%s29159_s5 + $0x1234] sm:$0xf0] }
 0x309   :  { %6166 = vmatpush.bf16.msra.mxu2 %v13957_v0  ;;  %v13389_v13 = vor.u32 %v18312_v3, %v13388_v1  ;;  %v15101_v1 = vor.u32 %v18734_v2, %v15098_v48  ;;  %v18319_v3 = vld [vmem:[%s29159_s5 + $0x5dc] sm:$0xf]  ;;  %v18708_v28 = vld [vmem:[%s29159_s5 + $0x1204] sm:$0xf] }
 0x30b   :  { %6134 = vmatpush.bf16.msrb.mxu3 %v13437_v53  ;;  %6239 = vmatpush.bf16.msra.mxu1 %v13805_v6  ;;  %v12973_v53 = vor.u32 %v18208_v45, %v12972_v44  ;;  %v23661_v6 = vadd.f32 %v23368_v25, %v5831_v4  ;;  %v5962_v0 = vpop.f32.mrf.mxu1  ;;  %v18182_v25 = vld [vmem:[%s29159_s5 + $0x190] sm:$0xf0]  ;;  %v23710_v62 = vpop.f32.mrf.mxu2  ;;  %v18169_v44 = vld [vmem:[%s29159_s5 + $0x128] sm:$0xf0]  ;;  %v13284_v45 = vld [vmem:[%s29159_s5 + $0x4a0] sm:$0xf] }
 0x30c   :  { %6153 = vmatpush.bf16.msra.mxu0 %v13541_v35  ;;  %6167 = vmatmul.bf16.vlgmr.msra.gmra.mxu2 %v20888_v30  ;;  %v18351_v35 = vld [vmem:[%s29159_s5 + $0x6d8] sm:$0xf0]  ;;  %v12869_v11 = vor.u32 %v18182_v25, %v12868_v16  ;;  %v18273_v4 = vld [vmem:[%s29159_s5 + $0x468] sm:$0xf0]  ;;  %v12712_v0 = vld [vmem:[%s29159_s5 + $0x28] sm:$0xf] }
 0x30d   :  { %6211 = vmatpush.bf16.msrb.mxu2 %v13077_v20  ;;  %v13336_v20 = vld [vmem:[%s29159_s5 + $0x508] sm:$0xf]  ;;  %v18143_v16 = vld [vmem:[%s29159_s5 + $0x58] sm:$0xf0]  ;;  %v13180_v25 = vld [vmem:[%s29159_s5 + $0x3d0] sm:$0xf] }
 0x30e   :  { %v13337_v15 = vor.u32 %v18299_v9, %v13336_v20  ;;  %v14740_v9 = vld [vmem:[%s29159_s5 + $0x1000] sm:$0xf] }
 0x30f   :  { %6135 = vmatpush.bf16.msrb.mxu3 %v13385_v8  ;;  %6240 = vmatpush.bf16.msra.mxu1 %v13753_v27  ;;  %v13174_v8 = vld [vmem:[%s29159_s5 + $0x3fc] sm:$0xf0]  ;;  %v13122_v27 = vld [vmem:[%s29159_s5 + $0x394] sm:$0xf0] }
 0x310   :  { %6205 = vmatpush.bf16.msrb.mxu0 %v15205_v38  ;;  %v13177_v55 = vor.u32 %v18253_v56, %v13174_v8  ;;  %v5832_v38 = vpop.f32.mrf.mxu3  ;;  %v13125_v46 = vor.u32 %v18240_v57, %v13122_v27  ;;  %v18721_v56 = vld [vmem:[%s29159_s5 + $0x126c] sm:$0xf]  ;;  %v15046_v8 = vld [vmem:[%s29159_s5 + $0x129c] sm:$0xf0]  ;;  %v13390_v57 = vld [vmem:[%s29159_s5 + $0x5a4] sm:$0xf0] }
 0x311   :  { %6154 = vmatmul.bf16.vlgmr.msra.gmra.mxu0 %v20877_v22  ;;  %6212 = vmatpush.bf16.msrb.mxu2 %v13025_v10  ;;  %v15150_v10 = vld [vmem:[%s29159_s5 + $0x136c] sm:$0xf0] }
 0x312   :  { %15226 = vmatmul.msk.bf16.vlgmr.msra.gmra.mxu3 %vm5297_vm1, %v21175_v19 }
 0x313   :  { %6136 = vmatpush.bf16.msrb.mxu3 %v13333_v33  ;;  %6241 = vmatpush.bf16.msra.mxu1 %v13701_v36  ;;  %v23699_v33 = vpop.f32.mrf.mxu0  ;;  %v18286_v36 = vld [vmem:[%s29159_s5 + $0x4d0] sm:$0xf0] }
 0x314   :  { %6224 = vmatpush.bf16.msra.mxu0 %v13493_v23  ;;  %v13545_v23 = vor.u32 %v18351_v35, %v13544_v37  ;;  %v13285_v40 = vor.u32 %v18286_v36, %v13284_v45  ;;  %v15049_v37 = vor.u32 %v18721_v56, %v15046_v8  ;;  %v18306_v35 = vld [vmem:[%s29159_s5 + $0x574] sm:$0xf]  ;;  %v14997_v36 = vor.u32 %v18708_v28, %v14994_v31  ;;  %v14532_v31 = vld [vmem:[%s29159_s5 + $0xe60] sm:$0xf] }
 0x315   :  { %6213 = vmatpush.bf16.msrb.mxu2 %v12973_v53  ;;  %v12817_v53 = vor.u32 %v18169_v44, %v12816_v39  ;;  %v13393_v39 = vor.u32 %v18306_v35, %v13390_v57  ;;  %v15156_v44 = vld [vmem:[%s29159_s5 + $0x1340] sm:$0xf]  ;;  %v18754_v45 = vld [vmem:[%s29159_s5 + $0x1370] sm:$0xf0] }
 0x316   :  { %v15157_v2 = vor.u32 %v18754_v45, %v15156_v44  ;;  %v14838_v35 = vld [vmem:[%s29159_s5 + $0x10fc] sm:$0xf0]  ;;  %v18656_v44 = vld [vmem:[%s29159_s5 + $0x1064] sm:$0xf]  ;;  %v14786_v45 = vld [vmem:[%s29159_s5 + $0x1094] sm:$0xf0] }
 0x317   :  { %6137 = vmatpush.bf16.msrb.mxu3 %v13281_v42  ;;  %6242 = vmatpush.bf16.msra.mxu1 %v13649_v60  ;;  %v15153_v42 = vor.u32 %v18747_v26, %v15150_v10  ;;  %v13497_v60 = vor.u32 %v18332_v51, %v13494_v41  ;;  %v18247_v26 = vld [vmem:[%s29159_s5 + $0x398] sm:$0xf0]  ;;  %v14688_v10 = vld [vmem:[%s29159_s5 + $0xf98] sm:$0xf]  ;;  %v14942_v41 = vld [vmem:[%s29159_s5 + $0x11cc] sm:$0xf0] }
 0x318   :  { %6225 = vmatpush.bf16.msra.mxu0 %v13441_v54  ;;  %v12764_v54 = vld [vmem:[%s29159_s5 + $0x90] sm:$0xf]  ;;  %v18695_v51 = vld [vmem:[%s29159_s5 + $0x119c] sm:$0xf] }
 0x319   :  { %6214 = vmatpush.bf16.msrb.mxu2 %v12921_v61  ;;  %v12765_v14 = vor.u32 %v18156_v21, %v12764_v54  ;;  %v13233_v61 = vor.u32 %v18273_v4, %v13232_v58  ;;  %v14636_v54 = vld [vmem:[%s29159_s5 + $0xf30] sm:$0xf]  ;;  %v18624_v21 = vld [vmem:[%s29159_s5 + $0xf60] sm:$0xf0]  ;;  %v15104_v58 = vld [vmem:[%s29159_s5 + $0x12d8] sm:$0xf]  ;;  %v14945_v4 = vor.u32 %v18695_v51, %v14942_v41 }
 0x31b   :  { %6138 = vmatpush.bf16.msrb.mxu3 %v13229_v29  ;;  %6243 = vmatpush.bf16.msra.mxu1 %v13597_v18  ;;  %v13442_v29 = vld [vmem:[%s29159_s5 + $0x60c] sm:$0xf0]  ;;  %v5923_v5 = vpop.f32.mrf.mxu0  ;;  %v18260_v18 = vld [vmem:[%s29159_s5 + $0x400] sm:$0xf0] }
 0x31c   :  { %6226 = vmatpush.bf16.msra.mxu0 %v13389_v13  ;;  %v5910_v13 = vpop.f32.mrf.mxu2  ;;  %v13445_v20 = vor.u32 %v18319_v3, %v13442_v29  ;;  %v13181_v27 = vor.u32 %v18260_v18, %v13180_v25  ;;  %v13286_v3 = vld [vmem:[%s29159_s5 + $0x4d4] sm:$0xf0]  ;;  %v18682_v29 = vld [vmem:[%s29159_s5 + $0x1134] sm:$0xf]  ;;  %v14890_v5 = vld [vmem:[%s29159_s5 + $0x1164] sm:$0xf0] }
 0x31d   :  { %6215 = vmatpush.bf16.msrb.mxu2 %v12869_v11  ;;  %v12713_v11 = vor.u32 %v18143_v16, %v12712_v0  ;;  %v14584_v13 = vld [vmem:[%s29159_s5 + $0xec8] sm:$0xf]  ;;  %v18611_v16 = vld [vmem:[%s29159_s5 + $0xef8] sm:$0xf0]  ;;  %v15052_v25 = vld [vmem:[%s29159_s5 + $0x1270] sm:$0xf]  ;;  %v14893_v18 = vor.u32 %v18682_v29, %v14890_v5 }
 0x31e   :  { %v15158_v29 = vld [vmem:[%s29159_s5 + $0x1374] sm:$0xf0] }
 0x31f   :  { %6139 = vmatpush.bf16.msrb.mxu3 %v13177_v55  ;;  %6244 = vmatpush.bf16.msra.mxu1 %v13545_v23  ;;  %v18650_v55 = vld [vmem:[%s29159_s5 + $0x1030] sm:$0xf0]  ;;  %v18637_v23 = vld [vmem:[%s29159_s5 + $0xfc8] sm:$0xf0] }
 0x320   :  { %6227 = vmatpush.bf16.msra.mxu0 %v13337_v15  ;;  %v14741_v38 = vor.u32 %v18650_v55, %v14740_v9  ;;  %v13128_v15 = vld [vmem:[%s29159_s5 + $0x368] sm:$0xf]  ;;  %v13234_v9 = vld [vmem:[%s29159_s5 + $0x46c] sm:$0xf0] }
 0x321   :  { %15227 = vmatmul.msk.bf16.vlgmr.msrb.gmra.mxu0 %vm5297_vm1, %v21175_v19  ;;  %6216 = vmatpush.bf16.msrb.mxu2 %v12817_v53  ;;  %v23821_v53 = vpop.f32.mrf.mxu1 }
 0x322   :  { %6245 = vmatmul.bf16.vlgmr.msra.gmra.mxu1 %v20877_v22 }
 0x323   :  { %6140 = vmatpush.bf16.msrb.mxu3 %v13125_v46  ;;  %6296 = vmatpush.bf16.msrb.mxu1 %v15209_v49  ;;  %v18293_v46 = vld [vmem:[%s29159_s5 + $0x50c] sm:$0xf]  ;;  %v13338_v49 = vld [vmem:[%s29159_s5 + $0x53c] sm:$0xf0] }
 0x324   :  { %6228 = vmatpush.bf16.msra.mxu0 %v13285_v40  ;;  %v14689_v40 = vor.u32 %v18637_v23, %v14688_v10  ;;  %v13341_v48 = vor.u32 %v18293_v46, %v13338_v49  ;;  %v18254_v10 = vld [vmem:[%s29159_s5 + $0x3d4] sm:$0xf] }
 0x325   :  { %6217 = vmatpush.bf16.msrb.mxu2 %v12765_v14  ;;  %v5895_v14 = vpop.f32.mrf.mxu3 }
 0x326   :  { %6141 = vmatmul.bf16.vlgmr.msrb.gmra.mxu3 %v20807_v34  ;;  %v5896_v56 = vadd.f32 %v5895_v14, %v23536_v50  ;;  %v18728_v50 = vld [vmem:[%s29159_s5 + $0x12a0] sm:$0xf0]  ;;  %v14272_v14 = vld [vmem:[%s29159_s5 + $0xc58] sm:$0xf] }
 0x327   :  { %6185 = vmatpush.bf16.msra.mxu3 %v15153_v42  ;;  %6315 = vmatpush.bf16.msra.mxu1 %v13497_v60  ;;  %v13129_v42 = vor.u32 %v18247_v26, %v13128_v15  ;;  %v18741_v60 = vld [vmem:[%s29159_s5 + $0x1308] sm:$0xf0]  ;;  %v15053_v28 = vor.u32 %v18728_v50, %v15052_v25  ;;  %v15000_v15 = vld [vmem:[%s29159_s5 + $0x1208] sm:$0xf]  ;;  %v14896_v25 = vld [vmem:[%s29159_s5 + $0x1138] sm:$0xf] }
 0x328   :  { %6229 = vmatpush.bf16.msra.mxu0 %v13233_v61  ;;  %v14637_v61 = vor.u32 %v18624_v21, %v14636_v54  ;;  %v15105_v8 = vor.u32 %v18741_v60, %v15104_v58  ;;  %v5909_v55 = vadd.f32 %v23710_v62, %v5896_v56  ;;  %v14948_v54 = vld [vmem:[%s29159_s5 + $0x11a0] sm:$0xf]  ;;  %v14789_v21 = vor.u32 %v18656_v44, %v14786_v45  ;;  %v18702_v58 = vld [vmem:[%s29159_s5 + $0x11d0] sm:$0xf0]  ;;  %v15054_v44 = vld [vmem:[%s29159_s5 + $0x12a4] sm:$0xf0] }
 0x329   :  { %6218 = vmatpush.bf16.msrb.mxu2 %v12713_v11  ;;  %v6014_v57 = vpop.f32.mrf.mxu1  ;;  %v14585_v11 = vor.u32 %v18611_v16, %v14584_v13  ;;  %v13130_v60 = vld [vmem:[%s29159_s5 + $0x39c] sm:$0xf0]  ;;  %v14949_v56 = vor.u32 %v18702_v58, %v14948_v54  ;;  %v18572_v13 = vld [vmem:[%s29159_s5 + $0xdc0] sm:$0xf0]  ;;  %v13858_v54 = vld [vmem:[%s29159_s5 + $0x94c] sm:$0xf0] }
 0x32a   :  { %v18520_v57 = vld [vmem:[%s29159_s5 + $0xc20] sm:$0xf0] }
 0x32b   :  { %6186 = vmatpush.bf16.msra.mxu3 %v15101_v1  ;;  %6316 = vmatpush.bf16.msra.mxu1 %v13445_v20  ;;  %v18280_v1 = vld [vmem:[%s29159_s5 + $0x4a4] sm:$0xf]  ;;  %v18267_v20 = vld [vmem:[%s29159_s5 + $0x43c] sm:$0xf]  ;;  %v23913_v51 = vpop.f32.mrf.mxu2 }
 0x32c   :  { %6230 = vmatpush.bf16.msra.mxu0 %v13181_v27  ;;  %6219 = vmatmul.bf16.vlgmr.msrb.gmra.mxu2 %v20729_v52  ;;  %v13289_v0 = vor.u32 %v18280_v1, %v13286_v3  ;;  %v5922_v27 = vadd.f32 %v23699_v33, %v5909_v55  ;;  %v13237_v62 = vor.u32 %v18267_v20, %v13234_v9  ;;  %v18715_v33 = vld [vmem:[%s29159_s5 + $0x1238] sm:$0xf0]  ;;  %v18748_v3 = vld [vmem:[%s29159_s5 + $0x1344] sm:$0xf]  ;;  %v15106_v9 = vld [vmem:[%s29159_s5 + $0x130c] sm:$0xf0] }
 0x32d   :  { %6263 = vmatpush.bf16.msra.mxu2 %v14741_v38  ;;  %v18598_v38 = vld [vmem:[%s29159_s5 + $0xe90] sm:$0xf0]  ;;  %v5897_v46 = vpop.f32.mrf.mxu3  ;;  %v15001_v41 = vor.u32 %v18715_v33, %v15000_v15  ;;  %v15161_v16 = vor.u32 %v18748_v3, %v15158_v29  ;;  %v18735_v20 = vld [vmem:[%s29159_s5 + $0x12dc] sm:$0xf]  ;;  %v18676_v15 = vld [vmem:[%s29159_s5 + $0x1100] sm:$0xf0] }
 0x32e   :  { %v23897_v23 = vadd.f32 %v23502_v24, %v5922_v27  ;;  %v14533_v49 = vor.u32 %v18598_v38, %v14532_v31  ;;  %v18546_v24 = vld [vmem:[%s29159_s5 + $0xcf0] sm:$0xf0]  ;;  %v14844_v31 = vld [vmem:[%s29159_s5 + $0x10d0] sm:$0xf]  ;;  %v15109_v38 = vor.u32 %v18735_v20, %v15106_v9  ;;  %v13910_v33 = vld [vmem:[%s29159_s5 + $0x9b4] sm:$0xf0] }
 0x32f   :  { %6187 = vmatpush.bf16.msra.mxu3 %v15049_v37  ;;  %6317 = vmatpush.bf16.msra.mxu1 %v13393_v39  ;;  %v18669_v37 = vld [vmem:[%s29159_s5 + $0x10cc] sm:$0xf]  ;;  %v13182_v39 = vld [vmem:[%s29159_s5 + $0x404] sm:$0xf0]  ;;  %v14116_v3 = vld [vmem:[%s29159_s5 + $0xb20] sm:$0xf] }
 0x330   :  { %6231 = vmatpush.bf16.msra.mxu0 %v13129_v42  ;;  %v14841_v26 = vor.u32 %v18669_v37, %v14838_v35  ;;  %v14324_v42 = vld [vmem:[%s29159_s5 + $0xcc0] sm:$0xf]  ;;  %v14220_v35 = vld [vmem:[%s29159_s5 + $0xbf0] sm:$0xf]  ;;  %v14168_v46 = vld [vmem:[%s29159_s5 + $0xb88] sm:$0xf] }
 0x331   :  { %6264 = vmatpush.bf16.msra.mxu2 %v14689_v40  ;;  %v13185_v40 = vor.u32 %v18254_v10, %v13182_v39  ;;  %v14325_v1 = vor.u32 %v18546_v24, %v14324_v42  ;;  %v14221_v10 = vor.u32 %v18520_v57, %v14220_v35  ;;  %v18722_v39 = vld [vmem:[%s29159_s5 + $0x1274] sm:$0xf]  ;;  %v14845_v42 = vor.u32 %v18676_v15, %v14844_v31  ;;  %v14274_v9 = vld [vmem:[%s29159_s5 + $0xc8c] sm:$0xf0]  ;;  %v14064_v35 = vld [vmem:[%s29159_s5 + $0xab8] sm:$0xf] }
 0x332   :  { %15228 = vmatmul.msk.bf16.vlgmr.msrb.gmra.mxu1 %vm5297_vm1, %v21175_v19  ;;  %v18494_v29 = vld [vmem:[%s29159_s5 + $0xb50] sm:$0xf0]  ;;  %v18481_v57 = vld [vmem:[%s29159_s5 + $0xae8] sm:$0xf0]  ;;  %v13754_v15 = vld [vmem:[%s29159_s5 + $0x87c] sm:$0xf0] }
 0x333   :  { %6188 = vmatpush.bf16.msra.mxu3 %v14997_v36  ;;  %6318 = vmatpush.bf16.msra.mxu1 %v13341_v48  ;;  %v23905_v36 = vpop.f32.mrf.mxu0  ;;  %v18585_v48 = vld [vmem:[%s29159_s5 + $0xe28] sm:$0xf0]  ;;  %v14117_v20 = vor.u32 %v18494_v29, %v14116_v3  ;;  %v14846_v3 = vld [vmem:[%s29159_s5 + $0x1104] sm:$0xf0] }
 0x334   :  { %6276 = vmatpush.bf16.msrb.mxu0 %v15157_v2  ;;  %v14480_v2 = vld [vmem:[%s29159_s5 + $0xdf8] sm:$0xf]  ;;  %v13960_v29 = vld [vmem:[%s29159_s5 + $0x9e8] sm:$0xf] }
 0x335   :  { %6232 = vmatmul.bf16.vlgmr.msra.gmra.mxu0 %v20807_v34  ;;  %6265 = vmatpush.bf16.msra.mxu2 %v14637_v61  ;;  %v14481_v5 = vor.u32 %v18585_v48, %v14480_v2  ;;  %v18533_v61 = vld [vmem:[%s29159_s5 + $0xc88] sm:$0xf0]  ;;  %v15057_v2 = vor.u32 %v18722_v39, %v15054_v44  ;;  %v18423_v48 = vld [vmem:[%s29159_s5 + $0x91c] sm:$0xf]  ;;  %v14898_v44 = vld [vmem:[%s29159_s5 + $0x116c] sm:$0xf0] }
 0x336   :  { %v14273_v50 = vor.u32 %v18533_v61, %v14272_v14  ;;  %v18683_v39 = vld [vmem:[%s29159_s5 + $0x113c] sm:$0xf] }
 0x337   :  { %6189 = vmatpush.bf16.msra.mxu3 %v14945_v4  ;;  %6319 = vmatpush.bf16.msra.mxu1 %v13289_v0  ;;  %v18241_v4 = vld [vmem:[%s29159_s5 + $0x36c] sm:$0xf]  ;;  %v14428_v0 = vld [vmem:[%s29159_s5 + $0xd90] sm:$0xf] }
 0x338   :  { %6277 = vmatpush.bf16.msrb.mxu0 %v15105_v8  ;;  %v13133_v8 = vor.u32 %v18241_v4, %v13130_v60  ;;  %v14429_v37 = vor.u32 %v18572_v13, %v14428_v0  ;;  %v14326_v4 = vld [vmem:[%s29159_s5 + $0xcf4] sm:$0xf0]  ;;  %v18709_v60 = vld [vmem:[%s29159_s5 + $0x120c] sm:$0xf] }
 0x339   :  { %6266 = vmatpush.bf16.msra.mxu2 %v14585_v11  ;;  %v5975_v11 = vpop.f32.mrf.mxu2 }
 0x33b   :  { %6190 = vmatpush.bf16.msra.mxu3 %v14893_v18  ;;  %6320 = vmatpush.bf16.msra.mxu1 %v13237_v62  ;;  %v18689_v18 = vld [vmem:[%s29159_s5 + $0x1168] sm:$0xf0]  ;;  %v5988_v55 = vpop.f32.mrf.mxu0  ;;  %v18559_v62 = vld [vmem:[%s29159_s5 + $0xd58] sm:$0xf0] }
 0x33c   :  { %6278 = vmatpush.bf16.msrb.mxu0 %v15053_v28  ;;  %v14897_v27 = vor.u32 %v18689_v18, %v14896_v25  ;;  %v14376_v28 = vld [vmem:[%s29159_s5 + $0xd28] sm:$0xf]  ;;  %v18410_v25 = vld [vmem:[%s29159_s5 + $0x8b4] sm:$0xf]  ;;  %v18696_v55 = vld [vmem:[%s29159_s5 + $0x11a4] sm:$0xf] }
 0x33d   :  { %6267 = vmatpush.bf16.msra.mxu2 %v14533_v49  ;;  %v14377_v45 = vor.u32 %v18559_v62, %v14376_v28  ;;  %v18507_v49 = vld [vmem:[%s29159_s5 + $0xbb8] sm:$0xf0]  ;;  %v13806_v18 = vld [vmem:[%s29159_s5 + $0x8e4] sm:$0xf0] }
 0x33e   :  { %v14169_v58 = vor.u32 %v18507_v49, %v14168_v46  ;;  %v14012_v46 = vld [vmem:[%s29159_s5 + $0xa50] sm:$0xf]  ;;  %v18468_v49 = vld [vmem:[%s29159_s5 + $0xa80] sm:$0xf0] }
 0x33f   :  { %6191 = vmatpush.bf16.msra.mxu3 %v14841_v26  ;;  %6321 = vmatpush.bf16.msra.mxu1 %v13185_v40  ;;  %v18436_v26 = vld [vmem:[%s29159_s5 + $0x984] sm:$0xf]  ;;  %v18663_v40 = vld [vmem:[%s29159_s5 + $0x1098] sm:$0xf0] }
 0x340   :  { %6279 = vmatpush.bf16.msrb.mxu0 %v15001_v41  ;;  %v13913_v24 = vor.u32 %v18436_v26, %v13910_v33  ;;  %v14792_v41 = vld [vmem:[%s29159_s5 + $0x1068] sm:$0xf]  ;;  %v18514_v26 = vld [vmem:[%s29159_s5 + $0xbf4] sm:$0xf]  ;;  %v14065_v33 = vor.u32 %v18481_v57, %v14064_v35  ;;  %v18657_v35 = vld [vmem:[%s29159_s5 + $0x106c] sm:$0xf] }
 0x341   :  { %6268 = vmatpush.bf16.msra.mxu2 %v14481_v5  ;;  %v24031_v5 = vpop.f32.mrf.mxu1  ;;  %v24033_v14 = vpop.f32.mrf.mxu2  ;;  %v14793_v61 = vor.u32 %v18663_v40, %v14792_v41  ;;  %v24092_v41 = vld [vmem:[%s29161_s6 + $0x8] sm:$0x1f]  ;;  %v14794_v57 = vld [vmem:[%s29159_s5 + $0x109c] sm:$0xf0] }
 0x343   :  { %6192 = vmatpush.bf16.msra.mxu3 %v14789_v21  ;;  %6322 = vmatpush.bf16.msra.mxu1 %v13133_v8  ;;  %v18540_v21 = vld [vmem:[%s29159_s5 + $0xcc4] sm:$0xf] }
 0x344   :  { %6280 = vmatpush.bf16.msrb.mxu0 %v14949_v56  ;;  %v13861_v56 = vor.u32 %v18423_v48, %v13858_v54  ;;  %v19456_v8 = vld [vmem:[%s29161_s6] sm:$0xff]  ;;  %v14329_v13 = vor.u32 %v18540_v21, %v14326_v4  ;;  %v13702_v54 = vld [vmem:[%s29159_s5 + $0x814] sm:$0xf0]  ;;  %v18501_v21 = vld [vmem:[%s29159_s5 + $0xb8c] sm:$0xf]  ;;  %v14013_v4 = vor.u32 %v18468_v49, %v14012_v46 }
 0x345   :  { %6269 = vmatpush.bf16.msra.mxu2 %v14429_v37  ;;  %v2044_v0 = vperm.slane %v19456_v8, 7  ;;  %v14950_v37 = vld [vmem:[%s29159_s5 + $0x11d4] sm:$0xf0]  ;;  %v5947_v11 = vpop.f32.mrf.mxu3  ;;  %v18384_v48 = vld [vmem:[%s29159_s5 + $0x7e4] sm:$0xf] }
 0x346   :  { %6193 = vmatmul.bf16.vlgmr.msra.gmra.mxu3 %v21066_v17  ;;  %6323 = vmatmul.bf16.vlgmr.msra.gmra.mxu1 %v20807_v34  ;;  %v14953_v31 = vor.u32 %v18696_v55, %v14950_v37  ;;  %v14118_v37 = vld [vmem:[%s29159_s5 + $0xb54] sm:$0xf0]  ;;  %v18475_v49 = vld [vmem:[%s29159_s5 + $0xabc] sm:$0xf] }
 0x347   :  { %6250 = vmatpush.bf16.msrb.mxu3 %v14325_v1  ;;  %6367 = vmatpush.bf16.msrb.mxu1 %v15161_v16  ;;  %v15002_v1 = vld [vmem:[%s29159_s5 + $0x123c] sm:$0xf0]  ;;  %v5948_v28 = vadd.f32 %v5947_v11, %v2044_v0 }
 0x348   :  { %6281 = vmatpush.bf16.msrb.mxu0 %v14897_v27  ;;  %v15005_v16 = vor.u32 %v18709_v60, %v15002_v1  ;;  %v13809_v27 = vor.u32 %v18410_v25, %v13806_v18  ;;  %v14170_v60 = vld [vmem:[%s29159_s5 + $0xbbc] sm:$0xf0]  ;;  %v18670_v1 = vld [vmem:[%s29159_s5 + $0x10d4] sm:$0xf]  ;;  %v13078_v25 = vld [vmem:[%s29159_s5 + $0x334] sm:$0xf0] }
 0x349   :  { %6270 = vmatpush.bf16.msra.mxu2 %v14377_v45  ;;  %v5961_v45 = vadd.f32 %v23611_v63, %v5948_v28  ;;  %v14173_v18 = vor.u32 %v18501_v21, %v14170_v60  ;;  %v18547_v28 = vld [vmem:[%s29159_s5 + $0xcf8] sm:$0xf0]  ;;  %v12974_v21 = vld [vmem:[%s29159_s5 + $0x264] sm:$0xf0]  ;;  %v13546_v60 = vld [vmem:[%s29159_s5 + $0x6dc] sm:$0xf0] }
 0x34b   :  { %6251 = vmatpush.bf16.msrb.mxu3 %v14273_v50  ;;  %6368 = vmatpush.bf16.msrb.mxu1 %v15109_v38  ;;  %v18527_v50 = vld [vmem:[%s29159_s5 + $0xc5c] sm:$0xf]  ;;  %v18397_v38 = vld [vmem:[%s29159_s5 + $0x84c] sm:$0xf] }
 0x34c   :  { %6282 = vmatpush.bf16.msrb.mxu0 %v14845_v42  ;;  %6271 = vmatmul.bf16.vlgmr.msra.gmra.mxu2 %v21033_v59  ;;  %v14277_v62 = vor.u32 %v18527_v50, %v14274_v9  ;;  %v6079_v42 = vpop.f32.mrf.mxu1  ;;  %v13757_v40 = vor.u32 %v18397_v38, %v13754_v15  ;;  %v14849_v50 = vor.u32 %v18670_v1, %v14846_v3  ;;  %v18488_v9 = vld [vmem:[%s29159_s5 + $0xb24] sm:$0xf]  ;;  %v18215_v38 = vld [vmem:[%s29159_s5 + $0x29c] sm:$0xf]  ;;  %v13026_v15 = vld [vmem:[%s29159_s5 + $0x2cc] sm:$0xf0] }
 0x34d   :  { %6328 = vmatpush.bf16.msrb.mxu2 %v13913_v24  ;;  %v6027_v24 = vpop.f32.mrf.mxu2  ;;  %v5949_v0 = vpop.f32.mrf.mxu3  ;;  %v14066_v42 = vld [vmem:[%s29159_s5 + $0xaec] sm:$0xf0]  ;;  %v18462_v1 = vld [vmem:[%s29159_s5 + $0xa54] sm:$0xf] }
 0x34e   :  { %v6038_v8 = vpop.f32.mrf.mxu0  ;;  %v13029_v24 = vor.u32 %v18215_v38, %v13026_v15  ;;  %v14228_v0 = vld [vmem:[%s29159_s5 + $0xbf8] sm:$0xf]  ;;  %v18176_v15 = vld [vmem:[%s29159_s5 + $0x164] sm:$0xf] }
 0x34f   :  { %6252 = vmatpush.bf16.msrb.mxu3 %v14221_v10  ;;  %6369 = vmatpush.bf16.msrb.mxu1 %v15057_v2  ;;  %v14222_v10 = vld [vmem:[%s29159_s5 + $0xc24] sm:$0xf0]  ;;  %v14901_v2 = vor.u32 %v18683_v39, %v14898_v44  ;;  %v18358_v39 = vld [vmem:[%s29159_s5 + $0x714] sm:$0xf] }
 0x350   :  { %6283 = vmatpush.bf16.msrb.mxu0 %v14793_v61  ;;  %v14225_v63 = vor.u32 %v18514_v26, %v14222_v10  ;;  %v14797_v10 = vor.u32 %v18657_v35, %v14794_v57  ;;  %v13598_v44 = vld [vmem:[%s29159_s5 + $0x744] sm:$0xf0]  ;;  %v18449_v35 = vld [vmem:[%s29159_s5 + $0x9ec] sm:$0xf]  ;;  %v13962_v57 = vld [vmem:[%s29159_s5 + $0xa1c] sm:$0xf0] }
 0x351   :  { %6329 = vmatpush.bf16.msrb.mxu2 %v13861_v56  ;;  %v2045_v56 = vperm.slane %v24092_v41, 0 }
 0x353   :  { %6253 = vmatpush.bf16.msrb.mxu3 %v14169_v58  ;;  %6370 = vmatpush.bf16.msrb.mxu1 %v15005_v16  ;;  %v5974_v58 = vadd.f32 %v23913_v51, %v5961_v45  ;;  %v18455_v51 = vld [vmem:[%s29159_s5 + $0xa18] sm:$0xf0]  ;;  %v18228_v16 = vld [vmem:[%s29159_s5 + $0x304] sm:$0xf] }
 0x354   :  { %6341 = vmatpush.bf16.msra.mxu0 %v14329_v13  ;;  %v13705_v13 = vor.u32 %v18384_v48, %v13702_v54  ;;  %v13961_v55 = vor.u32 %v18455_v51, %v13960_v29  ;;  %v13081_v11 = vor.u32 %v18228_v16, %v13078_v25  ;;  %v13601_v48 = vor.u32 %v18358_v39, %v13598_v44  ;;  %v18202_v54 = vld [vmem:[%s29159_s5 + $0x234] sm:$0xf]  ;;  %v14014_v29 = vld [vmem:[%s29159_s5 + $0xa84] sm:$0xf0]  ;;  %v18761_v51 = vld [vmem:[%s29159_s5 + $0x13ac] sm:$0xf] }
 0x355   :  { %6284 = vmatmul.bf16.vlgmr.msrb.gmra.mxu0 %v21066_v17  ;;  %6330 = vmatpush.bf16.msrb.mxu2 %v13809_v27  ;;  %v24120_v61 = vadd.f32 %v23905_v36, %v5974_v58  ;;  %v18371_v36 = vld [vmem:[%s29159_s5 + $0x77c] sm:$0xf]  ;;  %v14332_v27 = vld [vmem:[%s29159_s5 + $0xcc8] sm:$0xf]  ;;  %v6051_v26 = vpop.f32.mrf.mxu2  ;;  %v14069_v58 = vor.u32 %v18475_v49, %v14066_v42  ;;  %v18189_v25 = vld [vmem:[%s29159_s5 + $0x1cc] sm:$0xf] }
 0x356   :  { %v14333_v46 = vor.u32 %v18547_v28, %v14332_v27  ;;  %v18235_v28 = vld [vmem:[%s29159_s5 + $0x338] sm:$0xf0]  ;;  %v13448_v39 = vld [vmem:[%s29159_s5 + $0x5e0] sm:$0xf]  ;;  %v18326_v44 = vld [vmem:[%s29159_s5 + $0x610] sm:$0xf0] }
 0x357   :  { %6254 = vmatpush.bf16.msrb.mxu3 %v14117_v20  ;;  %6371 = vmatpush.bf16.msrb.mxu1 %v14953_v31  ;;  %v13650_v20 = vld [vmem:[%s29159_s5 + $0x7ac] sm:$0xf0]  ;;  %v13032_v42 = vld [vmem:[%s29159_s5 + $0x2a0] sm:$0xf] }
 0x358   :  { %6342 = vmatpush.bf16.msra.mxu0 %v14277_v62  ;;  %v6039_v62 = vadd.f32 %v6038_v8, %v2045_v56  ;;  %v13653_v31 = vor.u32 %v18371_v36, %v13650_v20  ;;  %v15210_v56 = vld [vmem:[%s29159_s5 + $0x13dc] sm:$0xf0]  ;;  %v12977_v8 = vor.u32 %v18202_v54, %v12974_v21  ;;  %v14017_v36 = vor.u32 %v18462_v1, %v14014_v29  ;;  %v18163_v54 = vld [vmem:[%s29159_s5 + $0xfc] sm:$0xf]  ;;  %v12818_v21 = vld [vmem:[%s29159_s5 + $0x12c] sm:$0xf0] }
 0x359   :  { %6331 = vmatpush.bf16.msrb.mxu2 %v13757_v40  ;;  %v14280_v40 = vld [vmem:[%s29159_s5 + $0xc60] sm:$0xf]  ;;  %v15213_v20 = vor.u32 %v18761_v51, %v15210_v56  ;;  %v12980_v51 = vld [vmem:[%s29159_s5 + $0x238] sm:$0xf]  ;;  %v12821_v56 = vor.u32 %v18163_v54, %v12818_v21  ;;  %v15429_v54 = vld [vmem:[%s29162_s7 + $0x188] sm:$0xf] }
 0x35a   :  { %v24165_v45 = vadd.f32 %v6051_v26, %v6039_v62  ;;  %v14176_v62 = vld [vmem:[%s29159_s5 + $0xb90] sm:$0xf]  ;;  %v12870_v26 = vld [vmem:[%s29159_s5 + $0x194] sm:$0xf0]  ;;  %v18821_v21 = vld [vmem:[%s29162_s7 + $0x1a0] sm:$0xf0] }
 0x35b   :  { %6255 = vmatpush.bf16.msrb.mxu3 %v14065_v33  ;;  %6372 = vmatpush.bf16.msrb.mxu1 %v14901_v2  ;;  %v14121_v33 = vor.u32 %v18488_v9, %v14118_v37  ;;  %v6040_v2 = vpop.f32.mrf.mxu0  ;;  %v13500_v9 = vld [vmem:[%s29159_s5 + $0x648] sm:$0xf] }
 0x35c   :  { %6343 = vmatpush.bf16.msra.mxu0 %v14225_v63  ;;  %v18534_v63 = vld [vmem:[%s29159_s5 + $0xc90] sm:$0xf0]  ;;  %v18495_v2 = vld [vmem:[%s29159_s5 + $0xb58] sm:$0xf0] }
 0x35d   :  { %6332 = vmatpush.bf16.msrb.mxu2 %v13705_v13  ;;  %v14281_v3 = vor.u32 %v18534_v63, %v14280_v40  ;;  %v18521_v13 = vld [vmem:[%s29159_s5 + $0xc28] sm:$0xf0]  ;;  %v18222_v40 = vld [vmem:[%s29159_s5 + $0x2d0] sm:$0xf0]  ;;  %v14124_v63 = vld [vmem:[%s29159_s5 + $0xb28] sm:$0xf] }
 0x35e   :  { %v14229_v37 = vor.u32 %v18521_v13, %v14228_v0  ;;  %v14125_v29 = vor.u32 %v18495_v2, %v14124_v63  ;;  %v14072_v0 = vld [vmem:[%s29159_s5 + $0xac0] sm:$0xf]  ;;  %v18456_v63 = vld [vmem:[%s29159_s5 + $0xa20] sm:$0xf0] }
 0x35f   :  { %6256 = vmatpush.bf16.msrb.mxu3 %v14013_v4  ;;  %6373 = vmatpush.bf16.msrb.mxu1 %v14849_v50  ;;  %v18345_v4 = vld [vmem:[%s29159_s5 + $0x6ac] sm:$0xf]  ;;  %v6053_v50 = vpop.f32.mrf.mxu2 }
 0x360   :  { %6344 = vmatpush.bf16.msra.mxu0 %v14173_v18  ;;  %v13549_v16 = vor.u32 %v18345_v4, %v13546_v60  ;;  %v12922_v18 = vld [vmem:[%s29159_s5 + $0x1fc] sm:$0xf0]  ;;  %v13396_v4 = vld [vmem:[%s29159_s5 + $0x578] sm:$0xf]  ;;  %v18313_v60 = vld [vmem:[%s29159_s5 + $0x5a8] sm:$0xf0] }
 0x361   :  { %6333 = vmatpush.bf16.msrb.mxu2 %v13653_v31  ;;  %v12925_v27 = vor.u32 %v18189_v25, %v12922_v18  ;;  %v18508_v31 = vld [vmem:[%s29159_s5 + $0xbc0] sm:$0xf0]  ;;  %v18150_v25 = vld [vmem:[%s29159_s5 + $0x94] sm:$0xf]  ;;  %v12766_v18 = vld [vmem:[%s29159_s5 + $0xc4] sm:$0xf0] }
 0x362   :  { %v14177_v49 = vor.u32 %v18508_v31, %v14176_v62  ;;  %v12714_v62 = vld [vmem:[%s29159_s5 + $0x5c] sm:$0xf0]  ;;  %v13292_v31 = vld [vmem:[%s29159_s5 + $0x4a8] sm:$0xf] }
 0x363   :  { %6257 = vmatpush.bf16.msrb.mxu3 %v13961_v55  ;;  %6374 = vmatpush.bf16.msrb.mxu1 %v14797_v10  ;;  %v18339_v55 = vld [vmem:[%s29159_s5 + $0x678] sm:$0xf0]  ;;  %v13965_v10 = vor.u32 %v18449_v35, %v13962_v57  ;;  %v12769_v35 = vor.u32 %v18150_v25, %v12766_v18  ;;  %v18196_v57 = vld [vmem:[%s29159_s5 + $0x200] sm:$0xf0]  ;;  %v18814_v25 = vld [vmem:[%s29162_s7 + $0x168] sm:$0xf0] }
 0x364   :  { %6345 = vmatpush.bf16.msra.mxu0 %v14121_v33  ;;  %v13501_v38 = vor.u32 %v18339_v55, %v13500_v9  ;;  %v24247_v33 = vpop.f32.mrf.mxu1  ;;  %v13188_v18 = vld [vmem:[%s29159_s5 + $0x3d8] sm:$0xf] }
 0x365   :  { %6334 = vmatpush.bf16.msrb.mxu2 %v13601_v48  ;;  %v13449_v48 = vor.u32 %v18326_v44, %v13448_v39  ;;  %v14742_v39 = vld [vmem:[%s29159_s5 + $0x1034] sm:$0xf0] }
 0x366   :  { %6258 = vmatmul.bf16.vlgmr.msrb.gmra.mxu3 %v20888_v30  ;;  %6375 = vmatmul.bf16.vlgmr.msrb.gmra.mxu1 %v21066_v17 }
 0x367   :  { %6302 = vmatpush.bf16.msra.mxu3 %v13081_v11  ;;  %6432 = vmatpush.bf16.msra.mxu1 %v14333_v46  ;;  %v13084_v11 = vld [vmem:[%s29159_s5 + $0x308] sm:$0xf] }
 0x368   :  { %6346 = vmatpush.bf16.msra.mxu0 %v14069_v58  ;;  %v13085_v46 = vor.u32 %v18235_v28, %v13084_v11  ;;  %v5999_v58 = vpop.f32.mrf.mxu3  ;;  %v14020_v11 = vld [vmem:[%s29159_s5 + $0xa58] sm:$0xf]  ;;  %v18137_v28 = vld [vmem:[%s29159_s5 + $0x2c] sm:$0xf] }
 0x369   :  { %6335 = vmatpush.bf16.msrb.mxu2 %v13549_v16  ;;  %v6000_v1 = vadd.f32 %v5999_v58, %v24120_v61  ;;  %v18482_v61 = vld [vmem:[%s29159_s5 + $0xaf0] sm:$0xf0]  ;;  %v13397_v16 = vor.u32 %v18313_v60, %v13396_v4  ;;  %v13240_v58 = vld [vmem:[%s29159_s5 + $0x440] sm:$0xf]  ;;  %v18631_v60 = vld [vmem:[%s29159_s5 + $0xf9c] sm:$0xf] }
 0x36a   :  { %v14073_v55 = vor.u32 %v18482_v61, %v14072_v0  ;;  %v18274_v4 = vld [vmem:[%s29159_s5 + $0x470] sm:$0xf0] }
 0x36b   :  { %6303 = vmatpush.bf16.msra.mxu3 %v13029_v24  ;;  %6433 = vmatpush.bf16.msra.mxu1 %v14281_v3  ;;  %v12873_v24 = vor.u32 %v18176_v15, %v12870_v26  ;;  %v13033_v3 = vor.u32 %v18222_v40, %v13032_v42  ;;  %v6013_v13 = vadd.f32 %v23821_v53, %v6000_v1  ;;  %v18300_v53 = vld [vmem:[%s29159_s5 + $0x540] sm:$0xf0]  ;;  %v18287_v26 = vld [vmem:[%s29159_s5 + $0x4d8] sm:$0xf0]  ;;  %v13968_v40 = vld [vmem:[%s29159_s5 + $0x9f0] sm:$0xf] }
 0x36c   :  { %6347 = vmatpush.bf16.msra.mxu0 %v14017_v36  ;;  %6336 = vmatmul.bf16.vlgmr.msrb.gmra.mxu2 %v20877_v22  ;;  %v6131_v50 = vpop.f32.mrf.mxu1  ;;  %v13344_v36 = vld [vmem:[%s29159_s5 + $0x510] sm:$0xf]  ;;  %v12717_v42 = vor.u32 %v18137_v28, %v12714_v62  ;;  %v13293_v2 = vor.u32 %v18287_v26, %v13292_v31  ;;  %v18170_v0 = vld [vmem:[%s29159_s5 + $0x130] sm:$0xf0]  ;;  %v13241_v61 = vor.u32 %v18274_v4, %v13240_v58  ;;  %v18248_v31 = vld [vmem:[%s29159_s5 + $0x3a0] sm:$0xf0] }
 0x36d   :  { %6387 = vmatpush.bf16.msra.mxu2 %v15213_v20  ;;  %v24308_v20 = vadd.f32 %v24033_v14, %v6013_v13  ;;  %v18469_v14 = vld [vmem:[%s29159_s5 + $0xa88] sm:$0xf0]  ;;  %v14690_v1 = vld [vmem:[%s29159_s5 + $0xfcc] sm:$0xf0]  ;;  %v18807_v28 = vld [vmem:[%s29162_s7 + $0x130] sm:$0xf0] }
 0x36e   :  { %v14693_v13 = vor.u32 %v18631_v60, %v14690_v1  ;;  %v13136_v62 = vld [vmem:[%s29159_s5 + $0x370] sm:$0xf]  ;;  %v14586_v26 = vld [vmem:[%s29159_s5 + $0xefc] sm:$0xf0]  ;;  %v18592_v58 = vld [vmem:[%s29159_s5 + $0xe64] sm:$0xf] }
 0x36f   :  { %6304 = vmatpush.bf16.msra.mxu3 %v12977_v8  ;;  %6434 = vmatpush.bf16.msra.mxu1 %v14229_v37  ;;  %v18209_v8 = vld [vmem:[%s29159_s5 + $0x268] sm:$0xf0]  ;;  %v12928_v37 = vld [vmem:[%s29159_s5 + $0x1d0] sm:$0xf]  ;;  %v14534_v4 = vld [vmem:[%s29159_s5 + $0xe94] sm:$0xf0] }
 0x370   :  { %6348 = vmatpush.bf16.msra.mxu0 %v13965_v10  ;;  %v12981_v9 = vor.u32 %v18209_v8, %v12980_v51  ;;  %v6001_v15 = vpop.f32.mrf.mxu3  ;;  %v18644_v10 = vld [vmem:[%s29159_s5 + $0x1004] sm:$0xf]  ;;  %v12929_v44 = vor.u32 %v18196_v57, %v12928_v37  ;;  %v13969_v51 = vor.u32 %v18456_v63, %v13968_v40  ;;  %v12824_v8 = vld [vmem:[%s29159_s5 + $0x100] sm:$0xf]  ;;  %v18157_v57 = vld [vmem:[%s29159_s5 + $0xc8] sm:$0xf0]  ;;  %v13137_v40 = vor.u32 %v18248_v31, %v13136_v62 }
 0x371   :  { %6406 = vmatpush.bf16.msrb.mxu2 %v13501_v38  ;;  %v24331_v38 = vpop.f32.mrf.mxu0  ;;  %v18605_v15 = vld [vmem:[%s29159_s5 + $0xecc] sm:$0xf]  ;;  %v18566_v31 = vld [vmem:[%s29159_s5 + $0xd94] sm:$0xf] }
 0x372   :  { %v14589_v63 = vor.u32 %v18605_v15, %v14586_v26  ;;  %v14430_v15 = vld [vmem:[%s29159_s5 + $0xdc4] sm:$0xf0] }
 0x373   :  { %6305 = vmatpush.bf16.msra.mxu3 %v12925_v27  ;;  %6435 = vmatpush.bf16.msra.mxu1 %v14177_v49  ;;  %v13345_v27 = vor.u32 %v18300_v53, %v13344_v36  ;;  %v12876_v49 = vld [vmem:[%s29159_s5 + $0x168] sm:$0xf]  ;;  %v18261_v36 = vld [vmem:[%s29159_s5 + $0x408] sm:$0xf0]  ;;  %v18618_v53 = vld [vmem:[%s29159_s5 + $0xf34] sm:$0xf] }
 0x374   :  { %6393 = vmatpush.bf16.msrb.mxu0 %v13085_v46  ;;  %v14021_v46 = vor.u32 %v18469_v14, %v14020_v11  ;;  %v13189_v11 = vor.u32 %v18261_v36, %v13188_v18  ;;  %v14482_v36 = vld [vmem:[%s29159_s5 + $0xe2c] sm:$0xf0] }
 0x375   :  { %6349 = vmatmul.bf16.vlgmr.msra.gmra.mxu0 %v20888_v30  ;;  %6407 = vmatpush.bf16.msrb.mxu2 %v13449_v48  ;;  %v14745_v48 = vor.u32 %v18644_v10, %v14742_v39 }
 0x377   :  { %6306 = vmatpush.bf16.msra.mxu3 %v12873_v24  ;;  %6436 = vmatpush.bf16.msra.mxu1 %v14125_v29  ;;  %v18183_v24 = vld [vmem:[%s29159_s5 + $0x198] sm:$0xf0] }
 0x378   :  { %6394 = vmatpush.bf16.msrb.mxu0 %v13033_v3  ;;  %v24372_v3 = vpop.f32.mrf.mxu2  ;;  %v12877_v29 = vor.u32 %v18183_v24, %v12876_v49  ;;  %v12720_v49 = vld [vmem:[%s29159_s5 + $0x30] sm:$0xf]  ;;  %v14748_v24 = vld [vmem:[%s29159_s5 + $0x1008] sm:$0xf] }
 0x379   :  { %6408 = vmatpush.bf16.msrb.mxu2 %v13397_v16  ;;  %v15401_v16 = vld [vmem:[%s29162_s7 + $0x150] sm:$0xf]  ;;  %v6092_v50 = vpop.f32.mrf.mxu0 }
 0x37a   :  { %v15402_v37 = vor.u32 %v18814_v25, %v15401_v16  ;;  %v15317_v16 = vld [vmem:[%s29162_s7 + $0xa8] sm:$0xf]  ;;  %v18793_v25 = vld [vmem:[%s29162_s7 + $0xc0] sm:$0xf0]  ;;  %v18579_v50 = vld [vmem:[%s29159_s5 + $0xdfc] sm:$0xf] }
 0x37b   :  { %6307 = vmatpush.bf16.msra.mxu3 %v12821_v56  ;;  %6437 = vmatpush.bf16.msra.mxu1 %v14073_v55  ;;  %v15430_v56 = vor.u32 %v18821_v21, %v15429_v54  ;;  %v12825_v55 = vor.u32 %v18170_v0, %v12824_v8  ;;  %v18800_v54 = vld [vmem:[%s29162_s7 + $0xf8] sm:$0xf0]  ;;  %v14696_v0 = vld [vmem:[%s29159_s5 + $0xfa0] sm:$0xf] }
 0x37c   :  { %6395 = vmatpush.bf16.msrb.mxu0 %v12981_v9  ;;  %15229 = vmatmul.msk.bf16.vlgmr.msra.gmra.mxu2 %vm5297_vm1, %v21175_v19  ;;  %v14638_v9 = vld [vmem:[%s29159_s5 + $0xf64] sm:$0xf0] }
 0x37d   :  { %6409 = vmatpush.bf16.msrb.mxu2 %v13345_v27  ;;  %v14641_v14 = vor.u32 %v18618_v53, %v14638_v9  ;;  %v15373_v27 = vld [vmem:[%s29162_s7 + $0x118] sm:$0xf] }
 0x37e   :  { %v15060_v9 = vld [vmem:[%s29159_s5 + $0x1278] sm:$0xf] }
 0x37f   :  { %6308 = vmatpush.bf16.msra.mxu3 %v12769_v35  ;;  %6438 = vmatpush.bf16.msra.mxu1 %v14021_v46  ;;  %v12772_v35 = vld [vmem:[%s29159_s5 + $0x98] sm:$0xf]  ;;  %v15374_v46 = vor.u32 %v18807_v28, %v15373_v27  ;;  %v24456_v60 = vpop.f32.mrf.mxu1  ;;  %v18625_v27 = vld [vmem:[%s29159_s5 + $0xf68] sm:$0xf0]  ;;  %v15289_v28 = vld [vmem:[%s29162_s7 + $0x70] sm:$0xf] }
 0x380   :  { %6396 = vmatpush.bf16.msrb.mxu0 %v12929_v44  ;;  %v6105_v10 = vpop.f32.mrf.mxu2  ;;  %v12773_v39 = vor.u32 %v18157_v57, %v12772_v35  ;;  %v15164_v44 = vld [vmem:[%s29159_s5 + $0x1348] sm:$0xf]  ;;  %v15318_v57 = vor.u32 %v18793_v25, %v15317_v16 }
 0x381   :  { %6410 = vmatpush.bf16.msrb.mxu2 %v13293_v2  ;;  %v18651_v2 = vld [vmem:[%s29159_s5 + $0x1038] sm:$0xf0]  ;;  %v15008_v10 = vld [vmem:[%s29159_s5 + $0x1210] sm:$0xf]  ;;  %v16325_v25 = vld [vmem:[%s29162_s7 + $0x888] sm:$0xf] }
 0x383   :  { %6309 = vmatpush.bf16.msra.mxu3 %v12717_v42  ;;  %6439 = vmatpush.bf16.msra.mxu1 %v13969_v51  ;;  %v18144_v42 = vld [vmem:[%s29159_s5 + $0x60] sm:$0xf0]  ;;  %v18742_v51 = vld [vmem:[%s29159_s5 + $0x1310] sm:$0xf0] }
 0x384   :  { %6397 = vmatpush.bf16.msrb.mxu0 %v12877_v29  ;;  %v12721_v1 = vor.u32 %v18144_v42, %v12720_v49  ;;  %v15112_v29 = vld [vmem:[%s29159_s5 + $0x12e0] sm:$0xf]  ;;  %v18612_v49 = vld [vmem:[%s29159_s5 + $0xf00] sm:$0xf0]  ;;  %v15261_v42 = vld [vmem:[%s29162_s7 + $0x38] sm:$0xf] }
 0x385   :  { %6411 = vmatpush.bf16.msrb.mxu2 %v13241_v61  ;;  %v14537_v61 = vor.u32 %v18592_v58, %v14534_v4  ;;  %v15113_v18 = vor.u32 %v18742_v51, %v15112_v29  ;;  %v6064_v53 = vpop.f32.mrf.mxu3  ;;  %v18703_v58 = vld [vmem:[%s29159_s5 + $0x11d8] sm:$0xf0]  ;;  %v13916_v4 = vld [vmem:[%s29159_s5 + $0x988] sm:$0xf] }
 0x386   :  { %6310 = vmatmul.bf16.vlgmr.msra.gmra.mxu3 %v20729_v52  ;;  %6440 = vmatmul.bf16.vlgmr.msra.gmra.mxu1 %v20888_v30  ;;  %v18755_v30 = vld [vmem:[%s29159_s5 + $0x1378] sm:$0xf0]  ;;  %v14540_v51 = vld [vmem:[%s29159_s5 + $0xe68] sm:$0xf] }
 0x387   :  { %6354 = vmatpush.bf16.msrb.mxu3 %v14745_v48  ;;  %10841 = vmatpush.bf16.msrb.mxu1 %v15430_v56  ;;  %v15345_v48 = vld [vmem:[%s29162_s7 + $0xe0] sm:$0xf]  ;;  %v15165_v21 = vor.u32 %v18755_v30, %v15164_v44  ;;  %v14749_v56 = vor.u32 %v18651_v2, %v14748_v24  ;;  %v6183_v26 = vpop.f32.mrf.mxu1  ;;  %v14592_v44 = vld [vmem:[%s29159_s5 + $0xed0] sm:$0xf]  ;;  %v18779_v24 = vld [vmem:[%s29162_s7 + $0x50] sm:$0xf0] }
 0x388   :  { %6398 = vmatpush.bf16.msrb.mxu0 %v12825_v55  ;;  %v15346_v8 = vor.u32 %v18800_v54, %v15345_v48  ;;  %v18729_v55 = vld [vmem:[%s29159_s5 + $0x12a8] sm:$0xf0]  ;;  %v14956_v2 = vld [vmem:[%s29159_s5 + $0x11a8] sm:$0xf]  ;;  %v14593_v29 = vor.u32 %v18612_v49, %v14592_v44 }
 0x389   :  { %6412 = vmatpush.bf16.msrb.mxu2 %v13189_v11  ;;  %v14644_v11 = vld [vmem:[%s29159_s5 + $0xf38] sm:$0xf]  ;;  %v18677_v26 = vld [vmem:[%s29159_s5 + $0x1108] sm:$0xf0] }
 0x38b   :  { %6355 = vmatpush.bf16.msrb.mxu3 %v14693_v13  ;;  %10842 = vmatpush.bf16.msrb.mxu1 %v15402_v37  ;;  %v18638_v13 = vld [vmem:[%s29159_s5 + $0xfd0] sm:$0xf0]  ;;  %v6065_v37 = vadd.f32 %v6064_v53, %v24165_v45  ;;  %v18786_v45 = vld [vmem:[%s29162_s7 + $0x88] sm:$0xf0] }
 0x38c   :  { %6399 = vmatpush.bf16.msrb.mxu0 %v12773_v39  ;;  %v14697_v35 = vor.u32 %v18638_v13, %v14696_v0  ;;  %v15290_v39 = vor.u32 %v18786_v45, %v15289_v28  ;;  %v15233_v0 = vld [vmem:[%s29162_s7] sm:$0xf]  ;;  %v14957_v13 = vor.u32 %v18703_v58, %v14956_v2  ;;  %v18690_v53 = vld [vmem:[%s29159_s5 + $0x1170] sm:$0xf0]  ;;  %v18664_v2 = vld [vmem:[%s29159_s5 + $0x10a0] sm:$0xf0] }
 0x38d   :  { %6413 = vmatpush.bf16.msrb.mxu2 %v13137_v40  ;;  %v6078_v62 = vadd.f32 %v24031_v5, %v6065_v37  ;;  %v18716_v5 = vld [vmem:[%s29159_s5 + $0x1240] sm:$0xf0] }
 0x38e   :  { %v15009_v40 = vor.u32 %v18716_v5, %v15008_v10  ;;  %v24541_v54 = vpop.f32.mrf.mxu0  ;;  %v13812_v10 = vld [vmem:[%s29159_s5 + $0x8b8] sm:$0xf]  ;;  %v18417_v5 = vld [vmem:[%s29159_s5 + $0x8e8] sm:$0xf0]  ;;  %v18404_v58 = vld [vmem:[%s29159_s5 + $0x880] sm:$0xf0] }
 0x38f   :  { %6356 = vmatpush.bf16.msrb.mxu3 %v14641_v14  ;;  %10843 = vmatpush.bf16.msrb.mxu1 %v15374_v46  ;;  %v14485_v14 = vor.u32 %v18579_v50, %v14482_v36  ;;  %v6091_v30 = vadd.f32 %v24331_v38, %v6078_v62  ;;  %v14433_v46 = vor.u32 %v18566_v31, %v14430_v15  ;;  %v18553_v38 = vld [vmem:[%s29159_s5 + $0xd2c] sm:$0xf]  ;;  %v14904_v50 = vld [vmem:[%s29159_s5 + $0x1140] sm:$0xf]  ;;  %v24573_v36 = vpop.f32.mrf.mxu2  ;;  %v16297_v62 = vld [vmem:[%s29162_s7 + $0x850] sm:$0xf] }
 0x390   :  { %6400 = vmatpush.bf16.msrb.mxu0 %v12721_v1  ;;  %6414 = vmatmul.bf16.vlgmr.msrb.gmra.mxu2 %v20807_v34  ;;  %v15061_v34 = vor.u32 %v18729_v55, %v15060_v9  ;;  %v18443_v1 = vld [vmem:[%s29159_s5 + $0x9b8] sm:$0xf0]  ;;  %v13864_v9 = vld [vmem:[%s29159_s5 + $0x920] sm:$0xf]  ;;  %v18430_v55 = vld [vmem:[%s29159_s5 + $0x950] sm:$0xf0]  ;;  %v14905_v28 = vor.u32 %v18690_v53, %v14904_v50 }
 0x391   :  { %6458 = vmatpush.bf16.msra.mxu2 %v15165_v21  ;;  %v24539_v48 = vadd.f32 %v24372_v3, %v6091_v30  ;;  %v6066_v21 = vpop.f32.mrf.mxu3  ;;  %v15262_v3 = vor.u32 %v18779_v24, %v15261_v42  ;;  %v13917_v16 = vor.u32 %v18443_v1, %v13916_v4  ;;  %v13865_v45 = vor.u32 %v18430_v55, %v13864_v9  ;;  %v14436_v30 = vld [vmem:[%s29159_s5 + $0xd98] sm:$0xf]  ;;  %v16101_v1 = vld [vmem:[%s29162_s7 + $0x6c8] sm:$0xf]  ;;  %v18391_v55 = vld [vmem:[%s29159_s5 + $0x818] sm:$0xf0] }
 0x392   :  { %v13813_v42 = vor.u32 %v18417_v5, %v13812_v10  ;;  %v16269_v24 = vld [vmem:[%s29162_s7 + $0x818] sm:$0xf]  ;;  %v13760_v21 = vld [vmem:[%s29159_s5 + $0x850] sm:$0xf]  ;;  %v13708_v9 = vld [vmem:[%s29159_s5 + $0x7e8] sm:$0xf] }
 0x393   :  { %6357 = vmatpush.bf16.msrb.mxu3 %v14589_v63  ;;  %10844 = vmatpush.bf16.msrb.mxu1 %v15346_v8  ;;  %v14378_v63 = vld [vmem:[%s29159_s5 + $0xd5c] sm:$0xf0]  ;;  %v18599_v8 = vld [vmem:[%s29159_s5 + $0xe98] sm:$0xf0]  ;;  %v18378_v10 = vld [vmem:[%s29159_s5 + $0x7b0] sm:$0xf0] }
 0x394   :  { %6445 = vmatpush.bf16.msra.mxu0 %v14749_v56  ;;  %v14381_v56 = vor.u32 %v18553_v38, %v14378_v63  ;;  %v14541_v37 = vor.u32 %v18599_v8, %v14540_v51  ;;  %v14800_v38 = vld [vmem:[%s29159_s5 + $0x1070] sm:$0xf]  ;;  %v15877_v8 = vld [vmem:[%s29162_s7 + $0x508] sm:$0xf]  ;;  %v16045_v5 = vld [vmem:[%s29162_s7 + $0x658] sm:$0xf] }
 0x395   :  { %6401 = vmatmul.bf16.vlgmr.msrb.gmra.mxu0 %v20729_v52  ;;  %6459 = vmatpush.bf16.msra.mxu2 %v15113_v18  ;;  %v14645_v52 = vor.u32 %v18625_v27, %v14644_v11  ;;  %v19045_v18 = vld [vmem:[%s29162_s7 + $0x8a0] sm:$0xf0]  ;;  %v18586_v27 = vld [vmem:[%s29159_s5 + $0xe30] sm:$0xf0]  ;;  %v14384_v51 = vld [vmem:[%s29159_s5 + $0xd30] sm:$0xf] }
 0x396   :  { %v16326_v11 = vor.u32 %v19045_v18, %v16325_v25  ;;  %v6157_v31 = vpop.f32.mrf.mxu0  ;;  %v19024_v25 = vld [vmem:[%s29162_s7 + $0x7f8] sm:$0xf0] }
 0x397   :  { %6358 = vmatpush.bf16.msrb.mxu3 %v14537_v61  ;;  %10845 = vmatpush.bf16.msrb.mxu1 %v15318_v57  ;;  %v18772_v61 = vld [vmem:[%s29162_s7 + $0x18] sm:$0xf0]  ;;  %v6484_v57 = vmax.f32 %v22121_v12, 0.0  ;;  %v19038_v12 = vld [vmem:[%s29162_s7 + $0x868] sm:$0xf0]  ;;  %v6170_v63 = vpop.f32.mrf.mxu2 }
 0x398   :  { %6446 = vmatpush.bf16.msra.mxu0 %v14697_v35  ;;  %v15234_v35 = vor.u32 %v18772_v61, %v15233_v0  ;;  %v16298_v44 = vor.u32 %v19038_v12, %v16297_v62  ;;  %v14801_v0 = vor.u32 %v18664_v2, %v14800_v38  ;;  %v13761_v61 = vor.u32 %v18404_v58, %v13760_v21  ;;  %v18926_v12 = vld [vmem:[%s29162_s7 + $0x4e8] sm:$0xf0]  ;;  %v13604_v2 = vld [vmem:[%s29159_s5 + $0x718] sm:$0xf] }
 0x399   :  { %6460 = vmatpush.bf16.msra.mxu2 %v15061_v34  ;;  %v14852_v34 = vld [vmem:[%s29159_s5 + $0x10d8] sm:$0xf]  ;;  %v24600_v15 = vpop.f32.mrf.mxu3  ;;  %v13709_v62 = vor.u32 %v18391_v55, %v13708_v9  ;;  %v19010_v38 = vld [vmem:[%s29162_s7 + $0x788] sm:$0xf0]  ;;  %v15216_v9 = vld [vmem:[%s29159_s5 + $0x13b0] sm:$0xf] }
 0x39a   :  { %v14853_v49 = vor.u32 %v18677_v26, %v14852_v34  ;;  %v19017_v34 = vld [vmem:[%s29162_s7 + $0x7c0] sm:$0xf0]  ;;  %v13656_v26 = vld [vmem:[%s29159_s5 + $0x780] sm:$0xf]  ;;  %v18365_v21 = vld [vmem:[%s29159_s5 + $0x748] sm:$0xf0] }
 0x39b   :  { %6359 = vmatpush.bf16.msrb.mxu3 %v14485_v14  ;;  %10846 = vmatpush.bf16.msrb.mxu1 %v15290_v39  ;;  %v14488_v14 = vld [vmem:[%s29159_s5 + $0xe00] sm:$0xf]  ;;  %v24611_v39 = vpack.c.bf16 %v6484_v57, %v6484_v57  ;;  %v18982_v57 = vld [vmem:[%s29162_s7 + $0x6a8] sm:$0xf0]  ;;  %v18768_v55 = vld [vmem:[%s29159_s5 + $0x13e0] sm:$0xf0] }
 0x39c   :  { %6447 = vmatpush.bf16.msra.mxu0 %v14645_v52  ;;  %v14489_v52 = vor.u32 %v18586_v27, %v14488_v14 }
 0x39d   :  { %6461 = vmatpush.bf16.msra.mxu2 %v15009_v40  ;;  %v19031_v40 = vld [vmem:[%s29162_s7 + $0x830] sm:$0xf0] }
 0x39e   :  { %v24663_v18 = vpop.f32.mrf.mxu0 }
 0x39f   :  { %6360 = vmatpush.bf16.msrb.mxu3 %v14433_v46  ;;  %10847 = vmatpush.bf16.msrb.mxu1 %v15262_v3  ;;  %v18573_v46 = vld [vmem:[%s29159_s5 + $0xdc8] sm:$0xf0]  ;;  %v16270_v3 = vor.u32 %v19031_v40, %v16269_v24  ;;  %v24678_v14 = vpop.f32.mrf.mxu1  ;;  %v18919_v24 = vld [vmem:[%s29162_s7 + $0x4b0] sm:$0xf0]  ;;  %v16185_v40 = vld [vmem:[%s29162_s7 + $0x770] sm:$0xf] }
 0x3a0   :  { %6448 = vmatpush.bf16.msra.mxu0 %v14593_v29  ;;  %v14437_v4 = vor.u32 %v18573_v46, %v14436_v30  ;;  %v18989_v29 = vld [vmem:[%s29162_s7 + $0x6e0] sm:$0xf0]  ;;  %v15821_v46 = vld [vmem:[%s29162_s7 + $0x498] sm:$0xf] }
 0x3a1   :  { %6462 = vmatpush.bf16.msra.mxu2 %v14957_v13  ;;  %v18933_v13 = vld [vmem:[%s29162_s7 + $0x520] sm:$0xf0]  ;;  %v6118_v50 = vpop.f32.mrf.mxu3  ;;  %v16102_v53 = vor.u32 %v18989_v29, %v16101_v1  ;;  %v15822_v29 = vor.u32 %v18919_v24, %v15821_v46  ;;  %v6488_v24 = vmax.f32 %v23316_v43, 0.0  ;;  %v19262_v43 = vld [vmem:[%s29162_s7 + $0xf68] sm:$0xf0] }
 0x3a2   :  { %v15878_v27 = vor.u32 %v18933_v13, %v15877_v8  ;;  %v13605_v8 = vor.u32 %v18365_v21, %v13604_v2  ;;  %v19003_v13 = vld [vmem:[%s29162_s7 + $0x750] sm:$0xf0]  ;;  %v15989_v50 = vld [vmem:[%s29162_s7 + $0x5e8] sm:$0xf]  ;;  %v17193_v2 = vld [vmem:[%s29162_s7 + $0xf50] sm:$0xf] }
 0x3a3   :  { %6361 = vmatpush.bf16.msrb.mxu3 %v14381_v56  ;;  %10848 = vmatpush.bf16.msrb.mxu1 %v15234_v35  ;;  %v18560_v56 = vld [vmem:[%s29159_s5 + $0xd60] sm:$0xf0]  ;;  %v16073_v35 = vld [vmem:[%s29162_s7 + $0x690] sm:$0xf] }
 0x3a4   :  { %6449 = vmatpush.bf16.msra.mxu0 %v14541_v37  ;;  %v14385_v37 = vor.u32 %v18560_v56, %v14384_v51  ;;  %v16074_v31 = vor.u32 %v18982_v57, %v16073_v35  ;;  %v15793_v51 = vld [vmem:[%s29162_s7 + $0x460] sm:$0xf]  ;;  %v15625_v21 = vld [vmem:[%s29162_s7 + $0x310] sm:$0xf] }
 0x3a5   :  { %6463 = vmatpush.bf16.msra.mxu2 %v14905_v28 }
 0x3a6   :  { %6362 = vmatmul.bf16.vlgmr.msrb.gmra.mxu3 %v21033_v59  ;;  %10849 = vmatmul.bf16.vlgmr.msrb.gmra.mxu1 %v24611_v39  ;;  %v6209_v63 = vpop.f32.mrf.mxu0 }
 0x3a7   :  { %6419 = vmatpush.bf16.msra.mxu3 %v13917_v16  ;;  %10893 = vmatpush.bf16.msra.mxu1 %v16326_v11  ;;  %v16241_v16 = vld [vmem:[%s29162_s7 + $0x7e0] sm:$0xf]  ;;  %v2046_v11 = vperm.slane %v24092_v41, 1  ;;  %v16213_v41 = vld [vmem:[%s29162_s7 + $0x7a8] sm:$0xf]  ;;  %v6248_v1 = vpop.f32.mrf.mxu1 }
 0x3a8   :  { %6450 = vmatpush.bf16.msra.mxu0 %v14489_v52  ;;  %v16242_v28 = vor.u32 %v19024_v25, %v16241_v16  ;;  %v18975_v52 = vld [vmem:[%s29162_s7 + $0x670] sm:$0xf0]  ;;  %v16214_v30 = vor.u32 %v19017_v34, %v16213_v41  ;;  %v18352_v25 = vld [vmem:[%s29159_s5 + $0x6e0] sm:$0xf0]  ;;  %v18898_v63 = vld [vmem:[%s29162_s7 + $0x408] sm:$0xf0] }
 0x3a9   :  { %6464 = vmatpush.bf16.msra.mxu2 %v14853_v49  ;;  %v6130_v49 = vadd.f32 %v24247_v33, %v2046_v11  ;;  %v6142_v33 = vpop.f32.mrf.mxu3  ;;  %v15765_v11 = vld [vmem:[%s29162_s7 + $0x428] sm:$0xf] }
 0x3ab   :  { %6420 = vmatpush.bf16.msra.mxu3 %v13865_v45  ;;  %10894 = vmatpush.bf16.msra.mxu1 %v16298_v44  ;;  %v15849_v45 = vld [vmem:[%s29162_s7 + $0x4d0] sm:$0xf]  ;;  %v6143_v58 = vadd.f32 %v6142_v33, %v6130_v49 }
 0x3ac   :  { %6451 = vmatpush.bf16.msra.mxu0 %v14437_v4  ;;  %v15850_v44 = vor.u32 %v18926_v12, %v15849_v45  ;;  %v16017_v4 = vld [vmem:[%s29162_s7 + $0x620] sm:$0xf] }
 0x3ad   :  { %6465 = vmatpush.bf16.msra.mxu2 %v14801_v0  ;;  %v6156_v56 = vadd.f32 %v24541_v54, %v6143_v58  ;;  %v18912_v0 = vld [vmem:[%s29162_s7 + $0x478] sm:$0xf0]  ;;  %v13552_v54 = vld [vmem:[%s29159_s5 + $0x6b0] sm:$0xf]  ;;  %v16129_v45 = vld [vmem:[%s29162_s7 + $0x700] sm:$0xf] }
 0x3ae   :  { %v15794_v35 = vor.u32 %v18912_v0, %v15793_v51  ;;  %v18870_v58 = vld [vmem:[%s29162_s7 + $0x328] sm:$0xf0]  ;;  %v15709_v51 = vld [vmem:[%s29162_s7 + $0x3b8] sm:$0xf] }
 0x3af   :  { %6421 = vmatpush.bf16.msra.mxu3 %v13813_v42  ;;  %10895 = vmatpush.bf16.msra.mxu1 %v16270_v3  ;;  %v13657_v42 = vor.u32 %v18378_v10, %v13656_v26  ;;  %v16186_v3 = vor.u32 %v19010_v38, %v16185_v40  ;;  %v19269_v26 = vld [vmem:[%s29162_s7 + $0xfa0] sm:$0xf0]  ;;  %v15217_v10 = vor.u32 %v18768_v55, %v15216_v9  ;;  %v24800_v46 = vpop.f32.mrf.mxu2  ;;  %v15737_v38 = vld [vmem:[%s29162_s7 + $0x3f0] sm:$0xf] }
 0x3b0   :  { %6452 = vmatpush.bf16.msra.mxu0 %v14385_v37  ;;  %6466 = vmatmul.bf16.vlgmr.msra.gmra.mxu2 %v21066_v17  ;;  %v16046_v17 = vor.u32 %v18975_v52, %v16045_v5  ;;  %v6169_v37 = vadd.f32 %v24573_v36, %v6156_v56  ;;  %v18996_v36 = vld [vmem:[%s29162_s7 + $0x718] sm:$0xf0]  ;;  %v15653_v5 = vld [vmem:[%s29162_s7 + $0x348] sm:$0xf]  ;;  %v15961_v52 = vld [vmem:[%s29162_s7 + $0x5b0] sm:$0xf]  ;;  %v15738_v1 = vor.u32 %v18898_v63, %v15737_v38 }
 0x3b1   :  { %10880 = vmatpush.bf16.msrb.mxu2 %v16102_v53  ;;  %v18961_v53 = vld [vmem:[%s29162_s7 + $0x600] sm:$0xf0]  ;;  %v6144_v41 = vpop.f32.mrf.mxu3  ;;  %v18891_v56 = vld [vmem:[%s29162_s7 + $0x3d0] sm:$0xf0]  ;;  %v15626_v0 = vor.u32 %v18870_v58, %v15625_v21  ;;  %v16745_v38 = vld [vmem:[%s29162_s7 + $0xbd0] sm:$0xf] }
 0x3b2   :  { %v24778_v12 = vpop.f32.mrf.mxu0  ;;  %v15990_v34 = vor.u32 %v18961_v53, %v15989_v50  ;;  %v18940_v50 = vld [vmem:[%s29162_s7 + $0x558] sm:$0xf0]  ;;  %v15710_v55 = vor.u32 %v18891_v56, %v15709_v51  ;;  %v19157_v41 = vld [vmem:[%s29162_s7 + $0xc20] sm:$0xf0]  ;;  %v19150_v63 = vld [vmem:[%s29162_s7 + $0xbe8] sm:$0xf0] }
 0x3b3   :  { %6422 = vmatpush.bf16.msra.mxu3 %v13761_v61  ;;  %10896 = vmatpush.bf16.msra.mxu1 %v16242_v28  ;;  %v16157_v61 = vld [vmem:[%s29162_s7 + $0x738] sm:$0xf]  ;;  %v18905_v28 = vld [vmem:[%s29162_s7 + $0x440] sm:$0xf0] }
 0x3b4   :  { %10867 = vmatpush.bf16.msrb.mxu0 %v15878_v27  ;;  %v16158_v57 = vor.u32 %v19003_v13, %v16157_v61  ;;  %v13553_v27 = vor.u32 %v18352_v25, %v13552_v54  ;;  %v15766_v49 = vor.u32 %v18905_v28, %v15765_v11  ;;  %v17165_v13 = vld [vmem:[%s29162_s7 + $0xf18] sm:$0xf]  ;;  %v18863_v54 = vld [vmem:[%s29162_s7 + $0x2f0] sm:$0xf0]  ;;  %v15905_v25 = vld [vmem:[%s29162_s7 + $0x540] sm:$0xf] }
 0x3b5   :  { %6453 = vmatmul.bf16.vlgmr.msra.gmra.mxu0 %v21033_v59  ;;  %10881 = vmatpush.bf16.msrb.mxu2 %v16074_v31  ;;  %v18968_v59 = vld [vmem:[%s29162_s7 + $0x638] sm:$0xf0]  ;;  %v17221_v31 = vld [vmem:[%s29162_s7 + $0xf88] sm:$0xf]  ;;  %v15681_v11 = vld [vmem:[%s29162_s7 + $0x380] sm:$0xf] }
 0x3b6   :  { %v16018_v16 = vor.u32 %v18968_v59, %v16017_v4  ;;  %v17222_v40 = vor.u32 %v19269_v26, %v17221_v31  ;;  %v15933_v4 = vld [vmem:[%s29162_s7 + $0x578] sm:$0xf]  ;;  %v18947_v59 = vld [vmem:[%s29162_s7 + $0x590] sm:$0xf0]  ;;  %v16773_v28 = vld [vmem:[%s29162_s7 + $0xc08] sm:$0xf] }
 0x3b7   :  { %6423 = vmatpush.bf16.msra.mxu3 %v13709_v62  ;;  %10897 = vmatpush.bf16.msra.mxu1 %v16214_v30  ;;  %v24776_v62 = vadd.f32 %v24456_v60, %v6169_v37  ;;  %v18877_v60 = vld [vmem:[%s29162_s7 + $0x360] sm:$0xf0]  ;;  %v24798_v30 = vpop.f32.mrf.mxu1  ;;  %v15934_v61 = vor.u32 %v18947_v59, %v15933_v4  ;;  %v6222_v9 = vpop.f32.mrf.mxu2  ;;  %v16997_v37 = vld [vmem:[%s29162_s7 + $0xdc8] sm:$0xf]  ;;  %v19248_v31 = vld [vmem:[%s29162_s7 + $0xef8] sm:$0xf0] }
 0x3b8   :  { %10868 = vmatpush.bf16.msrb.mxu0 %v15850_v44  ;;  %v18954_v44 = vld [vmem:[%s29162_s7 + $0x5c8] sm:$0xf0]  ;;  %v15654_v33 = vor.u32 %v18877_v60, %v15653_v5  ;;  %v18856_v5 = vld [vmem:[%s29162_s7 + $0x2b8] sm:$0xf0]  ;;  %v6487_v60 = vmax.f32 %v23018_v7, 0.0 }
 0x3b9   :  { %10882 = vmatpush.bf16.msrb.mxu2 %v16046_v17  ;;  %v15962_v17 = vor.u32 %v18954_v44, %v15961_v52  ;;  %v16969_v44 = vld [vmem:[%s29162_s7 + $0xd90] sm:$0xf]  ;;  %v18849_v58 = vld [vmem:[%s29162_s7 + $0x280] sm:$0xf0]  ;;  %v16941_v4 = vld [vmem:[%s29162_s7 + $0xd58] sm:$0xf] }
 0x3ba   :  { %v19199_v59 = vld [vmem:[%s29162_s7 + $0xd70] sm:$0xf0]  ;;  %v16717_v56 = vld [vmem:[%s29162_s7 + $0xb98] sm:$0xf] }
 0x3bb   :  { %6424 = vmatpush.bf16.msra.mxu3 %v13657_v42  ;;  %10898 = vmatpush.bf16.msra.mxu1 %v16186_v3  ;;  %v16130_v42 = vor.u32 %v18996_v36, %v16129_v45  ;;  %v17194_v3 = vor.u32 %v19262_v43, %v17193_v2  ;;  %v15906_v36 = vor.u32 %v18940_v50, %v15905_v25  ;;  %v15541_v2 = vld [vmem:[%s29162_s7 + $0x268] sm:$0xf]  ;;  %v18842_v25 = vld [vmem:[%s29162_s7 + $0x248] sm:$0xf0]  ;;  %v16913_v50 = vld [vmem:[%s29162_s7 + $0xd20] sm:$0xf] }
 0x3bc   :  { %10869 = vmatpush.bf16.msrb.mxu0 %v15822_v29  ;;  %v24827_v29 = vpack.c.bf16 %v6488_v24, %v6488_v24  ;;  %v16774_v24 = vor.u32 %v19157_v41, %v16773_v28  ;;  %v24908_v43 = vpack.c.bf16 %v6487_v60, %v6487_v60  ;;  %v18835_v41 = vld [vmem:[%s29162_s7 + $0x210] sm:$0xf0]  ;;  %v19129_v60 = vld [vmem:[%s29162_s7 + $0xb40] sm:$0xf0] }
 0x3bd   :  { %10883 = vmatpush.bf16.msrb.mxu2 %v16018_v16  ;;  %v15597_v16 = vld [vmem:[%s29162_s7 + $0x2d8] sm:$0xf] }
 0x3be   :  { %v15598_v45 = vor.u32 %v18863_v54, %v15597_v16  ;;  %v15513_v16 = vld [vmem:[%s29162_s7 + $0x230] sm:$0xf] }
 0x3bf   :  { %6425 = vmatpush.bf16.msra.mxu3 %v13605_v8  ;;  %10899 = vmatpush.bf16.msra.mxu1 %v16158_v57  ;;  %v6235_v8 = vpop.f32.mrf.mxu0  ;;  %v6300_v53 = vpop.f32.mrf.mxu1  ;;  %v15514_v28 = vor.u32 %v18842_v25, %v15513_v16  ;;  %v19115_v25 = vld [vmem:[%s29162_s7 + $0xad0] sm:$0xf0] }
 0x3c0   :  { %10870 = vmatpush.bf16.msrb.mxu0 %v15794_v35  ;;  %v19213_v35 = vld [vmem:[%s29162_s7 + $0xde0] sm:$0xf0]  ;;  %v19143_v8 = vld [vmem:[%s29162_s7 + $0xbb0] sm:$0xf0]  ;;  %v19192_v53 = vld [vmem:[%s29162_s7 + $0xd38] sm:$0xf0] }
 0x3c1   :  { %10884 = vmatpush.bf16.msrb.mxu2 %v15990_v34  ;;  %v17137_v34 = vld [vmem:[%s29162_s7 + $0xee0] sm:$0xf]  ;;  %v16998_v26 = vor.u32 %v19213_v35, %v16997_v37 }
 0x3c2   :  { %v16689_v35 = vld [vmem:[%s29162_s7 + $0xb60] sm:$0xf] }
 0x3c3   :  { %6426 = vmatpush.bf16.msra.mxu3 %v13553_v27  ;;  %10900 = vmatpush.bf16.msra.mxu1 %v16130_v42  ;;  %v18884_v27 = vld [vmem:[%s29162_s7 + $0x398] sm:$0xf0]  ;;  %v6486_v42 = vmax.f32 %v22600_v47, 0.0  ;;  %v19241_v47 = vld [vmem:[%s29162_s7 + $0xec0] sm:$0xf0] }
 0x3c4   :  { %10871 = vmatpush.bf16.msrb.mxu0 %v15766_v49  ;;  %v15682_v52 = vor.u32 %v18884_v27, %v15681_v11  ;;  %v19206_v49 = vld [vmem:[%s29162_s7 + $0xda8] sm:$0xf0]  ;;  %v17053_v11 = vld [vmem:[%s29162_s7 + $0xe38] sm:$0xf] }
 0x3c5   :  { %10885 = vmatpush.bf16.msrb.mxu2 %v15962_v17  ;;  %v16970_v17 = vor.u32 %v19206_v49, %v16969_v44  ;;  %v19220_v44 = vld [vmem:[%s29162_s7 + $0xe18] sm:$0xf0] }
 0x3c6   :  { %6427 = vmatmul.bf16.vlgmr.msra.gmra.mxu3 %v20877_v22  ;;  %v19255_v22 = vld [vmem:[%s29162_s7 + $0xf30] sm:$0xf0]  ;;  %10901 = vmatmul.bf16.vlgmr.msra.gmra.mxu1 %v24827_v29 }
 0x3c7   :  { %6478 = vmatpush.bf16.msrb.mxu3 %v15217_v10  ;;  %10945 = vmatpush.bf16.msrb.mxu1 %v17222_v40  ;;  %v17166_v57 = vor.u32 %v19255_v22, %v17165_v13  ;;  %v15569_v10 = vld [vmem:[%s29162_s7 + $0x2a0] sm:$0xf]  ;;  %v17138_v40 = vor.u32 %v19248_v31, %v17137_v34  ;;  %v24910_v21 = vpop.f32.mrf.mxu1  ;;  %v15542_v13 = vor.u32 %v18849_v58, %v15541_v2  ;;  %v16885_v34 = vld [vmem:[%s29162_s7 + $0xce8] sm:$0xf]  ;;  %v19101_v2 = vld [vmem:[%s29162_s7 + $0xa60] sm:$0xf0] }
 0x3c8   :  { %10872 = vmatpush.bf16.msrb.mxu0 %v15738_v1  ;;  %v15570_v7 = vor.u32 %v18856_v5, %v15569_v10  ;;  %v24921_v1 = vpack.c.bf16 %v6486_v42, %v6486_v42  ;;  %v16942_v22 = vor.u32 %v19199_v59, %v16941_v4  ;;  %v16661_v10 = vld [vmem:[%s29162_s7 + $0xb28] sm:$0xf]  ;;  %v6117_v5 = vadd.f32 %v24600_v15, %v24539_v48  ;;  %v15457_v48 = vld [vmem:[%s29162_s7 + $0x1c0] sm:$0xf]  ;;  %v16633_v4 = vld [vmem:[%s29162_s7 + $0xaf0] sm:$0xf] }
 0x3c9   :  { %10886 = vmatpush.bf16.msrb.mxu2 %v15934_v61  ;;  %v19234_v61 = vld [vmem:[%s29162_s7 + $0xe88] sm:$0xf0]  ;;  %v6194_v54 = vpop.f32.mrf.mxu3 }
 0x3ca   :  { %v6195_v9 = vadd.f32 %v6194_v54, %v24776_v62  ;;  %v19227_v62 = vld [vmem:[%s29162_s7 + $0xe50] sm:$0xf0]  ;;  %v6492_v58 = vmax.f32 %v6117_v5, 0.0  ;;  %v19122_v59 = vld [vmem:[%s29162_s7 + $0xb08] sm:$0xf0]  ;;  %v6491_v5 = vmax.f32 %v24308_v20, 0.0 }
 0x3cb   :  { %10854 = vmatpush.bf16.msra.mxu3 %v15654_v33  ;;  %10946 = vmatpush.bf16.msrb.mxu1 %v17194_v3  ;;  %v17109_v33 = vld [vmem:[%s29162_s7 + $0xea8] sm:$0xf]  ;;  %v16746_v3 = vor.u32 %v19150_v63, %v16745_v38  ;;  %v16857_v38 = vld [vmem:[%s29162_s7 + $0xcb0] sm:$0xf]  ;;  %v16605_v54 = vld [vmem:[%s29162_s7 + $0xab8] sm:$0xf] }
 0x3cc   :  { %10873 = vmatpush.bf16.msrb.mxu0 %v15710_v55  ;;  %v17110_v51 = vor.u32 %v19241_v47, %v17109_v33  ;;  %v16718_v55 = vor.u32 %v19143_v8, %v16717_v56  ;;  %v24965_v27 = vadd.f32 %v24663_v18, %v6195_v9  ;;  %v19185_v18 = vld [vmem:[%s29162_s7 + $0xd00] sm:$0xf0]  ;;  %v16662_v33 = vor.u32 %v19129_v60, %v16661_v10  ;;  %v17865_v20 = vld [vmem:[%s29162_s7 + $0x1490] sm:$0xf] }
 0x3cd   :  { %10887 = vmatpush.bf16.msrb.mxu2 %v15906_v36  ;;  %v16886_v42 = vor.u32 %v19185_v18, %v16885_v34  ;;  %v6485_v56 = vmax.f32 %v22367_v32, 0.0  ;;  %v19094_v32 = vld [vmem:[%s29162_s7 + $0xa28] sm:$0xf0]  ;;  %v25034_v16 = vpack.c.bf16 %v6492_v58, %v6492_v58  ;;  %v16577_v34 = vld [vmem:[%s29162_s7 + $0xa80] sm:$0xf] }
 0x3ce   :  { %v19108_v18 = vld [vmem:[%s29162_s7 + $0xa98] sm:$0xf0]  ;;  %v19381_v10 = vld [vmem:[%s29162_s7 + $0x1320] sm:$0xf0] }
 0x3cf   :  { %10855 = vmatpush.bf16.msra.mxu3 %v15626_v0  ;;  %10947 = vmatpush.bf16.msrb.mxu1 %v17166_v57  ;;  %v17081_v0 = vld [vmem:[%s29162_s7 + $0xe70] sm:$0xf]  ;;  %v19136_v57 = vld [vmem:[%s29162_s7 + $0xb78] sm:$0xf0]  ;;  %v6326_v36 = vpop.f32.mrf.mxu1  ;;  %v25007_v63 = vpop.f32.mrf.mxu2  ;;  %v19073_v58 = vld [vmem:[%s29162_s7 + $0x980] sm:$0xf0] }
 0x3d0   :  { %10874 = vmatpush.bf16.msrb.mxu0 %v15682_v52  ;;  %10888 = vmatmul.bf16.vlgmr.msrb.gmra.mxu2 %v24908_v43  ;;  %v17082_v37 = vor.u32 %v19234_v61, %v17081_v0  ;;  %v16690_v31 = vor.u32 %v19136_v57, %v16689_v35  ;;  %v17025_v52 = vld [vmem:[%s29162_s7 + $0xe00] sm:$0xf]  ;;  %v16829_v0 = vld [vmem:[%s29162_s7 + $0xc78] sm:$0xf]  ;;  %v19171_v61 = vld [vmem:[%s29162_s7 + $0xc90] sm:$0xf0] }
 0x3d1   :  { %10932 = vmatpush.bf16.msra.mxu2 %v16998_v26  ;;  %v17054_v26 = vor.u32 %v19227_v62, %v17053_v11  ;;  %v17026_v47 = vor.u32 %v19220_v44, %v17025_v52  ;;  %v16830_v9 = vor.u32 %v19171_v61, %v16829_v0  ;;  %v16493_v57 = vld [vmem:[%s29162_s7 + $0x9d8] sm:$0xf]  ;;  %v16801_v11 = vld [vmem:[%s29162_s7 + $0xc40] sm:$0xf]  ;;  %v19164_v62 = vld [vmem:[%s29162_s7 + $0xc58] sm:$0xf0] }
 0x3d2   :  { %v24996_v15 = vpop.f32.mrf.mxu0  ;;  %v17893_v36 = vld [vmem:[%s29162_s7 + $0x14c8] sm:$0xf] }
 0x3d3   :  { %10856 = vmatpush.bf16.msra.mxu3 %v15598_v45  ;;  %10948 = vmatpush.bf16.msrb.mxu1 %v17138_v40  ;;  %v16914_v45 = vor.u32 %v19192_v53, %v16913_v50  ;;  %v18828_v40 = vld [vmem:[%s29162_s7 + $0x1d8] sm:$0xf0]  ;;  %v25045_v50 = vld [vmem:[%s29161_s6 + $0x8] sm:$0x1f] }
 0x3d4   :  { %10919 = vmatpush.bf16.msra.mxu0 %v16774_v24  ;;  %v6196_v24 = vpop.f32.mrf.mxu3  ;;  %v2047_v53 = vperm.slane %v25045_v50, 2 }
 0x3d5   :  { %10875 = vmatmul.bf16.vlgmr.msrb.gmra.mxu0 %v24921_v1  ;;  %10933 = vmatpush.bf16.msra.mxu2 %v16970_v17  ;;  %v16549_v17 = vld [vmem:[%s29162_s7 + $0xa48] sm:$0xf]  ;;  %v6490_v24 = vmax.f32 %v23897_v23, 0.0 }
 0x3d6   :  { %15230 = vmatmul.msk.bf16.vlgmr.msrb.gmra.mxu3 %vm5297_vm1, %v21175_v19  ;;  %v15485_v19 = vld [vmem:[%s29162_s7 + $0x1f8] sm:$0xf]  ;;  %v16550_v8 = vor.u32 %v19101_v2, %v16549_v17  ;;  %v6221_v60 = vadd.f32 %v24800_v46, %v2047_v53  ;;  %v19430_v46 = vld [vmem:[%s29162_s7 + $0x14a8] sm:$0xf0]  ;;  %v16437_v2 = vld [vmem:[%s29162_s7 + $0x968] sm:$0xf] }
 0x3d7   :  { %10857 = vmatpush.bf16.msra.mxu3 %v15570_v7  ;;  %10949 = vmatpush.bf16.msrb.mxu1 %v17110_v51  ;;  %v15486_v49 = vor.u32 %v18835_v41, %v15485_v19  ;;  %v19178_v7 = vld [vmem:[%s29162_s7 + $0xcc8] sm:$0xf0]  ;;  %v19087_v19 = vld [vmem:[%s29162_s7 + $0x9f0] sm:$0xf0]  ;;  %v19437_v41 = vld [vmem:[%s29162_s7 + $0x14e0] sm:$0xf0]  ;;  %v16438_v61 = vor.u32 %v19073_v58, %v16437_v2 }
 0x3d8   :  { %10920 = vmatpush.bf16.msra.mxu0 %v16746_v3  ;;  %v15458_v3 = vor.u32 %v18828_v40, %v15457_v48  ;;  %v16858_v51 = vor.u32 %v19178_v7, %v16857_v38  ;;  %v16494_v52 = vor.u32 %v19087_v19, %v16493_v57  ;;  %v17894_v44 = vor.u32 %v19437_v41, %v17893_v36  ;;  %v19080_v48 = vld [vmem:[%s29162_s7 + $0x9b8] sm:$0xf0]  ;;  %v17641_v38 = vld [vmem:[%s29162_s7 + $0x12d0] sm:$0xf]  ;;  %v19374_v7 = vld [vmem:[%s29162_s7 + $0x12e8] sm:$0xf0] }
 0x3d9   :  { %10934 = vmatpush.bf16.msra.mxu2 %v16942_v22  ;;  %v16521_v22 = vld [vmem:[%s29162_s7 + $0xa10] sm:$0xf]  ;;  %v6234_v23 = vadd.f32 %v24778_v12, %v6221_v60  ;;  %v17642_v12 = vor.u32 %v19374_v7, %v17641_v38  ;;  %v16353_v60 = vld [vmem:[%s29162_s7 + $0x8c0] sm:$0xf]  ;;  %v6489_v7 = vmax.f32 %v23661_v6, 0.0 }
 0x3da   :  { %v16522_v35 = vor.u32 %v19094_v32, %v16521_v22  ;;  %v16409_v22 = vld [vmem:[%s29162_s7 + $0x930] sm:$0xf]  ;;  %v19066_v32 = vld [vmem:[%s29162_s7 + $0x948] sm:$0xf0]  ;;  %v19395_v6 = vld [vmem:[%s29162_s7 + $0x1390] sm:$0xf0] }
 0x3db   :  { %10858 = vmatpush.bf16.msra.mxu3 %v15542_v13  ;;  %10950 = vmatpush.bf16.msrb.mxu1 %v17082_v37  ;;  %v16634_v13 = vor.u32 %v19122_v59, %v16633_v4  ;;  %v6287_v37 = vpop.f32.mrf.mxu0  ;;  %v17866_v4 = vor.u32 %v19430_v46, %v17865_v20  ;;  %v25114_v59 = vpack.c.bf16 %v6490_v24, %v6490_v24  ;;  %v17753_v24 = vld [vmem:[%s29162_s7 + $0x13b0] sm:$0xf]  ;;  %v19346_v46 = vld [vmem:[%s29162_s7 + $0x1208] sm:$0xf0] }
 0x3dc   :  { %10921 = vmatpush.bf16.msra.mxu0 %v16718_v55  ;;  %v25048_v55 = vpack.c.bf16 %v6485_v56, %v6485_v56  ;;  %v17613_v56 = vld [vmem:[%s29162_s7 + $0x1298] sm:$0xf]  ;;  %v6247_v0 = vadd.f32 %v24678_v14, %v6234_v23  ;;  %v19416_v14 = vld [vmem:[%s29162_s7 + $0x1438] sm:$0xf0]  ;;  %v17585_v37 = vld [vmem:[%s29162_s7 + $0x1260] sm:$0xf] }
 0x3dd   :  { %10935 = vmatpush.bf16.msra.mxu2 %v16914_v45  ;;  %v16606_v45 = vor.u32 %v19115_v25, %v16605_v54  ;;  %v17529_v20 = vld [vmem:[%s29162_s7 + $0x11f0] sm:$0xf] }
 0x3de   :  { %v17530_v58 = vor.u32 %v19346_v46, %v17529_v20  ;;  %v16047_v20 = vld [vmem:[%s29162_s7 + $0x674] sm:$0xf0]  ;;  %v18860_v46 = vld [vmem:[%s29162_s7 + $0x2dc] sm:$0xf] }
 0x3df   :  { %10859 = vmatpush.bf16.msra.mxu3 %v15514_v28  ;;  %10951 = vmatpush.bf16.msrb.mxu1 %v17054_v26  ;;  %v6274_v28 = vpop.f32.mrf.mxu2  ;;  %v17669_v26 = vld [vmem:[%s29162_s7 + $0x1308] sm:$0xf] }
 0x3e0   :  { %10922 = vmatpush.bf16.msra.mxu0 %v16690_v31  ;;  %v16802_v31 = vor.u32 %v19164_v62, %v16801_v11  ;;  %v17670_v40 = vor.u32 %v19381_v10, %v17669_v26  ;;  %v16410_v11 = vor.u32 %v19066_v32, %v16409_v22  ;;  %v16381_v28 = vld [vmem:[%s29162_s7 + $0x8f8] sm:$0xf] }
 0x3e1   :  { %10936 = vmatpush.bf16.msra.mxu2 %v16886_v42  ;;  %v16465_v42 = vld [vmem:[%s29162_s7 + $0x9a0] sm:$0xf] }
 0x3e3   :  { %10860 = vmatpush.bf16.msra.mxu3 %v15486_v49  ;;  %10952 = vmatpush.bf16.msrb.mxu1 %v17026_v47  ;;  %v16578_v49 = vor.u32 %v19108_v18, %v16577_v34  ;;  %v16466_v47 = vor.u32 %v19080_v48, %v16465_v42  ;;  %v25106_v17 = vpop.f32.mrf.mxu1  ;;  %v19409_v34 = vld [vmem:[%s29162_s7 + $0x1400] sm:$0xf0]  ;;  %v17557_v18 = vld [vmem:[%s29162_s7 + $0x1228] sm:$0xf] }
 0x3e4   :  { %10923 = vmatpush.bf16.msra.mxu0 %v16662_v33  ;;  %v25103_v33 = vpack.c.bf16 %v6491_v5, %v6491_v5  ;;  %v19325_v48 = vld [vmem:[%s29162_s7 + $0x1160] sm:$0xf0] }
 0x3e5   :  { %10937 = vmatpush.bf16.msra.mxu2 %v16858_v51  ;;  %v19423_v51 = vld [vmem:[%s29162_s7 + $0x1470] sm:$0xf0] }
 0x3e6   :  { %10953 = vmatmul.bf16.vlgmr.msrb.gmra.mxu1 %v25034_v16 }
 0x3e7   :  { %10861 = vmatpush.bf16.msra.mxu3 %v15458_v3  ;;  %v17837_v3 = vld [vmem:[%s29162_s7 + $0x1458] sm:$0xf] }
 0x3e8   :  { %10924 = vmatpush.bf16.msra.mxu0 %v16634_v13  ;;  %v17838_v54 = vor.u32 %v19423_v51, %v17837_v3  ;;  %v17501_v3 = vld [vmem:[%s29162_s7 + $0x11b8] sm:$0xf]  ;;  %v19339_v51 = vld [vmem:[%s29162_s7 + $0x11d0] sm:$0xf0] }
 0x3e9   :  { %10938 = vmatpush.bf16.msra.mxu2 %v16830_v9  ;;  %v6259_v13 = vpop.f32.mrf.mxu3  ;;  %v17809_v9 = vld [vmem:[%s29162_s7 + $0x1420] sm:$0xf] }
 0x3ea   :  { %10862 = vmatmul.bf16.vlgmr.msra.gmra.mxu3 %v25048_v55  ;;  %v6260_v25 = vadd.f32 %v6259_v13, %v6247_v0  ;;  %v17810_v19 = vor.u32 %v19416_v14, %v17809_v9  ;;  %v19311_v13 = vld [vmem:[%s29162_s7 + $0x10f0] sm:$0xf0]  ;;  %v19388_v9 = vld [vmem:[%s29162_s7 + $0x1358] sm:$0xf0] }
 0x3eb   :  { %10906 = vmatpush.bf16.msrb.mxu3 %v16550_v8  ;;  %v19367_v8 = vld [vmem:[%s29162_s7 + $0x12b0] sm:$0xf0]  ;;  %v6378_v62 = vpop.f32.mrf.mxu1  ;;  %v19332_v14 = vld [vmem:[%s29162_s7 + $0x1198] sm:$0xf0] }
 0x3ec   :  { %10925 = vmatpush.bf16.msra.mxu0 %v16606_v45  ;;  %v17614_v53 = vor.u32 %v19367_v8, %v17613_v56  ;;  %v6273_v57 = vadd.f32 %v25007_v63, %v6260_v25  ;;  %v19059_v45 = vld [vmem:[%s29162_s7 + $0x910] sm:$0xf0]  ;;  %v17781_v63 = vld [vmem:[%s29162_s7 + $0x13e8] sm:$0xf]  ;;  %v25219_v56 = vpack.c.bf16 %v6489_v7, %v6489_v7  ;;  %v17473_v25 = vld [vmem:[%s29162_s7 + $0x1180] sm:$0xf] }
 0x3ed   :  { %10939 = vmatpush.bf16.msra.mxu2 %v16802_v31  ;;  %v19353_v31 = vld [vmem:[%s29162_s7 + $0x1240] sm:$0xf0]  ;;  %v16382_v26 = vor.u32 %v19059_v45, %v16381_v28  ;;  %v17474_v45 = vor.u32 %v19332_v14, %v17473_v25  ;;  %v18958_v25 = vld [vmem:[%s29162_s7 + $0x5ec] sm:$0xf]  ;;  %v15543_v14 = vld [vmem:[%s29162_s7 + $0x284] sm:$0xf0] }
 0x3ee   :  { %v6286_v36 = vadd.f32 %v24996_v15, %v6273_v57  ;;  %v17558_v42 = vor.u32 %v19353_v31, %v17557_v18  ;;  %v18874_v57 = vld [vmem:[%s29162_s7 + $0x34c] sm:$0xf]  ;;  %v18979_v18 = vld [vmem:[%s29162_s7 + $0x694] sm:$0xf]  ;;  %v16075_v31 = vld [vmem:[%s29162_s7 + $0x6ac] sm:$0xf0] }
 0x3ef   :  { %10907 = vmatpush.bf16.msrb.mxu3 %v16522_v35  ;;  %v19360_v35 = vld [vmem:[%s29162_s7 + $0x1278] sm:$0xf0] }
 0x3f0   :  { %10926 = vmatpush.bf16.msra.mxu0 %v16578_v49  ;;  %10940 = vmatmul.bf16.vlgmr.msra.gmra.mxu2 %v25103_v33  ;;  %v17586_v41 = vor.u32 %v19360_v35, %v17585_v37  ;;  %v25170_v15 = vadd.f32 %v24798_v30, %v6286_v36  ;;  %v17782_v30 = vor.u32 %v19409_v34, %v17781_v63  ;;  %v25183_v49 = vpop.f32.mrf.mxu2  ;;  %v18986_v37 = vld [vmem:[%s29162_s7 + $0x6cc] sm:$0xf]  ;;  %v16103_v35 = vld [vmem:[%s29162_s7 + $0x6e4] sm:$0xf0]  ;;  %v19304_v36 = vld [vmem:[%s29162_s7 + $0x10b8] sm:$0xf0] }
 0x3f1   :  { %10984 = vmatpush.bf16.msrb.mxu2 %v17894_v44  ;;  %v6261_v5 = vpop.f32.mrf.mxu3  ;;  %v17445_v44 = vld [vmem:[%s29162_s7 + $0x1148] sm:$0xf] }
 0x3f2   :  { %v25172_v10 = vpop.f32.mrf.mxu0  ;;  %v17446_v23 = vor.u32 %v19325_v48, %v17445_v44  ;;  %v6494_v63 = vmax.f32 %v25170_v15, 0.0  ;;  %v15627_v5 = vld [vmem:[%s29162_s7 + $0x32c] sm:$0xf0]  ;;  %v17333_v44 = vld [vmem:[%s29162_s7 + $0x1068] sm:$0xf] }
 0x3f3   :  { %10908 = vmatpush.bf16.msrb.mxu3 %v16494_v52  ;;  %10927 = vmatmul.bf16.vlgmr.msra.gmra.mxu0 %v25114_v59  ;;  %v19052_v52 = vld [vmem:[%s29162_s7 + $0x8d8] sm:$0xf0] }
 0x3f4   :  { %10971 = vmatpush.bf16.msrb.mxu0 %v17670_v40  ;;  %v19402_v40 = vld [vmem:[%s29162_s7 + $0x13c8] sm:$0xf0]  ;;  %v16354_v38 = vor.u32 %v19052_v52, %v16353_v60  ;;  %v25281_v48 = vpack.c.bf16 %v6494_v63, %v6494_v63  ;;  %v15963_v63 = vld [vmem:[%s29162_s7 + $0x5cc] sm:$0xf0] }
 0x3f5   :  { %10985 = vmatpush.bf16.msrb.mxu2 %v17866_v4  ;;  %v17754_v2 = vor.u32 %v19402_v40, %v17753_v24  ;;  %v19318_v4 = vld [vmem:[%s29162_s7 + $0x1128] sm:$0xf0]  ;;  %v18972_v40 = vld [vmem:[%s29162_s7 + $0x65c] sm:$0xf] }
 0x3f7   :  { %10909 = vmatpush.bf16.msrb.mxu3 %v16466_v47  ;;  %v17417_v47 = vld [vmem:[%s29162_s7 + $0x1110] sm:$0xf] }
 0x3f8   :  { %10972 = vmatpush.bf16.msrb.mxu0 %v17642_v12  ;;  %v17725_v12 = vld [vmem:[%s29162_s7 + $0x1378] sm:$0xf]  ;;  %v17418_v0 = vor.u32 %v19318_v4, %v17417_v47  ;;  %v6339_v32 = vpop.f32.mrf.mxu2  ;;  %v17305_v47 = vld [vmem:[%s29162_s7 + $0x1030] sm:$0xf] }
 0x3f9   :  { %10986 = vmatpush.bf16.msrb.mxu2 %v17838_v54  ;;  %v17726_v22 = vor.u32 %v19395_v6, %v17725_v12  ;;  %v17502_v54 = vor.u32 %v19339_v51, %v17501_v3  ;;  %v18965_v12 = vld [vmem:[%s29162_s7 + $0x624] sm:$0xf]  ;;  %v16019_v6 = vld [vmem:[%s29162_s7 + $0x63c] sm:$0xf0] }
 0x3fa   :  { %v6352_v8 = vpop.f32.mrf.mxu0  ;;  %v18853_v3 = vld [vmem:[%s29162_s7 + $0x2a4] sm:$0xf]  ;;  %v15571_v51 = vld [vmem:[%s29162_s7 + $0x2bc] sm:$0xf0]  ;;  %v16022_v32 = vor.u32 %v18965_v12, %v16019_v6 }
 0x3fb   :  { %10910 = vmatpush.bf16.msrb.mxu3 %v16438_v61  ;;  %v17389_v61 = vld [vmem:[%s29162_s7 + $0x10d8] sm:$0xf] }
 0x3fc   :  { %10973 = vmatpush.bf16.msrb.mxu0 %v17614_v53  ;;  %v17697_v53 = vld [vmem:[%s29162_s7 + $0x1340] sm:$0xf]  ;;  %v17390_v62 = vor.u32 %v19311_v13, %v17389_v61  ;;  %v17277_v13 = vld [vmem:[%s29162_s7 + $0xff8] sm:$0xf] }
 0x3fd   :  { %10987 = vmatpush.bf16.msrb.mxu2 %v17810_v19  ;;  %v17698_v28 = vor.u32 %v19388_v9, %v17697_v53  ;;  %v17361_v19 = vld [vmem:[%s29162_s7 + $0x10a0] sm:$0xf]  ;;  %v15991_v53 = vld [vmem:[%s29162_s7 + $0x604] sm:$0xf0]  ;;  %v18846_v9 = vld [vmem:[%s29162_s7 + $0x26c] sm:$0xf] }
 0x3fe   :  { %v17362_v60 = vor.u32 %v19304_v36, %v17361_v19  ;;  %v15546_v19 = vor.u32 %v18846_v9, %v15543_v14  ;;  %v15431_v36 = vld [vmem:[%s29162_s7 + $0x1a4] sm:$0xf0]  ;;  %v19098_v14 = vld [vmem:[%s29162_s7 + $0xa4c] sm:$0xf] }
 0x3ff   :  { %10911 = vmatpush.bf16.msrb.mxu3 %v16410_v11  ;;  %v15655_v11 = vld [vmem:[%s29162_s7 + $0x364] sm:$0xf0] }
 0x400   :  { %10974 = vmatpush.bf16.msrb.mxu0 %v17586_v41  ;;  %v16106_v41 = vor.u32 %v18986_v37, %v16103_v35  ;;  %v15658_v34 = vor.u32 %v18874_v57, %v15655_v11  ;;  %v25273_v52 = vpop.f32.mrf.mxu2  ;;  %v17249_v11 = vld [vmem:[%s29162_s7 + $0xfc0] sm:$0xf]  ;;  %v15879_v9 = vld [vmem:[%s29162_s7 + $0x524] sm:$0xf0] }
 0x401   :  { %10988 = vmatpush.bf16.msrb.mxu2 %v17782_v30  ;;  %v19297_v30 = vld [vmem:[%s29162_s7 + $0x1080] sm:$0xf0] }
 0x402   :  { %v17334_v7 = vor.u32 %v19297_v30, %v17333_v44  ;;  %v18811_v44 = vld [vmem:[%s29162_s7 + $0x154] sm:$0xf]  ;;  %v15403_v30 = vld [vmem:[%s29162_s7 + $0x16c] sm:$0xf0] }
 0x403   :  { %10912 = vmatpush.bf16.msrb.mxu3 %v16382_v26  ;;  %v18867_v26 = vld [vmem:[%s29162_s7 + $0x314] sm:$0xf]  ;;  %v25271_v15 = vpop.f32.mrf.mxu1 }
 0x404   :  { %10975 = vmatpush.bf16.msrb.mxu0 %v17558_v42  ;;  %v16078_v42 = vor.u32 %v18979_v18, %v16075_v31  ;;  %v15630_v24 = vor.u32 %v18867_v26, %v15627_v5  ;;  %v15515_v18 = vld [vmem:[%s29162_s7 + $0x24c] sm:$0xf0]  ;;  %v6493_v31 = vmax.f32 %v24965_v27, 0.0  ;;  %v2048_v26 = vperm.slane %v25045_v50, 3 }
 0x405   :  { %10989 = vmatpush.bf16.msrb.mxu2 %v17754_v2  ;;  %v19290_v2 = vld [vmem:[%s29162_s7 + $0x1048] sm:$0xf0] }
 0x406   :  { %v17306_v8 = vor.u32 %v19290_v2, %v17305_v47  ;;  %v15487_v47 = vld [vmem:[%s29162_s7 + $0x214] sm:$0xf0] }
 0x407   :  { %10913 = vmatpush.bf16.msrb.mxu3 %v16354_v38  ;;  %v15599_v38 = vld [vmem:[%s29162_s7 + $0x2f4] sm:$0xf0] }
 0x408   :  { %10976 = vmatpush.bf16.msrb.mxu0 %v17530_v58  ;;  %v16050_v58 = vor.u32 %v18972_v40, %v16047_v20  ;;  %v15602_v4 = vor.u32 %v18860_v46, %v15599_v38  ;;  %v6391_v61 = vpop.f32.mrf.mxu2  ;;  %v15935_v20 = vld [vmem:[%s29162_s7 + $0x594] sm:$0xf0]  ;;  %v19451_v38 = vld [vmem:[%s29162_s7 + $0x1550] sm:$0xf0] }
 0x409   :  { %10990 = vmatpush.bf16.msrb.mxu2 %v17726_v22  ;;  %v19283_v22 = vld [vmem:[%s29162_s7 + $0x1010] sm:$0xf0]  ;;  %v17949_v46 = vld [vmem:[%s29162_s7 + $0x1538] sm:$0xf]  ;;  %v18937_v61 = vld [vmem:[%s29162_s7 + $0x544] sm:$0xf] }
 0x40a   :  { %10914 = vmatmul.bf16.vlgmr.msrb.gmra.mxu3 %v25219_v56  ;;  %v17278_v37 = vor.u32 %v19283_v22, %v17277_v13  ;;  %v17950_v2 = vor.u32 %v19451_v38, %v17949_v46  ;;  %v17921_v22 = vld [vmem:[%s29162_s7 + $0x1500] sm:$0xf]  ;;  %v15823_v46 = vld [vmem:[%s29162_s7 + $0x4b4] sm:$0xf0] }
 0x40b   :  { %10958 = vmatpush.bf16.msra.mxu3 %v17446_v23  ;;  %v25296_v23 = vpop.f32.mrf.mxu3 }
 0x40c   :  { %10977 = vmatpush.bf16.msrb.mxu0 %v17502_v54  ;;  %v15574_v54 = vor.u32 %v18853_v3, %v15571_v51  ;;  %v6312_v12 = vadd.f32 %v25296_v23, %v2048_v26  ;;  %v15406_v3 = vor.u32 %v18811_v44, %v15403_v30  ;;  %v15375_v51 = vld [vmem:[%s29162_s7 + $0x134] sm:$0xf0]  ;;  %v15907_v23 = vld [vmem:[%s29162_s7 + $0x55c] sm:$0xf0]  ;;  %11003 = vmatpush.bf16.msra.mxu1 %v17950_v2  ;;  %v18790_v30 = vld [vmem:[%s29162_s7 + $0xac] sm:$0xf] }
 0x40d   :  { %10991 = vmatpush.bf16.msrb.mxu2 %v17698_v28  ;;  %v18818_v28 = vld [vmem:[%s29162_s7 + $0x18c] sm:$0xf] }
 0x40f   :  { %10959 = vmatpush.bf16.msra.mxu3 %v17418_v0  ;;  %v6443_v0 = vpop.f32.mrf.mxu1 }
 0x410   :  { %10978 = vmatpush.bf16.msrb.mxu0 %v17474_v45  ;;  %v15994_v45 = vor.u32 %v18958_v25, %v15991_v53  ;;  %v18930_v53 = vld [vmem:[%s29162_s7 + $0x50c] sm:$0xf] }
 0x411   :  { %11049 = vmatpush.bf16.msra.mxu2 %v16106_v41  ;;  %v18951_v41 = vld [vmem:[%s29162_s7 + $0x5b4] sm:$0xf] }
 0x412   :  { %v25334_v35 = vpop.f32.mrf.mxu0 }
 0x413   :  { %10960 = vmatpush.bf16.msra.mxu3 %v17390_v62  ;;  %10979 = vmatmul.bf16.vlgmr.msrb.gmra.mxu0 %v25281_v48  ;;  %v6313_v57 = vpop.f32.mrf.mxu3  ;;  %v19276_v62 = vld [vmem:[%s29162_s7 + $0xfd8] sm:$0xf0]  ;;  %v25371_v27 = vpop.f32.mrf.mxu2 }
 0x414   :  { %11023 = vmatpush.bf16.msra.mxu0 %v15658_v34  ;;  %v18839_v34 = vld [vmem:[%s29162_s7 + $0x234] sm:$0xf]  ;;  %v17250_v5 = vor.u32 %v19276_v62, %v17249_v11  ;;  %v15882_v57 = vor.u32 %v18930_v53, %v15879_v9  ;;  %v6325_v11 = vadd.f32 %v24910_v21, %v6312_v12  ;;  %v15291_v12 = vld [vmem:[%s29162_s7 + $0x8c] sm:$0xf0]  ;;  %v16999_v9 = vld [vmem:[%s29162_s7 + $0xde4] sm:$0xf0] }
 0x415   :  { %11050 = vmatpush.bf16.msra.mxu2 %v16078_v42  ;;  %v15966_v42 = vor.u32 %v18951_v41, %v15963_v63  ;;  %v15518_v40 = vor.u32 %v18839_v34, %v15515_v18  ;;  %v15347_v41 = vld [vmem:[%s29162_s7 + $0xfc] sm:$0xf0]  ;;  %v18923_v21 = vld [vmem:[%s29162_s7 + $0x4d4] sm:$0xf]  ;;  %v15851_v34 = vld [vmem:[%s29162_s7 + $0x4ec] sm:$0xf0] }
 0x416   :  { %v19091_v18 = vld [vmem:[%s29162_s7 + $0xa14] sm:$0xf]  ;;  %v15854_v26 = vor.u32 %v18923_v21, %v15851_v34  ;;  %v19042_v21 = vld [vmem:[%s29162_s7 + $0x88c] sm:$0xf]  ;;  %v16327_v34 = vld [vmem:[%s29162_s7 + $0x8a4] sm:$0xf0] }
 0x417   :  { %10961 = vmatpush.bf16.msra.mxu3 %v17362_v60  ;;  %v15434_v60 = vor.u32 %v18818_v28, %v15431_v36  ;;  %v15910_v28 = vor.u32 %v18937_v61, %v15907_v23  ;;  %v18797_v36 = vld [vmem:[%s29162_s7 + $0xe4] sm:$0xf] }
 0x418   :  { %11024 = vmatpush.bf16.msra.mxu0 %v15630_v24  ;;  %v18944_v24 = vld [vmem:[%s29162_s7 + $0x57c] sm:$0xf] }
 0x419   :  { %11051 = vmatpush.bf16.msra.mxu2 %v16050_v58  ;;  %v25388_v58 = vpack.c.bf16 %v6493_v31, %v6493_v31  ;;  %v15938_v0 = vor.u32 %v18944_v24, %v15935_v20  ;;  %v16523_v31 = vld [vmem:[%s29162_s7 + $0xa2c] sm:$0xf0]  ;;  %v18916_v20 = vld [vmem:[%s29162_s7 + $0x49c] sm:$0xf] }
 0x41a   :  { %v6404_v6 = vpop.f32.mrf.mxu0  ;;  %v16526_v24 = vor.u32 %v19091_v18, %v16523_v31 }
 0x41b   :  { %10962 = vmatpush.bf16.msra.mxu3 %v17334_v7  ;;  %v18832_v7 = vld [vmem:[%s29162_s7 + $0x1fc] sm:$0xf] }
 0x41c   :  { %11025 = vmatpush.bf16.msra.mxu0 %v15602_v4  ;;  %v18804_v4 = vld [vmem:[%s29162_s7 + $0x11c] sm:$0xf]  ;;  %v15490_v13 = vor.u32 %v18832_v7, %v15487_v47  ;;  %v15826_v47 = vor.u32 %v18916_v20, %v15823_v46  ;;  %v16330_v20 = vor.u32 %v19042_v21, %v16327_v34  ;;  %v19182_v21 = vld [vmem:[%s29162_s7 + $0xcec] sm:$0xf]  ;;  %v16887_v34 = vld [vmem:[%s29162_s7 + $0xd04] sm:$0xf0] }
 0x41d   :  { %11052 = vmatpush.bf16.msra.mxu2 %v16022_v32  ;;  %v19444_v32 = vld [vmem:[%s29162_s7 + $0x1518] sm:$0xf0]  ;;  %v15378_v62 = vor.u32 %v18804_v4, %v15375_v51  ;;  %v18783_v4 = vld [vmem:[%s29162_s7 + $0x74] sm:$0xf]  ;;  %v19077_v51 = vld [vmem:[%s29162_s7 + $0x9a4] sm:$0xf] }
 0x41e   :  { %v17922_v25 = vor.u32 %v19444_v32, %v17921_v22  ;;  %v18776_v32 = vld [vmem:[%s29162_s7 + $0x3c] sm:$0xf] }
 0x41f   :  { %10963 = vmatpush.bf16.msra.mxu3 %v17306_v8  ;;  %v18825_v8 = vld [vmem:[%s29162_s7 + $0x1c4] sm:$0xf] }
 0x420   :  { %11026 = vmatpush.bf16.msra.mxu0 %v15574_v54  ;;  %v15459_v54 = vld [vmem:[%s29162_s7 + $0x1dc] sm:$0xf0]  ;;  %11004 = vmatpush.bf16.msra.mxu1 %v17922_v25 }
 0x421   :  { %11053 = vmatpush.bf16.msra.mxu2 %v15994_v45  ;;  %v6417_v45 = vpop.f32.mrf.mxu2 }
 0x423   :  { %10964 = vmatpush.bf16.msra.mxu3 %v17278_v37  ;;  %v16551_v37 = vld [vmem:[%s29162_s7 + $0xa64] sm:$0xf0]  ;;  %v25448_v44 = vpop.f32.mrf.mxu1 }
 0x424   :  { %11027 = vmatpush.bf16.msra.mxu0 %v15546_v19  ;;  %v15462_v19 = vor.u32 %v18825_v8, %v15459_v54  ;;  %v16554_v63 = vor.u32 %v19098_v14, %v16551_v37  ;;  %11036 = vmatpush.bf16.msrb.mxu1 %v15882_v57  ;;  %v18909_v8 = vld [vmem:[%s29162_s7 + $0x464] sm:$0xf]  ;;  %v15263_v54 = vld [vmem:[%s29162_s7 + $0x54] sm:$0xf0]  ;;  %v19070_v14 = vld [vmem:[%s29162_s7 + $0x96c] sm:$0xf] }
 0x425   :  { %11054 = vmatpush.bf16.msra.mxu2 %v15966_v42  ;;  %v15319_v42 = vld [vmem:[%s29162_s7 + $0xc4] sm:$0xf0] }
 0x426   :  { %v15322_v7 = vor.u32 %v18790_v30, %v15319_v42  ;;  %v16439_v37 = vld [vmem:[%s29162_s7 + $0x984] sm:$0xf0]  ;;  %v16411_v30 = vld [vmem:[%s29162_s7 + $0x94c] sm:$0xf0]  ;;  %v18895_v42 = vld [vmem:[%s29162_s7 + $0x3f4] sm:$0xf] }
 0x427   :  { %10965 = vmatpush.bf16.msra.mxu3 %v17250_v5  ;;  %v15350_v5 = vor.u32 %v18797_v36, %v15347_v41  ;;  %v15767_v57 = vld [vmem:[%s29162_s7 + $0x444] sm:$0xf0]  ;;  %v16442_v31 = vor.u32 %v19070_v14, %v16439_v37  ;;  %v15683_v14 = vld [vmem:[%s29162_s7 + $0x39c] sm:$0xf0]  ;;  %v19322_v37 = vld [vmem:[%s29162_s7 + $0x114c] sm:$0xf] }
 0x428   :  { %11028 = vmatpush.bf16.msra.mxu0 %v15518_v40  ;;  %v19084_v40 = vld [vmem:[%s29162_s7 + $0x9dc] sm:$0xf]  ;;  %11037 = vmatpush.bf16.msrb.mxu1 %v15854_v26  ;;  %v19203_v26 = vld [vmem:[%s29162_s7 + $0xd94] sm:$0xf] }
 0x429   :  { %11055 = vmatpush.bf16.msra.mxu2 %v15938_v0  ;;  %v6363_v2 = vpop.f32.mrf.mxu3  ;;  %v15795_v0 = vld [vmem:[%s29162_s7 + $0x47c] sm:$0xf0] }
 0x42a   :  { %10966 = vmatmul.bf16.vlgmr.msra.gmra.mxu3 %v25388_v58  ;;  %v15798_v23 = vor.u32 %v18909_v8, %v15795_v0 }
 0x42b   :  { %11010 = vmatpush.bf16.msrb.mxu3 %v15434_v60  ;;  %v6338_v60 = vadd.f32 %v25183_v49, %v6325_v11  ;;  %v16495_v49 = vld [vmem:[%s29162_s7 + $0x9f4] sm:$0xf0]  ;;  %v10852_v22 = vpop.f32.mrf.mxu1 }
 0x42c   :  { %11029 = vmatpush.bf16.msra.mxu0 %v15490_v13  ;;  %11038 = vmatpush.bf16.msrb.mxu1 %v15826_v47  ;;  %v15294_v13 = vor.u32 %v18783_v4, %v15291_v12  ;;  %v19196_v4 = vld [vmem:[%s29162_s7 + $0xd5c] sm:$0xf]  ;;  %v16943_v12 = vld [vmem:[%s29162_s7 + $0xd74] sm:$0xf0] }
 0x42d   :  { %11056 = vmatpush.bf16.msra.mxu2 %v15910_v28  ;;  %v6351_v38 = vadd.f32 %v25172_v10, %v6338_v60  ;;  %v16467_v10 = vld [vmem:[%s29162_s7 + $0x9bc] sm:$0xf0]  ;;  %v18769_v28 = vld [vmem:[%s29162_s7 + $0x4] sm:$0xf]  ;;  %v19063_v60 = vld [vmem:[%s29162_s7 + $0x934] sm:$0xf] }
 0x42e   :  { %v16470_v53 = vor.u32 %v19077_v51, %v16467_v10  ;;  %v18888_v51 = vld [vmem:[%s29162_s7 + $0x3bc] sm:$0xf]  ;;  %v15711_v10 = vld [vmem:[%s29162_s7 + $0x3d4] sm:$0xf0] }
 0x42f   :  { %11011 = vmatpush.bf16.msrb.mxu3 %v15406_v3  ;;  %v6364_v6 = vadd.f32 %v6363_v2, %v6351_v38  ;;  %v16498_v3 = vor.u32 %v19084_v40, %v16495_v49  ;;  %v19035_v38 = vld [vmem:[%s29162_s7 + $0x854] sm:$0xf]  ;;  %v16414_v2 = vor.u32 %v19063_v60, %v16411_v30  ;;  %v15714_v8 = vor.u32 %v18888_v51, %v15711_v10  ;;  %v16271_v22 = vld [vmem:[%s29162_s7 + $0x834] sm:$0xf0]  ;;  %v19168_v10 = vld [vmem:[%s29162_s7 + $0xc7c] sm:$0xf] }
 0x430   :  { %11030 = vmatpush.bf16.msra.mxu0 %v15462_v19  ;;  %11039 = vmatpush.bf16.msrb.mxu1 %v15798_v23  ;;  %v19028_v23 = vld [vmem:[%s29162_s7 + $0x81c] sm:$0xf]  ;;  %v2049_v60 = vperm.slane %v25045_v50, 4  ;;  %v16859_v50 = vld [vmem:[%s29162_s7 + $0xccc] sm:$0xf0] }
 0x431   :  { %v6377_v61 = vadd.f32 %v25106_v17, %v6364_v6  ;;  %v19210_v17 = vld [vmem:[%s29162_s7 + $0xdcc] sm:$0xf]  ;;  %v6365_v36 = vpop.f32.mrf.mxu3  ;;  %v19056_v6 = vld [vmem:[%s29162_s7 + $0x8fc] sm:$0xf] }
 0x432   :  { %v25517_v19 = vpop.f32.mrf.mxu0  ;;  %v17002_v41 = vor.u32 %v19210_v17, %v16999_v9  ;;  %v16355_v17 = vld [vmem:[%s29162_s7 + $0x8dc] sm:$0xf0]  ;;  %v18881_v9 = vld [vmem:[%s29162_s7 + $0x384] sm:$0xf] }
 0x433   :  { %11012 = vmatpush.bf16.msrb.mxu3 %v15378_v62  ;;  %11031 = vmatmul.bf16.vlgmr.msra.gmra.mxu0 %v25048_v55  ;;  %v6390_v25 = vadd.f32 %v25273_v52, %v6377_v61  ;;  %v18902_v52 = vld [vmem:[%s29162_s7 + $0x42c] sm:$0xf]  ;;  %v15266_v62 = vor.u32 %v18776_v32, %v15263_v54  ;;  %v25555_v47 = vpop.f32.mrf.mxu2  ;;  %v19189_v54 = vld [vmem:[%s29162_s7 + $0xd24] sm:$0xf] }
 0x434   :  { %11075 = vmatpush.bf16.msrb.mxu0 %v16554_v63  ;;  %v15770_v45 = vor.u32 %v18902_v52, %v15767_v57  ;;  %v15235_v63 = vld [vmem:[%s29162_s7 + $0x1c] sm:$0xf0]  ;;  %v17447_v52 = vld [vmem:[%s29162_s7 + $0x1164] sm:$0xf0]  ;;  %v15686_v57 = vor.u32 %v18881_v9, %v15683_v14  ;;  %v19021_v36 = vld [vmem:[%s29162_s7 + $0x7e4] sm:$0xf] }
 0x435   :  { %v6495_v11 = vmax.f32 %v6390_v25, 0.0  ;;  %v15238_v40 = vor.u32 %v18769_v28, %v15235_v63  ;;  %v16915_v25 = vld [vmem:[%s29162_s7 + $0xd3c] sm:$0xf0]  ;;  %v17450_v63 = vor.u32 %v19322_v37, %v17447_v52  ;;  %v19434_v9 = vld [vmem:[%s29162_s7 + $0x14cc] sm:$0xf] }
 0x436   :  { %11040 = vmatpush.bf16.msrb.mxu1 %v15770_v45  ;;  %v17895_v14 = vld [vmem:[%s29162_s7 + $0x14e4] sm:$0xf0]  ;;  %v19294_v37 = vld [vmem:[%s29162_s7 + $0x106c] sm:$0xf] }
 0x437   :  { %11013 = vmatpush.bf16.msrb.mxu3 %v15350_v5  ;;  %v25528_v18 = vpack.c.bf16 %v6495_v11, %v6495_v11  ;;  %v16971_v5 = vld [vmem:[%s29162_s7 + $0xdac] sm:$0xf0]  ;;  %v16274_v11 = vor.u32 %v19028_v23, %v16271_v22  ;;  %v17335_v52 = vld [vmem:[%s29162_s7 + $0x1084] sm:$0xf0] }
 0x438   :  { %11076 = vmatpush.bf16.msrb.mxu0 %v16526_v24  ;;  %v15739_v24 = vld [vmem:[%s29162_s7 + $0x40c] sm:$0xf0]  ;;  %v16974_v46 = vor.u32 %v19203_v26, %v16971_v5 }
 0x439   :  { %10992 = vmatmul.bf16.vlgmr.msrb.gmra.mxu2 %v25528_v18  ;;  %v15742_v49 = vor.u32 %v18895_v42, %v15739_v24  ;;  %v17419_v26 = vld [vmem:[%s29162_s7 + $0x112c] sm:$0xf0]  ;;  %v16890_v42 = vor.u32 %v19182_v21, %v16887_v34  ;;  %v19014_v24 = vld [vmem:[%s29162_s7 + $0x7ac] sm:$0xf]  ;;  %v17338_v21 = vor.u32 %v19294_v37, %v17335_v52  ;;  %v17223_v34 = vld [vmem:[%s29162_s7 + $0xfa4] sm:$0xf0] }
 0x43a   :  { %11101 = vmatpush.bf16.msrb.mxu2 %v17002_v41  ;;  %v6456_v0 = vpop.f32.mrf.mxu0  ;;  %v16243_v41 = vld [vmem:[%s29162_s7 + $0x7fc] sm:$0xf0]  ;;  %v19245_v52 = vld [vmem:[%s29162_s7 + $0xee4] sm:$0xf] }
 0x43b   :  { %11014 = vmatpush.bf16.msrb.mxu3 %v15322_v7  ;;  %v16299_v7 = vld [vmem:[%s29162_s7 + $0x86c] sm:$0xf0]  ;;  %11041 = vmatpush.bf16.msrb.mxu1 %v15742_v49  ;;  %v6469_v28 = vpop.f32.mrf.mxu2  ;;  %v16246_v5 = vor.u32 %v19021_v36, %v16243_v41  ;;  %v19301_v0 = vld [vmem:[%s29162_s7 + $0x10a4] sm:$0xf]  ;;  %v16131_v41 = vld [vmem:[%s29162_s7 + $0x71c] sm:$0xf0] }
 0x43c   :  { %11077 = vmatpush.bf16.msrb.mxu0 %v16498_v3  ;;  %v16383_v3 = vld [vmem:[%s29162_s7 + $0x914] sm:$0xf0]  ;;  %v16302_v61 = vor.u32 %v19035_v38, %v16299_v7  ;;  %v18993_v36 = vld [vmem:[%s29162_s7 + $0x704] sm:$0xf] }
 0x43d   :  { %v16386_v32 = vor.u32 %v19056_v6, %v16383_v3  ;;  %v17391_v38 = vld [vmem:[%s29162_s7 + $0x10f4] sm:$0xf0]  ;;  %v19007_v6 = vld [vmem:[%s29162_s7 + $0x774] sm:$0xf]  ;;  %v16187_v3 = vld [vmem:[%s29162_s7 + $0x78c] sm:$0xf0] }
 0x43e   :  { %11102 = vmatpush.bf16.msrb.mxu2 %v16974_v46  ;;  %v19308_v46 = vld [vmem:[%s29162_s7 + $0x10dc] sm:$0xf] }
 0x43f   :  { %11015 = vmatpush.bf16.msrb.mxu3 %v15294_v13  ;;  %v16946_v13 = vor.u32 %v19196_v4, %v16943_v12  ;;  %11042 = vmatpush.bf16.msrb.mxu1 %v15714_v8  ;;  %v17394_v51 = vor.u32 %v19308_v46, %v17391_v38  ;;  %v19259_v46 = vld [vmem:[%s29162_s7 + $0xf54] sm:$0xf]  ;;  %v17195_v38 = vld [vmem:[%s29162_s7 + $0xf6c] sm:$0xf0] }
 0x440   :  { %11078 = vmatpush.bf16.msrb.mxu0 %v16470_v53  ;;  %v19049_v53 = vld [vmem:[%s29162_s7 + $0x8c4] sm:$0xf] }
 0x441   :  { %v16358_v45 = vor.u32 %v19049_v53, %v16355_v17  ;;  %v19161_v53 = vld [vmem:[%s29162_s7 + $0xc44] sm:$0xf]  ;;  %v16803_v17 = vld [vmem:[%s29162_s7 + $0xc5c] sm:$0xf0] }
 0x442   :  { %11103 = vmatpush.bf16.msrb.mxu2 %v16946_v13  ;;  %v16190_v13 = vor.u32 %v19007_v6, %v16187_v3  ;;  %v17198_v3 = vor.u32 %v19259_v46, %v17195_v38  ;;  %v16719_v46 = vld [vmem:[%s29162_s7 + $0xbb4] sm:$0xf0] }
 0x443   :  { %11016 = vmatpush.bf16.msrb.mxu3 %v15266_v62  ;;  %v16918_v62 = vor.u32 %v19189_v54, %v16915_v25  ;;  %11043 = vmatpush.bf16.msrb.mxu1 %v15686_v57  ;;  %v25625_v30 = vpop.f32.mrf.mxu1  ;;  %v19000_v54 = vld [vmem:[%s29162_s7 + $0x73c] sm:$0xf] }
 0x444   :  { %11079 = vmatpush.bf16.msrb.mxu0 %v16442_v31  ;;  %v19315_v31 = vld [vmem:[%s29162_s7 + $0x1114] sm:$0xf] }
 0x445   :  { %v17422_v49 = vor.u32 %v19315_v31, %v17419_v26  ;;  %v19427_v31 = vld [vmem:[%s29162_s7 + $0x1494] sm:$0xf]  ;;  %v17867_v26 = vld [vmem:[%s29162_s7 + $0x14ac] sm:$0xf0] }
 0x446   :  { %11104 = vmatpush.bf16.msrb.mxu2 %v16918_v62 }
 0x447   :  { %11017 = vmatpush.bf16.msrb.mxu3 %v15238_v40  ;;  %v16215_v40 = vld [vmem:[%s29162_s7 + $0x7c4] sm:$0xf0] }
 0x448   :  { %11080 = vmatpush.bf16.msrb.mxu0 %v16414_v2  ;;  %v16218_v7 = vor.u32 %v19014_v24, %v16215_v40  ;;  %v6403_v2 = vadd.f32 %v25334_v35, %v2049_v60  ;;  %v16831_v35 = vld [vmem:[%s29162_s7 + $0xc94] sm:$0xf0]  ;;  %v17307_v60 = vld [vmem:[%s29162_s7 + $0x104c] sm:$0xf0] }
 0x449   :  { %11057 = vmatmul.bf16.vlgmr.msra.gmra.mxu2 %v24908_v43  ;;  %v6428_v4 = vpop.f32.mrf.mxu3 }
 0x44a   :  { %11018 = vmatmul.bf16.vlgmr.msrb.gmra.mxu3 %v24611_v39  ;;  %11105 = vmatpush.bf16.msrb.mxu2 %v16890_v42  ;;  %v6416_v8 = vadd.f32 %v25371_v27, %v6403_v2  ;;  %v16159_v27 = vld [vmem:[%s29162_s7 + $0x754] sm:$0xf0]  ;;  %v16134_v42 = vor.u32 %v18993_v36, %v16131_v41  ;;  %v19280_v2 = vld [vmem:[%s29162_s7 + $0xffc] sm:$0xf]  ;;  %v16747_v36 = vld [vmem:[%s29162_s7 + $0xbec] sm:$0xf0] }
 0x44b   :  { %11062 = vmatpush.bf16.msra.mxu3 %v16330_v20  ;;  %v19175_v20 = vld [vmem:[%s29162_s7 + $0xcb4] sm:$0xf]  ;;  %v10904_v22 = vpop.f32.mrf.mxu1  ;;  %v16162_v57 = vor.u32 %v19000_v54, %v16159_v27  ;;  %v17251_v54 = vld [vmem:[%s29162_s7 + $0xfdc] sm:$0xf0] }
 0x44c   :  { %11081 = vmatpush.bf16.msrb.mxu0 %v16386_v32  ;;  %v16862_v12 = vor.u32 %v19175_v20, %v16859_v50  ;;  %v6429_v23 = vadd.f32 %v6428_v4, %v6416_v8  ;;  %v16834_v32 = vor.u32 %v19168_v10, %v16831_v35  ;;  %v17870_v20 = vor.u32 %v19427_v31, %v17867_v26  ;;  %v17279_v4 = vld [vmem:[%s29162_s7 + $0x1014] sm:$0xf0]  ;;  %v19154_v8 = vld [vmem:[%s29162_s7 + $0xc0c] sm:$0xf]  ;;  %v17811_v22 = vld [vmem:[%s29162_s7 + $0x143c] sm:$0xf0] }
 0x44d   :  { %v17282_v35 = vor.u32 %v19280_v2, %v17279_v4  ;;  %v18815_v31 = vld [vmem:[%s29162_s7 + $0x170] sm:$0xf0]  ;;  %v25803_v26 = vld [vmem:[%s29163_s8] sm:$0x7f] }
 0x44e   :  { %11106 = vmatpush.bf16.msrb.mxu2 %v16862_v12  ;;  %v7296_v2 = vperm.slane %v25803_v26, 0 }
 0x44f   :  { %11063 = vmatpush.bf16.msra.mxu3 %v16302_v61  ;;  %v17363_v61 = vld [vmem:[%s29162_s7 + $0x10bc] sm:$0xf0] }
 0x450   :  { %11082 = vmatpush.bf16.msrb.mxu0 %v16358_v45  ;;  %v17366_v25 = vor.u32 %v19301_v0, %v17363_v61  ;;  %v16806_v45 = vor.u32 %v19161_v53, %v16803_v17  ;;  %v19252_v0 = vld [vmem:[%s29162_s7 + $0xf1c] sm:$0xf]  ;;  %v17167_v61 = vld [vmem:[%s29162_s7 + $0xf34] sm:$0xf0]  ;;  %v15437_v53 = vld [vmem:[%s29162_s7 + $0x190] sm:$0xf] }
 0x451   :  { %v6430_v28 = vpop.f32.mrf.mxu3  ;;  %v18822_v17 = vld [vmem:[%s29162_s7 + $0x1a8] sm:$0xf0] }
 0x452   :  { %11107 = vmatpush.bf16.msrb.mxu2 %v16834_v32  ;;  %v25692_v62 = vpop.f32.mrf.mxu0  ;;  %v19273_v32 = vld [vmem:[%s29162_s7 + $0xfc4] sm:$0xf]  ;;  %v15438_v41 = vor.u32 %v18822_v17, %v15437_v53  ;;  %v19224_v17 = vld [vmem:[%s29162_s7 + $0xe3c] sm:$0xf] }
 0x453   :  { %11064 = vmatpush.bf16.msra.mxu3 %v16274_v11  ;;  %11083 = vmatmul.bf16.vlgmr.msrb.gmra.mxu0 %v25219_v56  ;;  %v6442_v11 = vadd.f32 %v25271_v15, %v6429_v23  ;;  %v19266_v15 = vld [vmem:[%s29162_s7 + $0xf8c] sm:$0xf]  ;;  %v19413_v23 = vld [vmem:[%s29162_s7 + $0x1424] sm:$0xf]  ;;  %v17254_v28 = vor.u32 %v19273_v32, %v17251_v54  ;;  %v15353_v32 = vld [vmem:[%s29162_s7 + $0xe8] sm:$0xf] }
 0x454   :  { %11127 = vmatpush.bf16.msra.mxu0 %v17450_v63  ;;  %v17898_v63 = vor.u32 %v19434_v9, %v17895_v14  ;;  %v17226_v24 = vor.u32 %v19266_v15, %v17223_v34  ;;  %v17814_v37 = vor.u32 %v19413_v23, %v17811_v22  ;;  %v15409_v34 = vld [vmem:[%s29162_s7 + $0x158] sm:$0xf]  ;;  %v10851_v23 = vadd.f32 %v25448_v44, %v7296_v2  ;;  %v18801_v54 = vld [vmem:[%s29162_s7 + $0x100] sm:$0xf0] }
 0x455   :  { %v6455_v40 = vadd.f32 %v25517_v19, %v6442_v11  ;;  %v17839_v19 = vld [vmem:[%s29162_s7 + $0x1474] sm:$0xf0]  ;;  %v15410_v38 = vor.u32 %v18815_v31, %v15409_v34  ;;  %v18794_v34 = vld [vmem:[%s29162_s7 + $0xc8] sm:$0xf0] }
 0x456   :  { %11108 = vmatpush.bf16.msrb.mxu2 %v16806_v45  ;;  %v19147_v45 = vld [vmem:[%s29162_s7 + $0xbd4] sm:$0xf]  ;;  %v17055_v44 = vld [vmem:[%s29162_s7 + $0xe54] sm:$0xf0] }
 0x457   :  { %11065 = vmatpush.bf16.msra.mxu3 %v16246_v5  ;;  %v19287_v5 = vld [vmem:[%s29162_s7 + $0x1034] sm:$0xf]  ;;  %v6468_v6 = vadd.f32 %v25555_v47, %v6455_v40  ;;  %v16775_v47 = vld [vmem:[%s29162_s7 + $0xc24] sm:$0xf0]  ;;  %v15857_v2 = vld [vmem:[%s29162_s7 + $0x4d8] sm:$0xf] }
 0x458   :  { %11128 = vmatpush.bf16.msra.mxu0 %v17422_v49  ;;  %v25719_v49 = vpop.f32.mrf.mxu2  ;;  %v17310_v50 = vor.u32 %v19287_v5, %v17307_v60  ;;  %v16778_v14 = vor.u32 %v19154_v8, %v16775_v47  ;;  %v17111_v40 = vld [vmem:[%s29162_s7 + $0xec4] sm:$0xf0]  ;;  %v19133_v8 = vld [vmem:[%s29162_s7 + $0xb64] sm:$0xf]  ;;  %v17727_v47 = vld [vmem:[%s29162_s7 + $0x1394] sm:$0xf0] }
 0x459   :  { %11109 = vmatmul.bf16.vlgmr.msrb.gmra.mxu2 %v25103_v33 }
 0x45a   :  { %11153 = vmatpush.bf16.msra.mxu2 %v17898_v63  ;;  %v10878_v12 = vpop.f32.mrf.mxu0  ;;  %v19406_v63 = vld [vmem:[%s29162_s7 + $0x13ec] sm:$0xf] }
 0x45b   :  { %11066 = vmatpush.bf16.msra.mxu3 %v16218_v7  ;;  %v19420_v7 = vld [vmem:[%s29162_s7 + $0x145c] sm:$0xf]  ;;  %v15381_v12 = vld [vmem:[%s29162_s7 + $0x120] sm:$0xf] }
 0x45c   :  { %11129 = vmatpush.bf16.msra.mxu0 %v17394_v51  ;;  %v6480_v51 = vpop.f32.mrf.mxu3  ;;  %v17842_v10 = vor.u32 %v19420_v7, %v17839_v19  ;;  %v19399_v7 = vld [vmem:[%s29162_s7 + $0x13b4] sm:$0xf]  ;;  %v17755_v19 = vld [vmem:[%s29162_s7 + $0x13cc] sm:$0xf0] }
 0x45e   :  { %11154 = vmatpush.bf16.msra.mxu2 %v17870_v20 }
 0x45f   :  { %11067 = vmatpush.bf16.msra.mxu3 %v16190_v13  ;;  %v6481_v13 = vadd.f32 %v6480_v51, %v6468_v6  ;;  %v18808_v6 = vld [vmem:[%s29162_s7 + $0x138] sm:$0xf0]  ;;  %v19231_v51 = vld [vmem:[%s29162_s7 + $0xe74] sm:$0xf] }
 0x460   :  { %11130 = vmatpush.bf16.msra.mxu0 %v17366_v25  ;;  %v17170_v25 = vor.u32 %v19252_v0, %v17167_v61  ;;  %v10891_v9 = vpop.f32.mrf.mxu2  ;;  %v16691_v0 = vld [vmem:[%s29162_s7 + $0xb7c] sm:$0xf0]  ;;  %v15382_v61 = vor.u32 %v18808_v6, %v15381_v12  ;;  %v15297_v12 = vld [vmem:[%s29162_s7 + $0x78] sm:$0xf]  ;;  %v18787_v6 = vld [vmem:[%s29162_s7 + $0x90] sm:$0xf0] }
 0x461   :  { %v6496_v27 = vmax.f32 %v6481_v13, 0.0  ;;  %v19392_v13 = vld [vmem:[%s29162_s7 + $0x137c] sm:$0xf]  ;;  %v16694_v53 = vor.u32 %v19133_v8, %v16691_v0 }
 0x462   :  { %11155 = vmatpush.bf16.msra.mxu2 %v17842_v10  ;;  %v17083_v10 = vld [vmem:[%s29162_s7 + $0xe8c] sm:$0xf0]  ;;  %v19112_v0 = vld [vmem:[%s29162_s7 + $0xabc] sm:$0xf] }
 0x463   :  { %11068 = vmatpush.bf16.msra.mxu3 %v16162_v57  ;;  %v17139_v57 = vld [vmem:[%s29162_s7 + $0xefc] sm:$0xf0]  ;;  %v25778_v11 = vpack.c.bf16 %v6496_v27, %v6496_v27  ;;  %v25805_v60 = vpop.f32.mrf.mxu1  ;;  %v17086_v22 = vor.u32 %v19231_v51, %v17083_v10 }
 0x464   :  { %11131 = vmatpush.bf16.msra.mxu0 %v17338_v21  ;;  %v17783_v21 = vld [vmem:[%s29162_s7 + $0x1404] sm:$0xf0]  ;;  %v17142_v15 = vor.u32 %v19245_v52, %v17139_v57  ;;  %v6482_v5 = vpop.f32.mrf.mxu3  ;;  %v15354_v57 = vor.u32 %v18801_v54, %v15353_v32  ;;  %v18920_v32 = vld [vmem:[%s29162_s7 + $0x4b8] sm:$0xf0]  ;;  %v15269_v54 = vld [vmem:[%s29162_s7 + $0x40] sm:$0xf] }
 0x465   :  { %17975 = vmatmul.msk.bf16.vlgmr.msra.gmra.mxu1 %vm1056_vm0, %v25778_v11  ;;  %v17786_v20 = vor.u32 %v19406_v63, %v17783_v21  ;;  %v16663_v52 = vld [vmem:[%s29162_s7 + $0xb44] sm:$0xf0]  ;;  %v17058_v63 = vor.u32 %v19224_v17, %v17055_v44  ;;  %v18934_v21 = vld [vmem:[%s29162_s7 + $0x528] sm:$0xf0]  ;;  %v16109_v17 = vld [vmem:[%s29162_s7 + $0x6d0] sm:$0xf] }
 0x466   :  { %11088 = vmatpush.bf16.msra.mxu1 %v16778_v14  ;;  %11156 = vmatpush.bf16.msra.mxu2 %v17814_v37  ;;  %v17730_v14 = vor.u32 %v19392_v13, %v17727_v47  ;;  %v19126_v37 = vld [vmem:[%s29162_s7 + $0xb2c] sm:$0xf]  ;;  %v19441_v47 = vld [vmem:[%s29162_s7 + $0x1504] sm:$0xf] }
 0x467   :  { %11069 = vmatpush.bf16.msra.mxu3 %v16134_v42  ;;  %v16750_v42 = vor.u32 %v19147_v45, %v16747_v36  ;;  %v17699_v45 = vld [vmem:[%s29162_s7 + $0x135c] sm:$0xf0]  ;;  %v15885_v36 = vld [vmem:[%s29162_s7 + $0x510] sm:$0xf]  ;;  %v16666_v5 = vor.u32 %v19126_v37, %v16663_v52  ;;  %v18990_v44 = vld [vmem:[%s29162_s7 + $0x6e8] sm:$0xf0] }
 0x468   :  { %11132 = vmatpush.bf16.msra.mxu0 %v17310_v50  ;;  %v19140_v50 = vld [vmem:[%s29162_s7 + $0xb9c] sm:$0xf]  ;;  %v16579_v37 = vld [vmem:[%s29162_s7 + $0xa9c] sm:$0xf0]  ;;  %v19378_v52 = vld [vmem:[%s29162_s7 + $0x130c] sm:$0xf] }
 0x46a   :  { %11070 = vmatmul.bf16.vlgmr.msra.gmra.mxu3 %v24827_v29  ;;  %11089 = vmatpush.bf16.msra.mxu1 %v16750_v42  ;;  %v17027_v42 = vld [vmem:[%s29162_s7 + $0xe1c] sm:$0xf0] }
 0x46b   :  { %11114 = vmatpush.bf16.msrb.mxu3 %v17226_v24  ;;  %v19238_v24 = vld [vmem:[%s29162_s7 + $0xeac] sm:$0xf]  ;;  %11157 = vmatpush.bf16.msra.mxu2 %v17786_v20  ;;  %v16635_v20 = vld [vmem:[%s29162_s7 + $0xb0c] sm:$0xf0] }
 0x46c   :  { %11133 = vmatpush.bf16.msra.mxu0 %v17282_v35  ;;  %v17114_v4 = vor.u32 %v19238_v24, %v17111_v40  ;;  %v17758_v35 = vor.u32 %v19399_v7, %v17755_v19  ;;  %v19119_v40 = vld [vmem:[%s29162_s7 + $0xaf4] sm:$0xf]  ;;  %v19448_v7 = vld [vmem:[%s29162_s7 + $0x153c] sm:$0xf]  ;;  %v17951_v19 = vld [vmem:[%s29162_s7 + $0x1554] sm:$0xf0] }
 0x46d   :  { %v10863_v27 = vpop.f32.mrf.mxu3  ;;  %v17954_v8 = vor.u32 %v19448_v7, %v17951_v19  ;;  %v17643_v7 = vld [vmem:[%s29162_s7 + $0x12ec] sm:$0xf0] }
 0x46e   :  { %v10864_v9 = vadd.f32 %v10863_v27, %v10851_v23  ;;  %v17923_v23 = vld [vmem:[%s29162_s7 + $0x151c] sm:$0xf0]  ;;  %v18780_v27 = vld [vmem:[%s29162_s7 + $0x58] sm:$0xf0] }
 0x46f   :  { %11115 = vmatpush.bf16.msrb.mxu3 %v17198_v3  ;;  %v16722_v3 = vor.u32 %v19140_v50, %v16719_v46  ;;  %11158 = vmatpush.bf16.msra.mxu2 %v17758_v35  ;;  %v15886_v46 = vor.u32 %v18934_v21, %v15885_v36  ;;  %v16638_v35 = vor.u32 %v19119_v40, %v16635_v20  ;;  %v15801_v36 = vld [vmem:[%s29162_s7 + $0x468] sm:$0xf]  ;;  %v19046_v40 = vld [vmem:[%s29162_s7 + $0x8a8] sm:$0xf0] }
 0x470   :  { %11134 = vmatpush.bf16.msra.mxu0 %v17254_v28  ;;  %v19385_v28 = vld [vmem:[%s29162_s7 + $0x1344] sm:$0xf]  ;;  %v25889_v31 = vpop.f32.mrf.mxu0  ;;  %v15241_v21 = vld [vmem:[%s29162_s7 + $0x8] sm:$0xf] }
 0x471   :  { %11090 = vmatpush.bf16.msra.mxu1 %v16722_v3  ;;  %v17702_v24 = vor.u32 %v19385_v28, %v17699_v45  ;;  %v15270_v28 = vor.u32 %v18780_v27, %v15269_v54  ;;  %v17671_v45 = vld [vmem:[%s29162_s7 + $0x1324] sm:$0xf0]  ;;  %v18969_v54 = vld [vmem:[%s29162_s7 + $0x640] sm:$0xf0]  ;;  %v16277_v27 = vld [vmem:[%s29162_s7 + $0x820] sm:$0xf] }
 0x472   :  { %v17674_v20 = vor.u32 %v19378_v52, %v17671_v45  ;;  %v15717_v52 = vld [vmem:[%s29162_s7 + $0x3c0] sm:$0xf]  ;;  %v18962_v45 = vld [vmem:[%s29162_s7 + $0x608] sm:$0xf0] }
 0x473   :  { %11116 = vmatpush.bf16.msrb.mxu3 %v17170_v25  ;;  %11135 = vmatmul.bf16.vlgmr.msra.gmra.mxu0 %v25388_v58  ;;  %v10956_v25 = vpop.f32.mrf.mxu1  ;;  %v25926_v10 = vpop.f32.mrf.mxu2 }
 0x474   :  { %11179 = vmatpush.bf16.msrb.mxu0 %v15438_v41  ;;  %v10877_v41 = vadd.f32 %v25692_v62, %v10864_v9  ;;  %v19217_v62 = vld [vmem:[%s29162_s7 + $0xe04] sm:$0xf]  ;;  %11159 = vmatpush.bf16.msra.mxu2 %v17730_v14  ;;  %v17926_v9 = vor.u32 %v19441_v47, %v17923_v23  ;;  %v15745_v23 = vld [vmem:[%s29162_s7 + $0x3f8] sm:$0xf] }
 0x475   :  { %11091 = vmatpush.bf16.msra.mxu1 %v16694_v53  ;;  %v10865_v51 = vpop.f32.mrf.mxu3  ;;  %v19105_v14 = vld [vmem:[%s29162_s7 + $0xa84] sm:$0xf] }
 0x476   :  { %v10890_v50 = vadd.f32 %v25719_v49, %v10877_v41  ;;  %11044 = vmatmul.bf16.vlgmr.msrb.gmra.mxu1 %v24921_v1  ;;  %v18927_v49 = vld [vmem:[%s29162_s7 + $0x4f0] sm:$0xf0]  ;;  %v18913_v41 = vld [vmem:[%s29162_s7 + $0x480] sm:$0xf0]  ;;  %v16305_v51 = vld [vmem:[%s29162_s7 + $0x858] sm:$0xf] }
 0x477   :  { %11117 = vmatpush.bf16.msrb.mxu3 %v17142_v15  ;;  %v15325_v15 = vld [vmem:[%s29162_s7 + $0xb0] sm:$0xf]  ;;  %v15858_v13 = vor.u32 %v18927_v49, %v15857_v2  ;;  %v18906_v49 = vld [vmem:[%s29162_s7 + $0x448] sm:$0xf0] }
 0x478   :  { %11180 = vmatpush.bf16.msrb.mxu0 %v15410_v38  ;;  %v15326_v38 = vor.u32 %v18794_v34, %v15325_v15  ;;  %v25924_v3 = vadd.f32 %v25625_v30, %v10890_v50  ;;  %11160 = vmatpush.bf16.msra.mxu2 %v17702_v24  ;;  %v15298_v30 = vor.u32 %v18787_v6, %v15297_v12  ;;  %v10930_v25 = vpop.f32.mrf.mxu0  ;;  %v18773_v15 = vld [vmem:[%s29162_s7 + $0x20] sm:$0xf0]  ;;  %v16081_v34 = vld [vmem:[%s29162_s7 + $0x698] sm:$0xf]  ;;  %v16333_v24 = vld [vmem:[%s29162_s7 + $0x890] sm:$0xf] }
 0x479   :  { %11092 = vmatpush.bf16.msra.mxu1 %v16666_v5  ;;  %v15802_v50 = vor.u32 %v18913_v41, %v15801_v36  ;;  %v16334_v2 = vor.u32 %v19046_v40, %v16333_v24  ;;  %v16053_v12 = vld [vmem:[%s29162_s7 + $0x660] sm:$0xf]  ;;  %v18976_v6 = vld [vmem:[%s29162_s7 + $0x678] sm:$0xf0]  ;;  %v16249_v36 = vld [vmem:[%s29162_s7 + $0x7e8] sm:$0xf] }
 0x47a   :  { %v19032_v25 = vld [vmem:[%s29162_s7 + $0x838] sm:$0xf0]  ;;  %v19025_v41 = vld [vmem:[%s29162_s7 + $0x800] sm:$0xf0]  ;;  %v15689_v40 = vld [vmem:[%s29162_s7 + $0x388] sm:$0xf] }
 0x47b   :  { %11118 = vmatpush.bf16.msrb.mxu3 %v17114_v4  ;;  %v17030_v4 = vor.u32 %v19217_v62, %v17027_v42  ;;  %11161 = vmatmul.bf16.vlgmr.msra.gmra.mxu2 %v25528_v18  ;;  %v10943_v5 = vpop.f32.mrf.mxu2  ;;  %v16582_v62 = vor.u32 %v19105_v14, %v16579_v37  ;;  %v18983_v42 = vld [vmem:[%s29162_s7 + $0x6b0] sm:$0xf0]  ;;  %v16278_v37 = vor.u32 %v19032_v25, %v16277_v27  ;;  %v19336_v27 = vld [vmem:[%s29162_s7 + $0x11bc] sm:$0xf] }
 0x47c   :  { %11181 = vmatpush.bf16.msrb.mxu0 %v15382_v61  ;;  %v16607_v61 = vld [vmem:[%s29162_s7 + $0xad4] sm:$0xf0]  ;;  %11205 = vmatpush.bf16.msrb.mxu2 %v15886_v46  ;;  %v15242_v46 = vor.u32 %v18773_v15, %v15241_v21  ;;  %v16082_v19 = vor.u32 %v18983_v42, %v16081_v34  ;;  %v19350_v5 = vld [vmem:[%s29162_s7 + $0x122c] sm:$0xf]  ;;  %v16250_v24 = vor.u32 %v19025_v41, %v16249_v36  ;;  %v17005_v36 = vld [vmem:[%s29162_s7 + $0xdd0] sm:$0xf] }
 0x47d   :  { %11093 = vmatpush.bf16.msra.mxu1 %v16638_v35  ;;  %v16610_v53 = vor.u32 %v19112_v0, %v16607_v61  ;;  %v19039_v35 = vld [vmem:[%s29162_s7 + $0x870] sm:$0xf0]  ;;  %v19364_v61 = vld [vmem:[%s29162_s7 + $0x129c] sm:$0xf]  ;;  %v19214_v41 = vld [vmem:[%s29162_s7 + $0xde8] sm:$0xf0] }
 0x47e   :  { %v16306_v47 = vor.u32 %v19039_v35, %v16305_v51 }
 0x47f   :  { %11119 = vmatpush.bf16.msrb.mxu3 %v17086_v22  ;;  %v15829_v22 = vld [vmem:[%s29162_s7 + $0x4a0] sm:$0xf] }
 0x480   :  { %11182 = vmatpush.bf16.msrb.mxu0 %v15354_v57  ;;  %11206 = vmatpush.bf16.msrb.mxu2 %v15858_v13  ;;  %v15830_v57 = vor.u32 %v18920_v32, %v15829_v22  ;;  %v17615_v13 = vld [vmem:[%s29162_s7 + $0x12b4] sm:$0xf0]  ;;  %v18899_v22 = vld [vmem:[%s29162_s7 + $0x410] sm:$0xf0]  ;;  %v16025_v32 = vld [vmem:[%s29162_s7 + $0x628] sm:$0xf] }
 0x481   :  { %11094 = vmatpush.bf16.msra.mxu1 %v16610_v53  ;;  %v17618_v53 = vor.u32 %v19364_v61, %v17615_v13  ;;  %v16026_v14 = vor.u32 %v18969_v54, %v16025_v32  ;;  %v18948_v13 = vld [vmem:[%s29162_s7 + $0x598] sm:$0xf0]  ;;  %v16193_v32 = vld [vmem:[%s29162_s7 + $0x778] sm:$0xf]  ;;  %v19011_v54 = vld [vmem:[%s29162_s7 + $0x790] sm:$0xf0] }
 0x483   :  { %11120 = vmatpush.bf16.msrb.mxu3 %v17058_v63  ;;  %v16110_v63 = vor.u32 %v18990_v44, %v16109_v17  ;;  %v15746_v17 = vor.u32 %v18899_v22, %v15745_v23  ;;  %v19357_v44 = vld [vmem:[%s29162_s7 + $0x1264] sm:$0xf] }
 0x484   :  { %11183 = vmatpush.bf16.msrb.mxu0 %v15326_v38  ;;  %11207 = vmatpush.bf16.msrb.mxu2 %v15830_v57  ;;  %v19371_v38 = vld [vmem:[%s29162_s7 + $0x12d4] sm:$0xf]  ;;  %v18892_v57 = vld [vmem:[%s29162_s7 + $0x3d8] sm:$0xf0] }
 0x485   :  { %11095 = vmatpush.bf16.msra.mxu1 %v16582_v62  ;;  %v15718_v34 = vor.u32 %v18892_v57, %v15717_v52  ;;  %v17559_v62 = vld [vmem:[%s29162_s7 + $0x1244] sm:$0xf0]  ;;  %v16165_v52 = vld [vmem:[%s29162_s7 + $0x740] sm:$0xf] }
 0x487   :  { %11121 = vmatpush.bf16.msrb.mxu3 %v17030_v4  ;;  %v15773_v4 = vld [vmem:[%s29162_s7 + $0x430] sm:$0xf] }
 0x488   :  { %11184 = vmatpush.bf16.msrb.mxu0 %v15298_v30  ;;  %11208 = vmatpush.bf16.msrb.mxu2 %v15802_v50  ;;  %v15774_v0 = vor.u32 %v18906_v49, %v15773_v4  ;;  %v16054_v30 = vor.u32 %v18976_v6, %v16053_v12  ;;  %v19018_v4 = vld [vmem:[%s29162_s7 + $0x7c8] sm:$0xf0]  ;;  %v19343_v12 = vld [vmem:[%s29162_s7 + $0x11f4] sm:$0xf]  ;;  %v17531_v6 = vld [vmem:[%s29162_s7 + $0x120c] sm:$0xf0] }
 0x489   :  { %11140 = vmatpush.bf16.msrb.mxu1 %v17674_v20  ;;  %v15969_v20 = vld [vmem:[%s29162_s7 + $0x5b8] sm:$0xf]  ;;  %v17534_v22 = vor.u32 %v19343_v12, %v17531_v6  ;;  %v18871_v6 = vld [vmem:[%s29162_s7 + $0x330] sm:$0xf0] }
 0x48a   :  { %11122 = vmatmul.bf16.vlgmr.msrb.gmra.mxu3 %v25034_v16  ;;  %11096 = vmatmul.bf16.vlgmr.msra.gmra.mxu1 %v25114_v59  ;;  %v15633_v12 = vld [vmem:[%s29162_s7 + $0x318] sm:$0xf] }
 0x48b   :  { %11172 = vmatpush.bf16.msra.mxu3 %v17954_v8  ;;  %v17646_v8 = vor.u32 %v19371_v38, %v17643_v7  ;;  %v16781_v38 = vld [vmem:[%s29162_s7 + $0xc10] sm:$0xf]  ;;  %v19158_v7 = vld [vmem:[%s29162_s7 + $0xc28] sm:$0xf0] }
 0x48c   :  { %11185 = vmatpush.bf16.msrb.mxu0 %v15270_v28  ;;  %11209 = vmatpush.bf16.msrb.mxu2 %v15774_v0  ;;  %v15997_v28 = vld [vmem:[%s29162_s7 + $0x5f0] sm:$0xf]  ;;  %v15941_v0 = vld [vmem:[%s29162_s7 + $0x580] sm:$0xf] }
 0x48d   :  { %11141 = vmatpush.bf16.msrb.mxu1 %v17646_v8  ;;  %v15998_v42 = vor.u32 %v18962_v45, %v15997_v28  ;;  %v16782_v8 = vor.u32 %v19158_v7, %v16781_v38  ;;  %v15942_v25 = vor.u32 %v18948_v13, %v15941_v0  ;;  %v19004_v45 = vld [vmem:[%s29162_s7 + $0x758] sm:$0xf0]  ;;  %v16977_v38 = vld [vmem:[%s29162_s7 + $0xd98] sm:$0xf]  ;;  %v19207_v7 = vld [vmem:[%s29162_s7 + $0xdb0] sm:$0xf0] }
 0x48e   :  { %v19130_v0 = vld [vmem:[%s29162_s7 + $0xb48] sm:$0xf0]  ;;  %v16949_v13 = vld [vmem:[%s29162_s7 + $0xd60] sm:$0xf] }
 0x48f   :  { %11173 = vmatpush.bf16.msra.mxu3 %v17926_v9  ;;  %v17587_v9 = vld [vmem:[%s29162_s7 + $0x127c] sm:$0xf0] }
 0x490   :  { %11186 = vmatpush.bf16.msrb.mxu0 %v15242_v46  ;;  %v17590_v21 = vor.u32 %v19357_v44, %v17587_v9  ;;  %11210 = vmatpush.bf16.msrb.mxu2 %v15746_v17  ;;  %v18955_v46 = vld [vmem:[%s29162_s7 + $0x5d0] sm:$0xf0]  ;;  %v15913_v17 = vld [vmem:[%s29162_s7 + $0x548] sm:$0xf]  ;;  %v18941_v44 = vld [vmem:[%s29162_s7 + $0x560] sm:$0xf0]  ;;  %v16194_v9 = vor.u32 %v19011_v54, %v16193_v32 }
 0x491   :  { %11142 = vmatpush.bf16.msrb.mxu1 %v17618_v53  ;;  %v15970_v35 = vor.u32 %v18955_v46, %v15969_v20  ;;  %v16137_v20 = vld [vmem:[%s29162_s7 + $0x708] sm:$0xf]  ;;  %v18997_v46 = vld [vmem:[%s29162_s7 + $0x720] sm:$0xf0]  ;;  %v15605_v54 = vld [vmem:[%s29162_s7 + $0x2e0] sm:$0xf] }
 0x493   :  { %11218 = vmatpush.bf16.msrb.mxu3 %v16110_v63  ;;  %11187 = vmatmul.bf16.vlgmr.msrb.gmra.mxu0 %v24611_v39  ;;  %v10915_v63 = vpop.f32.mrf.mxu3 }
 0x494   :  { %11231 = vmatpush.bf16.msra.mxu0 %v16334_v2  ;;  %v10916_v15 = vadd.f32 %v10915_v63, %v25924_v3  ;;  %v18885_v3 = vld [vmem:[%s29162_s7 + $0x3a0] sm:$0xf0]  ;;  %v17562_v2 = vor.u32 %v19350_v5, %v17559_v62  ;;  %11211 = vmatpush.bf16.msrb.mxu2 %v15718_v34  ;;  %v15661_v5 = vld [vmem:[%s29162_s7 + $0x350] sm:$0xf]  ;;  %v18878_v62 = vld [vmem:[%s29162_s7 + $0x368] sm:$0xf0] }
 0x495   :  { %11143 = vmatpush.bf16.msrb.mxu1 %v17590_v21  ;;  %v15690_v49 = vor.u32 %v18885_v3, %v15689_v40  ;;  %v19329_v63 = vld [vmem:[%s29162_s7 + $0x1184] sm:$0xf]  ;;  %v17475_v21 = vld [vmem:[%s29162_s7 + $0x119c] sm:$0xf0]  ;;  %v16697_v40 = vld [vmem:[%s29162_s7 + $0xb68] sm:$0xf] }
 0x496   :  { %v10929_v50 = vadd.f32 %v25889_v31, %v10916_v15  ;;  %v16221_v31 = vld [vmem:[%s29162_s7 + $0x7b0] sm:$0xf]  ;;  %v15914_v15 = vor.u32 %v18941_v44, %v15913_v17  ;;  %v19137_v3 = vld [vmem:[%s29162_s7 + $0xb80] sm:$0xf0]  ;;  %v16921_v44 = vld [vmem:[%s29162_s7 + $0xd28] sm:$0xf] }
 0x497   :  { %11219 = vmatpush.bf16.msrb.mxu3 %v16082_v19  ;;  %v26098_v19 = vpop.f32.mrf.mxu0  ;;  %v16222_v61 = vor.u32 %v19018_v4, %v16221_v31  ;;  %v17229_v31 = vld [vmem:[%s29162_s7 + $0xf90] sm:$0xf]  ;;  %v19270_v4 = vld [vmem:[%s29162_s7 + $0xfa8] sm:$0xf0] }
 0x498   :  { %11232 = vmatpush.bf16.msra.mxu0 %v16306_v47  ;;  %v10942_v51 = vadd.f32 %v25926_v10, %v10929_v50  ;;  %v19151_v10 = vld [vmem:[%s29162_s7 + $0xbf0] sm:$0xf0]  ;;  %11212 = vmatpush.bf16.msrb.mxu2 %v15690_v49  ;;  %v17478_v50 = vor.u32 %v19329_v63, %v17475_v21  ;;  %v16698_v49 = vor.u32 %v19137_v3, %v16697_v40  ;;  %v19116_v63 = vld [vmem:[%s29162_s7 + $0xad8] sm:$0xf0] }
 0x499   :  { %11144 = vmatpush.bf16.msrb.mxu1 %v17562_v2  ;;  %v15662_v2 = vor.u32 %v18878_v62, %v15661_v5 }
 0x49a   :  { %17976 = vmatmul.msk.bf16.vlgmr.msra.gmra.mxu3 %vm1056_vm0, %v25778_v11  ;;  %v26126_v47 = vadd.f32 %v25805_v60, %v10942_v51  ;;  %v17503_v60 = vld [vmem:[%s29162_s7 + $0x11d4] sm:$0xf0]  ;;  %v16138_v51 = vor.u32 %v18997_v46, %v16137_v20  ;;  %v15549_v20 = vld [vmem:[%s29162_s7 + $0x270] sm:$0xf] }
 0x49b   :  { %11220 = vmatpush.bf16.msrb.mxu3 %v16054_v30  ;;  %v16753_v30 = vld [vmem:[%s29162_s7 + $0xbd8] sm:$0xf]  ;;  %v10917_v23 = vpop.f32.mrf.mxu3  ;;  %11213 = vmatmul.bf16.vlgmr.msrb.gmra.mxu2 %v24921_v1  ;;  %v17506_v28 = vor.u32 %v19336_v27, %v17503_v60  ;;  %v18864_v27 = vld [vmem:[%s29162_s7 + $0x2f8] sm:$0xf0] }
 0x49c   :  { %11233 = vmatpush.bf16.msra.mxu0 %v16278_v37  ;;  %11257 = vmatpush.bf16.msra.mxu2 %v16782_v8  ;;  %v16754_v53 = vor.u32 %v19151_v10, %v16753_v30  ;;  %v19144_v37 = vld [vmem:[%s29162_s7 + $0xbb8] sm:$0xf0]  ;;  %v16669_v8 = vld [vmem:[%s29162_s7 + $0xb30] sm:$0xf]  ;;  %v15634_v10 = vor.u32 %v18871_v6, %v15633_v12  ;;  %v17201_v23 = vld [vmem:[%s29162_s7 + $0xf58] sm:$0xf] }
 0x49d   :  { %11145 = vmatpush.bf16.msrb.mxu1 %v17534_v22  ;;  %v19200_v30 = vld [vmem:[%s29162_s7 + $0xd78] sm:$0xf0]  ;;  %v19263_v22 = vld [vmem:[%s29162_s7 + $0xf70] sm:$0xf0]  ;;  %v16670_v32 = vor.u32 %v19130_v0, %v16669_v8  ;;  %v19242_v8 = vld [vmem:[%s29162_s7 + $0xec8] sm:$0xf0] }
 0x49e   :  { %v16950_v60 = vor.u32 %v19200_v30, %v16949_v13  ;;  %v17202_v17 = vor.u32 %v19263_v22, %v17201_v23  ;;  %v19172_v22 = vld [vmem:[%s29162_s7 + $0xc98] sm:$0xf0] }
 0x49f   :  { %11221 = vmatpush.bf16.msrb.mxu3 %v16026_v14  ;;  %v16725_v14 = vld [vmem:[%s29162_s7 + $0xba0] sm:$0xf]  ;;  %v10982_v57 = vpop.f32.mrf.mxu0 }
 0x4a0   :  { %11234 = vmatpush.bf16.msra.mxu0 %v16250_v24  ;;  %11258 = vmatpush.bf16.msra.mxu2 %v16754_v53  ;;  %v16726_v34 = vor.u32 %v19144_v37, %v16725_v14  ;;  %v17006_v24 = vor.u32 %v19214_v41, %v17005_v36  ;;  %v19123_v53 = vld [vmem:[%s29162_s7 + $0xb10] sm:$0xf0]  ;;  %v15606_v14 = vor.u32 %v18864_v27, %v15605_v54  ;;  %v17173_v37 = vld [vmem:[%s29162_s7 + $0xf20] sm:$0xf] }
 0x4a1   :  { %11146 = vmatpush.bf16.msrb.mxu1 %v17506_v28  ;;  %v15577_v28 = vld [vmem:[%s29162_s7 + $0x2a8] sm:$0xf]  ;;  %v16613_v41 = vld [vmem:[%s29162_s7 + $0xac0] sm:$0xf]  ;;  %v19375_v54 = vld [vmem:[%s29162_s7 + $0x12f0] sm:$0xf0] }
 0x4a2   :  { %v16614_v3 = vor.u32 %v19116_v63, %v16613_v41 }
 0x4a3   :  { %11222 = vmatpush.bf16.msrb.mxu3 %v15998_v42  ;;  %v16166_v42 = vor.u32 %v19004_v45, %v16165_v52  ;;  %v19256_v52 = vld [vmem:[%s29162_s7 + $0xf38] sm:$0xf0]  ;;  %v18857_v45 = vld [vmem:[%s29162_s7 + $0x2c0] sm:$0xf0] }
 0x4a4   :  { %11235 = vmatpush.bf16.msra.mxu0 %v16222_v61  ;;  %11259 = vmatpush.bf16.msra.mxu2 %v16726_v34  ;;  %v17230_v61 = vor.u32 %v19270_v4, %v17229_v31  ;;  %v17174_v21 = vor.u32 %v19256_v52, %v17173_v37  ;;  %v19186_v34 = vld [vmem:[%s29162_s7 + $0xd08] sm:$0xf0]  ;;  %v15578_v62 = vor.u32 %v18857_v45, %v15577_v28  ;;  %v19179_v31 = vld [vmem:[%s29162_s7 + $0xcd0] sm:$0xf0]  ;;  %v17677_v4 = vld [vmem:[%s29162_s7 + $0x1310] sm:$0xf] }
 0x4a5   :  { %11147 = vmatpush.bf16.msrb.mxu1 %v17478_v50  ;;  %v18850_v50 = vld [vmem:[%s29162_s7 + $0x288] sm:$0xf0]  ;;  %v16809_v37 = vld [vmem:[%s29162_s7 + $0xc48] sm:$0xf]  ;;  %v19165_v52 = vld [vmem:[%s29162_s7 + $0xc60] sm:$0xf0] }
 0x4a6   :  { %v17621_v28 = vld [vmem:[%s29162_s7 + $0x12a0] sm:$0xf]  ;;  %v19368_v45 = vld [vmem:[%s29162_s7 + $0x12b8] sm:$0xf0] }
 0x4a7   :  { %11223 = vmatpush.bf16.msrb.mxu3 %v15970_v35  ;;  %v16978_v35 = vor.u32 %v19207_v7, %v16977_v38  ;;  %v16585_v38 = vld [vmem:[%s29162_s7 + $0xa88] sm:$0xf]  ;;  %v19109_v7 = vld [vmem:[%s29162_s7 + $0xaa0] sm:$0xf0] }
 0x4a8   :  { %11236 = vmatpush.bf16.msra.mxu0 %v16194_v9  ;;  %11260 = vmatpush.bf16.msra.mxu2 %v16698_v49  ;;  %v19193_v9 = vld [vmem:[%s29162_s7 + $0xd40] sm:$0xf0]  ;;  %v19382_v49 = vld [vmem:[%s29162_s7 + $0x1328] sm:$0xf0]  ;;  %v16586_v0 = vor.u32 %v19109_v7, %v16585_v38  ;;  %v17033_v7 = vld [vmem:[%s29162_s7 + $0xe08] sm:$0xf] }
 0x4a9   :  { %11192 = vmatpush.bf16.msra.mxu1 %v15662_v2  ;;  %v16922_v36 = vor.u32 %v19193_v9, %v16921_v44  ;;  %v17678_v30 = vor.u32 %v19382_v49, %v17677_v4  ;;  %v18836_v44 = vld [vmem:[%s29162_s7 + $0x218] sm:$0xf0]  ;;  %v19361_v38 = vld [vmem:[%s29162_s7 + $0x1280] sm:$0xf0]  ;;  %v19431_v4 = vld [vmem:[%s29162_s7 + $0x14b0] sm:$0xf0] }
 0x4aa   :  { %11148 = vmatmul.bf16.vlgmr.msrb.gmra.mxu1 %v25281_v48 }
 0x4ab   :  { %11224 = vmatpush.bf16.msrb.mxu3 %v15942_v25  ;;  %v16641_v25 = vld [vmem:[%s29162_s7 + $0xaf8] sm:$0xf] }
 0x4ac   :  { %11237 = vmatpush.bf16.msra.mxu0 %v16166_v42  ;;  %11261 = vmatpush.bf16.msra.mxu2 %v16670_v32  ;;  %v16642_v57 = vor.u32 %v19123_v53, %v16641_v25  ;;  %v17145_v42 = vld [vmem:[%s29162_s7 + $0xee8] sm:$0xf]  ;;  %v17649_v32 = vld [vmem:[%s29162_s7 + $0x12d8] sm:$0xf]  ;;  %v19235_v53 = vld [vmem:[%s29162_s7 + $0xe90] sm:$0xf0] }
 0x4ad   :  { %11193 = vmatpush.bf16.msra.mxu1 %v15634_v10  ;;  %v10967_v5 = vpop.f32.mrf.mxu3  ;;  %v16837_v10 = vld [vmem:[%s29162_s7 + $0xc80] sm:$0xf]  ;;  %v17089_v25 = vld [vmem:[%s29162_s7 + $0xe78] sm:$0xf] }
 0x4ae   :  { %v10968_v40 = vadd.f32 %v10967_v5, %v26126_v47  ;;  %v16865_v47 = vld [vmem:[%s29162_s7 + $0xcb8] sm:$0xf]  ;;  %v16838_v9 = vor.u32 %v19172_v22, %v16837_v10  ;;  %v15465_v5 = vld [vmem:[%s29162_s7 + $0x1c8] sm:$0xf]  ;;  %v19354_v10 = vld [vmem:[%s29162_s7 + $0x1248] sm:$0xf0] }
 0x4af   :  { %11225 = vmatpush.bf16.msrb.mxu3 %v15914_v15  ;;  %v16893_v15 = vld [vmem:[%s29162_s7 + $0xcf0] sm:$0xf]  ;;  %v16866_v13 = vor.u32 %v19179_v31, %v16865_v47  ;;  %v17873_v31 = vld [vmem:[%s29162_s7 + $0x1498] sm:$0xf]  ;;  %v17845_v22 = vld [vmem:[%s29162_s7 + $0x1460] sm:$0xf] }
 0x4b0   :  { %11238 = vmatpush.bf16.msra.mxu0 %v16138_v51  ;;  %11262 = vmatpush.bf16.msra.mxu2 %v16642_v57  ;;  %v16894_v46 = vor.u32 %v19186_v34, %v16893_v15  ;;  %v26302_v12 = vadd.f32 %v26098_v19, %v10968_v40  ;;  %v26304_v6 = vpop.f32.mrf.mxu0  ;;  %v15550_v51 = vor.u32 %v18850_v50, %v15549_v20  ;;  %v18843_v19 = vld [vmem:[%s29162_s7 + $0x250] sm:$0xf0]  ;;  %v17901_v15 = vld [vmem:[%s29162_s7 + $0x14d0] sm:$0xf]  ;;  %v19438_v34 = vld [vmem:[%s29162_s7 + $0x14e8] sm:$0xf0] }
 0x4b1   :  { %11194 = vmatpush.bf16.msra.mxu1 %v15606_v14  ;;  %v17650_v14 = vor.u32 %v19375_v54, %v17649_v32  ;;  %v17090_v57 = vor.u32 %v19235_v53, %v17089_v25  ;;  %v16557_v40 = vld [vmem:[%s29162_s7 + $0xa50] sm:$0xf]  ;;  %v17902_v50 = vor.u32 %v19438_v34, %v17901_v15  ;;  %v19424_v32 = vld [vmem:[%s29162_s7 + $0x1478] sm:$0xf0]  ;;  %v18987_v25 = vld [vmem:[%s29162_s7 + $0x6d4] sm:$0xf] }
 0x4b2   :  { %11226 = vmatmul.bf16.vlgmr.msrb.gmra.mxu3 %v24908_v43  ;;  %v18980_v15 = vld [vmem:[%s29162_s7 + $0x69c] sm:$0xf] }
 0x4b3   :  { %11270 = vmatpush.bf16.msra.mxu3 %v17006_v24  ;;  %11239 = vmatmul.bf16.vlgmr.msra.gmra.mxu0 %v24827_v29  ;;  %v19249_v24 = vld [vmem:[%s29162_s7 + $0xf00] sm:$0xf0] }
 0x4b4   :  { %11283 = vmatpush.bf16.msrb.mxu0 %v17230_v61  ;;  %v17146_v2 = vor.u32 %v19249_v24, %v17145_v42  ;;  %11263 = vmatpush.bf16.msra.mxu2 %v16614_v3  ;;  %v15521_v61 = vld [vmem:[%s29162_s7 + $0x238] sm:$0xf]  ;;  %v16810_v42 = vor.u32 %v19165_v52, %v16809_v37  ;;  %v17622_v24 = vor.u32 %v19368_v45, %v17621_v28  ;;  %v19102_v3 = vld [vmem:[%s29162_s7 + $0xa68] sm:$0xf0]  ;;  %v19347_v28 = vld [vmem:[%s29162_s7 + $0x1210] sm:$0xf0] }
 0x4b5   :  { %11195 = vmatpush.bf16.msra.mxu1 %v15578_v62  ;;  %v10969_v27 = vpop.f32.mrf.mxu3  ;;  %v18829_v62 = vld [vmem:[%s29162_s7 + $0x1e0] sm:$0xf0]  ;;  %v16558_v49 = vor.u32 %v19102_v3, %v16557_v40  ;;  %v17846_v52 = vor.u32 %v19424_v32, %v17845_v22  ;;  %v19340_v40 = vld [vmem:[%s29162_s7 + $0x11d8] sm:$0xf0]  ;;  %v17789_v3 = vld [vmem:[%s29162_s7 + $0x13f0] sm:$0xf] }
 0x4b6   :  { %v15466_v47 = vor.u32 %v18829_v62, %v15465_v5  ;;  %v17929_v27 = vld [vmem:[%s29162_s7 + $0x1508] sm:$0xf]  ;;  %v16083_v5 = vld [vmem:[%s29162_s7 + $0x6b4] sm:$0xf0] }
 0x4b7   :  { %11271 = vmatpush.bf16.msra.mxu3 %v16978_v35  ;;  %v17117_v35 = vld [vmem:[%s29162_s7 + $0xeb0] sm:$0xf]  ;;  %v16473_v62 = vld [vmem:[%s29162_s7 + $0x9a8] sm:$0xf] }
 0x4b8   :  { %11284 = vmatpush.bf16.msrb.mxu0 %v17202_v17  ;;  %v17118_v23 = vor.u32 %v19242_v8, %v17117_v35  ;;  %11264 = vmatpush.bf16.msra.mxu2 %v16586_v0  ;;  %v15493_v17 = vld [vmem:[%s29162_s7 + $0x200] sm:$0xf]  ;;  %v11034_v41 = vpop.f32.mrf.mxu0  ;;  %v19452_v35 = vld [vmem:[%s29162_s7 + $0x1558] sm:$0xf0]  ;;  %v16529_v0 = vld [vmem:[%s29162_s7 + $0xa18] sm:$0xf] }
 0x4b9   :  { %11196 = vmatpush.bf16.msra.mxu1 %v15550_v51  ;;  %v15494_v63 = vor.u32 %v18836_v44, %v15493_v17  ;;  %v17957_v51 = vld [vmem:[%s29162_s7 + $0x1540] sm:$0xf]  ;;  %v16111_v44 = vld [vmem:[%s29162_s7 + $0x6ec] sm:$0xf0] }
 0x4ba   :  { %v16114_v41 = vor.u32 %v18987_v25, %v16111_v44  ;;  %v17733_v44 = vld [vmem:[%s29162_s7 + $0x1380] sm:$0xf] }
 0x4bb   :  { %11272 = vmatpush.bf16.msra.mxu3 %v16950_v60  ;;  %v15522_v60 = vor.u32 %v18843_v19, %v15521_v61  ;;  %11265 = vmatmul.bf16.vlgmr.msra.gmra.mxu2 %v25114_v59  ;;  %v19095_v61 = vld [vmem:[%s29162_s7 + $0xa30] sm:$0xf0] }
 0x4bc   :  { %11285 = vmatpush.bf16.msrb.mxu0 %v17174_v21  ;;  %11309 = vmatpush.bf16.msrb.mxu2 %v17678_v30  ;;  %v19228_v21 = vld [vmem:[%s29162_s7 + $0xe58] sm:$0xf0]  ;;  %v17565_v30 = vld [vmem:[%s29162_s7 + $0x1230] sm:$0xf]  ;;  %v16530_v54 = vor.u32 %v19095_v61, %v16529_v0  ;;  %v10993_v53 = vpop.f32.mrf.mxu2  ;;  %v19333_v0 = vld [vmem:[%s29162_s7 + $0x11a0] sm:$0xf0] }
 0x4bd   :  { %11197 = vmatpush.bf16.msra.mxu1 %v15522_v60  ;;  %v19445_v60 = vld [vmem:[%s29162_s7 + $0x1520] sm:$0xf0]  ;;  %v17566_v17 = vor.u32 %v19354_v10, %v17565_v30  ;;  %v26441_v37 = vadd.f32 %v10993_v53, %v26302_v12  ;;  %v17761_v61 = vld [vmem:[%s29162_s7 + $0x13b8] sm:$0xf]  ;;  %v15663_v30 = vld [vmem:[%s29162_s7 + $0x36c] sm:$0xf0] }
 0x4be   :  { %v17930_v45 = vor.u32 %v19445_v60, %v17929_v27  ;;  %v19417_v12 = vld [vmem:[%s29162_s7 + $0x1440] sm:$0xf0]  ;;  %v18966_v27 = vld [vmem:[%s29162_s7 + $0x62c] sm:$0xf]  ;;  %v16027_v60 = vld [vmem:[%s29162_s7 + $0x644] sm:$0xf0] }
 0x4bf   :  { %11273 = vmatpush.bf16.msra.mxu3 %v16922_v36  ;;  %v17061_v36 = vld [vmem:[%s29162_s7 + $0xe40] sm:$0xf]  ;;  %v16417_v53 = vld [vmem:[%s29162_s7 + $0x938] sm:$0xf] }
 0x4c0   :  { %11286 = vmatpush.bf16.msrb.mxu0 %v17146_v2  ;;  %11310 = vmatpush.bf16.msrb.mxu2 %v17650_v14  ;;  %v17062_v20 = vor.u32 %v19228_v21, %v17061_v36  ;;  %v19221_v2 = vld [vmem:[%s29162_s7 + $0xe20] sm:$0xf0]  ;;  %v19088_v14 = vld [vmem:[%s29162_s7 + $0x9f8] sm:$0xf0]  ;;  %v17817_v36 = vld [vmem:[%s29162_s7 + $0x1428] sm:$0xf] }
 0x4c1   :  { %11198 = vmatpush.bf16.msra.mxu1 %v15494_v63  ;;  %v17034_v19 = vor.u32 %v19221_v2, %v17033_v7  ;;  %v7297_v21 = vperm.slane %v25803_v26, 1  ;;  %v19081_v26 = vld [vmem:[%s29162_s7 + $0x9c0] sm:$0xf0] }
 0x4c2   :  { %v18973_v7 = vld [vmem:[%s29162_s7 + $0x664] sm:$0xf] }
 0x4c3   :  { %11274 = vmatpush.bf16.msra.mxu3 %v16894_v46  ;;  %v17593_v46 = vld [vmem:[%s29162_s7 + $0x1268] sm:$0xf] }
 0x4c4   :  { %11287 = vmatpush.bf16.msrb.mxu0 %v17118_v23  ;;  %11311 = vmatpush.bf16.msrb.mxu2 %v17622_v24  ;;  %v17594_v8 = vor.u32 %v19361_v38, %v17593_v46  ;;  %v17958_v23 = vor.u32 %v19452_v35, %v17957_v51  ;;  %v17509_v24 = vld [vmem:[%s29162_s7 + $0x11c0] sm:$0xf]  ;;  %v16086_v46 = vor.u32 %v18980_v15, %v16083_v5  ;;  %v10995_v2 = vpop.f32.mrf.mxu2  ;;  %v19074_v51 = vld [vmem:[%s29162_s7 + $0x988] sm:$0xf0]  ;;  %v17705_v5 = vld [vmem:[%s29162_s7 + $0x1348] sm:$0xf] }
 0x4c5   :  { %11199 = vmatpush.bf16.msra.mxu1 %v15466_v47  ;;  %v16474_v38 = vor.u32 %v19081_v26, %v16473_v62  ;;  %v16389_v15 = vld [vmem:[%s29162_s7 + $0x900] sm:$0xf]  ;;  %v19389_v62 = vld [vmem:[%s29162_s7 + $0x1360] sm:$0xf0]  ;;  %v16361_v2 = vld [vmem:[%s29162_s7 + $0x8c8] sm:$0xf] }
 0x4c6   :  { %v18861_v26 = vld [vmem:[%s29162_s7 + $0x2e4] sm:$0xf] }
 0x4c7   :  { %11275 = vmatpush.bf16.msra.mxu3 %v16866_v13  ;;  %v17874_v13 = vor.u32 %v19431_v4, %v17873_v31  ;;  %v17510_v31 = vor.u32 %v19340_v40, %v17509_v24  ;;  %v16055_v4 = vld [vmem:[%s29162_s7 + $0x67c] sm:$0xf0] }
 0x4c8   :  { %11288 = vmatpush.bf16.msrb.mxu0 %v17090_v57  ;;  %11312 = vmatpush.bf16.msrb.mxu2 %v17594_v8  ;;  %v17537_v57 = vld [vmem:[%s29162_s7 + $0x11f8] sm:$0xf]  ;;  %v17481_v8 = vld [vmem:[%s29162_s7 + $0x1188] sm:$0xf]  ;;  %v16058_v22 = vor.u32 %v18973_v7, %v16055_v4  ;;  %v17706_v7 = vor.u32 %v19389_v62, %v17705_v5  ;;  %v17453_v4 = vld [vmem:[%s29162_s7 + $0x1150] sm:$0xf] }
 0x4c9   :  { %11244 = vmatpush.bf16.msrb.mxu1 %v16558_v49  ;;  %v17538_v34 = vor.u32 %v19347_v28, %v17537_v57  ;;  %v16445_v49 = vld [vmem:[%s29162_s7 + $0x970] sm:$0xf]  ;;  %v16030_v28 = vor.u32 %v18966_v27, %v16027_v60  ;;  %v17425_v60 = vld [vmem:[%s29162_s7 + $0x1118] sm:$0xf] }
 0x4ca   :  { %11200 = vmatmul.bf16.vlgmr.msra.gmra.mxu1 %v25048_v55  ;;  %v16446_v32 = vor.u32 %v19074_v51, %v16445_v49  ;;  %v19326_v51 = vld [vmem:[%s29162_s7 + $0x1168] sm:$0xf0]  ;;  %v15523_v5 = vld [vmem:[%s29162_s7 + $0x254] sm:$0xf0] }
 0x4cb   :  { %11276 = vmatpush.bf16.msra.mxu3 %v16838_v9  ;;  %v16501_v9 = vld [vmem:[%s29162_s7 + $0x9e0] sm:$0xf] }
 0x4cc   :  { %11289 = vmatpush.bf16.msrb.mxu0 %v17062_v20  ;;  %v16502_v63 = vor.u32 %v19088_v14, %v16501_v9  ;;  %11313 = vmatpush.bf16.msrb.mxu2 %v17566_v17  ;;  %v19410_v20 = vld [vmem:[%s29162_s7 + $0x1408] sm:$0xf0]  ;;  %v19067_v17 = vld [vmem:[%s29162_s7 + $0x950] sm:$0xf0]  ;;  %v19396_v9 = vld [vmem:[%s29162_s7 + $0x1398] sm:$0xf0] }
 0x4cd   :  { %11245 = vmatpush.bf16.msrb.mxu1 %v16530_v54  ;;  %v17790_v35 = vor.u32 %v19410_v20, %v17789_v3  ;;  %v17482_v54 = vor.u32 %v19333_v0, %v17481_v8  ;;  %v18868_v14 = vld [vmem:[%s29162_s7 + $0x31c] sm:$0xf]  ;;  %v18931_v3 = vld [vmem:[%s29162_s7 + $0x514] sm:$0xf]  ;;  %v15887_v20 = vld [vmem:[%s29162_s7 + $0x52c] sm:$0xf0] }
 0x4ce   :  { %v15890_v49 = vor.u32 %v18931_v3, %v15887_v20  ;;  %v15579_v8 = vld [vmem:[%s29162_s7 + $0x2c4] sm:$0xf0] }
 0x4cf   :  { %11277 = vmatpush.bf16.msra.mxu3 %v16810_v42  ;;  %v17818_v42 = vor.u32 %v19417_v12, %v17817_v36  ;;  %v16418_v36 = vor.u32 %v19067_v17, %v16417_v53  ;;  %v18959_v12 = vld [vmem:[%s29162_s7 + $0x5f4] sm:$0xf]  ;;  %v15551_v17 = vld [vmem:[%s29162_s7 + $0x28c] sm:$0xf0] }
 0x4d0   :  { %11290 = vmatpush.bf16.msrb.mxu0 %v17034_v19  ;;  %11314 = vmatpush.bf16.msrb.mxu2 %v17538_v34  ;;  %v19403_v19 = vld [vmem:[%s29162_s7 + $0x13d0] sm:$0xf0]  ;;  %v19060_v34 = vld [vmem:[%s29162_s7 + $0x918] sm:$0xf0] }
 0x4d1   :  { %11246 = vmatpush.bf16.msrb.mxu1 %v16502_v63  ;;  %v17762_v25 = vor.u32 %v19403_v19, %v17761_v61  ;;  %v17734_v63 = vor.u32 %v19396_v9, %v17733_v44  ;;  %v18924_v61 = vld [vmem:[%s29162_s7 + $0x4dc] sm:$0xf]  ;;  %v15859_v19 = vld [vmem:[%s29162_s7 + $0x4f4] sm:$0xf0]  ;;  %v18847_v53 = vld [vmem:[%s29162_s7 + $0x274] sm:$0xf] }
 0x4d2   :  { %11278 = vmatmul.bf16.vlgmr.msra.gmra.mxu3 %v25103_v33  ;;  %v18917_v9 = vld [vmem:[%s29162_s7 + $0x4a4] sm:$0xf] }
 0x4d3   :  { %11322 = vmatpush.bf16.msrb.mxu3 %v17902_v50  ;;  %11291 = vmatmul.bf16.vlgmr.msrb.gmra.mxu0 %v25034_v16  ;;  %v11019_v50 = vpop.f32.mrf.mxu3 }
 0x4d4   :  { %11341 = vmatpush.bf16.msra.mxu0 %v17958_v23  ;;  %v11020_v47 = vadd.f32 %v11019_v50, %v7297_v21  ;;  %v26515_v23 = vpop.f32.mrf.mxu0  ;;  %11315 = vmatpush.bf16.msrb.mxu2 %v17510_v31  ;;  %v16390_v50 = vor.u32 %v19060_v34, %v16389_v15  ;;  %v19053_v31 = vld [vmem:[%s29162_s7 + $0x8e0] sm:$0xf0]  ;;  %v19312_v15 = vld [vmem:[%s29162_s7 + $0x10f8] sm:$0xf0] }
 0x4d5   :  { %11247 = vmatpush.bf16.msrb.mxu1 %v16474_v38  ;;  %v15971_v38 = vld [vmem:[%s29162_s7 + $0x5d4] sm:$0xf0]  ;;  %v18840_v34 = vld [vmem:[%s29162_s7 + $0x23c] sm:$0xf] }
 0x4d6   :  { %v26513_v10 = vadd.f32 %v26304_v6, %v11020_v47  ;;  %v15526_v20 = vor.u32 %v18840_v34, %v15523_v5  ;;  %v19092_v34 = vld [vmem:[%s29162_s7 + $0xa1c] sm:$0xf]  ;;  %v16531_v5 = vld [vmem:[%s29162_s7 + $0xa34] sm:$0xf0] }
 0x4d7   :  { %11323 = vmatpush.bf16.msrb.mxu3 %v17874_v13  ;;  %v18875_v13 = vld [vmem:[%s29162_s7 + $0x354] sm:$0xf] }
 0x4d8   :  { %11342 = vmatpush.bf16.msra.mxu0 %v17930_v45  ;;  %v15666_v6 = vor.u32 %v18875_v13, %v15663_v30  ;;  %11316 = vmatpush.bf16.msrb.mxu2 %v17482_v54  ;;  %v26541_v45 = vpop.f32.mrf.mxu2  ;;  %v16362_v30 = vor.u32 %v19053_v31, %v16361_v2  ;;  %v17454_v54 = vor.u32 %v19326_v51, %v17453_v4  ;;  %v18833_v2 = vld [vmem:[%s29162_s7 + $0x204] sm:$0xf]  ;;  %v15495_v31 = vld [vmem:[%s29162_s7 + $0x21c] sm:$0xf0]  ;;  %v18903_v4 = vld [vmem:[%s29162_s7 + $0x434] sm:$0xf] }
 0x4d9   :  { %11248 = vmatpush.bf16.msrb.mxu1 %v16446_v32  ;;  %v15943_v32 = vld [vmem:[%s29162_s7 + $0x59c] sm:$0xf0] }
 0x4db   :  { %11324 = vmatpush.bf16.msrb.mxu3 %v17846_v52  ;;  %v15635_v52 = vld [vmem:[%s29162_s7 + $0x334] sm:$0xf0]  ;;  %v11021_v57 = vpop.f32.mrf.mxu3  ;;  %11317 = vmatmul.bf16.vlgmr.msrb.gmra.mxu2 %v25281_v48 }
 0x4dc   :  { %11387 = vmatpush.bf16.msrb.mxu0 %v16114_v41  ;;  %v15999_v41 = vld [vmem:[%s29162_s7 + $0x60c] sm:$0xf0]  ;;  %11361 = vmatpush.bf16.msra.mxu2 %v15666_v6  ;;  %v15638_v21 = vor.u32 %v18868_v14, %v15635_v52  ;;  %v11086_v24 = vpop.f32.mrf.mxu0  ;;  %v19319_v6 = vld [vmem:[%s29162_s7 + $0x1130] sm:$0xf0]  ;;  %v15831_v14 = vld [vmem:[%s29162_s7 + $0x4bc] sm:$0xf0] }
 0x4dd   :  { %v16002_v40 = vor.u32 %v18959_v12, %v15999_v41  ;;  %11249 = vmatpush.bf16.msrb.mxu1 %v16418_v36  ;;  %v18938_v52 = vld [vmem:[%s29162_s7 + $0x54c] sm:$0xf]  ;;  %v15915_v57 = vld [vmem:[%s29162_s7 + $0x564] sm:$0xf0]  ;;  %v15554_v36 = vor.u32 %v18847_v53, %v15551_v17  ;;  %v19211_v12 = vld [vmem:[%s29162_s7 + $0xdd4] sm:$0xf] }
 0x4de   :  { %v17007_v41 = vld [vmem:[%s29162_s7 + $0xdec] sm:$0xf0]  ;;  %v15918_v62 = vor.u32 %v18938_v52, %v15915_v57  ;;  %v19190_v57 = vld [vmem:[%s29162_s7 + $0xd2c] sm:$0xf] }
 0x4df   :  { %11325 = vmatpush.bf16.msrb.mxu3 %v17818_v42  ;;  %v15607_v42 = vld [vmem:[%s29162_s7 + $0x2fc] sm:$0xf0]  ;;  %v17010_v24 = vor.u32 %v19211_v12, %v17007_v41  ;;  %v16559_v53 = vld [vmem:[%s29162_s7 + $0xa6c] sm:$0xf0]  ;;  %v17313_v41 = vld [vmem:[%s29162_s7 + $0x1038] sm:$0xf] }
 0x4e0   :  { %11388 = vmatpush.bf16.msrb.mxu0 %v16086_v46  ;;  %v18952_v46 = vld [vmem:[%s29162_s7 + $0x5bc] sm:$0xf]  ;;  %11362 = vmatpush.bf16.msra.mxu2 %v15638_v21  ;;  %v15610_v47 = vor.u32 %v18861_v26, %v15607_v42  ;;  %v11060_v13 = vpop.f32.mrf.mxu2  ;;  %v15834_v21 = vor.u32 %v18917_v9, %v15831_v14  ;;  %v18910_v26 = vld [vmem:[%s29162_s7 + $0x46c] sm:$0xf]  ;;  %v15803_v42 = vld [vmem:[%s29162_s7 + $0x484] sm:$0xf0] }
 0x4e1   :  { %v15974_v0 = vor.u32 %v18952_v46, %v15971_v38  ;;  %11250 = vmatpush.bf16.msrb.mxu1 %v16390_v50  ;;  %v19204_v50 = vld [vmem:[%s29162_s7 + $0xd9c] sm:$0xf]  ;;  %v16979_v46 = vld [vmem:[%s29162_s7 + $0xdb4] sm:$0xf0]  ;;  %v17369_v38 = vld [vmem:[%s29162_s7 + $0x10a8] sm:$0xf]  ;;  %v15498_v13 = vor.u32 %v18833_v2, %v15495_v31 }
 0x4e2   :  { %v11006_v51 = vpop.f32.mrf.mxu1  ;;  %v15691_v2 = vld [vmem:[%s29162_s7 + $0x3a4] sm:$0xf0]  ;;  %v19085_v31 = vld [vmem:[%s29162_s7 + $0x9e4] sm:$0xf] }
 0x4e3   :  { %11326 = vmatpush.bf16.msrb.mxu3 %v17790_v35  ;;  %17977 = vmatmul.msk.bf16.vlgmr.msra.gmra.mxu0 %vm1056_vm0, %v25778_v11  ;;  %v18854_v35 = vld [vmem:[%s29162_s7 + $0x2ac] sm:$0xf] }
 0x4e4   :  { %11389 = vmatpush.bf16.msrb.mxu0 %v16058_v22  ;;  %v18945_v22 = vld [vmem:[%s29162_s7 + $0x584] sm:$0xf]  ;;  %11363 = vmatpush.bf16.msra.mxu2 %v15610_v47  ;;  %v15582_v27 = vor.u32 %v18854_v35, %v15579_v8  ;;  %v16982_v8 = vor.u32 %v19204_v50, %v16979_v46  ;;  %v16534_v46 = vor.u32 %v19092_v34, %v16531_v5  ;;  %v15411_v34 = vld [vmem:[%s29162_s7 + $0x174] sm:$0xf0]  ;;  %v19071_v5 = vld [vmem:[%s29162_s7 + $0x974] sm:$0xf] }
 0x4e5   :  { %v15946_v44 = vor.u32 %v18945_v22, %v15943_v32  ;;  %11251 = vmatpush.bf16.msrb.mxu1 %v16362_v30  ;;  %v19305_v47 = vld [vmem:[%s29162_s7 + $0x10c0] sm:$0xf0]  ;;  %v16951_v30 = vld [vmem:[%s29162_s7 + $0xd7c] sm:$0xf0]  ;;  %v17341_v22 = vld [vmem:[%s29162_s7 + $0x1070] sm:$0xf] }
 0x4e6   :  { %v19298_v32 = vld [vmem:[%s29162_s7 + $0x1088] sm:$0xf0] }
 0x4e7   :  { %11327 = vmatpush.bf16.msrb.mxu3 %v17762_v25  ;;  %v15862_v25 = vor.u32 %v18924_v61, %v15859_v19  ;;  %v26694_v61 = vadd.f32 %v11006_v51, %v26441_v37  ;;  %v17370_v19 = vor.u32 %v19305_v47, %v17369_v38  ;;  %v18826_v37 = vld [vmem:[%s29162_s7 + $0x1cc] sm:$0xf]  ;;  %v17342_v14 = vor.u32 %v19298_v32, %v17341_v22  ;;  %v17285_v38 = vld [vmem:[%s29162_s7 + $0x1000] sm:$0xf]  ;;  %v19155_v51 = vld [vmem:[%s29162_s7 + $0xc14] sm:$0xf] }
 0x4e8   :  { %11390 = vmatpush.bf16.msrb.mxu0 %v16030_v28  ;;  %11364 = vmatpush.bf16.msra.mxu2 %v15582_v27  ;;  %v17426_v28 = vor.u32 %v19319_v6, %v17425_v60  ;;  %v15467_v27 = vld [vmem:[%s29162_s7 + $0x1e4] sm:$0xf0]  ;;  %v18896_v60 = vld [vmem:[%s29162_s7 + $0x3fc] sm:$0xf]  ;;  %v19099_v6 = vld [vmem:[%s29162_s7 + $0xa54] sm:$0xf] }
 0x4e9   :  { %11296 = vmatpush.bf16.msra.mxu1 %v17454_v54  ;;  %v15470_v52 = vor.u32 %v18826_v37, %v15467_v27  ;;  %v16562_v12 = vor.u32 %v19099_v6, %v16559_v53  ;;  %v18882_v47 = vld [vmem:[%s29162_s7 + $0x38c] sm:$0xf]  ;;  %v19277_v37 = vld [vmem:[%s29162_s7 + $0xfe0] sm:$0xf0]  ;;  %v18819_v27 = vld [vmem:[%s29162_s7 + $0x194] sm:$0xf] }
 0x4ea   :  { %11252 = vmatmul.bf16.vlgmr.msrb.gmra.mxu1 %v25219_v56  ;;  %v15694_v22 = vor.u32 %v18882_v47, %v15691_v2  ;;  %v19078_v6 = vld [vmem:[%s29162_s7 + $0x9ac] sm:$0xf]  ;;  %v16475_v53 = vld [vmem:[%s29162_s7 + $0x9c4] sm:$0xf0]  ;;  %v18805_v47 = vld [vmem:[%s29162_s7 + $0x124] sm:$0xf] }
 0x4eb   :  { %11328 = vmatpush.bf16.msrb.mxu3 %v17734_v63  ;;  %v17397_v63 = vld [vmem:[%s29162_s7 + $0x10e0] sm:$0xf] }
 0x4ec   :  { %11391 = vmatpush.bf16.msrb.mxu0 %v16002_v40  ;;  %11365 = vmatpush.bf16.msra.mxu2 %v15554_v36  ;;  %v26662_v40 = vpop.f32.mrf.mxu2  ;;  %v17398_v3 = vor.u32 %v19312_v15, %v17397_v63  ;;  %v19291_v63 = vld [vmem:[%s29162_s7 + $0x1050] sm:$0xf0]  ;;  %v15719_v15 = vld [vmem:[%s29162_s7 + $0x3dc] sm:$0xf0] }
 0x4ed   :  { %11297 = vmatpush.bf16.msra.mxu1 %v17426_v28  ;;  %v26688_v35 = vpop.f32.mrf.mxu3  ;;  %v16923_v28 = vld [vmem:[%s29162_s7 + $0xd44] sm:$0xf0] }
 0x4ef   :  { %11329 = vmatpush.bf16.msrb.mxu3 %v17706_v7  ;;  %v15806_v7 = vor.u32 %v18910_v26, %v15803_v42  ;;  %v16926_v42 = vor.u32 %v19190_v57, %v16923_v28 }
 0x4f0   :  { %11392 = vmatpush.bf16.msrb.mxu0 %v15974_v0  ;;  %v19197_v0 = vld [vmem:[%s29162_s7 + $0xd64] sm:$0xf]  ;;  %11366 = vmatpush.bf16.msra.mxu2 %v15526_v20  ;;  %v16895_v20 = vld [vmem:[%s29162_s7 + $0xd0c] sm:$0xf0] }
 0x4f1   :  { %11298 = vmatpush.bf16.msra.mxu1 %v17398_v3  ;;  %v16954_v17 = vor.u32 %v19197_v0, %v16951_v30  ;;  %v19183_v3 = vld [vmem:[%s29162_s7 + $0xcf4] sm:$0xf]  ;;  %v16867_v30 = vld [vmem:[%s29162_s7 + $0xcd4] sm:$0xf0] }
 0x4f2   :  { %11330 = vmatmul.bf16.vlgmr.msrb.gmra.mxu3 %v25528_v18 }
 0x4f3   :  { %11374 = vmatpush.bf16.msra.mxu3 %v15890_v49  ;;  %v15775_v49 = vld [vmem:[%s29162_s7 + $0x44c] sm:$0xf0] }
 0x4f4   :  { %11393 = vmatpush.bf16.msrb.mxu0 %v15946_v44  ;;  %v15778_v54 = vor.u32 %v18903_v4, %v15775_v49  ;;  %11367 = vmatpush.bf16.msra.mxu2 %v15498_v13  ;;  %v26724_v44 = vpop.f32.mrf.mxu0  ;;  %v11112_v9 = vpop.f32.mrf.mxu2  ;;  %v16503_v4 = vld [vmem:[%s29162_s7 + $0x9fc] sm:$0xf0]  ;;  %v16898_v49 = vor.u32 %v19183_v3, %v16895_v20  ;;  %v19176_v13 = vld [vmem:[%s29162_s7 + $0xcbc] sm:$0xf]  ;;  %v16811_v3 = vld [vmem:[%s29162_s7 + $0xc64] sm:$0xf0] }
 0x4f5   :  { %11299 = vmatpush.bf16.msra.mxu1 %v17370_v19  ;;  %v11073_v26 = vpop.f32.mrf.mxu3  ;;  %v16506_v32 = vor.u32 %v19085_v31, %v16503_v4  ;;  %v16870_v9 = vor.u32 %v19176_v13, %v16867_v30  ;;  %v19064_v31 = vld [vmem:[%s29162_s7 + $0x93c] sm:$0xf]  ;;  %v16419_v4 = vld [vmem:[%s29162_s7 + $0x954] sm:$0xf0] }
 0x4f7   :  { %11375 = vmatpush.bf16.msra.mxu3 %v15862_v25  ;;  %v15747_v25 = vld [vmem:[%s29162_s7 + $0x414] sm:$0xf0] }
 0x4f8   :  { %11394 = vmatpush.bf16.msrb.mxu0 %v15918_v62  ;;  %v15750_v36 = vor.u32 %v18896_v60, %v15747_v25  ;;  %v11008_v62 = vpop.f32.mrf.mxu1  ;;  %11368 = vmatpush.bf16.msra.mxu2 %v15470_v52  ;;  %v15439_v25 = vld [vmem:[%s29162_s7 + $0x1ac] sm:$0xf0]  ;;  %v16755_v52 = vld [vmem:[%s29162_s7 + $0xbf4] sm:$0xf0] }
 0x4f9   :  { %11300 = vmatpush.bf16.msra.mxu1 %v17342_v14  ;;  %v19148_v14 = vld [vmem:[%s29162_s7 + $0xbdc] sm:$0xf]  ;;  %v16447_v62 = vld [vmem:[%s29162_s7 + $0x98c] sm:$0xf0] }
 0x4fb   :  { %11376 = vmatpush.bf16.msra.mxu3 %v15834_v21  ;;  %11395 = vmatmul.bf16.vlgmr.msrb.gmra.mxu0 %v24908_v43  ;;  %v18889_v21 = vld [vmem:[%s29162_s7 + $0x3c4] sm:$0xf] }
 0x4fc   :  { %11439 = vmatpush.bf16.msra.mxu0 %v17010_v24  ;;  %v17314_v24 = vor.u32 %v19291_v63, %v17313_v41  ;;  %11413 = vmatpush.bf16.msrb.mxu2 %v16562_v12  ;;  %v15722_v50 = vor.u32 %v18889_v21, %v15719_v15  ;;  %v11138_v0 = vpop.f32.mrf.mxu0  ;;  %v16839_v12 = vld [vmem:[%s29162_s7 + $0xc9c] sm:$0xf0]  ;;  %v15442_v41 = vor.u32 %v18819_v27, %v15439_v25  ;;  %v18812_v21 = vld [vmem:[%s29162_s7 + $0x15c] sm:$0xf]  ;;  %v19057_v25 = vld [vmem:[%s29162_s7 + $0x904] sm:$0xf] }
 0x4fd   :  { %11369 = vmatmul.bf16.vlgmr.msra.gmra.mxu2 %v25048_v55  ;;  %v16478_v63 = vor.u32 %v19078_v6, %v16475_v53  ;;  %v19134_v0 = vld [vmem:[%s29162_s7 + $0xb6c] sm:$0xf]  ;;  %v16391_v6 = vld [vmem:[%s29162_s7 + $0x91c] sm:$0xf0]  ;;  %v19127_v53 = vld [vmem:[%s29162_s7 + $0xb34] sm:$0xf] }
 0x4fe   :  { %11301 = vmatpush.bf16.msra.mxu1 %v17314_v24  ;;  %v19162_v24 = vld [vmem:[%s29162_s7 + $0xc4c] sm:$0xf] }
 0x4ff   :  { %11377 = vmatpush.bf16.msra.mxu3 %v15806_v7  ;;  %v19284_v7 = vld [vmem:[%s29162_s7 + $0x1018] sm:$0xf0] }
 0x500   :  { %11440 = vmatpush.bf16.msra.mxu0 %v16982_v8  ;;  %v16783_v8 = vld [vmem:[%s29162_s7 + $0xc2c] sm:$0xf0]  ;;  %v17286_v19 = vor.u32 %v19284_v7, %v17285_v38  ;;  %11414 = vmatpush.bf16.msrb.mxu2 %v16534_v46  ;;  %v16450_v46 = vor.u32 %v19071_v5, %v16447_v62  ;;  %v19435_v38 = vld [vmem:[%s29162_s7 + $0x14d4] sm:$0xf] }
 0x501   :  { %v16786_v60 = vor.u32 %v19155_v51, %v16783_v8  ;;  %v17903_v7 = vld [vmem:[%s29162_s7 + $0x14ec] sm:$0xf0]  ;;  %v16814_v8 = vor.u32 %v19162_v24, %v16811_v3  ;;  %v19323_v5 = vld [vmem:[%s29162_s7 + $0x1154] sm:$0xf] }
 0x502   :  { %11302 = vmatpush.bf16.msra.mxu1 %v17286_v19  ;;  %v16699_v19 = vld [vmem:[%s29162_s7 + $0xb84] sm:$0xf0]  ;;  %v17906_v13 = vor.u32 %v19435_v38, %v17903_v7  ;;  %v17455_v62 = vld [vmem:[%s29162_s7 + $0x116c] sm:$0xf0] }
 0x503   :  { %11378 = vmatpush.bf16.msra.mxu3 %v15778_v54  ;;  %v17257_v54 = vld [vmem:[%s29162_s7 + $0xfc8] sm:$0xf]  ;;  %v16702_v27 = vor.u32 %v19134_v0, %v16699_v19 }
 0x504   :  { %11441 = vmatpush.bf16.msra.mxu0 %v16954_v17  ;;  %v11045_v17 = vpop.f32.mrf.mxu1  ;;  %v17258_v28 = vor.u32 %v19277_v37, %v17257_v54  ;;  %11415 = vmatpush.bf16.msrb.mxu2 %v16506_v32  ;;  %v17875_v32 = vld [vmem:[%s29162_s7 + $0x14b4] sm:$0xf0]  ;;  %v18798_v54 = vld [vmem:[%s29162_s7 + $0xec] sm:$0xf]  ;;  %v26880_v37 = vpop.f32.mrf.mxu2 }
 0x505   :  { %v11046_v57 = vadd.f32 %v11045_v17, %v26513_v10  ;;  %v16758_v10 = vor.u32 %v19148_v14, %v16755_v52  ;;  %v16671_v17 = vld [vmem:[%s29162_s7 + $0xb4c] sm:$0xf0]  ;;  %v19421_v14 = vld [vmem:[%s29162_s7 + $0x1464] sm:$0xf] }
 0x506   :  { %11303 = vmatpush.bf16.msra.mxu1 %v17258_v28  ;;  %v16394_v28 = vor.u32 %v19057_v25, %v16391_v6  ;;  %v16587_v25 = vld [vmem:[%s29162_s7 + $0xaa4] sm:$0xf0]  ;;  %v19309_v6 = vld [vmem:[%s29162_s7 + $0x10e4] sm:$0xf] }
 0x507   :  { %11379 = vmatpush.bf16.msra.mxu3 %v15750_v36  ;;  %v19169_v36 = vld [vmem:[%s29162_s7 + $0xc84] sm:$0xf]  ;;  %v11059_v15 = vadd.f32 %v26541_v45, %v11046_v57 }
 0x508   :  { %11442 = vmatpush.bf16.msra.mxu0 %v16926_v42  ;;  %v16842_v26 = vor.u32 %v19169_v36, %v16839_v12  ;;  %v19141_v45 = vld [vmem:[%s29162_s7 + $0xba4] sm:$0xf]  ;;  %v16727_v42 = vld [vmem:[%s29162_s7 + $0xbbc] sm:$0xf0]  ;;  %11416 = vmatpush.bf16.msrb.mxu2 %v16478_v63  ;;  %v18791_v12 = vld [vmem:[%s29162_s7 + $0xb4] sm:$0xf]  ;;  %v16674_v63 = vor.u32 %v19127_v53, %v16671_v17 }
 0x509   :  { %v11072_v20 = vadd.f32 %v26688_v35, %v11059_v15  ;;  %v16730_v2 = vor.u32 %v19141_v45, %v16727_v42  ;;  %v15383_v35 = vld [vmem:[%s29162_s7 + $0x13c] sm:$0xf0]  ;;  %11304 = vmatmul.bf16.vlgmr.msra.gmra.mxu1 %v25388_v58  ;;  %v16363_v15 = vld [vmem:[%s29162_s7 + $0x8e4] sm:$0xf0] }
 0x50a   :  { %11348 = vmatpush.bf16.msrb.mxu1 %v15442_v41  ;;  %v15386_v30 = vor.u32 %v18805_v47, %v15383_v35  ;;  %v17847_v36 = vld [vmem:[%s29162_s7 + $0x147c] sm:$0xf0]  ;;  %v15327_v41 = vld [vmem:[%s29162_s7 + $0xcc] sm:$0xf0]  ;;  %v17458_v47 = vor.u32 %v19323_v5, %v17455_v62  ;;  %v15299_v35 = vld [vmem:[%s29162_s7 + $0x94] sm:$0xf0] }
 0x50b   :  { %11380 = vmatpush.bf16.msra.mxu3 %v15722_v50  ;;  %v15414_v50 = vor.u32 %v18812_v21, %v15411_v34  ;;  %v19050_v21 = vld [vmem:[%s29162_s7 + $0x8cc] sm:$0xf]  ;;  %v16643_v34 = vld [vmem:[%s29162_s7 + $0xb14] sm:$0xf0]  ;;  %v17850_v45 = vor.u32 %v19421_v14, %v17847_v36  ;;  %v15330_v3 = vor.u32 %v18791_v12, %v15327_v41  ;;  %v17399_v53 = vld [vmem:[%s29162_s7 + $0x10fc] sm:$0xf0] }
 0x50c   :  { %11443 = vmatpush.bf16.msra.mxu0 %v16898_v49  ;;  %v11085_v49 = vadd.f32 %v26515_v23, %v11072_v20  ;;  %v11047_v51 = vpop.f32.mrf.mxu1  ;;  %11417 = vmatpush.bf16.msrb.mxu2 %v16450_v46  ;;  %v19428_v23 = vld [vmem:[%s29162_s7 + $0x149c] sm:$0xf]  ;;  %v16366_v20 = vor.u32 %v19050_v21, %v16363_v15  ;;  %v17819_v46 = vld [vmem:[%s29162_s7 + $0x1444] sm:$0xf0]  ;;  %v11164_v38 = vpop.f32.mrf.mxu2  ;;  %v17763_v12 = vld [vmem:[%s29162_s7 + $0x13d4] sm:$0xf0] }
 0x50d   :  { %v11123_v52 = vpop.f32.mrf.mxu3  ;;  %v19316_v51 = vld [vmem:[%s29162_s7 + $0x111c] sm:$0xf]  ;;  %v18770_v21 = vld [vmem:[%s29162_s7 + $0xc] sm:$0xf]  ;;  %v15243_v15 = vld [vmem:[%s29162_s7 + $0x24] sm:$0xf0] }
 0x50e   :  { %11349 = vmatpush.bf16.msrb.mxu1 %v15414_v50  ;;  %v19414_v50 = vld [vmem:[%s29162_s7 + $0x142c] sm:$0xf]  ;;  %v16335_v5 = vld [vmem:[%s29162_s7 + $0x8ac] sm:$0xf0] }
 0x50f   :  { %11381 = vmatpush.bf16.msra.mxu3 %v15694_v22  ;;  %v16422_v22 = vor.u32 %v19064_v31, %v16419_v4  ;;  %v19113_v31 = vld [vmem:[%s29162_s7 + $0xac4] sm:$0xf]  ;;  %v17822_v0 = vor.u32 %v19414_v50, %v17819_v46  ;;  %v19302_v62 = vld [vmem:[%s29162_s7 + $0x10ac] sm:$0xf]  ;;  %v17735_v46 = vld [vmem:[%s29162_s7 + $0x139c] sm:$0xf0] }
 0x510   :  { %11444 = vmatpush.bf16.msra.mxu0 %v16870_v9  ;;  %v17878_v9 = vor.u32 %v19428_v23, %v17875_v32  ;;  %v26928_v24 = vpop.f32.mrf.mxu0  ;;  %v19393_v50 = vld [vmem:[%s29162_s7 + $0x1384] sm:$0xf] }
 0x511   :  { %11418 = vmatpush.bf16.msrb.mxu2 %v16422_v22 }
 0x512   :  { %11382 = vmatmul.bf16.vlgmr.msra.gmra.mxu3 %v24921_v1  ;;  %11350 = vmatpush.bf16.msrb.mxu1 %v15386_v30  ;;  %v17791_v30 = vld [vmem:[%s29162_s7 + $0x140c] sm:$0xf0] }
 0x513   :  { %11426 = vmatpush.bf16.msrb.mxu3 %v16786_v60  ;;  %v15355_v60 = vld [vmem:[%s29162_s7 + $0x104] sm:$0xf0] }
 0x514   :  { %11445 = vmatpush.bf16.msra.mxu0 %v16842_v26  ;;  %v15358_v57 = vor.u32 %v18798_v54, %v15355_v60  ;;  %v11097_v26 = vpop.f32.mrf.mxu1  ;;  %v18777_v54 = vld [vmem:[%s29162_s7 + $0x44] sm:$0xf]  ;;  %v19106_v60 = vld [vmem:[%s29162_s7 + $0xa8c] sm:$0xf] }
 0x515   :  { %v11098_v42 = vadd.f32 %v11097_v26, %v11085_v49  ;;  %11419 = vmatpush.bf16.msrb.mxu2 %v16394_v28  ;;  %v16615_v49 = vld [vmem:[%s29162_s7 + $0xadc] sm:$0xf0]  ;;  %v11125_v19 = vpop.f32.mrf.mxu3  ;;  %v16590_v41 = vor.u32 %v19106_v60, %v16587_v25  ;;  %v17371_v26 = vld [vmem:[%s29162_s7 + $0x10c4] sm:$0xf0]  ;;  %v19288_v60 = vld [vmem:[%s29162_s7 + $0x103c] sm:$0xf] }
 0x516   :  { %11351 = vmatpush.bf16.msrb.mxu1 %v15358_v57  ;;  %v16618_v23 = vor.u32 %v19113_v31, %v16615_v49  ;;  %v17679_v57 = vld [vmem:[%s29162_s7 + $0x132c] sm:$0xf0]  ;;  %v16307_v31 = vld [vmem:[%s29162_s7 + $0x874] sm:$0xf0]  ;;  %v19386_v19 = vld [vmem:[%s29162_s7 + $0x134c] sm:$0xf] }
 0x517   :  { %11427 = vmatpush.bf16.msrb.mxu3 %v16758_v10  ;;  %v19120_v10 = vld [vmem:[%s29162_s7 + $0xafc] sm:$0xf]  ;;  %v11111_v4 = vadd.f32 %v26662_v40, %v11098_v42  ;;  %v19407_v40 = vld [vmem:[%s29162_s7 + $0x13f4] sm:$0xf]  ;;  %v17343_v49 = vld [vmem:[%s29162_s7 + $0x108c] sm:$0xf0] }
 0x518   :  { %11446 = vmatpush.bf16.msra.mxu0 %v16814_v8  ;;  %v16646_v7 = vor.u32 %v19120_v10, %v16643_v34  ;;  %v17427_v8 = vld [vmem:[%s29162_s7 + $0x1134] sm:$0xf0]  ;;  %v17794_v14 = vor.u32 %v19407_v40, %v17791_v30  ;;  %v11190_v28 = vpop.f32.mrf.mxu0  ;;  %v19043_v10 = vld [vmem:[%s29162_s7 + $0x894] sm:$0xf]  ;;  %v19372_v42 = vld [vmem:[%s29162_s7 + $0x12dc] sm:$0xf] }
 0x519   :  { %11420 = vmatpush.bf16.msrb.mxu2 %v16366_v20  ;;  %v11124_v22 = vadd.f32 %v11123_v52, %v11111_v4  ;;  %v17430_v32 = vor.u32 %v19316_v51, %v17427_v8  ;;  %v19379_v52 = vld [vmem:[%s29162_s7 + $0x1314] sm:$0xf]  ;;  %v15246_v20 = vor.u32 %v18770_v21, %v15243_v15  ;;  %v17738_v51 = vor.u32 %v19393_v50, %v17735_v46  ;;  %v19365_v8 = vld [vmem:[%s29162_s7 + $0x12a4] sm:$0xf]  ;;  %v17315_v25 = vld [vmem:[%s29162_s7 + $0x1054] sm:$0xf0] }
 0x51a   :  { %11352 = vmatpush.bf16.msrb.mxu1 %v15330_v3  ;;  %v17682_v34 = vor.u32 %v19379_v52, %v17679_v57  ;;  %v17651_v3 = vld [vmem:[%s29162_s7 + $0x12f4] sm:$0xf0]  ;;  %v19295_v4 = vld [vmem:[%s29162_s7 + $0x1074] sm:$0xf]  ;;  %v17318_v28 = vor.u32 %v19288_v60, %v17315_v25  ;;  %v16251_v21 = vld [vmem:[%s29162_s7 + $0x804] sm:$0xf0] }
 0x51b   :  { %11428 = vmatpush.bf16.msrb.mxu3 %v16730_v2  ;;  %11447 = vmatmul.bf16.vlgmr.msra.gmra.mxu0 %v25103_v33  ;;  %v18784_v2 = vld [vmem:[%s29162_s7 + $0x7c] sm:$0xf]  ;;  %v26980_v17 = vadd.f32 %v26724_v44, %v11124_v22  ;;  %v17346_v30 = vor.u32 %v19295_v4, %v17343_v49  ;;  %v15893_v22 = vld [vmem:[%s29162_s7 + $0x518] sm:$0xf]  ;;  %v19281_v15 = vld [vmem:[%s29162_s7 + $0x1004] sm:$0xf] }
 0x51c   :  { %11491 = vmatpush.bf16.msrb.mxu0 %v17906_v13  ;;  %v15302_v13 = vor.u32 %v18784_v2, %v15299_v35  ;;  %11421 = vmatmul.bf16.vlgmr.msrb.gmra.mxu2 %v25219_v56  ;;  %v19400_v44 = vld [vmem:[%s29162_s7 + $0x13bc] sm:$0xf]  ;;  %v17654_v35 = vor.u32 %v19372_v42, %v17651_v3  ;;  %v18921_v3 = vld [vmem:[%s29162_s7 + $0x4c0] sm:$0xf0]  ;;  %v16223_v50 = vld [vmem:[%s29162_s7 + $0x7cc] sm:$0xf0] }
 0x51d   :  { %11465 = vmatpush.bf16.msra.mxu2 %v17458_v47  ;;  %v27025_v38 = vpop.f32.mrf.mxu3  ;;  %v17374_v47 = vor.u32 %v19302_v62, %v17371_v26  ;;  %v19036_v2 = vld [vmem:[%s29162_s7 + $0x85c] sm:$0xf]  ;;  %v15837_v26 = vld [vmem:[%s29162_s7 + $0x4a8] sm:$0xf]  ;;  %v18823_v4 = vld [vmem:[%s29162_s7 + $0x1b0] sm:$0xf0] }
 0x51e   :  { %11353 = vmatpush.bf16.msrb.mxu1 %v15302_v13  ;;  %v17707_v13 = vld [vmem:[%s29162_s7 + $0x1364] sm:$0xf0]  ;;  %v16310_v40 = vor.u32 %v19036_v2, %v16307_v31  ;;  %v19344_v2 = vld [vmem:[%s29162_s7 + $0x11fc] sm:$0xf]  ;;  %v15445_v31 = vld [vmem:[%s29162_s7 + $0x198] sm:$0xf] }
 0x51f   :  { %11429 = vmatpush.bf16.msrb.mxu3 %v16702_v27  ;;  %v15271_v27 = vld [vmem:[%s29162_s7 + $0x5c] sm:$0xf0] }
 0x520   :  { %11492 = vmatpush.bf16.msrb.mxu0 %v17878_v9  ;;  %v11099_v9 = vpop.f32.mrf.mxu1  ;;  %v15274_v36 = vor.u32 %v18777_v54, %v15271_v27  ;;  %v16279_v27 = vld [vmem:[%s29162_s7 + $0x83c] sm:$0xf0] }
 0x521   :  { %11466 = vmatpush.bf16.msra.mxu2 %v17430_v32  ;;  %v19029_v32 = vld [vmem:[%s29162_s7 + $0x824] sm:$0xf]  ;;  %v17595_v9 = vld [vmem:[%s29162_s7 + $0x1284] sm:$0xf0] }
 0x522   :  { %11354 = vmatpush.bf16.msrb.mxu1 %v15274_v36  ;;  %v16282_v57 = vor.u32 %v19029_v32, %v16279_v27  ;;  %v15865_v36 = vld [vmem:[%s29162_s7 + $0x4e0] sm:$0xf]  ;;  %v15446_v32 = vor.u32 %v18823_v4, %v15445_v31  ;;  %v19337_v27 = vld [vmem:[%s29162_s7 + $0x11c4] sm:$0xf]  ;;  %v19267_v31 = vld [vmem:[%s29162_s7 + $0xf94] sm:$0xf] }
 0x523   :  { %11430 = vmatpush.bf16.msrb.mxu3 %v16674_v63  ;;  %v17402_v63 = vor.u32 %v19309_v6, %v17399_v53  ;;  %v17710_v6 = vor.u32 %v19386_v19, %v17707_v13  ;;  %v19358_v53 = vld [vmem:[%s29162_s7 + $0x126c] sm:$0xf]  ;;  %v15809_v13 = vld [vmem:[%s29162_s7 + $0x470] sm:$0xf] }
 0x524   :  { %11493 = vmatpush.bf16.msrb.mxu0 %v17850_v45  ;;  %v17766_v45 = vor.u32 %v19400_v44, %v17763_v12  ;;  %v18928_v44 = vld [vmem:[%s29162_s7 + $0x4f8] sm:$0xf0]  ;;  %v19022_v12 = vld [vmem:[%s29162_s7 + $0x7ec] sm:$0xf] }
 0x525   :  { %11467 = vmatpush.bf16.msra.mxu2 %v17402_v63  ;;  %v11177_v52 = vpop.f32.mrf.mxu3  ;;  %v17598_v63 = vor.u32 %v19358_v53, %v17595_v9  ;;  %v15866_v62 = vor.u32 %v18928_v44, %v15865_v36  ;;  %v15417_v53 = vld [vmem:[%s29162_s7 + $0x160] sm:$0xf]  ;;  %v18816_v9 = vld [vmem:[%s29162_s7 + $0x178] sm:$0xf0]  ;;  %v19001_v36 = vld [vmem:[%s29162_s7 + $0x744] sm:$0xf] }
 0x526   :  { %11355 = vmatpush.bf16.msrb.mxu1 %v15246_v20  ;;  %v19015_v20 = vld [vmem:[%s29162_s7 + $0x7b4] sm:$0xf] }
 0x527   :  { %11431 = vmatpush.bf16.msrb.mxu3 %v16646_v7  ;;  %v16338_v7 = vor.u32 %v19043_v10, %v16335_v5  ;;  %v17287_v10 = vld [vmem:[%s29162_s7 + $0x101c] sm:$0xf0]  ;;  %v17567_v5 = vld [vmem:[%s29162_s7 + $0x124c] sm:$0xf0] }
 0x528   :  { %11494 = vmatpush.bf16.msrb.mxu0 %v17822_v0  ;;  %v17623_v0 = vld [vmem:[%s29162_s7 + $0x12bc] sm:$0xf0]  ;;  %v17290_v42 = vor.u32 %v19281_v15, %v17287_v10  ;;  %v11149_v49 = vpop.f32.mrf.mxu1  ;;  %v15389_v10 = vld [vmem:[%s29162_s7 + $0x128] sm:$0xf] }
 0x529   :  { %11468 = vmatpush.bf16.msra.mxu2 %v17374_v47  ;;  %v17626_v54 = vor.u32 %v19365_v8, %v17623_v0  ;;  %11356 = vmatmul.bf16.vlgmr.msrb.gmra.mxu1 %v24611_v39  ;;  %v17259_v47 = vld [vmem:[%s29162_s7 + $0xfe4] sm:$0xf0]  ;;  %v11150_v8 = vadd.f32 %v11149_v49, %v26980_v17  ;;  %v16226_v0 = vor.u32 %v19015_v20, %v16223_v50  ;;  %v19008_v17 = vld [vmem:[%s29162_s7 + $0x77c] sm:$0xf]  ;;  %v15753_v50 = vld [vmem:[%s29162_s7 + $0x400] sm:$0xf] }
 0x52a   :  { %11400 = vmatpush.bf16.msra.mxu1 %v16338_v7  ;;  %v19274_v7 = vld [vmem:[%s29162_s7 + $0xfcc] sm:$0xf] }
 0x52b   :  { %11432 = vmatpush.bf16.msrb.mxu3 %v16618_v23  ;;  %v18935_v23 = vld [vmem:[%s29162_s7 + $0x530] sm:$0xf0]  ;;  %v17262_v19 = vor.u32 %v19274_v7, %v17259_v47  ;;  %v11163_v60 = vadd.f32 %v26880_v37, %v11150_v8  ;;  %v17231_v8 = vld [vmem:[%s29162_s7 + $0xfac] sm:$0xf0] }
 0x52c   :  { %11495 = vmatpush.bf16.msrb.mxu0 %v17794_v14  ;;  %v15894_v14 = vor.u32 %v18935_v23, %v15893_v22 }
 0x52d   :  { %11469 = vmatpush.bf16.msra.mxu2 %v17346_v30  ;;  %v11176_v52 = vadd.f32 %v27025_v38, %v11163_v60  ;;  %v16167_v38 = vld [vmem:[%s29162_s7 + $0x75c] sm:$0xf0]  ;;  %v19260_v60 = vld [vmem:[%s29162_s7 + $0xf5c] sm:$0xf] }
 0x52e   :  { %11401 = vmatpush.bf16.msra.mxu1 %v16310_v40  ;;  %v18914_v40 = vld [vmem:[%s29162_s7 + $0x488] sm:$0xf0]  ;;  %v16170_v20 = vor.u32 %v19001_v36, %v16167_v38  ;;  %v16789_v38 = vld [vmem:[%s29162_s7 + $0xc18] sm:$0xf] }
 0x52f   :  { %11433 = vmatpush.bf16.msrb.mxu3 %v16590_v41  ;;  %v27086_v41 = vpop.f32.mrf.mxu2  ;;  %v12025_v15 = vmax.f32 %v11176_v52, 0.0  ;;  %v18886_v36 = vld [vmem:[%s29162_s7 + $0x3a8] sm:$0xf0] }
 0x530   :  { %11496 = vmatpush.bf16.msrb.mxu0 %v17766_v45  ;;  %v16254_v45 = vor.u32 %v19022_v12, %v16251_v21  ;;  %v27141_v22 = vpop.f32.mrf.mxu0  ;;  %v15418_v12 = vor.u32 %v18816_v9, %v15417_v53  ;;  %v17483_v21 = vld [vmem:[%s29162_s7 + $0x11a4] sm:$0xf0]  ;;  %v17203_v53 = vld [vmem:[%s29162_s7 + $0xf74] sm:$0xf0] }
 0x531   :  { %11470 = vmatpush.bf16.msra.mxu2 %v17318_v28  ;;  %v18907_v28 = vld [vmem:[%s29162_s7 + $0x450] sm:$0xf0]  ;;  %v15333_v9 = vld [vmem:[%s29162_s7 + $0xb8] sm:$0xf] }
 0x532   :  { %11434 = vmatmul.bf16.vlgmr.msrb.gmra.mxu3 %v25114_v59  ;;  %11402 = vmatpush.bf16.msra.mxu1 %v16282_v57  ;;  %v15781_v57 = vld [vmem:[%s29162_s7 + $0x438] sm:$0xf] }
 0x533   :  { %11478 = vmatpush.bf16.msra.mxu3 %v17682_v34  ;;  %v19351_v34 = vld [vmem:[%s29162_s7 + $0x1234] sm:$0xf] }
 0x534   :  { %11497 = vmatpush.bf16.msrb.mxu0 %v17738_v51  ;;  %v17570_v46 = vor.u32 %v19351_v34, %v17567_v5  ;;  %v15838_v51 = vor.u32 %v18921_v3, %v15837_v26  ;;  %v18809_v34 = vld [vmem:[%s29162_s7 + $0x140] sm:$0xf0]  ;;  %v11151_v5 = vpop.f32.mrf.mxu1  ;;  %v15669_v26 = vld [vmem:[%s29162_s7 + $0x358] sm:$0xf]  ;;  %v12038_v3 = vrot.slane %v12025_v15, 6 }
 0x535   :  { %11471 = vmatpush.bf16.msra.mxu2 %v17290_v42  ;;  %v27153_v25 = vpop.f32.mrf.mxu3  ;;  %v12024_v42 = vmax.f32 %v26694_v61, 0.0  ;;  %v18994_v61 = vld [vmem:[%s29162_s7 + $0x70c] sm:$0xf]  ;;  %v18788_v5 = vld [vmem:[%s29162_s7 + $0x98] sm:$0xf0] }
 0x536   :  { %11403 = vmatpush.bf16.msra.mxu1 %v16254_v45  ;;  %v18879_v45 = vld [vmem:[%s29162_s7 + $0x370] sm:$0xf0] }
 0x537   :  { %11479 = vmatpush.bf16.msra.mxu3 %v17654_v35  ;;  %v17539_v35 = vld [vmem:[%s29162_s7 + $0x1214] sm:$0xf0]  ;;  %v11216_v30 = vpop.f32.mrf.mxu2  ;;  %v27213_v4 = vsel %vm12043_vm2, %v12024_v42, %v12038_v3 }
 0x538   :  { %11498 = vmatpush.bf16.msrb.mxu0 %v17710_v6  ;;  %v17542_v23 = vor.u32 %v19344_v2, %v17539_v35  ;;  %v17511_v6 = vld [vmem:[%s29162_s7 + $0x11dc] sm:$0xf0]  ;;  %v11242_v7 = vpop.f32.mrf.mxu0  ;;  %v15390_v2 = vor.u32 %v18809_v34, %v15389_v10  ;;  %v16139_v35 = vld [vmem:[%s29162_s7 + $0x724] sm:$0xf0]  ;;  %v18872_v30 = vld [vmem:[%s29162_s7 + $0x338] sm:$0xf0] }
 0x539   :  { %11472 = vmatpush.bf16.msra.mxu2 %v17262_v19  ;;  %v17514_v44 = vor.u32 %v19337_v27, %v17511_v6  ;;  %v18802_v19 = vld [vmem:[%s29162_s7 + $0x108] sm:$0xf0]  ;;  %v17175_v10 = vld [vmem:[%s29162_s7 + $0xf3c] sm:$0xf0] }
 0x53a   :  { %11404 = vmatpush.bf16.msra.mxu1 %v16226_v0  ;;  %v15361_v0 = vld [vmem:[%s29162_s7 + $0xf0] sm:$0xf]  ;;  %v15305_v34 = vld [vmem:[%s29162_s7 + $0x80] sm:$0xf]  ;;  %v19246_v7 = vld [vmem:[%s29162_s7 + $0xeec] sm:$0xf] }
 0x53b   :  { %11480 = vmatpush.bf16.msra.mxu3 %v17626_v54  ;;  %11499 = vmatmul.bf16.vlgmr.msrb.gmra.mxu0 %v25528_v18  ;;  %v16195_v54 = vld [vmem:[%s29162_s7 + $0x794] sm:$0xf0]  ;;  %v15362_v27 = vor.u32 %v18802_v19, %v15361_v0  ;;  %v18851_v0 = vld [vmem:[%s29162_s7 + $0x290] sm:$0xf0] }
 0x53c   :  { %11543 = vmatpush.bf16.msra.mxu0 %v15894_v14  ;;  %v15810_v14 = vor.u32 %v18914_v40, %v15809_v13  ;;  %v16198_v37 = vor.u32 %v19008_v17, %v16195_v54  ;;  %11473 = vmatmul.bf16.vlgmr.msra.gmra.mxu2 %v25388_v58  ;;  %v15641_v40 = vld [vmem:[%s29162_s7 + $0x320] sm:$0xf]  ;;  %v18893_v17 = vld [vmem:[%s29162_s7 + $0x3e0] sm:$0xf0]  ;;  %v17234_v54 = vor.u32 %v19267_v31, %v17231_v8  ;;  %v15557_v8 = vld [vmem:[%s29162_s7 + $0x278] sm:$0xf] }
 0x53d   :  { %11517 = vmatpush.bf16.msrb.mxu2 %v15446_v32  ;;  %v11229_v49 = vpop.f32.mrf.mxu3  ;;  %v15725_v32 = vld [vmem:[%s29162_s7 + $0x3c8] sm:$0xf]  ;;  %v15642_v6 = vor.u32 %v18872_v30, %v15641_v40  ;;  %v18781_v31 = vld [vmem:[%s29162_s7 + $0x60] sm:$0xf0] }
 0x53e   :  { %11405 = vmatpush.bf16.msra.mxu1 %v16198_v37  ;;  %v15726_v52 = vor.u32 %v18893_v17, %v15725_v32  ;;  %v15613_v37 = vld [vmem:[%s29162_s7 + $0x2e8] sm:$0xf]  ;;  %v27309_v49 = vld [vmem:[%s29163_s8] sm:$0x7f]  ;;  %v19239_v32 = vld [vmem:[%s29162_s7 + $0xeb4] sm:$0xf] }
 0x53f   :  { %11481 = vmatpush.bf16.msra.mxu3 %v17598_v63  ;;  %v19330_v63 = vld [vmem:[%s29162_s7 + $0x118c] sm:$0xf]  ;;  %v17119_v17 = vld [vmem:[%s29162_s7 + $0xecc] sm:$0xf0] }
 0x540   :  { %11544 = vmatpush.bf16.msra.mxu0 %v15866_v62  ;;  %v15782_v62 = vor.u32 %v18907_v28, %v15781_v57  ;;  %v17486_v47 = vor.u32 %v19330_v63, %v17483_v21  ;;  %v18865_v57 = vld [vmem:[%s29162_s7 + $0x300] sm:$0xf0]  ;;  %v15697_v28 = vld [vmem:[%s29162_s7 + $0x390] sm:$0xf]  ;;  %v19159_v63 = vld [vmem:[%s29162_s7 + $0xc30] sm:$0xf0] }
 0x541   :  { %11518 = vmatpush.bf16.msrb.mxu2 %v15418_v12  ;;  %v19253_v21 = vld [vmem:[%s29162_s7 + $0xf24] sm:$0xf]  ;;  %v15614_v15 = vor.u32 %v18865_v57, %v15613_v37  ;;  %v16790_v42 = vor.u32 %v19159_v63, %v16789_v38 }
 0x542   :  { %11406 = vmatpush.bf16.msra.mxu1 %v16170_v20  ;;  %v17178_v3 = vor.u32 %v19253_v21, %v17175_v10  ;;  %v15306_v20 = vor.u32 %v18788_v5, %v15305_v34  ;;  %v19232_v10 = vld [vmem:[%s29162_s7 + $0xe7c] sm:$0xf]  ;;  %v17091_v34 = vld [vmem:[%s29162_s7 + $0xe94] sm:$0xf0]  ;;  %v15501_v5 = vld [vmem:[%s29162_s7 + $0x208] sm:$0xf] }
 0x543   :  { %11482 = vmatpush.bf16.msra.mxu3 %v17570_v46  ;;  %v18900_v46 = vld [vmem:[%s29162_s7 + $0x418] sm:$0xf0] }
 0x544   :  { %11545 = vmatpush.bf16.msra.mxu0 %v15838_v51  ;;  %v15670_v51 = vor.u32 %v18879_v45, %v15669_v26  ;;  %v15754_v13 = vor.u32 %v18900_v46, %v15753_v50  ;;  %v15585_v26 = vld [vmem:[%s29162_s7 + $0x2b0] sm:$0xf]  ;;  %v18858_v45 = vld [vmem:[%s29162_s7 + $0x2c8] sm:$0xf0]  ;;  %v16761_v50 = vld [vmem:[%s29162_s7 + $0xbe0] sm:$0xf] }
 0x545   :  { %11519 = vmatpush.bf16.msrb.mxu2 %v15390_v2  ;;  %v19152_v46 = vld [vmem:[%s29162_s7 + $0xbf8] sm:$0xf0]  ;;  %v15586_v2 = vor.u32 %v18858_v45, %v15585_v26  ;;  %v18837_v45 = vld [vmem:[%s29162_s7 + $0x220] sm:$0xf0] }
 0x546   :  { %v16762_v19 = vor.u32 %v19152_v46, %v16761_v50  ;;  %v17094_v50 = vor.u32 %v19232_v10, %v17091_v34  ;;  %v19131_v46 = vld [vmem:[%s29162_s7 + $0xb50] sm:$0xf0]  ;;  %v19442_v34 = vld [vmem:[%s29162_s7 + $0x150c] sm:$0xf] }
 0x547   :  { %11483 = vmatpush.bf16.msra.mxu3 %v17542_v23  ;;  %v16142_v23 = vor.u32 %v18994_v61, %v16139_v35  ;;  %v17147_v61 = vld [vmem:[%s29162_s7 + $0xf04] sm:$0xf0]  ;;  %v11201_v37 = vpop.f32.mrf.mxu1 }
 0x548   :  { %11546 = vmatpush.bf16.msra.mxu0 %v15810_v14  ;;  %v18795_v14 = vld [vmem:[%s29162_s7 + $0xd0] sm:$0xf0]  ;;  %v15277_v35 = vld [vmem:[%s29162_s7 + $0x48] sm:$0xf]  ;;  %v17150_v40 = vor.u32 %v19246_v7, %v17147_v61 }
 0x549   :  { %11407 = vmatpush.bf16.msra.mxu1 %v16142_v23  ;;  %11520 = vmatpush.bf16.msrb.mxu2 %v15362_v27  ;;  %v15334_v12 = vor.u32 %v18795_v14, %v15333_v9  ;;  %v15278_v30 = vor.u32 %v18781_v31, %v15277_v35  ;;  %v19145_v23 = vld [vmem:[%s29162_s7 + $0xbc0] sm:$0xf0]  ;;  %v15249_v27 = vld [vmem:[%s29162_s7 + $0x10] sm:$0xf]  ;;  %v18844_v9 = vld [vmem:[%s29162_s7 + $0x258] sm:$0xf0] }
 0x54a   :  { %v16341_v14 = vld [vmem:[%s29162_s7 + $0x898] sm:$0xf]  ;;  %v19225_v35 = vld [vmem:[%s29162_s7 + $0xe44] sm:$0xf]  ;;  %v17063_v31 = vld [vmem:[%s29162_s7 + $0xe5c] sm:$0xf0] }
 0x54b   :  { %11484 = vmatpush.bf16.msra.mxu3 %v17514_v44  ;;  %v17206_v44 = vor.u32 %v19260_v60, %v17203_v53  ;;  %v18774_v60 = vld [vmem:[%s29162_s7 + $0x28] sm:$0xf0] }
 0x54c   :  { %11547 = vmatpush.bf16.msra.mxu0 %v15782_v62  ;;  %11408 = vmatmul.bf16.vlgmr.msra.gmra.mxu1 %v24827_v29  ;;  %v15698_v62 = vor.u32 %v18886_v36, %v15697_v28  ;;  %v17122_v36 = vor.u32 %v19239_v32, %v17119_v17  ;;  %v17066_v32 = vor.u32 %v19225_v35, %v17063_v31  ;;  %v19124_v17 = vld [vmem:[%s29162_s7 + $0xb18] sm:$0xf0] }
 0x54d   :  { %11452 = vmatpush.bf16.msrb.mxu1 %v17234_v54  ;;  %11521 = vmatpush.bf16.msrb.mxu2 %v15334_v12  ;;  %v15558_v54 = vor.u32 %v18851_v0, %v15557_v8  ;;  %v19138_v12 = vld [vmem:[%s29162_s7 + $0xb88] sm:$0xf0]  ;;  %v16285_v8 = vld [vmem:[%s29162_s7 + $0x828] sm:$0xf]  ;;  %v19033_v0 = vld [vmem:[%s29162_s7 + $0x840] sm:$0xf0] }
 0x54f   :  { %11485 = vmatpush.bf16.msra.mxu3 %v17486_v47  ;;  %v27295_v47 = vpop.f32.mrf.mxu2 }
 0x550   :  { %11548 = vmatpush.bf16.msra.mxu0 %v15754_v13  ;;  %v16733_v13 = vld [vmem:[%s29162_s7 + $0xba8] sm:$0xf]  ;;  %v27356_v63 = vpop.f32.mrf.mxu0 }
 0x551   :  { %11453 = vmatpush.bf16.msrb.mxu1 %v17206_v44  ;;  %11522 = vmatpush.bf16.msrb.mxu2 %v15306_v20  ;;  %v16734_v57 = vor.u32 %v19145_v23, %v16733_v13  ;;  %v16705_v44 = vld [vmem:[%s29162_s7 + $0xb70] sm:$0xf]  ;;  %v11203_v13 = vpop.f32.mrf.mxu1  ;;  %v19103_v23 = vld [vmem:[%s29162_s7 + $0xa70] sm:$0xf0] }
 0x552   :  { %11486 = vmatmul.bf16.vlgmr.msra.gmra.mxu3 %v25281_v48  ;;  %v16706_v20 = vor.u32 %v19138_v12, %v16705_v44  ;;  %v19096_v44 = vld [vmem:[%s29162_s7 + $0xa38] sm:$0xf0]  ;;  %v16201_v13 = vld [vmem:[%s29162_s7 + $0x780] sm:$0xf] }
 0x553   :  { %11530 = vmatpush.bf16.msrb.mxu3 %v15670_v51  ;;  %v7298_v51 = vperm.slane %v27309_v49, 2 }
 0x554   :  { %11549 = vmatpush.bf16.msra.mxu0 %v15726_v52  ;;  %v19047_v52 = vld [vmem:[%s29162_s7 + $0x8b0] sm:$0xf0] }
 0x555   :  { %11454 = vmatpush.bf16.msrb.mxu1 %v17178_v3  ;;  %v11189_v53 = vadd.f32 %v26928_v24, %v7298_v51  ;;  %11523 = vmatpush.bf16.msrb.mxu2 %v15278_v30  ;;  %v15250_v24 = vor.u32 %v18774_v60, %v15249_v27  ;;  %v27368_v26 = vpop.f32.mrf.mxu3  ;;  %v19040_v3 = vld [vmem:[%s29162_s7 + $0x878] sm:$0xf0]  ;;  %v15473_v51 = vld [vmem:[%s29162_s7 + $0x1d0] sm:$0xf]  ;;  %v16565_v30 = vld [vmem:[%s29162_s7 + $0xa58] sm:$0xf]  ;;  %v16286_v60 = vor.u32 %v19033_v0, %v16285_v8 }
 0x557   :  { %11531 = vmatpush.bf16.msrb.mxu3 %v15642_v6  ;;  %v15529_v6 = vld [vmem:[%s29162_s7 + $0x240] sm:$0xf]  ;;  %v11202_v28 = vadd.f32 %v11201_v37, %v11189_v53  ;;  %v11268_v38 = vpop.f32.mrf.mxu2  ;;  %v17035_v53 = vld [vmem:[%s29162_s7 + $0xe24] sm:$0xf0] }
 0x558   :  { %11550 = vmatpush.bf16.msra.mxu0 %v15698_v62  ;;  %v15530_v21 = vor.u32 %v18844_v9, %v15529_v6  ;;  %v19218_v6 = vld [vmem:[%s29162_s7 + $0xe0c] sm:$0xf]  ;;  %v19449_v9 = vld [vmem:[%s29162_s7 + $0x1544] sm:$0xf]  ;;  %v17959_v37 = vld [vmem:[%s29162_s7 + $0x155c] sm:$0xf0] }
 0x559   :  { %11455 = vmatpush.bf16.msrb.mxu1 %v17150_v40  ;;  %v11215_v62 = vadd.f32 %v27086_v41, %v11202_v28  ;;  %11524 = vmatpush.bf16.msrb.mxu2 %v15250_v24  ;;  %v16677_v41 = vld [vmem:[%s29162_s7 + $0xb38] sm:$0xf]  ;;  %v19026_v28 = vld [vmem:[%s29162_s7 + $0x808] sm:$0xf0]  ;;  %v16537_v24 = vld [vmem:[%s29162_s7 + $0xa20] sm:$0xf]  ;;  %v17038_v12 = vor.u32 %v19218_v6, %v17035_v53 }
 0x55a   :  { %v16678_v40 = vor.u32 %v19131_v46, %v16677_v41  ;;  %v16621_v38 = vld [vmem:[%s29162_s7 + $0xac8] sm:$0xf]  ;;  %v19089_v46 = vld [vmem:[%s29162_s7 + $0xa00] sm:$0xf0]  ;;  %v19376_v6 = vld [vmem:[%s29162_s7 + $0x12f8] sm:$0xf0] }
 0x55b   :  { %11532 = vmatpush.bf16.msrb.mxu3 %v15614_v15  ;;  %11551 = vmatmul.bf16.vlgmr.msra.gmra.mxu0 %v24921_v1  ;;  %v16342_v15 = vor.u32 %v19047_v52, %v16341_v14  ;;  %v11228_v7 = vadd.f32 %v27153_v25, %v11215_v62  ;;  %v18830_v25 = vld [vmem:[%s29162_s7 + $0x1e8] sm:$0xf0]  ;;  %v16566_v52 = vor.u32 %v19103_v23, %v16565_v30  ;;  %v16509_v41 = vld [vmem:[%s29162_s7 + $0x9e8] sm:$0xf]  ;;  %v16089_v30 = vld [vmem:[%s29162_s7 + $0x6a0] sm:$0xf] }
 0x55c   :  { %11595 = vmatpush.bf16.msrb.mxu0 %v16790_v42  ;;  %v16313_v42 = vld [vmem:[%s29162_s7 + $0x860] sm:$0xf]  ;;  %11525 = vmatmul.bf16.vlgmr.msrb.gmra.mxu2 %v24611_v39  ;;  %v15474_v27 = vor.u32 %v18830_v25, %v15473_v51  ;;  %v16538_v62 = vor.u32 %v19096_v44, %v16537_v24  ;;  %v17685_v51 = vld [vmem:[%s29162_s7 + $0x1318] sm:$0xf]  ;;  %v19383_v25 = vld [vmem:[%s29162_s7 + $0x1330] sm:$0xf0]  ;;  %v16510_v0 = vor.u32 %v19089_v46, %v16509_v41 }
 0x55d   :  { %11456 = vmatpush.bf16.msrb.mxu1 %v17122_v36  ;;  %11569 = vmatpush.bf16.msra.mxu2 %v16342_v15  ;;  %v16314_v61 = vor.u32 %v19040_v3, %v16313_v42  ;;  %v11281_v14 = vpop.f32.mrf.mxu3  ;;  %v17962_v15 = vor.u32 %v19449_v9, %v17959_v37  ;;  %v19019_v42 = vld [vmem:[%s29162_s7 + $0x7d0] sm:$0xf0]  ;;  %v16117_v3 = vld [vmem:[%s29162_s7 + $0x6d8] sm:$0xf]  ;;  %v19005_v37 = vld [vmem:[%s29162_s7 + $0x760] sm:$0xf0] }
 0x55e   :  { %v19075_v24 = vld [vmem:[%s29162_s7 + $0x990] sm:$0xf0]  ;;  %v17237_v46 = vld [vmem:[%s29162_s7 + $0xf98] sm:$0xf] }
 0x55f   :  { %11533 = vmatpush.bf16.msrb.mxu3 %v15586_v2  ;;  %v15502_v2 = vor.u32 %v18837_v45, %v15501_v5  ;;  %v17931_v5 = vld [vmem:[%s29162_s7 + $0x1524] sm:$0xf0]  ;;  %v16229_v45 = vld [vmem:[%s29162_s7 + $0x7b8] sm:$0xf]  ;;  %v27514_v53 = vpop.f32.mrf.mxu2 }
 0x560   :  { %11596 = vmatpush.bf16.msrb.mxu0 %v16762_v19  ;;  %v27405_v19 = vadd.f32 %v27141_v22, %v11228_v7  ;;  %v16649_v22 = vld [vmem:[%s29162_s7 + $0xb00] sm:$0xf]  ;;  %v16593_v7 = vld [vmem:[%s29162_s7 + $0xa90] sm:$0xf]  ;;  %v17934_v35 = vor.u32 %v19442_v34, %v17931_v5  ;;  %v16230_v31 = vor.u32 %v19019_v42, %v16229_v45  ;;  %v18970_v42 = vld [vmem:[%s29162_s7 + $0x648] sm:$0xf0] }
 0x561   :  { %11457 = vmatpush.bf16.msrb.mxu1 %v17094_v50  ;;  %11570 = vmatpush.bf16.msra.mxu2 %v16314_v61  ;;  %v16650_v36 = vor.u32 %v19124_v17, %v16649_v22  ;;  %v18991_v50 = vld [vmem:[%s29162_s7 + $0x6f0] sm:$0xf0]  ;;  %v16481_v22 = vld [vmem:[%s29162_s7 + $0x9b0] sm:$0xf]  ;;  %v19082_v17 = vld [vmem:[%s29162_s7 + $0x9c8] sm:$0xf0] }
 0x562   :  { %v16118_v8 = vor.u32 %v18991_v50, %v16117_v3  ;;  %v16482_v14 = vor.u32 %v19082_v17, %v16481_v22  ;;  %v16145_v5 = vld [vmem:[%s29162_s7 + $0x710] sm:$0xf]  ;;  %v16425_v3 = vld [vmem:[%s29162_s7 + $0x940] sm:$0xf]  ;;  %v19061_v22 = vld [vmem:[%s29162_s7 + $0x920] sm:$0xf0] }
 0x563   :  { %11534 = vmatpush.bf16.msrb.mxu3 %v15558_v54  ;;  %v11294_v54 = vpop.f32.mrf.mxu0  ;;  %v16033_v45 = vld [vmem:[%s29162_s7 + $0x630] sm:$0xf] }
 0x564   :  { %11597 = vmatpush.bf16.msrb.mxu0 %v16734_v57  ;;  %v16257_v57 = vld [vmem:[%s29162_s7 + $0x7f0] sm:$0xf]  ;;  %v17686_v54 = vor.u32 %v19383_v25, %v17685_v51  ;;  %v19362_v51 = vld [vmem:[%s29162_s7 + $0x1288] sm:$0xf0] }
 0x565   :  { %11458 = vmatpush.bf16.msrb.mxu1 %v17066_v32  ;;  %11571 = vmatpush.bf16.msra.mxu2 %v16286_v60  ;;  %v16258_v10 = vor.u32 %v19026_v28, %v16257_v57  ;;  %v18984_v32 = vld [vmem:[%s29162_s7 + $0x6b8] sm:$0xf0]  ;;  %v17657_v60 = vld [vmem:[%s29162_s7 + $0x12e0] sm:$0xf]  ;;  %v16061_v57 = vld [vmem:[%s29162_s7 + $0x668] sm:$0xf] }
 0x566   :  { %v16090_v9 = vor.u32 %v18984_v32, %v16089_v30  ;;  %v18977_v28 = vld [vmem:[%s29162_s7 + $0x680] sm:$0xf0]  ;;  %v17658_v44 = vor.u32 %v19376_v6, %v17657_v60  ;;  %v16397_v32 = vld [vmem:[%s29162_s7 + $0x908] sm:$0xf]  ;;  %v19355_v60 = vld [vmem:[%s29162_s7 + $0x1250] sm:$0xf0] }
 0x567   :  { %11535 = vmatpush.bf16.msrb.mxu3 %v15530_v21  ;;  %v19117_v21 = vld [vmem:[%s29162_s7 + $0xae0] sm:$0xf0]  ;;  %v11253_v50 = vpop.f32.mrf.mxu1  ;;  %v11320_v25 = vpop.f32.mrf.mxu2 }
 0x568   :  { %11598 = vmatpush.bf16.msrb.mxu0 %v16706_v20  ;;  %v16622_v20 = vor.u32 %v19117_v21, %v16621_v38  ;;  %v17629_v21 = vld [vmem:[%s29162_s7 + $0x12a8] sm:$0xf] }
 0x569   :  { %11459 = vmatpush.bf16.msrb.mxu1 %v17038_v12  ;;  %11572 = vmatpush.bf16.msra.mxu2 %v16258_v10  ;;  %v16062_v10 = vor.u32 %v18977_v28, %v16061_v57 }
 0x56b   :  { %11536 = vmatpush.bf16.msrb.mxu3 %v15502_v2  ;;  %v19110_v2 = vld [vmem:[%s29162_s7 + $0xaa8] sm:$0xf0]  ;;  %v27481_v61 = vpop.f32.mrf.mxu0 }
 0x56c   :  { %11599 = vmatpush.bf16.msrb.mxu0 %v16678_v40  ;;  %v19012_v40 = vld [vmem:[%s29162_s7 + $0x798] sm:$0xf0]  ;;  %11460 = vmatmul.bf16.vlgmr.msrb.gmra.mxu1 %v25034_v16  ;;  %v16594_v23 = vor.u32 %v19110_v2, %v16593_v7  ;;  %v19271_v7 = vld [vmem:[%s29162_s7 + $0xfb0] sm:$0xf0]  ;;  %v11254_v2 = vadd.f32 %v11253_v50, %v27405_v19  ;;  %v18949_v50 = vld [vmem:[%s29162_s7 + $0x5a0] sm:$0xf0] }
 0x56d   :  { %11510 = vmatpush.bf16.msra.mxu1 %v17962_v15  ;;  %11573 = vmatpush.bf16.msra.mxu2 %v16230_v31  ;;  %v19369_v15 = vld [vmem:[%s29162_s7 + $0x12c0] sm:$0xf0]  ;;  %v17601_v31 = vld [vmem:[%s29162_s7 + $0x1270] sm:$0xf]  ;;  %v17238_v30 = vor.u32 %v19271_v7, %v17237_v46  ;;  %v19250_v7 = vld [vmem:[%s29162_s7 + $0xf08] sm:$0xf0] }
 0x56e   :  { %v17630_v41 = vor.u32 %v19369_v15, %v17629_v21  ;;  %v11267_v19 = vadd.f32 %v27295_v47, %v11254_v2  ;;  %v17602_v17 = vor.u32 %v19362_v51, %v17601_v31  ;;  %v17209_v47 = vld [vmem:[%s29162_s7 + $0xf60] sm:$0xf]  ;;  %v19257_v21 = vld [vmem:[%s29162_s7 + $0xf40] sm:$0xf0]  ;;  %v17461_v15 = vld [vmem:[%s29162_s7 + $0x1158] sm:$0xf] }
 0x56f   :  { %11537 = vmatpush.bf16.msrb.mxu3 %v15474_v27  ;;  %v16202_v27 = vor.u32 %v19012_v40, %v16201_v13  ;;  %v16005_v13 = vld [vmem:[%s29162_s7 + $0x5f8] sm:$0xf]  ;;  %v17433_v2 = vld [vmem:[%s29162_s7 + $0x1120] sm:$0xf]  ;;  %v17517_v31 = vld [vmem:[%s29162_s7 + $0x11c8] sm:$0xf] }
 0x570   :  { %11600 = vmatpush.bf16.msrb.mxu0 %v16650_v36  ;;  %v16453_v36 = vld [vmem:[%s29162_s7 + $0x978] sm:$0xf]  ;;  %v11280_v6 = vadd.f32 %v27368_v26, %v11267_v19  ;;  %v16369_v26 = vld [vmem:[%s29162_s7 + $0x8d0] sm:$0xf]  ;;  %v19341_v51 = vld [vmem:[%s29162_s7 + $0x11e0] sm:$0xf0] }
 0x571   :  { %11511 = vmatpush.bf16.msra.mxu1 %v17934_v35  ;;  %11574 = vmatpush.bf16.msra.mxu2 %v16202_v27  ;;  %v16454_v34 = vor.u32 %v19075_v24, %v16453_v36  ;;  %v17573_v27 = vld [vmem:[%s29162_s7 + $0x1238] sm:$0xf]  ;;  %v19054_v36 = vld [vmem:[%s29162_s7 + $0x8e8] sm:$0xf0]  ;;  %v17181_v24 = vld [vmem:[%s29162_s7 + $0xf28] sm:$0xf] }
 0x572   :  { %11538 = vmatmul.bf16.vlgmr.msrb.gmra.mxu3 %v25048_v55 }
 0x573   :  { %11582 = vmatpush.bf16.msra.mxu3 %v16566_v52  ;;  %v16173_v52 = vld [vmem:[%s29162_s7 + $0x748] sm:$0xf]  ;;  %v11346_v12 = vpop.f32.mrf.mxu0 }
 0x574   :  { %11601 = vmatpush.bf16.msrb.mxu0 %v16622_v20  ;;  %v16174_v38 = vor.u32 %v19005_v37, %v16173_v52  ;;  %v19068_v20 = vld [vmem:[%s29162_s7 + $0x958] sm:$0xf0]  ;;  %v15977_v52 = vld [vmem:[%s29162_s7 + $0x5c0] sm:$0xf]  ;;  %v11255_v12 = vpop.f32.mrf.mxu1 }
 0x575   :  { %11556 = vmatpush.bf16.msrb.mxu1 %v16118_v8  ;;  %v16034_v8 = vor.u32 %v18970_v42, %v16033_v45  ;;  %v27576_v40 = vpop.f32.mrf.mxu3  ;;  %v18956_v37 = vld [vmem:[%s29162_s7 + $0x5d8] sm:$0xf0]  ;;  %v17182_v42 = vor.u32 %v19257_v21, %v17181_v24 }
 0x576   :  { %11575 = vmatpush.bf16.msra.mxu2 %v16174_v38  ;;  %v17574_v38 = vor.u32 %v19355_v60, %v17573_v27  ;;  %v19313_v27 = vld [vmem:[%s29162_s7 + $0x1100] sm:$0xf0]  ;;  %v17489_v60 = vld [vmem:[%s29162_s7 + $0x1190] sm:$0xf]  ;;  %v19236_v12 = vld [vmem:[%s29162_s7 + $0xe98] sm:$0xf0] }
 0x577   :  { %11583 = vmatpush.bf16.msra.mxu3 %v16538_v62  ;;  %v18998_v62 = vld [vmem:[%s29162_s7 + $0x728] sm:$0xf0]  ;;  %v19208_v21 = vld [vmem:[%s29162_s7 + $0xdb8] sm:$0xf0] }
 0x578   :  { %11602 = vmatpush.bf16.msrb.mxu0 %v16594_v23  ;;  %v16146_v35 = vor.u32 %v18998_v62, %v16145_v5  ;;  %v18963_v23 = vld [vmem:[%s29162_s7 + $0x610] sm:$0xf0]  ;;  %v15978_v5 = vor.u32 %v18956_v37, %v15977_v52  ;;  %v16370_v62 = vor.u32 %v19054_v36, %v16369_v26  ;;  %v15671_v52 = vld [vmem:[%s29162_s7 + $0x374] sm:$0xf0]  ;;  %v17097_v26 = vld [vmem:[%s29162_s7 + $0xe80] sm:$0xf] }
 0x579   :  { %11557 = vmatpush.bf16.msrb.mxu1 %v16090_v9  ;;  %v16006_v9 = vor.u32 %v18963_v23, %v16005_v13  ;;  %v17125_v23 = vld [vmem:[%s29162_s7 + $0xeb8] sm:$0xf] }
 0x57a   :  { %11576 = vmatpush.bf16.msra.mxu2 %v16146_v35  ;;  %v19320_v35 = vld [vmem:[%s29162_s7 + $0x1138] sm:$0xf0] }
 0x57b   :  { %11584 = vmatpush.bf16.msra.mxu3 %v16510_v0  ;;  %11603 = vmatmul.bf16.vlgmr.msrb.gmra.mxu0 %v25114_v59  ;;  %v16426_v0 = vor.u32 %v19068_v20, %v16425_v3  ;;  %v27606_v57 = vpop.f32.mrf.mxu0  ;;  %v15949_v20 = vld [vmem:[%s29162_s7 + $0x588] sm:$0xf]  ;;  %v17434_v19 = vor.u32 %v19320_v35, %v17433_v2  ;;  %v17349_v2 = vld [vmem:[%s29162_s7 + $0x1078] sm:$0xf]  ;;  %v19299_v35 = vld [vmem:[%s29162_s7 + $0x1090] sm:$0xf0] }
 0x57c   :  { %11647 = vmatpush.bf16.msra.mxu0 %v17686_v54  ;;  %v19264_v54 = vld [vmem:[%s29162_s7 + $0xf78] sm:$0xf0]  ;;  %17978 = vmatmul.msk.bf16.vlgmr.msra.gmra.mxu1 %vm1056_vm0, %v25778_v11  ;;  %v15950_v25 = vor.u32 %v18949_v50, %v15949_v20  ;;  %v19229_v50 = vld [vmem:[%s29162_s7 + $0xe60] sm:$0xf0] }
 0x57d   :  { %11558 = vmatpush.bf16.msrb.mxu1 %v16062_v10  ;;  %v17210_v28 = vor.u32 %v19264_v54, %v17209_v47  ;;  %11577 = vmatmul.bf16.vlgmr.msra.gmra.mxu2 %v24827_v29  ;;  %v19327_v10 = vld [vmem:[%s29162_s7 + $0x1170] sm:$0xf0]  ;;  %v11333_v45 = vpop.f32.mrf.mxu3  ;;  %v17405_v54 = vld [vmem:[%s29162_s7 + $0x10e8] sm:$0xf] }
 0x57e   :  { %11621 = vmatpush.bf16.msrb.mxu2 %v17238_v30  ;;  %v17462_v3 = vor.u32 %v19327_v10, %v17461_v15  ;;  %v18942_v30 = vld [vmem:[%s29162_s7 + $0x568] sm:$0xf0]  ;;  %v19215_v47 = vld [vmem:[%s29162_s7 + $0xdf0] sm:$0xf0]  ;;  %v17406_v36 = vor.u32 %v19313_v27, %v17405_v54  ;;  %v17377_v10 = vld [vmem:[%s29162_s7 + $0x10b0] sm:$0xf]  ;;  %v17098_v45 = vor.u32 %v19236_v12, %v17097_v26 }
 0x57f   :  { %11585 = vmatpush.bf16.msra.mxu3 %v16482_v14  ;;  %v16398_v14 = vor.u32 %v19061_v22, %v16397_v32  ;;  %v19243_v32 = vld [vmem:[%s29162_s7 + $0xed0] sm:$0xf0]  ;;  %v17518_v22 = vor.u32 %v19341_v51, %v17517_v31  ;;  %v18862_v31 = vld [vmem:[%s29162_s7 + $0x2ec] sm:$0xf]  ;;  %v15615_v51 = vld [vmem:[%s29162_s7 + $0x304] sm:$0xf0] }
 0x580   :  { %11648 = vmatpush.bf16.msra.mxu0 %v17658_v44  ;;  %v27620_v44 = vadd.f32 %v27356_v63, %v11280_v6  ;;  %v17545_v63 = vld [vmem:[%s29162_s7 + $0x1200] sm:$0xf]  ;;  %v19334_v6 = vld [vmem:[%s29162_s7 + $0x11a8] sm:$0xf0]  ;;  %v17126_v37 = vor.u32 %v19243_v32, %v17125_v23  ;;  %v17965_v54 = vld [vmem:[%s29162_s7 + $0x1548] sm:$0xf] }
 0x581   :  { %11559 = vmatpush.bf16.msrb.mxu1 %v16034_v8  ;;  %v15921_v8 = vld [vmem:[%s29162_s7 + $0x550] sm:$0xf]  ;;  %v17490_v24 = vor.u32 %v19334_v6, %v17489_v60  ;;  %v19194_v23 = vld [vmem:[%s29162_s7 + $0xd48] sm:$0xf0]  ;;  %v17321_v32 = vld [vmem:[%s29162_s7 + $0x1040] sm:$0xf] }
 0x582   :  { %11622 = vmatpush.bf16.msrb.mxu2 %v17210_v28  ;;  %v19453_v27 = vld [vmem:[%s29162_s7 + $0x1560] sm:$0xf0]  ;;  %v18855_v6 = vld [vmem:[%s29162_s7 + $0x2b4] sm:$0xf] }
 0x583   :  { %11586 = vmatpush.bf16.msra.mxu3 %v16454_v34  ;;  %v19348_v34 = vld [vmem:[%s29162_s7 + $0x1218] sm:$0xf0]  ;;  %v19187_v12 = vld [vmem:[%s29162_s7 + $0xd10] sm:$0xf0] }
 0x584   :  { %11649 = vmatpush.bf16.msra.mxu0 %v17630_v41  ;;  %v17153_v41 = vld [vmem:[%s29162_s7 + $0xef0] sm:$0xf]  ;;  %v17546_v46 = vor.u32 %v19348_v34, %v17545_v63  ;;  %v19306_v63 = vld [vmem:[%s29162_s7 + $0x10c8] sm:$0xf0]  ;;  %v18869_v34 = vld [vmem:[%s29162_s7 + $0x324] sm:$0xf] }
 0x585   :  { %11560 = vmatpush.bf16.msrb.mxu1 %v16006_v9  ;;  %v17154_v13 = vor.u32 %v19250_v7, %v17153_v41  ;;  %v15922_v9 = vor.u32 %v18942_v30, %v15921_v8  ;;  %v17378_v20 = vor.u32 %v19306_v63, %v17377_v10  ;;  %v16957_v41 = vld [vmem:[%s29162_s7 + $0xd68] sm:$0xf]  ;;  %v16929_v30 = vld [vmem:[%s29162_s7 + $0xd30] sm:$0xf]  ;;  %v19446_v10 = vld [vmem:[%s29162_s7 + $0x1528] sm:$0xf0] }
 0x586   :  { %11623 = vmatpush.bf16.msrb.mxu2 %v17182_v42  ;;  %v18988_v63 = vld [vmem:[%s29162_s7 + $0x6dc] sm:$0xf] }
 0x587   :  { %11587 = vmatpush.bf16.msra.mxu3 %v16426_v0  ;;  %v11398_v0 = vpop.f32.mrf.mxu0 }
 0x588   :  { %11650 = vmatpush.bf16.msra.mxu0 %v17602_v17  ;;  %v17013_v17 = vld [vmem:[%s29162_s7 + $0xdd8] sm:$0xf]  ;;  %v17041_v0 = vld [vmem:[%s29162_s7 + $0xe10] sm:$0xf] }
 0x589   :  { %11561 = vmatpush.bf16.msrb.mxu1 %v15978_v5  ;;  %v17014_v28 = vor.u32 %v19215_v47, %v17013_v17  ;;  %v15643_v5 = vld [vmem:[%s29162_s7 + $0x33c] sm:$0xf0]  ;;  %v15618_v17 = vor.u32 %v18862_v31, %v15615_v51  ;;  %v19292_v47 = vld [vmem:[%s29162_s7 + $0x1058] sm:$0xf0]  ;;  %v19278_v51 = vld [vmem:[%s29162_s7 + $0xfe8] sm:$0xf0] }
 0x58a   :  { %11624 = vmatpush.bf16.msrb.mxu2 %v17154_v13  ;;  %v15646_v7 = vor.u32 %v18869_v34, %v15643_v5  ;;  %v19222_v13 = vld [vmem:[%s29162_s7 + $0xe28] sm:$0xf0]  ;;  %v16119_v5 = vld [vmem:[%s29162_s7 + $0x6f4] sm:$0xf0] }
 0x58b   :  { %11588 = vmatpush.bf16.msra.mxu3 %v16398_v14  ;;  %v18876_v14 = vld [vmem:[%s29162_s7 + $0x35c] sm:$0xf] }
 0x58c   :  { %11651 = vmatpush.bf16.msra.mxu0 %v17574_v38  ;;  %v16985_v38 = vld [vmem:[%s29162_s7 + $0xda0] sm:$0xf]  ;;  %v15674_v15 = vor.u32 %v18876_v14, %v15671_v52  ;;  %v17042_v52 = vor.u32 %v19222_v13, %v17041_v0  ;;  %v18981_v0 = vld [vmem:[%s29162_s7 + $0x6a4] sm:$0xf] }
 0x58d   :  { %11562 = vmatpush.bf16.msrb.mxu1 %v15950_v25  ;;  %v16986_v42 = vor.u32 %v19208_v21, %v16985_v38  ;;  %v17293_v38 = vld [vmem:[%s29162_s7 + $0x1008] sm:$0xf]  ;;  %v19285_v21 = vld [vmem:[%s29162_s7 + $0x1020] sm:$0xf0]  ;;  %v16091_v13 = vld [vmem:[%s29162_s7 + $0x6bc] sm:$0xf0] }
 0x58e   :  { %11625 = vmatpush.bf16.msrb.mxu2 %v17126_v37  ;;  %v16930_v37 = vor.u32 %v19194_v23, %v16929_v30  ;;  %v18841_v30 = vld [vmem:[%s29162_s7 + $0x244] sm:$0xf]  ;;  %v15531_v23 = vld [vmem:[%s29162_s7 + $0x25c] sm:$0xf0] }
 0x58f   :  { %11589 = vmatpush.bf16.msra.mxu3 %v16370_v62  ;;  %v27723_v62 = vpop.f32.mrf.mxu2 }
 0x590   :  { %11652 = vmatpush.bf16.msra.mxu0 %v17546_v46  ;;  %v19201_v46 = vld [vmem:[%s29162_s7 + $0xd80] sm:$0xf0] }
 0x591   :  { %11563 = vmatpush.bf16.msrb.mxu1 %v15922_v9  ;;  %v16958_v8 = vor.u32 %v19201_v46, %v16957_v41  ;;  %v15587_v9 = vld [vmem:[%s29162_s7 + $0x2cc] sm:$0xf0]  ;;  %v16873_v46 = vld [vmem:[%s29162_s7 + $0xcc0] sm:$0xf] }
 0x592   :  { %11590 = vmatmul.bf16.vlgmr.msra.gmra.mxu3 %v25219_v56  ;;  %11626 = vmatpush.bf16.msrb.mxu2 %v17098_v45  ;;  %v18848_v45 = vld [vmem:[%s29162_s7 + $0x27c] sm:$0xf] }
 0x593   :  { %11634 = vmatpush.bf16.msrb.mxu3 %v17462_v3  ;;  %v17069_v3 = vld [vmem:[%s29162_s7 + $0xe48] sm:$0xf] }
 0x594   :  { %11653 = vmatpush.bf16.msra.mxu0 %v17518_v22  ;;  %11564 = vmatmul.bf16.vlgmr.msrb.gmra.mxu1 %v24908_v43  ;;  %v17070_v25 = vor.u32 %v19229_v50, %v17069_v3  ;;  %v11305_v22 = vpop.f32.mrf.mxu1  ;;  %v17294_v50 = vor.u32 %v19285_v21, %v17293_v38 }
 0x595   :  { %11608 = vmatpush.bf16.msra.mxu1 %v17014_v28  ;;  %v11306_v60 = vadd.f32 %v11305_v22, %v27620_v44  ;;  %v16901_v28 = vld [vmem:[%s29162_s7 + $0xcf8] sm:$0xf]  ;;  %v27786_v44 = vpop.f32.mrf.mxu3 }
 0x596   :  { %11627 = vmatpush.bf16.msrb.mxu2 %v17070_v25  ;;  %v16902_v3 = vor.u32 %v19187_v12, %v16901_v28  ;;  %v18820_v25 = vld [vmem:[%s29162_s7 + $0x19c] sm:$0xf]  ;;  %v18834_v28 = vld [vmem:[%s29162_s7 + $0x20c] sm:$0xf] }
 0x597   :  { %11635 = vmatpush.bf16.msrb.mxu3 %v17434_v19  ;;  %v17350_v19 = vor.u32 %v19299_v35, %v17349_v2  ;;  %v11372_v14 = vpop.f32.mrf.mxu2  ;;  %v11319_v26 = vadd.f32 %v27514_v53, %v11306_v60  ;;  %v17937_v53 = vld [vmem:[%s29162_s7 + $0x1510] sm:$0xf]  ;;  %v16122_v35 = vor.u32 %v18988_v63, %v16119_v5  ;;  %v18813_v60 = vld [vmem:[%s29162_s7 + $0x164] sm:$0xf]  ;;  %v19166_v12 = vld [vmem:[%s29162_s7 + $0xc68] sm:$0xf0] }
 0x598   :  { %11654 = vmatpush.bf16.msra.mxu0 %v17490_v24  ;;  %v17966_v24 = vor.u32 %v19453_v27, %v17965_v54  ;;  %v17938_v41 = vor.u32 %v19446_v10, %v17937_v53  ;;  %v16094_v27 = vor.u32 %v18981_v0, %v16091_v13  ;;  %v18974_v14 = vld [vmem:[%s29162_s7 + $0x66c] sm:$0xf]  ;;  %v19439_v53 = vld [vmem:[%s29162_s7 + $0x14f0] sm:$0xf0]  ;;  %v18960_v13 = vld [vmem:[%s29162_s7 + $0x5fc] sm:$0xf] }
 0x599   :  { %11609 = vmatpush.bf16.msra.mxu1 %v16986_v42  ;;  %v11332_v34 = vadd.f32 %v27576_v40, %v11319_v26  ;;  %v15559_v42 = vld [vmem:[%s29162_s7 + $0x294] sm:$0xf0]  ;;  %v27819_v40 = vpop.f32.mrf.mxu0  ;;  %v15503_v26 = vld [vmem:[%s29162_s7 + $0x224] sm:$0xf0]  ;;  %v18806_v10 = vld [vmem:[%s29162_s7 + $0x12c] sm:$0xf] }
 0x59a   :  { %11628 = vmatpush.bf16.msrb.mxu2 %v17042_v52  ;;  %v15562_v31 = vor.u32 %v18848_v45, %v15559_v42  ;;  %v16063_v52 = vld [vmem:[%s29162_s7 + $0x684] sm:$0xf0]  ;;  %v15506_v63 = vor.u32 %v18834_v28, %v15503_v26  ;;  %v18967_v5 = vld [vmem:[%s29162_s7 + $0x634] sm:$0xf]  ;;  %v16035_v45 = vld [vmem:[%s29162_s7 + $0x64c] sm:$0xf0] }
 0x59b   :  { %11636 = vmatpush.bf16.msrb.mxu3 %v17406_v36  ;;  %11655 = vmatmul.bf16.vlgmr.msra.gmra.mxu0 %v25281_v48  ;;  %v17322_v36 = vor.u32 %v19292_v47, %v17321_v32  ;;  %v19173_v47 = vld [vmem:[%s29162_s7 + $0xca0] sm:$0xf0]  ;;  %v16066_v21 = vor.u32 %v18974_v14, %v16063_v52  ;;  %v19086_v26 = vld [vmem:[%s29162_s7 + $0x9ec] sm:$0xf] }
 0x59c   :  { %11699 = vmatpush.bf16.msrb.mxu0 %v15674_v15  ;;  %v15590_v15 = vor.u32 %v18855_v6, %v15587_v9  ;;  %v11307_v2 = vpop.f32.mrf.mxu1  ;;  %v15534_v6 = vor.u32 %v18841_v30, %v15531_v23  ;;  %v15419_v9 = vld [vmem:[%s29162_s7 + $0x17c] sm:$0xf0]  ;;  %v18953_v52 = vld [vmem:[%s29162_s7 + $0x5c4] sm:$0xf] }
 0x59d   :  { %11610 = vmatpush.bf16.msra.mxu1 %v16958_v8  ;;  %11629 = vmatmul.bf16.vlgmr.msrb.gmra.mxu2 %v25034_v16  ;;  %v15447_v8 = vld [vmem:[%s29162_s7 + $0x1b4] sm:$0xf0]  ;;  %v11385_v32 = vpop.f32.mrf.mxu3  ;;  %v15422_v38 = vor.u32 %v18813_v60, %v15419_v9  ;;  %v18792_v60 = vld [vmem:[%s29162_s7 + $0xbc] sm:$0xf]  ;;  %v7299_v9 = vperm.slane %v27309_v49, 3 }
 0x59e   :  { %11679 = vmatpush.bf16.msra.mxu2 %v17966_v24  ;;  %v15450_v54 = vor.u32 %v18820_v25, %v15447_v8  ;;  %v16817_v24 = vld [vmem:[%s29162_s7 + $0xc50] sm:$0xf]  ;;  %v18799_v25 = vld [vmem:[%s29162_s7 + $0xf4] sm:$0xf]  ;;  %v19093_v32 = vld [vmem:[%s29162_s7 + $0xa24] sm:$0xf] }
 0x59f   :  { %11637 = vmatpush.bf16.msrb.mxu3 %v17378_v20  ;;  %v27817_v20 = vadd.f32 %v27481_v61, %v11332_v34  ;;  %v17265_v61 = vld [vmem:[%s29162_s7 + $0xfd0] sm:$0xf]  ;;  %v15391_v34 = vld [vmem:[%s29162_s7 + $0x144] sm:$0xf0]  ;;  %v16818_v42 = vor.u32 %v19166_v12, %v16817_v24  ;;  %v27931_v30 = vpop.f32.mrf.mxu2  ;;  %v19418_v12 = vld [vmem:[%s29162_s7 + $0x1448] sm:$0xf0] }
 0x5a0   :  { %11700 = vmatpush.bf16.msrb.mxu0 %v15646_v7  ;;  %v19180_v7 = vld [vmem:[%s29162_s7 + $0xcd8] sm:$0xf0]  ;;  %v17266_v22 = vor.u32 %v19278_v51, %v17265_v61  ;;  %v15394_v2 = vor.u32 %v18806_v10, %v15391_v34  ;;  %v15363_v8 = vld [vmem:[%s29162_s7 + $0x10c] sm:$0xf0]  ;;  %v18946_v34 = vld [vmem:[%s29162_s7 + $0x58c] sm:$0xf] }
 0x5a1   :  { %11611 = vmatpush.bf16.msra.mxu1 %v16930_v37  ;;  %v19432_v61 = vld [vmem:[%s29162_s7 + $0x14b8] sm:$0xf0]  ;;  %v17825_v24 = vld [vmem:[%s29162_s7 + $0x1430] sm:$0xf] }
 0x5a2   :  { %11680 = vmatpush.bf16.msra.mxu2 %v17938_v41 }
 0x5a3   :  { %11638 = vmatpush.bf16.msrb.mxu3 %v17350_v19  ;;  %v16874_v19 = vor.u32 %v19180_v7, %v16873_v46  ;;  %v19100_v46 = vld [vmem:[%s29162_s7 + $0xa5c] sm:$0xf]  ;;  %v16567_v7 = vld [vmem:[%s29162_s7 + $0xa74] sm:$0xf0] }
 0x5a4   :  { %11701 = vmatpush.bf16.msrb.mxu0 %v15618_v17  ;;  %v16845_v17 = vld [vmem:[%s29162_s7 + $0xc88] sm:$0xf]  ;;  %v16570_v0 = vor.u32 %v19100_v46, %v16567_v7 }
 0x5a5   :  { %11612 = vmatpush.bf16.msra.mxu1 %v16902_v3  ;;  %v16846_v37 = vor.u32 %v19173_v47, %v16845_v17  ;;  %v18827_v3 = vld [vmem:[%s29162_s7 + $0x1d4] sm:$0xf]  ;;  %v15366_v17 = vor.u32 %v18799_v25, %v15363_v8  ;;  %v17853_v47 = vld [vmem:[%s29162_s7 + $0x1468] sm:$0xf]  ;;  %v15923_v8 = vld [vmem:[%s29162_s7 + $0x56c] sm:$0xf0] }
 0x5a6   :  { %11725 = vmatpush.bf16.msrb.mxu2 %v16122_v35  ;;  %v16038_v35 = vor.u32 %v18967_v5, %v16035_v45  ;;  %v15951_v5 = vld [vmem:[%s29162_s7 + $0x5a4] sm:$0xf0]  ;;  %v18939_v25 = vld [vmem:[%s29162_s7 + $0x554] sm:$0xf] }
 0x5a7   :  { %11639 = vmatpush.bf16.msrb.mxu3 %v17322_v36  ;;  %v11450_v36 = vpop.f32.mrf.mxu0  ;;  %v11424_v45 = vpop.f32.mrf.mxu2 }
 0x5a8   :  { %11702 = vmatpush.bf16.msrb.mxu0 %v15590_v15  ;;  %v17909_v15 = vld [vmem:[%s29162_s7 + $0x14d8] sm:$0xf]  ;;  %v16511_v36 = vld [vmem:[%s29162_s7 + $0xa04] sm:$0xf0]  ;;  %v16315_v45 = vld [vmem:[%s29162_s7 + $0x87c] sm:$0xf0] }
 0x5a9   :  { %11613 = vmatpush.bf16.msra.mxu1 %v16874_v19  ;;  %v17910_v41 = vor.u32 %v19439_v53, %v17909_v15  ;;  %v16007_v19 = vld [vmem:[%s29162_s7 + $0x614] sm:$0xf0]  ;;  %v18785_v15 = vld [vmem:[%s29162_s7 + $0x84] sm:$0xf]  ;;  %v15307_v53 = vld [vmem:[%s29162_s7 + $0x9c] sm:$0xf0] }
 0x5aa   :  { %11726 = vmatpush.bf16.msrb.mxu2 %v16094_v27  ;;  %v16010_v27 = vor.u32 %v18960_v13, %v16007_v19  ;;  %v15310_v7 = vor.u32 %v18785_v15, %v15307_v53  ;;  %v17741_v15 = vld [vmem:[%s29162_s7 + $0x1388] sm:$0xf]  ;;  %v19397_v53 = vld [vmem:[%s29162_s7 + $0x13a0] sm:$0xf0] }
 0x5ab   :  { %11640 = vmatpush.bf16.msrb.mxu3 %v17294_v50  ;;  %v15475_v50 = vld [vmem:[%s29162_s7 + $0x1ec] sm:$0xf0] }
 0x5ac   :  { %11703 = vmatpush.bf16.msrb.mxu0 %v15562_v31  ;;  %v17881_v31 = vld [vmem:[%s29162_s7 + $0x14a0] sm:$0xf]  ;;  %v15478_v51 = vor.u32 %v18827_v3, %v15475_v50  ;;  %v19079_v3 = vld [vmem:[%s29162_s7 + $0x9b4] sm:$0xf]  ;;  %v16483_v50 = vld [vmem:[%s29162_s7 + $0x9cc] sm:$0xf0] }
 0x5ad   :  { %11614 = vmatpush.bf16.msra.mxu1 %v16846_v37  ;;  %v17882_v23 = vor.u32 %v19432_v61, %v17881_v31  ;;  %17979 = vmatmul.msk.bf16.vlgmr.msra.gmra.mxu2 %vm1056_vm0, %v25778_v11  ;;  %v15979_v37 = vld [vmem:[%s29162_s7 + $0x5dc] sm:$0xf0]  ;;  %v15954_v31 = vor.u32 %v18946_v34, %v15951_v5  ;;  %v18778_v61 = vld [vmem:[%s29162_s7 + $0x4c] sm:$0xf]  ;;  %v19037_v5 = vld [vmem:[%s29162_s7 + $0x864] sm:$0xf] }
 0x5ae   :  { %11727 = vmatpush.bf16.msrb.mxu2 %v16066_v21  ;;  %v15982_v21 = vor.u32 %v18953_v52, %v15979_v37 }
 0x5af   :  { %11641 = vmatpush.bf16.msrb.mxu3 %v17266_v22  ;;  %v16539_v22 = vld [vmem:[%s29162_s7 + $0xa3c] sm:$0xf0] }
 0x5b0   :  { %11704 = vmatpush.bf16.msrb.mxu0 %v15534_v6  ;;  %v15335_v6 = vld [vmem:[%s29162_s7 + $0xd4] sm:$0xf0]  ;;  %v16542_v14 = vor.u32 %v19093_v32, %v16539_v22  ;;  %v19072_v32 = vld [vmem:[%s29162_s7 + $0x97c] sm:$0xf] }
 0x5b1   :  { %11615 = vmatpush.bf16.msra.mxu1 %v16818_v42  ;;  %v15338_v49 = vor.u32 %v18792_v60, %v15335_v6  ;;  %v17826_v42 = vor.u32 %v19418_v12, %v17825_v24  ;;  %v16455_v22 = vld [vmem:[%s29162_s7 + $0x994] sm:$0xf0]  ;;  %v15926_v6 = vor.u32 %v18939_v25, %v15923_v8  ;;  %v19065_v24 = vld [vmem:[%s29162_s7 + $0x944] sm:$0xf]  ;;  %v16427_v12 = vld [vmem:[%s29162_s7 + $0x95c] sm:$0xf0] }
 0x5b2   :  { %11642 = vmatmul.bf16.vlgmr.msrb.gmra.mxu3 %v25388_v58  ;;  %11728 = vmatpush.bf16.msrb.mxu2 %v16038_v35  ;;  %v19411_v35 = vld [vmem:[%s29162_s7 + $0x1410] sm:$0xf0]  ;;  %v16458_v37 = vor.u32 %v19072_v32, %v16455_v22  ;;  %v16430_v34 = vor.u32 %v19065_v24, %v16427_v12  ;;  %v16931_v32 = vld [vmem:[%s29162_s7 + $0xd4c] sm:$0xf0] }
 0x5b3   :  { %11686 = vmatpush.bf16.msra.mxu3 %v15450_v54  ;;  %v19425_v54 = vld [vmem:[%s29162_s7 + $0x1480] sm:$0xf0]  ;;  %v19051_v22 = vld [vmem:[%s29162_s7 + $0x8d4] sm:$0xf] }
 0x5b4   :  { %11705 = vmatpush.bf16.msrb.mxu0 %v15506_v63  ;;  %11616 = vmatmul.bf16.vlgmr.msra.gmra.mxu1 %v25103_v33  ;;  %v17854_v28 = vor.u32 %v19425_v54, %v17853_v47  ;;  %v16514_v63 = vor.u32 %v19086_v26, %v16511_v36  ;;  %v19404_v54 = vld [vmem:[%s29162_s7 + $0x13d8] sm:$0xf0]  ;;  %v19205_v26 = vld [vmem:[%s29162_s7 + $0xda4] sm:$0xf] }
 0x5b5   :  { %11660 = vmatpush.bf16.msrb.mxu1 %v17910_v41  ;;  %v27993_v46 = vpop.f32.mrf.mxu3 }
 0x5b6   :  { %11729 = vmatpush.bf16.msrb.mxu2 %v16010_v27 }
 0x5b7   :  { %11687 = vmatpush.bf16.msra.mxu3 %v15422_v38  ;;  %v11357_v38 = vpop.f32.mrf.mxu1 }
 0x5b8   :  { %11706 = vmatpush.bf16.msrb.mxu0 %v15478_v51  ;;  %v11358_v10 = vadd.f32 %v11357_v38, %v7299_v9  ;;  %v16486_v51 = vor.u32 %v19079_v3, %v16483_v50  ;;  %v18771_v9 = vld [vmem:[%s29162_s7 + $0x14] sm:$0xf]  ;;  %v17742_v3 = vor.u32 %v19397_v53, %v17741_v15  ;;  %v16959_v50 = vld [vmem:[%s29162_s7 + $0xd84] sm:$0xf0]  ;;  %v18918_v53 = vld [vmem:[%s29162_s7 + $0x4ac] sm:$0xf] }
 0x5b9   :  { %11661 = vmatpush.bf16.msrb.mxu1 %v17882_v23  ;;  %v17015_v23 = vld [vmem:[%s29162_s7 + $0xdf4] sm:$0xf0] }
 0x5ba   :  { %v11371_v41 = vadd.f32 %v27723_v62, %v11358_v10  ;;  %11730 = vmatpush.bf16.msrb.mxu2 %v15982_v21  ;;  %v15279_v62 = vld [vmem:[%s29162_s7 + $0x64] sm:$0xf0] }
 0x5bb   :  { %11688 = vmatpush.bf16.msra.mxu3 %v15394_v2  ;;  %11707 = vmatmul.bf16.vlgmr.msrb.gmra.mxu0 %v25048_v55  ;;  %v17797_v2 = vld [vmem:[%s29162_s7 + $0x13f8] sm:$0xf]  ;;  %v15282_v47 = vor.u32 %v18778_v61, %v15279_v62  ;;  %v16318_v61 = vor.u32 %v19037_v5, %v16315_v45  ;;  %v18932_v62 = vld [vmem:[%s29162_s7 + $0x51c] sm:$0xf] }
 0x5bc   :  { %11751 = vmatpush.bf16.msra.mxu0 %v16570_v0  ;;  %v19212_v0 = vld [vmem:[%s29162_s7 + $0xddc] sm:$0xf]  ;;  %v11384_v13 = vadd.f32 %v27786_v44, %v11371_v41  ;;  %v17798_v19 = vor.u32 %v19411_v35, %v17797_v2  ;;  %v17769_v44 = vld [vmem:[%s29162_s7 + $0x13c0] sm:$0xf]  ;;  %v19058_v41 = vld [vmem:[%s29162_s7 + $0x90c] sm:$0xf] }
 0x5bd   :  { %11662 = vmatpush.bf16.msrb.mxu1 %v17854_v28  ;;  %v17018_v52 = vor.u32 %v19212_v0, %v17015_v23  ;;  %v19044_v28 = vld [vmem:[%s29162_s7 + $0x89c] sm:$0xf]  ;;  %v17770_v36 = vor.u32 %v19404_v54, %v17769_v44  ;;  %v11437_v38 = vpop.f32.mrf.mxu3  ;;  %v17713_v35 = vld [vmem:[%s29162_s7 + $0x1350] sm:$0xf]  ;;  %v19030_v0 = vld [vmem:[%s29162_s7 + $0x82c] sm:$0xf] }
 0x5be   :  { %v28035_v27 = vadd.f32 %v27606_v57, %v11384_v13  ;;  %11731 = vmatpush.bf16.msrb.mxu2 %v15954_v31  ;;  %v16343_v57 = vld [vmem:[%s29162_s7 + $0x8b4] sm:$0xf0]  ;;  %v19390_v31 = vld [vmem:[%s29162_s7 + $0x1368] sm:$0xf0]  ;;  %v16287_v13 = vld [vmem:[%s29162_s7 + $0x844] sm:$0xf0] }
 0x5bf   :  { %11689 = vmatpush.bf16.msra.mxu3 %v15366_v17  ;;  %v28026_v17 = vpop.f32.mrf.mxu0  ;;  %v11359_v60 = vpop.f32.mrf.mxu1  ;;  %v16346_v10 = vor.u32 %v19044_v28, %v16343_v57  ;;  %v17714_v23 = vor.u32 %v19390_v31, %v17713_v35  ;;  %v19324_v54 = vld [vmem:[%s29162_s7 + $0x115c] sm:$0xf]  ;;  %v19023_v28 = vld [vmem:[%s29162_s7 + $0x7f4] sm:$0xf]  ;;  %v16259_v57 = vld [vmem:[%s29162_s7 + $0x80c] sm:$0xf0] }
 0x5c0   :  { %11752 = vmatpush.bf16.msra.mxu0 %v16542_v14  ;;  %v15251_v14 = vld [vmem:[%s29162_s7 + $0x2c] sm:$0xf0]  ;;  %v17463_v60 = vld [vmem:[%s29162_s7 + $0x1174] sm:$0xf0]  ;;  %v28141_v24 = vpop.f32.mrf.mxu2  ;;  %v19317_v38 = vld [vmem:[%s29162_s7 + $0x1124] sm:$0xf]  ;;  %v16262_v15 = vor.u32 %v19023_v28, %v16259_v57 }
 0x5c1   :  { %11663 = vmatpush.bf16.msrb.mxu1 %v17826_v42  ;;  %v15254_v21 = vor.u32 %v18771_v9, %v15251_v14  ;;  %v19198_v42 = vld [vmem:[%s29162_s7 + $0xd6c] sm:$0xf]  ;;  %v18925_v9 = vld [vmem:[%s29162_s7 + $0x4e4] sm:$0xf]  ;;  %v15867_v14 = vld [vmem:[%s29162_s7 + $0x4fc] sm:$0xf0] }
 0x5c2   :  { %11732 = vmatpush.bf16.msrb.mxu2 %v15926_v6  ;;  %v16962_v25 = vor.u32 %v19198_v42, %v16959_v50  ;;  %v16290_v6 = vor.u32 %v19030_v0, %v16287_v13  ;;  %v15870_v12 = vor.u32 %v18925_v9, %v15867_v14  ;;  %v16231_v5 = vld [vmem:[%s29162_s7 + $0x7d4] sm:$0xf0]  ;;  %v19177_v42 = vld [vmem:[%s29162_s7 + $0xcc4] sm:$0xf]  ;;  %v18911_v35 = vld [vmem:[%s29162_s7 + $0x474] sm:$0xf] }
 0x5c3   :  { %11690 = vmatpush.bf16.msra.mxu3 %v15338_v49  ;;  %v16987_v49 = vld [vmem:[%s29162_s7 + $0xdbc] sm:$0xf0]  ;;  %v15811_v31 = vld [vmem:[%s29162_s7 + $0x48c] sm:$0xf0]  ;;  %v19170_v13 = vld [vmem:[%s29162_s7 + $0xc8c] sm:$0xf] }
 0x5c4   :  { %11753 = vmatpush.bf16.msra.mxu0 %v16514_v63  ;;  %v16990_v63 = vor.u32 %v19205_v26, %v16987_v49  ;;  %v17466_v26 = vor.u32 %v19324_v54, %v17463_v60  ;;  %v16903_v49 = vld [vmem:[%s29162_s7 + $0xd14] sm:$0xf0]  ;;  %v18904_v60 = vld [vmem:[%s29162_s7 + $0x43c] sm:$0xf]  ;;  %v19002_v14 = vld [vmem:[%s29162_s7 + $0x74c] sm:$0xf] }
 0x5c5   :  { %11664 = vmatpush.bf16.msrb.mxu1 %v17798_v19  ;;  %11733 = vmatmul.bf16.vlgmr.msrb.gmra.mxu2 %v24908_v43  ;;  %v19191_v19 = vld [vmem:[%s29162_s7 + $0xd34] sm:$0xf]  ;;  %v16819_v28 = vld [vmem:[%s29162_s7 + $0xc6c] sm:$0xf0]  ;;  %v19436_v57 = vld [vmem:[%s29162_s7 + $0x14dc] sm:$0xf] }
 0x5c6   :  { %11777 = vmatpush.bf16.msra.mxu2 %v17018_v52  ;;  %v16934_v52 = vor.u32 %v19191_v19, %v16931_v32  ;;  %v16847_v19 = vld [vmem:[%s29162_s7 + $0xca4] sm:$0xf0]  ;;  %v15814_v32 = vor.u32 %v18911_v35, %v15811_v31  ;;  %v19289_v35 = vld [vmem:[%s29162_s7 + $0x1044] sm:$0xf]  ;;  %v17323_v31 = vld [vmem:[%s29162_s7 + $0x105c] sm:$0xf0] }
 0x5c7   :  { %11691 = vmatpush.bf16.msra.mxu3 %v15310_v7  ;;  %v16399_v7 = vld [vmem:[%s29162_s7 + $0x924] sm:$0xf0]  ;;  %v11502_v2 = vpop.f32.mrf.mxu0  ;;  %v16850_v9 = vor.u32 %v19170_v13, %v16847_v19  ;;  %v17326_v13 = vor.u32 %v19289_v35, %v17323_v31  ;;  %v19261_v19 = vld [vmem:[%s29162_s7 + $0xf64] sm:$0xf] }
 0x5c8   :  { %11754 = vmatpush.bf16.msra.mxu0 %v16486_v51  ;;  %v15895_v51 = vld [vmem:[%s29162_s7 + $0x534] sm:$0xf0]  ;;  %v16402_v8 = vor.u32 %v19058_v41, %v16399_v7  ;;  %v19310_v41 = vld [vmem:[%s29162_s7 + $0x10ec] sm:$0xf]  ;;  %v17407_v7 = vld [vmem:[%s29162_s7 + $0x1104] sm:$0xf0] }
 0x5c9   :  { %11665 = vmatpush.bf16.msrb.mxu1 %v17770_v36  ;;  %v15898_v44 = vor.u32 %v18932_v62, %v15895_v51  ;;  %v19184_v36 = vld [vmem:[%s29162_s7 + $0xcfc] sm:$0xf]  ;;  %v19009_v51 = vld [vmem:[%s29162_s7 + $0x784] sm:$0xf]  ;;  %v17410_v0 = vor.u32 %v19310_v41, %v17407_v7 }
 0x5ca   :  { %11778 = vmatpush.bf16.msra.mxu2 %v16990_v63  ;;  %v16906_v63 = vor.u32 %v19184_v36, %v16903_v49  ;;  %v17911_v49 = vld [vmem:[%s29162_s7 + $0x14f4] sm:$0xf0]  ;;  %v19429_v41 = vld [vmem:[%s29162_s7 + $0x14a4] sm:$0xf] }
 0x5cb   :  { %11692 = vmatpush.bf16.msra.mxu3 %v15282_v47  ;;  %v16371_v47 = vld [vmem:[%s29162_s7 + $0x8ec] sm:$0xf0] }
 0x5cc   :  { %11755 = vmatpush.bf16.msra.mxu0 %v16458_v37  ;;  %v16374_v37 = vor.u32 %v19051_v22, %v16371_v47  ;;  %v19303_v22 = vld [vmem:[%s29162_s7 + $0x10b4] sm:$0xf] }
 0x5cd   :  { %11666 = vmatpush.bf16.msrb.mxu1 %v17742_v3  ;;  %v16875_v3 = vld [vmem:[%s29162_s7 + $0xcdc] sm:$0xf0] }
 0x5ce   :  { %11779 = vmatpush.bf16.msra.mxu2 %v16962_v25  ;;  %v16878_v62 = vor.u32 %v19177_v42, %v16875_v3  ;;  %v16203_v25 = vld [vmem:[%s29162_s7 + $0x79c] sm:$0xf0]  ;;  %v17914_v42 = vor.u32 %v19436_v57, %v17911_v49  ;;  %v19254_v57 = vld [vmem:[%s29162_s7 + $0xf2c] sm:$0xf] }
 0x5cf   :  { %11693 = vmatpush.bf16.msra.mxu3 %v15254_v21  ;;  %v17435_v21 = vld [vmem:[%s29162_s7 + $0x113c] sm:$0xf0]  ;;  %v16206_v54 = vor.u32 %v19009_v51, %v16203_v25  ;;  %v18890_v51 = vld [vmem:[%s29162_s7 + $0x3cc] sm:$0xf]  ;;  %v15727_v25 = vld [vmem:[%s29162_s7 + $0x3e4] sm:$0xf0] }
 0x5d0   :  { %11756 = vmatpush.bf16.msra.mxu0 %v16430_v34  ;;  %v19016_v34 = vld [vmem:[%s29162_s7 + $0x7bc] sm:$0xf]  ;;  %v17438_v45 = vor.u32 %v19317_v38, %v17435_v21  ;;  %v17351_v38 = vld [vmem:[%s29162_s7 + $0x1094] sm:$0xf0] }
 0x5d1   :  { %11667 = vmatpush.bf16.msrb.mxu1 %v17714_v23  ;;  %v16234_v2 = vor.u32 %v19016_v34, %v16231_v5  ;;  %v11476_v23 = vpop.f32.mrf.mxu2  ;;  %v18995_v5 = vld [vmem:[%s29162_s7 + $0x714] sm:$0xf] }
 0x5d2   :  { %11694 = vmatmul.bf16.vlgmr.msra.gmra.mxu3 %v24611_v39  ;;  %11780 = vmatpush.bf16.msra.mxu2 %v16934_v52  ;;  %v17211_v23 = vld [vmem:[%s29162_s7 + $0xf7c] sm:$0xf0] }
 0x5d3   :  { %11738 = vmatpush.bf16.msrb.mxu3 %v16346_v10  ;;  %v15839_v10 = vld [vmem:[%s29162_s7 + $0x4c4] sm:$0xf0] }
 0x5d4   :  { %11757 = vmatpush.bf16.msra.mxu0 %v16402_v8  ;;  %11668 = vmatmul.bf16.vlgmr.msrb.gmra.mxu1 %v25528_v18  ;;  %v15842_v50 = vor.u32 %v18918_v53, %v15839_v10  ;;  %v15755_v53 = vld [vmem:[%s29162_s7 + $0x41c] sm:$0xf0] }
 0x5d5   :  { %11712 = vmatpush.bf16.msra.mxu1 %v15898_v44  ;;  %v28201_v44 = vpop.f32.mrf.mxu3 }
 0x5d6   :  { %11781 = vmatpush.bf16.msra.mxu2 %v16906_v63 }
 0x5d7   :  { %11739 = vmatpush.bf16.msrb.mxu3 %v16318_v61  ;;  %v11409_v61 = vpop.f32.mrf.mxu1 }
 0x5d8   :  { %11758 = vmatpush.bf16.msra.mxu0 %v16374_v37  ;;  %v11410_v8 = vadd.f32 %v11409_v61, %v28035_v27  ;;  %v17379_v27 = vld [vmem:[%s29162_s7 + $0x10cc] sm:$0xf0]  ;;  %v19163_v37 = vld [vmem:[%s29162_s7 + $0xc54] sm:$0xf]  ;;  %v28234_v21 = vpop.f32.mrf.mxu0 }
 0x5d9   :  { %11713 = vmatpush.bf16.msra.mxu1 %v15870_v12  ;;  %v17382_v52 = vor.u32 %v19303_v22, %v17379_v27  ;;  %v19296_v12 = vld [vmem:[%s29162_s7 + $0x107c] sm:$0xf]  ;;  %v16822_v34 = vor.u32 %v19163_v37, %v16819_v28  ;;  %v15730_v22 = vor.u32 %v18890_v51, %v15727_v25  ;;  %v17855_v27 = vld [vmem:[%s29162_s7 + $0x1484] sm:$0xf0]  ;;  %v19142_v25 = vld [vmem:[%s29162_s7 + $0xbac] sm:$0xf] }
 0x5da   :  { %v11423_v47 = vadd.f32 %v27931_v30, %v11410_v8  ;;  %11782 = vmatpush.bf16.msra.mxu2 %v16878_v62  ;;  %v16175_v30 = vld [vmem:[%s29162_s7 + $0x764] sm:$0xf0]  ;;  %v17354_v3 = vor.u32 %v19296_v12, %v17351_v38  ;;  %v17827_v12 = vld [vmem:[%s29162_s7 + $0x144c] sm:$0xf0]  ;;  %v19275_v38 = vld [vmem:[%s29162_s7 + $0xfd4] sm:$0xf] }
 0x5db   :  { %11740 = vmatpush.bf16.msrb.mxu3 %v16290_v6  ;;  %11759 = vmatmul.bf16.vlgmr.msra.gmra.mxu0 %v25219_v56  ;;  %v15783_v6 = vld [vmem:[%s29162_s7 + $0x454] sm:$0xf0] }
 0x5dc   :  { %11803 = vmatpush.bf16.msrb.mxu0 %v17466_v26  ;;  %v11436_v26 = vadd.f32 %v27993_v46, %v11423_v47  ;;  %v15786_v36 = vor.u32 %v18904_v60, %v15783_v6  ;;  %v18897_v46 = vld [vmem:[%s29162_s7 + $0x404] sm:$0xf]  ;;  %v19282_v47 = vld [vmem:[%s29162_s7 + $0x100c] sm:$0xf]  ;;  %v18883_v6 = vld [vmem:[%s29162_s7 + $0x394] sm:$0xf] }
 0x5dd   :  { %11714 = vmatpush.bf16.msra.mxu1 %v15842_v50  ;;  %v19268_v50 = vld [vmem:[%s29162_s7 + $0xf9c] sm:$0xf]  ;;  %v15758_v7 = vor.u32 %v18897_v46, %v15755_v53  ;;  %v11489_v61 = vpop.f32.mrf.mxu3  ;;  %v15453_v53 = vld [vmem:[%s29162_s7 + $0x1a0] sm:$0xf] }
 0x5de   :  { %v28243_v10 = vadd.f32 %v27819_v40, %v11436_v26  ;;  %11783 = vmatpush.bf16.msra.mxu2 %v16850_v9  ;;  %v17239_v40 = vld [vmem:[%s29162_s7 + $0xfb4] sm:$0xf0]  ;;  %v15699_v9 = vld [vmem:[%s29162_s7 + $0x3ac] sm:$0xf0]  ;;  %v17183_v26 = vld [vmem:[%s29162_s7 + $0xf44] sm:$0xf0] }
 0x5df   :  { %11741 = vmatpush.bf16.msrb.mxu3 %v16262_v15  ;;  %v16178_v15 = vor.u32 %v19002_v14, %v16175_v30  ;;  %v11411_v63 = vpop.f32.mrf.mxu1  ;;  %v17242_v8 = vor.u32 %v19268_v50, %v17239_v40  ;;  %v17214_v14 = vor.u32 %v19261_v19, %v17211_v23  ;;  %v19156_v30 = vld [vmem:[%s29162_s7 + $0xc1c] sm:$0xf]  ;;  %v15702_v49 = vor.u32 %v18883_v6, %v15699_v9  ;;  %v19247_v50 = vld [vmem:[%s29162_s7 + $0xef4] sm:$0xf]  ;;  %v17155_v40 = vld [vmem:[%s29162_s7 + $0xf0c] sm:$0xf0]  ;;  %v11526_v35 = vpop.f32.mrf.mxu2 }
 0x5e0   :  { %11804 = vmatpush.bf16.msrb.mxu0 %v17438_v45  ;;  %v16147_v45 = vld [vmem:[%s29162_s7 + $0x72c] sm:$0xf0]  ;;  %v11554_v60 = vpop.f32.mrf.mxu0  ;;  %v18824_v63 = vld [vmem:[%s29162_s7 + $0x1b8] sm:$0xf0]  ;;  %v15425_v61 = vld [vmem:[%s29162_s7 + $0x168] sm:$0xf]  ;;  %v17158_v51 = vor.u32 %v19247_v50, %v17155_v40 }
 0x5e1   :  { %11715 = vmatpush.bf16.msra.mxu1 %v15814_v32  ;;  %v16150_v62 = vor.u32 %v18995_v5, %v16147_v45  ;;  %v19422_v32 = vld [vmem:[%s29162_s7 + $0x146c] sm:$0xf]  ;;  %v19149_v5 = vld [vmem:[%s29162_s7 + $0xbe4] sm:$0xf]  ;;  %v16763_v45 = vld [vmem:[%s29162_s7 + $0xbfc] sm:$0xf0] }
 0x5e2   :  { %11784 = vmatpush.bf16.msra.mxu2 %v16822_v34  ;;  %v17858_v37 = vor.u32 %v19422_v32, %v17855_v27  ;;  %v17186_v34 = vor.u32 %v19254_v57, %v17183_v26  ;;  %v16766_v31 = vor.u32 %v19149_v5, %v16763_v45  ;;  %v17127_v19 = vld [vmem:[%s29162_s7 + $0xed4] sm:$0xf0]  ;;  %v19401_v32 = vld [vmem:[%s29162_s7 + $0x13c4] sm:$0xf]  ;;  %v15397_v60 = vld [vmem:[%s29162_s7 + $0x130] sm:$0xf] }
 0x5e3   :  { %11742 = vmatpush.bf16.msrb.mxu3 %v16234_v2  ;;  %v17883_v2 = vld [vmem:[%s29162_s7 + $0x14bc] sm:$0xf0]  ;;  %v18810_v6 = vld [vmem:[%s29162_s7 + $0x148] sm:$0xf0]  ;;  %v19128_v45 = vld [vmem:[%s29162_s7 + $0xb3c] sm:$0xf] }
 0x5e4   :  { %11805 = vmatpush.bf16.msrb.mxu0 %v17410_v0  ;;  %v17886_v0 = vor.u32 %v19429_v41, %v17883_v2  ;;  %v15454_v41 = vor.u32 %v18824_v63, %v15453_v53  ;;  %v17799_v2 = vld [vmem:[%s29162_s7 + $0x1414] sm:$0xf0]  ;;  %v28377_v27 = vld [vmem:[%s29163_s8] sm:$0x7f]  ;;  %v19226_v40 = vld [vmem:[%s29162_s7 + $0xe4c] sm:$0xf] }
 0x5e5   :  { %11716 = vmatpush.bf16.msra.mxu1 %v15786_v36  ;;  %11785 = vmatmul.bf16.vlgmr.msra.gmra.mxu2 %v25103_v33  ;;  %v19415_v36 = vld [vmem:[%s29162_s7 + $0x1434] sm:$0xf]  ;;  %v17099_v57 = vld [vmem:[%s29162_s7 + $0xe9c] sm:$0xf0]  ;;  %v15369_v53 = vld [vmem:[%s29162_s7 + $0xf8] sm:$0xf] }
 0x5e6   :  { %11829 = vmatpush.bf16.msrb.mxu2 %v17914_v42  ;;  %v17830_v42 = vor.u32 %v19415_v36, %v17827_v12  ;;  %v15398_v36 = vor.u32 %v18810_v6, %v15397_v60  ;;  %v17743_v12 = vld [vmem:[%s29162_s7 + $0x13a4] sm:$0xf0] }
 0x5e7   :  { %11743 = vmatpush.bf16.msrb.mxu3 %v16206_v54  ;;  %v17295_v54 = vld [vmem:[%s29162_s7 + $0x1024] sm:$0xf0] }
 0x5e8   :  { %11806 = vmatpush.bf16.msrb.mxu0 %v17382_v52  ;;  %v16791_v52 = vld [vmem:[%s29162_s7 + $0xc34] sm:$0xf0]  ;;  %v17298_v28 = vor.u32 %v19282_v47, %v17295_v54  ;;  %v7300_v47 = vperm.slane %v28377_v27, 4  ;;  %v17967_v6 = vld [vmem:[%s29162_s7 + $0x1564] sm:$0xf0] }
 0x5e9   :  { %11717 = vmatpush.bf16.msra.mxu1 %v15758_v7  ;;  %v16794_v46 = vor.u32 %v19156_v30, %v16791_v52  ;;  %v19408_v7 = vld [vmem:[%s29162_s7 + $0x13fc] sm:$0xf]  ;;  %v16707_v30 = vld [vmem:[%s29162_s7 + $0xb8c] sm:$0xf0]  ;;  %v11461_v52 = vpop.f32.mrf.mxu1 }
 0x5ea   :  { %11830 = vmatpush.bf16.msrb.mxu2 %v17886_v0  ;;  %v17802_v0 = vor.u32 %v19408_v7, %v17799_v2  ;;  %v11462_v26 = vadd.f32 %v11461_v52, %v28243_v10  ;;  %v18803_v10 = vld [vmem:[%s29162_s7 + $0x110] sm:$0xf0]  ;;  %v17715_v2 = vld [vmem:[%s29162_s7 + $0x136c] sm:$0xf0]  ;;  %v15313_v52 = vld [vmem:[%s29162_s7 + $0x88] sm:$0xf] }
 0x5eb   :  { %11744 = vmatpush.bf16.msrb.mxu3 %v16178_v15  ;;  %v17267_v15 = vld [vmem:[%s29162_s7 + $0xfec] sm:$0xf0]  ;;  %v19387_v7 = vld [vmem:[%s29162_s7 + $0x1354] sm:$0xf] }
 0x5ec   :  { %11807 = vmatpush.bf16.msrb.mxu0 %v17354_v3  ;;  %v17270_v3 = vor.u32 %v19275_v38, %v17267_v15  ;;  %v11527_v38 = vadd.f32 %v11526_v35, %v7300_v47  ;;  %v11528_v15 = vpop.f32.mrf.mxu2  ;;  %v11475_v63 = vadd.f32 %v28141_v24, %v11462_v26  ;;  %v17071_v24 = vld [vmem:[%s29162_s7 + $0xe64] sm:$0xf0]  ;;  %v15901_v35 = vld [vmem:[%s29162_s7 + $0x520] sm:$0xf]  ;;  %v17043_v47 = vld [vmem:[%s29162_s7 + $0xe2c] sm:$0xf0] }
 0x5ed   :  { %11718 = vmatpush.bf16.msra.mxu1 %v15730_v22  ;;  %v17771_v22 = vld [vmem:[%s29162_s7 + $0x13dc] sm:$0xf0]  ;;  %v19114_v26 = vld [vmem:[%s29162_s7 + $0xacc] sm:$0xf] }
 0x5ee   :  { %11831 = vmatpush.bf16.msrb.mxu2 %v17858_v37  ;;  %v17774_v37 = vor.u32 %v19401_v32, %v17771_v22  ;;  %v17718_v22 = vor.u32 %v19387_v7, %v17715_v2  ;;  %v19380_v7 = vld [vmem:[%s29162_s7 + $0x131c] sm:$0xf]  ;;  %v17687_v2 = vld [vmem:[%s29162_s7 + $0x1334] sm:$0xf0] }
 0x5ef   :  { %11745 = vmatpush.bf16.msrb.mxu3 %v16150_v62  ;;  %v18817_v62 = vld [vmem:[%s29162_s7 + $0x180] sm:$0xf0] }
 0x5f0   :  { %11808 = vmatpush.bf16.msrb.mxu0 %v17326_v13  ;;  %v19240_v13 = vld [vmem:[%s29162_s7 + $0xebc] sm:$0xf]  ;;  %v15426_v23 = vor.u32 %v18817_v62, %v15425_v61 }
 0x5f1   :  { %11719 = vmatpush.bf16.msra.mxu1 %v15702_v49  ;;  %v17130_v9 = vor.u32 %v19240_v13, %v17127_v19  ;;  %v19394_v49 = vld [vmem:[%s29162_s7 + $0x138c] sm:$0xf]  ;;  %v18936_v62 = vld [vmem:[%s29162_s7 + $0x538] sm:$0xf0]  ;;  %v16651_v13 = vld [vmem:[%s29162_s7 + $0xb1c] sm:$0xf0]  ;;  %v11463_v32 = vpop.f32.mrf.mxu1 }
 0x5f2   :  { %11746 = vmatmul.bf16.vlgmr.msrb.gmra.mxu3 %v24827_v29  ;;  %11832 = vmatpush.bf16.msrb.mxu2 %v17830_v42  ;;  %v16679_v42 = vld [vmem:[%s29162_s7 + $0xb54] sm:$0xf0]  ;;  %v17746_v50 = vor.u32 %v19394_v49, %v17743_v12  ;;  %v12026_v49 = vmax.f32 %v27817_v20, 0.0  ;;  %v18922_v20 = vld [vmem:[%s29162_s7 + $0x4c8] sm:$0xf0] }
 0x5f3   :  { %11790 = vmatpush.bf16.msra.mxu3 %v17242_v8  ;;  %v16735_v8 = vld [vmem:[%s29162_s7 + $0xbc4] sm:$0xf0]  ;;  %v16682_v61 = vor.u32 %v19128_v45, %v16679_v42  ;;  %v16125_v45 = vld [vmem:[%s29162_s7 + $0x6e0] sm:$0xf]  ;;  %v18992_v42 = vld [vmem:[%s29162_s7 + $0x6f8] sm:$0xf0] }
 0x5f4   :  { %11809 = vmatpush.bf16.msrb.mxu0 %v17298_v28  ;;  %11720 = vmatmul.bf16.vlgmr.msra.gmra.mxu1 %v24921_v1  ;;  %v16738_v54 = vor.u32 %v19142_v25, %v16735_v8  ;;  %v19233_v28 = vld [vmem:[%s29162_s7 + $0xe84] sm:$0xf]  ;;  %v18796_v25 = vld [vmem:[%s29162_s7 + $0xd8] sm:$0xf0]  ;;  %v16097_v32 = vld [vmem:[%s29162_s7 + $0x6a8] sm:$0xf] }
 0x5f5   :  { %11764 = vmatpush.bf16.msrb.mxu1 %v16794_v46  ;;  %v17102_v5 = vor.u32 %v19233_v28, %v17099_v57 }
 0x5f6   :  { %11833 = vmatpush.bf16.msrb.mxu2 %v17802_v0  ;;  %v17074_v0 = vor.u32 %v19226_v40, %v17071_v24 }
 0x5f7   :  { %11791 = vmatpush.bf16.msra.mxu3 %v17214_v14  ;;  %v19135_v14 = vld [vmem:[%s29162_s7 + $0xb74] sm:$0xf] }
 0x5f8   :  { %11810 = vmatpush.bf16.msrb.mxu0 %v17270_v3  ;;  %v16710_v46 = vor.u32 %v19135_v14, %v16707_v30  ;;  %v18929_v30 = vld [vmem:[%s29162_s7 + $0x500] sm:$0xf0] }
 0x5f9   :  { %11765 = vmatpush.bf16.msrb.mxu1 %v16766_v31  ;;  %v11488_v31 = vadd.f32 %v28201_v44, %v11475_v63  ;;  %v19121_v44 = vld [vmem:[%s29162_s7 + $0xb04] sm:$0xf]  ;;  %v11513_v24 = vpop.f32.mrf.mxu1 }
 0x5fa   :  { %11834 = vmatpush.bf16.msrb.mxu2 %v17774_v37  ;;  %v16654_v14 = vor.u32 %v19121_v44, %v16651_v13  ;;  %v18789_v37 = vld [vmem:[%s29162_s7 + $0xa0] sm:$0xf0]  ;;  %v15257_v13 = vld [vmem:[%s29162_s7 + $0x18] sm:$0xf] }
 0x5fb   :  { %11792 = vmatpush.bf16.msra.mxu3 %v17186_v34  ;;  %11811 = vmatmul.bf16.vlgmr.msrb.gmra.mxu0 %v25388_v58  ;;  %v11539_v34 = vpop.f32.mrf.mxu3  ;;  %v11501_v19 = vadd.f32 %v28026_v17, %v11488_v31  ;;  %v19450_v17 = vld [vmem:[%s29162_s7 + $0x154c] sm:$0xf] }
 0x5fc   :  { %11855 = vmatpush.bf16.msra.mxu0 %v15454_v41  ;;  %v11540_v3 = vadd.f32 %v11539_v34, %v11527_v38  ;;  %v15370_v41 = vor.u32 %v18803_v10, %v15369_v53  ;;  %v17970_v12 = vor.u32 %v19450_v17, %v17967_v6  ;;  %v19443_v38 = vld [vmem:[%s29162_s7 + $0x1514] sm:$0xf]  ;;  %v17939_v53 = vld [vmem:[%s29162_s7 + $0x152c] sm:$0xf0]  ;;  %v19373_v17 = vld [vmem:[%s29162_s7 + $0x12e4] sm:$0xf] }
 0x5fd   :  { %11766 = vmatpush.bf16.msrb.mxu1 %v16738_v54  ;;  %v15902_v54 = vor.u32 %v18936_v62, %v15901_v35  ;;  %v15845_v10 = vld [vmem:[%s29162_s7 + $0x4b0] sm:$0xf]  ;;  %v12039_v35 = vrot.slane %v12026_v49, 4  ;;  %v11514_v31 = vadd.f32 %v11513_v24, %v11501_v19  ;;  %v18775_v19 = vld [vmem:[%s29162_s7 + $0x30] sm:$0xf0] }
 0x5fe   :  { %v28445_v8 = vadd.f32 %v28234_v21, %v11540_v3  ;;  %11835 = vmatpush.bf16.msrb.mxu2 %v17746_v50  ;;  %v19219_v21 = vld [vmem:[%s29162_s7 + $0xe14] sm:$0xf]  ;;  %v15285_v34 = vld [vmem:[%s29162_s7 + $0x50] sm:$0xf]  ;;  %v17659_v6 = vld [vmem:[%s29162_s7 + $0x12fc] sm:$0xf0] }
 0x5ff   :  { %11793 = vmatpush.bf16.msra.mxu3 %v17158_v51  ;;  %v15341_v51 = vld [vmem:[%s29162_s7 + $0xc0] sm:$0xf]  ;;  %v17046_v57 = vor.u32 %v19219_v21, %v17043_v47  ;;  %v19107_v3 = vld [vmem:[%s29162_s7 + $0xa94] sm:$0xf]  ;;  %v16595_v50 = vld [vmem:[%s29162_s7 + $0xaac] sm:$0xf0]  ;;  %v17690_v21 = vor.u32 %v19380_v7, %v17687_v2  ;;  %v17662_v49 = vor.u32 %v19373_v17, %v17659_v6 }
 0x600   :  { %11856 = vmatpush.bf16.msra.mxu0 %v15426_v23  ;;  %v28454_v23 = vpop.f32.mrf.mxu0  ;;  %v15342_v60 = vor.u32 %v18796_v25, %v15341_v51  ;;  %v15817_v51 = vld [vmem:[%s29162_s7 + $0x478] sm:$0xf]  ;;  %v18915_v25 = vld [vmem:[%s29162_s7 + $0x490] sm:$0xf0]  ;;  %v16598_v44 = vor.u32 %v19107_v3, %v16595_v50  ;;  %v18985_v47 = vld [vmem:[%s29162_s7 + $0x6c0] sm:$0xf0] }
 0x601   :  { %11767 = vmatpush.bf16.msrb.mxu1 %v16710_v46  ;;  %v15314_v46 = vor.u32 %v18789_v37, %v15313_v52  ;;  %v16098_v52 = vor.u32 %v18985_v47, %v16097_v32  ;;  %v15789_v37 = vld [vmem:[%s29162_s7 + $0x440] sm:$0xf]  ;;  %v16041_v50 = vld [vmem:[%s29162_s7 + $0x638] sm:$0xf]  ;;  %v16293_v24 = vld [vmem:[%s29162_s7 + $0x830] sm:$0xf] }
 0x602   :  { %11836 = vmatpush.bf16.msrb.mxu2 %v17718_v22  ;;  %v12027_v22 = vmax.f32 %v11514_v31, 0.0  ;;  %v19359_v2 = vld [vmem:[%s29162_s7 + $0x1274] sm:$0xf]  ;;  %v15733_v31 = vld [vmem:[%s29162_s7 + $0x3d0] sm:$0xf] }
 0x603   :  { %11794 = vmatpush.bf16.msra.mxu3 %v17130_v9  ;;  %v15873_v9 = vld [vmem:[%s29162_s7 + $0x4e8] sm:$0xf]  ;;  %v11541_v28 = vpop.f32.mrf.mxu3  ;;  %v19027_v32 = vld [vmem:[%s29162_s7 + $0x810] sm:$0xf0]  ;;  %v17575_v47 = vld [vmem:[%s29162_s7 + $0x1254] sm:$0xf0] }
 0x604   :  { %11857 = vmatpush.bf16.msra.mxu0 %v15398_v36  ;;  %v16623_v36 = vld [vmem:[%s29162_s7 + $0xae4] sm:$0xf0]  ;;  %v15874_v15 = vor.u32 %v18929_v30, %v15873_v9  ;;  %v12040_v9 = vrot.slane %v12027_v22, 2  ;;  %v15258_v30 = vor.u32 %v18775_v19, %v15257_v13  ;;  %v18908_v28 = vld [vmem:[%s29162_s7 + $0x458] sm:$0xf0] }
 0x605   :  { %11768 = vmatpush.bf16.msrb.mxu1 %v16682_v61  ;;  %v16626_v63 = vor.u32 %v19114_v26, %v16623_v36  ;;  %11837 = vmatmul.bf16.vlgmr.msrb.gmra.mxu2 %v25528_v18  ;;  %v15846_v61 = vor.u32 %v18922_v20, %v15845_v10  ;;  %v28562_v26 = vpop.f32.mrf.mxu2  ;;  %v19041_v10 = vld [vmem:[%s29162_s7 + $0x880] sm:$0xf0]  ;;  %v19366_v20 = vld [vmem:[%s29162_s7 + $0x12ac] sm:$0xf]  ;;  %v16265_v19 = vld [vmem:[%s29162_s7 + $0x7f8] sm:$0xf] }
 0x606   :  { %11881 = vmatpush.bf16.msra.mxu2 %v15902_v54  ;;  %v16349_v54 = vld [vmem:[%s29162_s7 + $0x8a0] sm:$0xf]  ;;  %v15705_v17 = vld [vmem:[%s29162_s7 + $0x398] sm:$0xf]  ;;  %v18887_v6 = vld [vmem:[%s29162_s7 + $0x3b0] sm:$0xf0] }
 0x607   :  { %11795 = vmatpush.bf16.msra.mxu3 %v17102_v5  ;;  %v18782_v5 = vld [vmem:[%s29162_s7 + $0x68] sm:$0xf0] }
 0x608   :  { %11858 = vmatpush.bf16.msra.mxu0 %v15370_v41  ;;  %v11606_v40 = vpop.f32.mrf.mxu0  ;;  %v17942_v41 = vor.u32 %v19443_v38, %v17939_v53  ;;  %v15286_v62 = vor.u32 %v18782_v5, %v15285_v34  ;;  %v18978_v38 = vld [vmem:[%s29162_s7 + $0x688] sm:$0xf0]  ;;  %v11515_v53 = vpop.f32.mrf.mxu1  ;;  %v15761_v5 = vld [vmem:[%s29162_s7 + $0x408] sm:$0xf] }
 0x609   :  { %11769 = vmatpush.bf16.msrb.mxu1 %v16654_v14  ;;  %v15818_v14 = vor.u32 %v18915_v25, %v15817_v51  ;;  %v18971_v40 = vld [vmem:[%s29162_s7 + $0x650] sm:$0xf0]  ;;  %v16013_v25 = vld [vmem:[%s29162_s7 + $0x600] sm:$0xf] }
 0x60a   :  { %11882 = vmatpush.bf16.msra.mxu2 %v15874_v15  ;;  %v16321_v15 = vld [vmem:[%s29162_s7 + $0x868] sm:$0xf] }
 0x60b   :  { %11796 = vmatpush.bf16.msra.mxu3 %v17074_v0  ;;  %v16126_v0 = vor.u32 %v18992_v42, %v16125_v45  ;;  %v18901_v45 = vld [vmem:[%s29162_s7 + $0x420] sm:$0xf0]  ;;  %v16322_v42 = vor.u32 %v19041_v10, %v16321_v15 }
 0x60c   :  { %11859 = vmatpush.bf16.msra.mxu0 %v15342_v60  ;;  %v19048_v60 = vld [vmem:[%s29162_s7 + $0x8b8] sm:$0xf0]  ;;  %v15762_v7 = vor.u32 %v18901_v45, %v15761_v5  ;;  %v19345_v15 = vld [vmem:[%s29162_s7 + $0x1204] sm:$0xf] }
 0x60d   :  { %11770 = vmatpush.bf16.msrb.mxu1 %v16626_v63  ;;  %v16350_v36 = vor.u32 %v19048_v60, %v16349_v54  ;;  %v17631_v63 = vld [vmem:[%s29162_s7 + $0x12c4] sm:$0xf0] }
 0x60e   :  { %11883 = vmatpush.bf16.msra.mxu2 %v15846_v61  ;;  %v17634_v3 = vor.u32 %v19366_v20, %v17631_v63  ;;  %v18894_v61 = vld [vmem:[%s29162_s7 + $0x3e8] sm:$0xf0]  ;;  %v15957_v20 = vld [vmem:[%s29162_s7 + $0x590] sm:$0xf] }
 0x60f   :  { %11797 = vmatpush.bf16.msra.mxu3 %v17046_v57  ;;  %v12046_v57 = vsel %vm12045_vm3, %v12039_v35, %v12040_v9  ;;  %v17603_v35 = vld [vmem:[%s29162_s7 + $0x128c] sm:$0xf0]  ;;  %v15734_v22 = vor.u32 %v18894_v61, %v15733_v31  ;;  %v15985_v9 = vld [vmem:[%s29162_s7 + $0x5c8] sm:$0xf]  ;;  %v18950_v63 = vld [vmem:[%s29162_s7 + $0x5a8] sm:$0xf0] }
 0x610   :  { %11860 = vmatpush.bf16.msra.mxu0 %v15314_v46  ;;  %v12048_v46 = vsel %vm12047_vm4, %v27213_v4, %v12046_v57  ;;  %v15790_v4 = vor.u32 %v18908_v28, %v15789_v37  ;;  %v17606_v13 = vor.u32 %v19359_v2, %v17603_v35  ;;  %v16797_v37 = vld [vmem:[%s29162_s7 + $0xc20] sm:$0xf]  ;;  %v19160_v28 = vld [vmem:[%s29162_s7 + $0xc38] sm:$0xf0]  ;;  %v15958_v2 = vor.u32 %v18950_v63, %v15957_v20  ;;  %v18943_v31 = vld [vmem:[%s29162_s7 + $0x570] sm:$0xf0] }
 0x611   :  { %11771 = vmatpush.bf16.msrb.mxu1 %v16598_v44  ;;  %12053 = vst [vmem:[%s29164_s9] sm:$0xff] %v12048_v46  ;;  %v11565_v54 = vpop.f32.mrf.mxu1  ;;  %v17547_v46 = vld [vmem:[%s29162_s7 + $0x121c] sm:$0xf0]  ;;  %v16798_v10 = vor.u32 %v19160_v28, %v16797_v37  ;;  %v16993_v37 = vld [vmem:[%s29162_s7 + $0xda8] sm:$0xf]  ;;  %v19209_v28 = vld [vmem:[%s29162_s7 + $0xdc0] sm:$0xf0] }
 0x612   :  { %11798 = vmatmul.bf16.vlgmr.msra.gmra.mxu3 %v25034_v16  ;;  %11884 = vmatpush.bf16.msra.mxu2 %v15818_v14  ;;  %v11566_v14 = vadd.f32 %v11565_v54, %v28445_v8  ;;  %v19020_v8 = vld [vmem:[%s29162_s7 + $0x7d8] sm:$0xf0]  ;;  %v16965_v63 = vld [vmem:[%s29162_s7 + $0xd70] sm:$0xf] }
 0x613   :  { %11848 = vmatpush.bf16.msrb.mxu3 %v17970_v12  ;;  %v16069_v12 = vld [vmem:[%s29162_s7 + $0x670] sm:$0xf]  ;;  %v18880_v54 = vld [vmem:[%s29162_s7 + $0x378] sm:$0xf0] }
 0x614   :  { %11861 = vmatpush.bf16.msra.mxu0 %v15286_v62  ;;  %11772 = vmatmul.bf16.vlgmr.msrb.gmra.mxu1 %v25114_v59  ;;  %v16070_v34 = vor.u32 %v18978_v38, %v16069_v12  ;;  %v11580_v62 = vpop.f32.mrf.mxu2  ;;  %v15706_v38 = vor.u32 %v18887_v6, %v15705_v17  ;;  %v16713_v6 = vld [vmem:[%s29162_s7 + $0xb78] sm:$0xf]  ;;  %v19132_v20 = vld [vmem:[%s29162_s7 + $0xb58] sm:$0xf0] }
 0x615   :  { %11816 = vmatpush.bf16.msra.mxu1 %v17690_v21  ;;  %v11591_v44 = vpop.f32.mrf.mxu3  ;;  %v19352_v21 = vld [vmem:[%s29162_s7 + $0x123c] sm:$0xf]  ;;  %v19146_v62 = vld [vmem:[%s29162_s7 + $0xbc8] sm:$0xf0] }
 0x616   :  { %11885 = vmatpush.bf16.msra.mxu2 %v15790_v4  ;;  %v17578_v57 = vor.u32 %v19352_v21, %v17575_v47  ;;  %v16769_v4 = vld [vmem:[%s29162_s7 + $0xbe8] sm:$0xf]  ;;  %v15677_v47 = vld [vmem:[%s29162_s7 + $0x360] sm:$0xf] }
 0x617   :  { %11849 = vmatpush.bf16.msrb.mxu3 %v17942_v41  ;;  %v19034_v41 = vld [vmem:[%s29162_s7 + $0x848] sm:$0xf0] }
 0x618   :  { %11862 = vmatpush.bf16.msra.mxu0 %v15258_v30  ;;  %v16294_v51 = vor.u32 %v19034_v41, %v16293_v24  ;;  %v16266_v30 = vor.u32 %v19027_v32, %v16265_v19  ;;  %v28665_v12 = vpop.f32.mrf.mxu0  ;;  %v17519_v24 = vld [vmem:[%s29162_s7 + $0x11e4] sm:$0xf0]  ;;  %v19331_v32 = vld [vmem:[%s29162_s7 + $0x1194] sm:$0xf] }
 0x619   :  { %11817 = vmatpush.bf16.msra.mxu1 %v17662_v49  ;;  %v11579_v49 = vadd.f32 %v28562_v26, %v11566_v14  ;;  %v16153_v14 = vld [vmem:[%s29162_s7 + $0x718] sm:$0xf] }
 0x61a   :  { %11886 = vmatpush.bf16.msra.mxu2 %v15762_v7  ;;  %v11567_v7 = vpop.f32.mrf.mxu1 }
 0x61b   :  { %11894 = vmatpush.bf16.msra.mxu3 %v16126_v0  ;;  %11863 = vmatmul.bf16.vlgmr.msra.gmra.mxu0 %v24611_v39  ;;  %v16042_v39 = vor.u32 %v18971_v40, %v16041_v50  ;;  %v18964_v0 = vld [vmem:[%s29162_s7 + $0x618] sm:$0xf0]  ;;  %v11592_v5 = vadd.f32 %v11591_v44, %v11579_v49  ;;  %v19013_v50 = vld [vmem:[%s29162_s7 + $0x7a0] sm:$0xf0]  ;;  %v19338_v40 = vld [vmem:[%s29162_s7 + $0x11cc] sm:$0xf] }
 0x61c   :  { %11907 = vmatpush.bf16.msrb.mxu0 %v16350_v36  ;;  %v16014_v60 = vor.u32 %v18964_v0, %v16013_v25  ;;  %v16237_v36 = vld [vmem:[%s29162_s7 + $0x7c0] sm:$0xf]  ;;  %v17522_v25 = vor.u32 %v19338_v40, %v17519_v24  ;;  %v19006_v0 = vld [vmem:[%s29162_s7 + $0x768] sm:$0xf0]  ;;  %v16657_v24 = vld [vmem:[%s29162_s7 + $0xb08] sm:$0xf] }
 0x61d   :  { %11818 = vmatpush.bf16.msra.mxu1 %v17634_v3  ;;  %v16238_v26 = vor.u32 %v19020_v8, %v16237_v36  ;;  %v11593_v45 = vpop.f32.mrf.mxu3  ;;  %v16209_v3 = vld [vmem:[%s29162_s7 + $0x788] sm:$0xf]  ;;  %v28698_v41 = vadd.f32 %v28454_v23, %v11592_v5  ;;  %v16741_v23 = vld [vmem:[%s29162_s7 + $0xbb0] sm:$0xf]  ;;  %v17021_v44 = vld [vmem:[%s29162_s7 + $0xde0] sm:$0xf] }
 0x61e   :  { %11887 = vmatpush.bf16.msra.mxu2 %v15734_v22  ;;  %v16210_v61 = vor.u32 %v19013_v50, %v16209_v3  ;;  %v16742_v21 = vor.u32 %v19146_v62, %v16741_v23  ;;  %v17245_v36 = vld [vmem:[%s29162_s7 + $0xfa0] sm:$0xf]  ;;  %v19272_v8 = vld [vmem:[%s29162_s7 + $0xfb8] sm:$0xf0]  ;;  %v17217_v45 = vld [vmem:[%s29162_s7 + $0xf68] sm:$0xf] }
 0x61f   :  { %11895 = vmatpush.bf16.msra.mxu3 %v16098_v52  ;;  %v18957_v52 = vld [vmem:[%s29162_s7 + $0x5e0] sm:$0xf0]  ;;  %v15621_v50 = vld [vmem:[%s29162_s7 + $0x2f0] sm:$0xf]  ;;  %v19258_v23 = vld [vmem:[%s29162_s7 + $0xf48] sm:$0xf0] }
 0x620   :  { %11908 = vmatpush.bf16.msrb.mxu0 %v16322_v42  ;;  %v15986_v53 = vor.u32 %v18957_v52, %v15985_v9  ;;  %v17550_v42 = vor.u32 %v19345_v15, %v17547_v46  ;;  %v11658_v19 = vpop.f32.mrf.mxu0  ;;  %v19139_v9 = vld [vmem:[%s29162_s7 + $0xb90] sm:$0xf0]  ;;  %v18873_v15 = vld [vmem:[%s29162_s7 + $0x340] sm:$0xf0] }
 0x621   :  { %11819 = vmatpush.bf16.msra.mxu1 %v17606_v13  ;;  %v19216_v13 = vld [vmem:[%s29162_s7 + $0xdf8] sm:$0xf0]  ;;  %v18999_v52 = vld [vmem:[%s29162_s7 + $0x730] sm:$0xf0]  ;;  %v16714_v49 = vor.u32 %v19139_v9, %v16713_v6  ;;  %v19125_v7 = vld [vmem:[%s29162_s7 + $0xb20] sm:$0xf0] }
 0x622   :  { %17980 = vmatmul.msk.bf16.vlgmr.msrb.gmra.mxu3 %vm1056_vm0, %v25778_v11  ;;  %11888 = vmatpush.bf16.msra.mxu2 %v15706_v38  ;;  %v17022_v17 = vor.u32 %v19216_v13, %v17021_v44  ;;  %v15649_v38 = vld [vmem:[%s29162_s7 + $0x328] sm:$0xf]  ;;  %v16154_v46 = vor.u32 %v18999_v52, %v16153_v14  ;;  %v16658_v62 = vor.u32 %v19125_v7, %v16657_v24  ;;  %v16629_v44 = vld [vmem:[%s29162_s7 + $0xad0] sm:$0xf]  ;;  %v16909_v19 = vld [vmem:[%s29162_s7 + $0xd00] sm:$0xf] }
 0x623   :  { %11896 = vmatpush.bf16.msra.mxu3 %v16070_v34  ;;  %v19153_v34 = vld [vmem:[%s29162_s7 + $0xc00] sm:$0xf0]  ;;  %v15650_v5 = vor.u32 %v18873_v15, %v15649_v38  ;;  %v18852_v6 = vld [vmem:[%s29162_s7 + $0x298] sm:$0xf0]  ;;  %v16601_v14 = vld [vmem:[%s29162_s7 + $0xa98] sm:$0xf] }
 0x624   :  { %11909 = vmatpush.bf16.msrb.mxu0 %v16294_v51  ;;  %v16770_v35 = vor.u32 %v19153_v34, %v16769_v4  ;;  %v16181_v51 = vld [vmem:[%s29162_s7 + $0x750] sm:$0xf]  ;;  %v19202_v4 = vld [vmem:[%s29162_s7 + $0xd88] sm:$0xf0]  ;;  %v28780_v34 = vpop.f32.mrf.mxu2  ;;  %v16881_v52 = vld [vmem:[%s29162_s7 + $0xcc8] sm:$0xf] }
 0x625   :  { %11820 = vmatpush.bf16.msra.mxu1 %v17578_v57  ;;  %11889 = vmatmul.bf16.vlgmr.msra.gmra.mxu2 %v24921_v1  ;;  %v17491_v1 = vld [vmem:[%s29162_s7 + $0x11ac] sm:$0xf0]  ;;  %v15678_v57 = vor.u32 %v18880_v54, %v15677_v47  ;;  %v16966_v40 = vor.u32 %v19202_v4, %v16965_v63  ;;  %v19251_v47 = vld [vmem:[%s29162_s7 + $0xf10] sm:$0xf0]  ;;  %v17133_v15 = vld [vmem:[%s29162_s7 + $0xec0] sm:$0xf] }
 0x626   :  { %11933 = vmatpush.bf16.msrb.mxu2 %v16798_v10  ;;  %v16685_v10 = vld [vmem:[%s29162_s7 + $0xb40] sm:$0xf]  ;;  %v19237_v24 = vld [vmem:[%s29162_s7 + $0xea0] sm:$0xf0] }
 0x627   :  { %11897 = vmatpush.bf16.msra.mxu3 %v16042_v39  ;;  %v15929_v39 = vld [vmem:[%s29162_s7 + $0x558] sm:$0xf]  ;;  %v16686_v3 = vor.u32 %v19132_v20, %v16685_v10  ;;  %v15537_v20 = vld [vmem:[%s29162_s7 + $0x248] sm:$0xf] }
 0x628   :  { %11910 = vmatpush.bf16.msrb.mxu0 %v16266_v30  ;;  %v15930_v22 = vor.u32 %v18943_v31, %v15929_v39  ;;  %v17494_v30 = vor.u32 %v19331_v32, %v17491_v1  ;;  %v19195_v39 = vld [vmem:[%s29162_s7 + $0xd50] sm:$0xf0]  ;;  %v19188_v32 = vld [vmem:[%s29162_s7 + $0xd18] sm:$0xf0] }
 0x629   :  { %11821 = vmatpush.bf16.msra.mxu1 %v17550_v42  ;;  %v19265_v42 = vld [vmem:[%s29162_s7 + $0xf80] sm:$0xf0]  ;;  %v16910_v9 = vor.u32 %v19188_v32, %v16909_v19  ;;  %v19230_v19 = vld [vmem:[%s29162_s7 + $0xe68] sm:$0xf0]  ;;  %v17917_v32 = vld [vmem:[%s29162_s7 + $0x14e0] sm:$0xf] }
 0x62a   :  { %11934 = vmatpush.bf16.msrb.mxu2 %v16770_v35  ;;  %v16937_v35 = vld [vmem:[%s29162_s7 + $0xd38] sm:$0xf] }
 0x62b   :  { %11898 = vmatpush.bf16.msra.mxu3 %v16014_v60  ;;  %v16182_v60 = vor.u32 %v19006_v0, %v16181_v51  ;;  %v15593_v51 = vld [vmem:[%s29162_s7 + $0x2b8] sm:$0xf]  ;;  %v16938_v0 = vor.u32 %v19195_v39, %v16937_v35  ;;  %v15509_v35 = vld [vmem:[%s29162_s7 + $0x210] sm:$0xf]  ;;  %v18838_v39 = vld [vmem:[%s29162_s7 + $0x228] sm:$0xf0] }
 0x62c   :  { %11911 = vmatpush.bf16.msrb.mxu0 %v16238_v26  ;;  %v17246_v26 = vor.u32 %v19272_v8, %v17245_v36  ;;  %v11632_v1 = vpop.f32.mrf.mxu2  ;;  %v17693_v36 = vld [vmem:[%s29162_s7 + $0x1320] sm:$0xf]  ;;  %v19384_v8 = vld [vmem:[%s29162_s7 + $0x1338] sm:$0xf0] }
 0x62d   :  { %11822 = vmatpush.bf16.msra.mxu1 %v17522_v25  ;;  %v18859_v25 = vld [vmem:[%s29162_s7 + $0x2d0] sm:$0xf0]  ;;  %v17694_v4 = vor.u32 %v19384_v8, %v17693_v36  ;;  %v19440_v1 = vld [vmem:[%s29162_s7 + $0x14f8] sm:$0xf0]  ;;  %v17889_v36 = vld [vmem:[%s29162_s7 + $0x14a8] sm:$0xf] }
 0x62e   :  { %11935 = vmatpush.bf16.msrb.mxu2 %v16742_v21  ;;  %v17161_v21 = vld [vmem:[%s29162_s7 + $0xef8] sm:$0xf]  ;;  %v19433_v8 = vld [vmem:[%s29162_s7 + $0x14c0] sm:$0xf0] }
 0x62f   :  { %11899 = vmatpush.bf16.msra.mxu3 %v15986_v53  ;;  %v16994_v53 = vor.u32 %v19209_v28, %v16993_v37  ;;  %v17162_v28 = vor.u32 %v19251_v47, %v17161_v21  ;;  %v15481_v21 = vld [vmem:[%s29162_s7 + $0x1d8] sm:$0xf] }
 0x630   :  { %11912 = vmatpush.bf16.msrb.mxu0 %v16210_v61  ;;  %v17189_v61 = vld [vmem:[%s29162_s7 + $0xf30] sm:$0xf] }
 0x631   :  { %11823 = vmatpush.bf16.msra.mxu1 %v17494_v30  ;;  %v17190_v13 = vor.u32 %v19258_v23, %v17189_v61  ;;  %v19111_v30 = vld [vmem:[%s29162_s7 + $0xab0] sm:$0xf0]  ;;  %v11617_v37 = vpop.f32.mrf.mxu1  ;;  %v16825_v23 = vld [vmem:[%s29162_s7 + $0xc58] sm:$0xf] }
 0x632   :  { %11936 = vmatpush.bf16.msrb.mxu2 %v16714_v49  ;;  %v11618_v49 = vadd.f32 %v11617_v37, %v28698_v41  ;;  %v16602_v10 = vor.u32 %v19111_v30, %v16601_v14  ;;  %v18845_v41 = vld [vmem:[%s29162_s7 + $0x260] sm:$0xf0]  ;;  %v17609_v14 = vld [vmem:[%s29162_s7 + $0x1278] sm:$0xf]  ;;  %v19363_v30 = vld [vmem:[%s29162_s7 + $0x1290] sm:$0xf0] }
 0x633   :  { %11900 = vmatpush.bf16.msra.mxu3 %v15958_v2  ;;  %v17218_v2 = vor.u32 %v19265_v42, %v17217_v45  ;;  %v19174_v42 = vld [vmem:[%s29162_s7 + $0xca8] sm:$0xf0] }
 0x634   :  { %11913 = vmatpush.bf16.msrb.mxu0 %v16182_v60  ;;  %11824 = vmatmul.bf16.vlgmr.msra.gmra.mxu1 %v25281_v48 }
 0x635   :  { %11868 = vmatpush.bf16.msrb.mxu1 %v15678_v57  ;;  %v11643_v54 = vpop.f32.mrf.mxu3  ;;  %v19181_v57 = vld [vmem:[%s29162_s7 + $0xce0] sm:$0xf0] }
 0x636   :  { %11937 = vmatpush.bf16.msrb.mxu2 %v16686_v3  ;;  %v16882_v63 = vor.u32 %v19181_v57, %v16881_v52  ;;  %v17665_v3 = vld [vmem:[%s29162_s7 + $0x12e8] sm:$0xf]  ;;  %v17049_v52 = vld [vmem:[%s29162_s7 + $0xe18] sm:$0xf]  ;;  %v19223_v57 = vld [vmem:[%s29162_s7 + $0xe30] sm:$0xf0] }
 0x637   :  { %11901 = vmatpush.bf16.msra.mxu3 %v15930_v22  ;;  %v15594_v22 = vor.u32 %v18859_v25, %v15593_v51 }
 0x638   :  { %11914 = vmatpush.bf16.msrb.mxu0 %v16154_v46  ;;  %v19244_v46 = vld [vmem:[%s29162_s7 + $0xed8] sm:$0xf0] }
 0x639   :  { %11869 = vmatpush.bf16.msrb.mxu1 %v15650_v5  ;;  %v16853_v5 = vld [vmem:[%s29162_s7 + $0xc90] sm:$0xf]  ;;  %v17134_v45 = vor.u32 %v19244_v46, %v17133_v15  ;;  %v11619_v25 = vpop.f32.mrf.mxu1  ;;  %v19454_v15 = vld [vmem:[%s29162_s7 + $0x1568] sm:$0xf0]  ;;  %v17610_v46 = vor.u32 %v19363_v30, %v17609_v14 }
 0x63a   :  { %11902 = vmatmul.bf16.vlgmr.msra.gmra.mxu3 %v24908_v43  ;;  %v18866_v43 = vld [vmem:[%s29162_s7 + $0x308] sm:$0xf0]  ;;  %11938 = vmatpush.bf16.msrb.mxu2 %v16658_v62  ;;  %v19167_v62 = vld [vmem:[%s29162_s7 + $0xc70] sm:$0xf0] }
 0x63b   :  { %11946 = vmatpush.bf16.msrb.mxu3 %v17022_v17  ;;  %v15622_v31 = vor.u32 %v18866_v43, %v15621_v50  ;;  %11915 = vmatmul.bf16.vlgmr.msrb.gmra.mxu0 %v24827_v29  ;;  %v19118_v29 = vld [vmem:[%s29162_s7 + $0xae8] sm:$0xf0]  ;;  %v15565_v17 = vld [vmem:[%s29162_s7 + $0x280] sm:$0xf]  ;;  %v28890_v50 = vpop.f32.mrf.mxu2  ;;  %v15538_v43 = vor.u32 %v18845_v41, %v15537_v20  ;;  %v16826_v47 = vor.u32 %v19167_v62, %v16825_v23  ;;  %v19097_v20 = vld [vmem:[%s29162_s7 + $0xa40] sm:$0xf0] }
 0x63c   :  { %11959 = vmatpush.bf16.msra.mxu0 %v17246_v26  ;;  %v16630_v60 = vor.u32 %v19118_v29, %v16629_v44  ;;  %v15566_v38 = vor.u32 %v18852_v6, %v15565_v17  ;;  %v11631_v26 = vadd.f32 %v28780_v34, %v11618_v49  ;;  %v19377_v34 = vld [vmem:[%s29162_s7 + $0x1300] sm:$0xf0]  ;;  %v17637_v44 = vld [vmem:[%s29162_s7 + $0x12b0] sm:$0xf]  ;;  %v19370_v29 = vld [vmem:[%s29162_s7 + $0x12c8] sm:$0xf0]  ;;  %v17050_v41 = vor.u32 %v19223_v57, %v17049_v52 }
 0x63d   :  { %11870 = vmatpush.bf16.msrb.mxu1 %v15622_v31  ;;  %v16854_v31 = vor.u32 %v19174_v42, %v16853_v5  ;;  %v17666_v61 = vor.u32 %v19377_v34, %v17665_v3  ;;  %v19104_v17 = vld [vmem:[%s29162_s7 + $0xa78] sm:$0xf0]  ;;  %v17861_v5 = vld [vmem:[%s29162_s7 + $0x1470] sm:$0xf]  ;;  %v17945_v34 = vld [vmem:[%s29162_s7 + $0x1518] sm:$0xf] }
 0x63e   :  { %11939 = vmatpush.bf16.msrb.mxu2 %v16630_v60  ;;  %v11644_v7 = vadd.f32 %v11643_v54, %v11631_v26  ;;  %v17638_v54 = vor.u32 %v19370_v29, %v17637_v44  ;;  %v16573_v60 = vld [vmem:[%s29162_s7 + $0xa60] sm:$0xf]  ;;  %v17890_v26 = vor.u32 %v19433_v8, %v17889_v36  ;;  %v19083_v25 = vld [vmem:[%s29162_s7 + $0x9d0] sm:$0xf0]  ;;  %v7301_v44 = vperm.slane %v28377_v27, 5 }
 0x63f   :  { %11947 = vmatpush.bf16.msrb.mxu3 %v16994_v53  ;;  %v28869_v53 = vpop.f32.mrf.mxu0  ;;  %v16574_v49 = vor.u32 %v19104_v17, %v16573_v60  ;;  %v19335_v60 = vld [vmem:[%s29162_s7 + $0x11b0] sm:$0xf0]  ;;  %v16433_v57 = vld [vmem:[%s29162_s7 + $0x948] sm:$0xf]  ;;  %v19069_v36 = vld [vmem:[%s29162_s7 + $0x960] sm:$0xf0] }
 0x640   :  { %11960 = vmatpush.bf16.msra.mxu0 %v17218_v2  ;;  %v11645_v2 = vpop.f32.mrf.mxu3  ;;  %v28911_v51 = vadd.f32 %v28665_v12, %v11644_v7  ;;  %v15510_v12 = vor.u32 %v18838_v39, %v15509_v35  ;;  %v19349_v35 = vld [vmem:[%s29162_s7 + $0x1220] sm:$0xf0]  ;;  %v17833_v39 = vld [vmem:[%s29162_s7 + $0x1438] sm:$0xf] }
 0x641   :  { %11871 = vmatpush.bf16.msrb.mxu1 %v15594_v22  ;;  %v17553_v2 = vld [vmem:[%s29162_s7 + $0x1208] sm:$0xf] }
 0x642   :  { %11940 = vmatpush.bf16.msrb.mxu2 %v16602_v10  ;;  %v16545_v10 = vld [vmem:[%s29162_s7 + $0xa28] sm:$0xf]  ;;  %v17554_v62 = vor.u32 %v19349_v35, %v17553_v2  ;;  %v19314_v2 = vld [vmem:[%s29162_s7 + $0x1108] sm:$0xf0] }
 0x643   :  { %11948 = vmatpush.bf16.msrb.mxu3 %v16966_v40  ;;  %v17105_v40 = vld [vmem:[%s29162_s7 + $0xe88] sm:$0xf]  ;;  %v11684_v37 = vpop.f32.mrf.mxu2  ;;  %v16546_v3 = vor.u32 %v19097_v20, %v16545_v10  ;;  %v19062_v10 = vld [vmem:[%s29162_s7 + $0x928] sm:$0xf0] }
 0x644   :  { %11961 = vmatpush.bf16.msra.mxu0 %v17190_v13  ;;  %v17077_v13 = vld [vmem:[%s29162_s7 + $0xe50] sm:$0xf] }
 0x645   :  { %11872 = vmatpush.bf16.msrb.mxu1 %v15566_v38  ;;  %11941 = vmatmul.bf16.vlgmr.msrb.gmra.mxu2 %v25114_v59  ;;  %v18831_v59 = vld [vmem:[%s29162_s7 + $0x1f0] sm:$0xf0]  ;;  %v17078_v6 = vor.u32 %v19230_v19, %v17077_v13  ;;  %v17973_v38 = vld [vmem:[%s29162_s7 + $0x1550] sm:$0xf]  ;;  %v19342_v13 = vld [vmem:[%s29162_s7 + $0x11e8] sm:$0xf0] }
 0x646   :  { %11985 = vmatpush.bf16.msra.mxu2 %v17694_v4  ;;  %v19356_v4 = vld [vmem:[%s29162_s7 + $0x1258] sm:$0xf0]  ;;  %v17974_v42 = vor.u32 %v19454_v15, %v17973_v38  ;;  %v19398_v38 = vld [vmem:[%s29162_s7 + $0x13a8] sm:$0xf0]  ;;  %v16434_v15 = vor.u32 %v19069_v36, %v16433_v57 }
 0x647   :  { %11949 = vmatpush.bf16.msrb.mxu3 %v16938_v0  ;;  %v17106_v0 = vor.u32 %v19237_v24, %v17105_v40  ;;  %v11710_v22 = vpop.f32.mrf.mxu0  ;;  %v16517_v24 = vld [vmem:[%s29162_s7 + $0x9f0] sm:$0xf]  ;;  %v19412_v19 = vld [vmem:[%s29162_s7 + $0x1418] sm:$0xf0] }
 0x648   :  { %11962 = vmatpush.bf16.msra.mxu0 %v17162_v28  ;;  %v15482_v28 = vor.u32 %v18831_v59, %v15481_v21  ;;  %v16461_v22 = vld [vmem:[%s29162_s7 + $0x980] sm:$0xf]  ;;  %v19076_v21 = vld [vmem:[%s29162_s7 + $0x998] sm:$0xf0] }
 0x649   :  { %11873 = vmatpush.bf16.msrb.mxu1 %v15538_v43  ;;  %v19447_v43 = vld [vmem:[%s29162_s7 + $0x1530] sm:$0xf0]  ;;  %v16462_v30 = vor.u32 %v19076_v21, %v16461_v22  ;;  %v17301_v22 = vld [vmem:[%s29162_s7 + $0x1010] sm:$0xf]  ;;  %v19286_v21 = vld [vmem:[%s29162_s7 + $0x1028] sm:$0xf0] }
 0x64a   :  { %11986 = vmatpush.bf16.msra.mxu2 %v17666_v61  ;;  %v17946_v61 = vor.u32 %v19447_v43, %v17945_v34  ;;  %v19328_v34 = vld [vmem:[%s29162_s7 + $0x1178] sm:$0xf0] }
 0x64b   :  { %11950 = vmatpush.bf16.msrb.mxu3 %v16910_v9  ;;  %v17918_v9 = vor.u32 %v19440_v1, %v17917_v32 }
 0x64c   :  { %11963 = vmatpush.bf16.msra.mxu0 %v17134_v45  ;;  %v19426_v45 = vld [vmem:[%s29162_s7 + $0x1488] sm:$0xf0] }
 0x64d   :  { %11874 = vmatpush.bf16.msrb.mxu1 %v15510_v12  ;;  %v17862_v7 = vor.u32 %v19426_v45, %v17861_v5  ;;  %v17805_v12 = vld [vmem:[%s29162_s7 + $0x1400] sm:$0xf]  ;;  %v16377_v45 = vld [vmem:[%s29162_s7 + $0x8d8] sm:$0xf] }
 0x64e   :  { %11987 = vmatpush.bf16.msra.mxu2 %v17638_v54  ;;  %v17497_v54 = vld [vmem:[%s29162_s7 + $0x1198] sm:$0xf] }
 0x64f   :  { %11951 = vmatpush.bf16.msrb.mxu3 %v16882_v63  ;;  %v17581_v63 = vld [vmem:[%s29162_s7 + $0x1240] sm:$0xf] }
 0x650   :  { %11964 = vmatpush.bf16.msra.mxu0 %v17106_v0  ;;  %v17582_v40 = vor.u32 %v19356_v4, %v17581_v63  ;;  %v29019_v0 = vpop.f32.mrf.mxu2  ;;  %v19391_v63 = vld [vmem:[%s29162_s7 + $0x1370] sm:$0xf0] }
 0x651   :  { %11875 = vmatpush.bf16.msrb.mxu1 %v15482_v28  ;;  %v11669_v17 = vpop.f32.mrf.mxu1  ;;  %v17498_v28 = vor.u32 %v19335_v60, %v17497_v54  ;;  %v17302_v54 = vor.u32 %v19286_v21, %v17301_v22 }
 0x652   :  { %11988 = vmatpush.bf16.msra.mxu2 %v17610_v46  ;;  %v11670_v14 = vadd.f32 %v11669_v17, %v28911_v51  ;;  %v19279_v17 = vld [vmem:[%s29162_s7 + $0xff0] sm:$0xf0] }
 0x653   :  { %11952 = vmatpush.bf16.msrb.mxu3 %v16854_v31  ;;  %v19419_v31 = vld [vmem:[%s29162_s7 + $0x1450] sm:$0xf0] }
 0x654   :  { %11965 = vmatpush.bf16.msra.mxu0 %v17078_v6  ;;  %11876 = vmatmul.bf16.vlgmr.msrb.gmra.mxu1 %v25048_v55  ;;  %v16489_v55 = vld [vmem:[%s29162_s7 + $0x9b8] sm:$0xf]  ;;  %v17834_v29 = vor.u32 %v19419_v31, %v17833_v39  ;;  %v17777_v6 = vld [vmem:[%s29162_s7 + $0x13c8] sm:$0xf]  ;;  %v29063_v8 = vadd.f32 %v28890_v50, %v11670_v14  ;;  %v16405_v50 = vld [vmem:[%s29162_s7 + $0x910] sm:$0xf] }
 0x655   :  { %11920 = vmatpush.bf16.msra.mxu1 %v16574_v49  ;;  %v16490_v27 = vor.u32 %v19083_v25, %v16489_v55  ;;  %v11695_v32 = vpop.f32.mrf.mxu3  ;;  %v16406_v4 = vor.u32 %v19062_v10, %v16405_v50  ;;  %v17385_v39 = vld [vmem:[%s29162_s7 + $0x10b8] sm:$0xf] }
 0x656   :  { %11989 = vmatpush.bf16.msra.mxu2 %v17582_v40  ;;  %v11696_v59 = vadd.f32 %v11695_v32, %v7301_v44  ;;  %v17441_v40 = vld [vmem:[%s29162_s7 + $0x1128] sm:$0xf] }
 0x657   :  { %11953 = vmatpush.bf16.msrb.mxu3 %v16826_v47  ;;  %v17806_v47 = vor.u32 %v19412_v19, %v17805_v12 }
 0x658   :  { %11966 = vmatpush.bf16.msra.mxu0 %v17050_v41  ;;  %v11709_v52 = vadd.f32 %v28869_v53, %v11696_v59  ;;  %v29054_v37 = vpop.f32.mrf.mxu0  ;;  %v11736_v51 = vpop.f32.mrf.mxu2  ;;  %v17749_v53 = vld [vmem:[%s29162_s7 + $0x1390] sm:$0xf] }
 0x659   :  { %11921 = vmatpush.bf16.msra.mxu1 %v16546_v3  ;;  %v17750_v20 = vor.u32 %v19398_v38, %v17749_v53  ;;  %v11671_v41 = vpop.f32.mrf.mxu1 }
 0x65a   :  { %11954 = vmatmul.bf16.vlgmr.msrb.gmra.mxu3 %v25103_v33  ;;  %v19090_v33 = vld [vmem:[%s29162_s7 + $0xa08] sm:$0xf0]  ;;  %11990 = vmatpush.bf16.msra.mxu2 %v17554_v62  ;;  %v17357_v62 = vld [vmem:[%s29162_s7 + $0x1080] sm:$0xf] }
 0x65b   :  { %11998 = vmatpush.bf16.msra.mxu3 %v17918_v9  ;;  %v16518_v23 = vor.u32 %v19090_v33, %v16517_v24  ;;  %11967 = vmatmul.bf16.vlgmr.msra.gmra.mxu0 %v25034_v16  ;;  %v17525_v16 = vld [vmem:[%s29162_s7 + $0x11d0] sm:$0xf]  ;;  %v19405_v9 = vld [vmem:[%s29162_s7 + $0x13e0] sm:$0xf0] }
 0x65c   :  { %12017 = vmatpush.bf16.msrb.mxu0 %v17974_v42  ;;  %v17526_v1 = vor.u32 %v19342_v13, %v17525_v16  ;;  %v17778_v49 = vor.u32 %v19405_v9, %v17777_v6  ;;  %v19055_v42 = vld [vmem:[%s29162_s7 + $0x8f0] sm:$0xf0]  ;;  %v19321_v24 = vld [vmem:[%s29162_s7 + $0x1140] sm:$0xf0]  ;;  %v17329_v16 = vld [vmem:[%s29162_s7 + $0x1048] sm:$0xf] }
 0x65d   :  { %11922 = vmatpush.bf16.msra.mxu1 %v16518_v23  ;;  %v11697_v46 = vpop.f32.mrf.mxu3  ;;  %v17442_v33 = vor.u32 %v19321_v24, %v17441_v40  ;;  %v19293_v13 = vld [vmem:[%s29162_s7 + $0x1060] sm:$0xf0] }
 0x65e   :  { %11991 = vmatpush.bf16.msra.mxu2 %v17526_v1  ;;  %v19460_v40 = vld [vmem:[%s29163_s8] sm:$0x7f] }
 0x65f   :  { %11999 = vmatpush.bf16.msra.mxu3 %v17890_v26  ;;  %v17721_v26 = vld [vmem:[%s29162_s7 + $0x1358] sm:$0xf]  ;;  %v7302_v24 = vperm.slane %v19460_v40, 6 }
 0x660   :  { %12018 = vmatpush.bf16.msrb.mxu0 %v17946_v61  ;;  %v11762_v5 = vpop.f32.mrf.mxu0  ;;  %v17722_v3 = vor.u32 %v19391_v63, %v17721_v26 }
 0x661   :  { %11923 = vmatpush.bf16.msra.mxu1 %v16490_v27  ;;  %v17330_v27 = vor.u32 %v19293_v13, %v17329_v16 }
 0x662   :  { %11992 = vmatpush.bf16.msra.mxu2 %v17498_v28 }
 0x663   :  { %12000 = vmatpush.bf16.msra.mxu3 %v17862_v7  ;;  %v17413_v7 = vld [vmem:[%s29162_s7 + $0x10f0] sm:$0xf] }
 0x664   :  { %v17414_v35 = vor.u32 %v19314_v2, %v17413_v7 }
 0x665   :  { %11924 = vmatpush.bf16.msra.mxu1 %v16462_v30  ;;  %11993 = vmatmul.bf16.vlgmr.msra.gmra.mxu2 %v25281_v48  ;;  %v17469_v48 = vld [vmem:[%s29162_s7 + $0x1160] sm:$0xf] }
 0x666   :  { %v17470_v43 = vor.u32 %v19328_v34, %v17469_v48 }
 0x667   :  { %12001 = vmatpush.bf16.msra.mxu3 %v17834_v29 }
 0x668   :  { %v11786_v31 = vpop.f32.mrf.mxu2 }
 0x669   :  { %11925 = vmatpush.bf16.msra.mxu1 %v16434_v15 }
 0x66b   :  { %12002 = vmatpush.bf16.msra.mxu3 %v17806_v47  ;;  %17981 = vmatmul.msk.bf16.vlgmr.msrb.gmra.mxu0 %vm1056_vm0, %v25778_v11  ;;  %v16378_v11 = vor.u32 %v19055_v42, %v16377_v45  ;;  %v12028_v42 = vmax.f32 %v29063_v8, 0.0 }
 0x66d   :  { %11926 = vmatpush.bf16.msra.mxu1 %v16406_v4 }
 0x66f   :  { %12003 = vmatpush.bf16.msra.mxu3 %v17778_v49 }
 0x670   :  { %v11788_v19 = vpop.f32.mrf.mxu2 }
 0x671   :  { %11927 = vmatpush.bf16.msra.mxu1 %v16378_v11  ;;  %v11721_v55 = vpop.f32.mrf.mxu1 }
 0x672   :  { %v11722_v25 = vadd.f32 %v11721_v55, %v11709_v52 }
 0x673   :  { %12004 = vmatpush.bf16.msra.mxu3 %v17750_v20 }
 0x674   :  { %11928 = vmatmul.bf16.vlgmr.msra.gmra.mxu1 %v25219_v56  ;;  %v19300_v56 = vld [vmem:[%s29162_s7 + $0x1098] sm:$0xf0]  ;;  %v11735_v12 = vadd.f32 %v29019_v0, %v11722_v25  ;;  %v17273_v0 = vld [vmem:[%s29162_s7 + $0xfd8] sm:$0xf] }
 0x675   :  { %11972 = vmatpush.bf16.msrb.mxu1 %v17470_v43  ;;  %v11747_v23 = vpop.f32.mrf.mxu3  ;;  %v17358_v44 = vor.u32 %v19300_v56, %v17357_v62  ;;  %v17274_v6 = vor.u32 %v19279_v17, %v17273_v0 }
 0x676   :  { %v11748_v32 = vadd.f32 %v11747_v23, %v11735_v12 }
 0x677   :  { %12005 = vmatpush.bf16.msra.mxu3 %v17722_v3 }
 0x678   :  { %v11812_v29 = vpop.f32.mrf.mxu0  ;;  %v11761_v59 = vadd.f32 %v29054_v37, %v11748_v32 }
 0x679   :  { %11973 = vmatpush.bf16.msrb.mxu1 %v17442_v33  ;;  %v11723_v47 = vpop.f32.mrf.mxu1 }
 0x67a   :  { %12006 = vmatmul.bf16.vlgmr.msra.gmra.mxu3 %v25528_v18  ;;  %v19307_v18 = vld [vmem:[%s29162_s7 + $0x10d0] sm:$0xf0] }
 0x67b   :  { %v17386_v61 = vor.u32 %v19307_v18, %v17385_v39 }
 0x67d   :  { %11974 = vmatpush.bf16.msrb.mxu1 %v17414_v35  ;;  %v11749_v1 = vpop.f32.mrf.mxu3 }
 0x680   :  { %v11814_v60 = vpop.f32.mrf.mxu0 }
 0x681   :  { %11975 = vmatpush.bf16.msrb.mxu1 %v17386_v61 }
 0x685   :  { %11976 = vmatpush.bf16.msrb.mxu1 %v17358_v44 }
 0x688   :  { %v11838_v9 = vpop.f32.mrf.mxu2 }
 0x689   :  { %11977 = vmatpush.bf16.msrb.mxu1 %v17330_v27 }
 0x68d   :  { %11978 = vmatpush.bf16.msrb.mxu1 %v17302_v54 }
 0x690   :  { %v11840_v57 = vpop.f32.mrf.mxu2 }
 0x691   :  { %11979 = vmatpush.bf16.msrb.mxu1 %v17274_v6  ;;  %v11773_v30 = vpop.f32.mrf.mxu1 }
 0x692   :  { %v11774_v52 = vadd.f32 %v11773_v30, %v11761_v59 }
 0x694   :  { %11980 = vmatmul.bf16.vlgmr.msrb.gmra.mxu1 %v25388_v58  ;;  %v11787_v28 = vadd.f32 %v11786_v31, %v11774_v52 }
 0x695   :  { %v11799_v14 = vpop.f32.mrf.mxu3 }
 0x696   :  { %v11800_v36 = vadd.f32 %v11799_v14, %v11787_v28 }
 0x698   :  { %v11864_v37 = vpop.f32.mrf.mxu0  ;;  %v11813_v49 = vadd.f32 %v11812_v29, %v11800_v36 }
 0x699   :  { %v11775_v53 = vpop.f32.mrf.mxu1  ;;  %v11865_v33 = vadd.f32 %v11864_v37, %v7302_v24 }
 0x69d   :  { %v11801_v51 = vpop.f32.mrf.mxu3 }
 0x6a0   :  { %v11866_v38 = vpop.f32.mrf.mxu0 }
 0x6a5   :  { %v11851_v15 = vpop.f32.mrf.mxu3 }
 0x6a8   :  { %v11890_v50 = vpop.f32.mrf.mxu2 }
 0x6ad   :  { %v11853_v46 = vpop.f32.mrf.mxu3 }
 0x6b0   :  { %v11892_v41 = vpop.f32.mrf.mxu2 }
 0x6b1   :  { %v11825_v10 = vpop.f32.mrf.mxu1 }
 0x6b2   :  { %v11826_v20 = vadd.f32 %v11825_v10, %v11813_v49 }
 0x6b4   :  { %v11839_v58 = vadd.f32 %v11838_v9, %v11826_v20 }
 0x6b6   :  { %v11852_v4 = vadd.f32 %v11851_v15, %v11839_v58 }
 0x6b8   :  { %v11916_v26 = vpop.f32.mrf.mxu0  ;;  %v12029_v5 = vmax.f32 %v11852_v4, 0.0 }
 0x6b9   :  { %v11827_v45 = vpop.f32.mrf.mxu1 }
 0x6ba   :  { %v12041_v3 = vrot.slane %v12029_v5, 6 }
 0x6bc   :  { %v12049_v34 = vsel %vm12043_vm2, %v12028_v42, %v12041_v3 }
 0x6bd   :  { %v11903_v63 = vpop.f32.mrf.mxu3 }
 0x6c0   :  { %v11918_v48 = vpop.f32.mrf.mxu0 }
 0x6c5   :  { %v11905_v11 = vpop.f32.mrf.mxu3 }
 0x6c8   :  { %v11942_v43 = vpop.f32.mrf.mxu2 }
 0x6d0   :  { %v11944_v35 = vpop.f32.mrf.mxu2 }
 0x6d1   :  { %v11877_v7 = vpop.f32.mrf.mxu1 }
 0x6d2   :  { %v11878_v2 = vadd.f32 %v11877_v7, %v11865_v33 }
 0x6d4   :  { %v11891_v18 = vadd.f32 %v11890_v50, %v11878_v2 }
 0x6d6   :  { %v11904_v61 = vadd.f32 %v11903_v63, %v11891_v18 }
 0x6d8   :  { %v11968_v39 = vpop.f32.mrf.mxu0  ;;  %v11917_v8 = vadd.f32 %v11916_v26, %v11904_v61 }
 0x6d9   :  { %v11879_v23 = vpop.f32.mrf.mxu1 }
 0x6dd   :  { %v11955_v31 = vpop.f32.mrf.mxu3 }
 0x6e0   :  { %v11970_v62 = vpop.f32.mrf.mxu0 }
 0x6e5   :  { %v11957_v56 = vpop.f32.mrf.mxu3 }
 0x6e8   :  { %v12020_v55 = vpop.f32.mrf.mxu0  ;;  %v11994_v25 = vpop.f32.mrf.mxu2 }
 0x6f0   :  { %v12022_v44 = vpop.f32.mrf.mxu0  ;;  %v11996_v16 = vpop.f32.mrf.mxu2 }
 0x6f1   :  { %v11929_v29 = vpop.f32.mrf.mxu1 }
 0x6f2   :  { %v11930_v27 = vadd.f32 %v11929_v29, %v11917_v8 }
 0x6f4   :  { %v11943_v32 = vadd.f32 %v11942_v43, %v11930_v27 }
 0x6f6   :  { %v11956_v1 = vadd.f32 %v11955_v31, %v11943_v32 }
 0x6f8   :  { %v11969_v22 = vadd.f32 %v11968_v39, %v11956_v1 }
 0x6f9   :  { %v11931_v12 = vpop.f32.mrf.mxu1 }
 0x6fd   :  { %v12007_v13 = vpop.f32.mrf.mxu3 }
 0x705   :  { %v12009_v19 = vpop.f32.mrf.mxu3 }
 0x711   :  { %v11981_v21 = vpop.f32.mrf.mxu1 }
 0x712   :  { %v11982_v59 = vadd.f32 %v11981_v21, %v11969_v22 }
 0x714   :  { %v11995_v47 = vadd.f32 %v11994_v25, %v11982_v59 }
 0x716   :  { %v12008_v54 = vadd.f32 %v12007_v13, %v11995_v47 }
 0x718   :  { %v12021_v60 = vadd.f32 %v12020_v55, %v12008_v54 }
 0x719   :  { %v11983_v0 = vpop.f32.mrf.mxu1 }
 0x71a   :  { %v12030_v17 = vmax.f32 %v12021_v60, 0.0 }
 0x71c   :  { %v12042_v6 = vrot.slane %v12030_v17, 4 }
 0x71e   :  { %v12050_v9 = vsel %vm12047_vm4, %v12049_v34, %v12042_v6 }
 0x71f   :  { %12058 = vst.msk [vmem:[%s29164_s9 + $0x8] sm:$0x3f] %vm12057_vm8, %v12050_v9 }

</bundles_post_ra>
